<compile_context>
chip_gen: v7x
topology: tpu7x:2x2x1
jax: 0.10.0
libtpu: 0.0.40
codegen_flags: <defaults>
</compile_context>

<pallas_src>
import functools

import numpy as np
import jax
import jax.numpy as jnp
from jax import lax
from jax.experimental import pallas as pl
from jax.experimental.pallas import tpu as pltpu


# ----------------------------------------------------------------------------
# Fused kernel: whole network for one batch element, fully VMEM-resident.
# Activations are kept as 2D slabs (C*N, W): row index = channel*N + node,
# W (time) on the lane axis.
# ----------------------------------------------------------------------------
def _fused_kernel(x_ref, *refs, dilations):
    # refs layout: [G, (E1, b1, E2, b2, D, bd) * n_blocks, LW, LB, out_ref]
    g_ref = refs[0]
    lw_ref = refs[-3]
    lb_ref = refs[-2]
    o_ref = refs[-1]
    blk_refs = refs[1:-3]
    f32 = jnp.float32

    # Gaussian 1x1 conv over input channels (+ ReLU; dropout = identity).
    # x_ref block: (1, F*N, T); G: (N, F*N)  ->  h: (N, T) == (1*N, T)
    h = jnp.dot(g_ref[...], x_ref[0], preferred_element_type=f32)
    h = jnp.maximum(h, 0.0)

    # Temporal blocks (fully unrolled; shapes differ per block).
    for i, d in enumerate(dilations):
        e1, b1, e2, b2, dn, bd = blk_refs[6 * i: 6 * i + 6]
        p = 2 * d                                   # (kernel_size - 1) * dilation
        wb = h.shape[1]

        # W zero-padding in VMEM (H padding + chomp are folded into E / D).
        z = jnp.zeros((h.shape[0], p), f32)
        hp = jnp.concatenate([z, h, z], axis=1)     # (C_in*N, wb + 2p)

        # conv1 -> chomp -> tanh : one matmul, K = 3*C_in*N
        ow1 = wb + 2 * d
        a1 = jnp.concatenate(
            [hp[:, kw * d: kw * d + ow1] for kw in range(3)], axis=0)
        c1 = jnp.tanh(jnp.dot(e1[...], a1, preferred_element_type=f32) + b1[...])

        # conv2 -> chomp -> tanh : one matmul, K = 3*C_out*N
        ow2 = wb + 4 * d
        z2 = jnp.zeros((c1.shape[0], p), f32)
        c1p = jnp.concatenate([z2, c1, z2], axis=1)  # (C_out*N, ow1 + 2p)
        a2 = jnp.concatenate(
            [c1p[:, kw * d: kw * d + ow2] for kw in range(3)], axis=0)
        c2 = jnp.tanh(jnp.dot(e2[...], a2, preferred_element_type=f32) + b2[...])

        # downsample residual conv ((2p+1)x1, padding p): one dense matmul on hp.
        res = jnp.dot(dn[...], hp, preferred_element_type=f32) + bd[...]

        h = jnp.maximum(c2 + res, 0.0)               # (C_out*N, wb + 4d)

    # Final Linear over the time axis: (C_last*N, 136) @ (136, O) + bias.
    y = jnp.dot(h, lw_ref[...], preferred_element_type=f32) + lb_ref[...]
    o_ref[0] = y.astype(o_ref.dtype)


def temporal_net_forward(x, packed):
    """x: (B, N, T, F). Returns (B, N, C_last, O) == torch output after permute(0,2,1,3)."""
    B, N, T, F = x.shape
    # torch: x.permute(0,3,1,2) -> NCHW (B,F,N,T); we flatten (F,N) into rows f*N + n.
    x2 = jnp.transpose(x, (0, 3, 1, 2)).reshape(B, F * N, T).astype(jnp.float32)

    blocks = packed["blocks"]
    dilations = tuple(2 ** i for i in range(len(blocks)))
    c_last = blocks[-1]["E1"].shape[0] // N
    O = packed["LW"].shape[1]

    flat_w = []
    for blk in blocks:
        flat_w.extend([blk["E1"], blk["b1"], blk["E2"], blk["b2"],
                       blk["D"], blk["bd"]])
    weight_args = [packed["G"]] + flat_w + [packed["LW"], packed["LB"]]

    def full_spec(a):
        return pl.BlockSpec(a.shape, lambda bi: (0,) * a.ndim)

    in_specs = [pl.BlockSpec((1, F * N, T), lambda bi: (bi, 0, 0))]
    in_specs += [full_spec(a) for a in weight_args]

    kernel = functools.partial(_fused_kernel, dilations=dilations)

    out = pl.pallas_call(
        kernel,
        out_shape=jax.ShapeDtypeStruct((B, c_last * N, O), jnp.float32),
        grid=(B,),
        in_specs=in_specs,
        out_specs=pl.BlockSpec((1, c_last * N, O), lambda bi: (bi, 0, 0)),
        compiler_params=pltpu.CompilerParams(
            dimension_semantics=("parallel",)),
    )(x2, *weight_args)

    # rows are (channel*N + node) -> (B, C_last, N, O) -> (B, N, C_last, O)
    return jnp.transpose(out.reshape(B, c_last, N, O), (0, 2, 1, 3))


# ----------------------------------------------------------------------------
# One-time weight packing: fold H-taps / chomp / H-padding into dense matrices.
# ----------------------------------------------------------------------------
def pack_params(raw, num_nodes):
    N = num_nodes
    g = np.asarray(raw["g"], np.float32)              # (F,)
    F = g.shape[0]

    G = np.zeros((N, F * N), np.float32)              # gaussian 1x1 conv, C_out=1
    for f in range(F):
        G[np.arange(N), f * N + np.arange(N)] = g[f]

    blocks = []
    for i, blk in enumerate(raw["blocks"]):
        d = 2 ** i
        p = 2 * d

        def conv_E(w):                                 # w: (3, 3, C_out, C_in)
            KH, KW, C_out, C_in = w.shape
            E = np.zeros((C_out * N, KW * C_in * N), np.float32)
            rows = np.arange(C_out) * N
            for kh in range(KH):
                for h in range(N):
                    j = h + kh * d - p                 # unpadded input row (chomped conv)
                    if 0 <= j < N:
                        for kw in range(KW):
                            cols = kw * C_in * N + np.arange(C_in) * N + j
                            E[(rows + h)[:, None], cols[None, :]] = w[kh, kw]
            return E

        wd = np.asarray(blk["wd"], np.float32)         # (2p+1, C_out, C_in)
        KHd, C_out, C_in = wd.shape
        D = np.zeros((C_out * N, C_in * N), np.float32)
        rowsD = np.arange(C_out) * N
        colsD = np.arange(C_in) * N
        for h in range(N):
            for j in range(N):
                kh = j - h + p
                if 0 <= kh < KHd:
                    D[(rowsD + h)[:, None], (colsD + j)[None, :]] = wd[kh]

        def pack_bias(b):
            return jnp.asarray(np.repeat(np.asarray(b, np.float32), N).reshape(-1, 1))

        blocks.append({
            "E1": jnp.asarray(conv_E(np.asarray(blk["w1"], np.float32))),
            "b1": pack_bias(blk["b1"]),
            "E2": jnp.asarray(conv_E(np.asarray(blk["w2"], np.float32))),
            "b2": pack_bias(blk["b2"]),
            "D": jnp.asarray(D),
            "bd": pack_bias(blk["bd"]),
        })

    return {
        "G": jnp.asarray(G),
        "blocks": blocks,
        "LW": jnp.asarray(np.asarray(raw["lin_w"], np.float32).T),   # (136, O)
        "LB": jnp.asarray(np.asarray(raw["lin_b"], np.float32).reshape(1, -1)),
    }


# ----------------------------------------------------------------------------
# Deterministic synthetic parameter init (mirrors the module's shapes).
# ----------------------------------------------------------------------------
def init_params(key, input_channels, output_channels):
    tcn_layer = 5
    T = 12
    channel_size = [T] * (tcn_layer - 1) + [T - 2]          # [12,12,12,12,10]
    linear_num = T + 4 * (2 ** tcn_layer - 1)               # 136
    keys = iter(jax.random.split(key, 64))

    idx = jnp.arange(input_channels, dtype=jnp.float32)
    gauss = jnp.exp(-0.5 * (idx - (input_channels - 1) / 2.0) ** 2)
    gauss = gauss / jnp.sum(gauss)

    raw = {"g": gauss, "blocks": []}
    scale = 0.1
    in_c = 1
    for i, out_c in enumerate(channel_size):
        p = 2 * (2 ** i)
        raw["blocks"].append({
            "w1": scale * jax.random.normal(next(keys), (3, 3, out_c, in_c), jnp.float32),
            "b1": scale * jax.random.normal(next(keys), (out_c,), jnp.float32),
            "w2": scale * jax.random.normal(next(keys), (3, 3, out_c, out_c), jnp.float32),
            "b2": scale * jax.random.normal(next(keys), (out_c,), jnp.float32),
            "wd": scale * jax.random.normal(next(keys), (2 * p + 1, out_c, in_c), jnp.float32),
            "bd": scale * jax.random.normal(next(keys), (out_c,), jnp.float32),
        })
        in_c = out_c
    raw["lin_w"] = scale * jax.random.normal(
        next(keys), (output_channels, linear_num), jnp.float32)
    raw["lin_b"] = scale * jax.random.normal(
        next(keys), (output_channels,), jnp.float32)
    return raw


# ----------------------------------------------------------------------------
# Pure-JAX reference (mirrors the PyTorch forward) for a correctness check.
# ----------------------------------------------------------------------------
def temporal_net_reference(x, raw):
    xc = jnp.transpose(x, (0, 3, 1, 2)).astype(jnp.float32)           # (B,F,N,T)
    out = jnp.einsum("bfnt,f->bnt", xc, raw["g"],
                     precision=lax.Precision.HIGHEST)[:, None]        # (B,1,N,T)
    out = jnp.maximum(out, 0.0)

    for i, blk in enumerate(raw["blocks"]):
        d = 2 ** i
        p = 2 * d
        w1 = jnp.transpose(blk["w1"], (2, 3, 0, 1))                   # OIHW
        w2 = jnp.transpose(blk["w2"], (2, 3, 0, 1))
        wd = jnp.transpose(blk["wd"], (1, 2, 0))[..., None]           # (O,I,2p+1,1)

        def conv(z, w, dil):
            return lax.conv_general_dilated(
                z, w, window_strides=(1, 1), padding=((p, p), (p, p)),
                rhs_dilation=(dil, dil),
                dimension_numbers=("NCHW", "OIHW", "NCHW"),
                precision=lax.Precision.HIGHEST)

        c1 = jnp.tanh(conv(out, w1, d)[:, :, :-p, :]
                      + blk["b1"][None, :, None, None])
        c2 = jnp.tanh(conv(c1, w2, d)[:, :, :-p, :]
                      + blk["b2"][None, :, None, None])
        res = conv(out, wd, 1) + blk["bd"][None, :, None, None]
        out = jnp.maximum(c2 + res, 0.0)

    y = jnp.einsum("bchw,ow->bcho", out, raw["lin_w"],
                   precision=lax.Precision.HIGHEST) + raw["lin_b"]
    return jnp.transpose(y, (0, 2, 1, 3))                             # (B,N,C,O)


if __name__ == "__main__":
    key = jax.random.PRNGKey(0)
    B, N, T, F_in = 2, 8, 12, 3            # T must be 12 (linear_num = 12 + 124 = 136)
    output_channels = 4

    kx, kp = jax.random.split(key)
    x = jax.random.normal(kx, (B, N, T, F_in), jnp.float32)
    raw = init_params(kp, F_in, output_channels)
    packed = pack_params(raw, N)

    fwd = jax.jit(temporal_net_forward)
    out = jax.block_until_ready(fwd(x, packed))

    assert out.shape == (B, N, 10, output_channels), out.shape

    ref = jax.block_until_ready(jax.jit(temporal_net_reference)(x, raw))
    np.testing.assert_allclose(np.asarray(out), np.asarray(ref),
                               rtol=2e-2, atol=2e-3)
    print("KERNEL_OK")
</pallas_src>

<mosaic_0001>
module attributes {stable_mosaic.version = 11 : i64} {
  func.func @_fused_kernel(%arg0: i32, %arg1: memref<1x24x12xf32, #tpu.memory_space<vmem>>, %arg2: memref<8x24xf32, #tpu.memory_space<vmem>>, %arg3: memref<96x24xf32, #tpu.memory_space<vmem>>, %arg4: memref<96x1xf32, #tpu.memory_space<vmem>>, %arg5: memref<96x288xf32, #tpu.memory_space<vmem>>, %arg6: memref<96x1xf32, #tpu.memory_space<vmem>>, %arg7: memref<96x8xf32, #tpu.memory_space<vmem>>, %arg8: memref<96x1xf32, #tpu.memory_space<vmem>>, %arg9: memref<96x288xf32, #tpu.memory_space<vmem>>, %arg10: memref<96x1xf32, #tpu.memory_space<vmem>>, %arg11: memref<96x288xf32, #tpu.memory_space<vmem>>, %arg12: memref<96x1xf32, #tpu.memory_space<vmem>>, %arg13: memref<96x96xf32, #tpu.memory_space<vmem>>, %arg14: memref<96x1xf32, #tpu.memory_space<vmem>>, %arg15: memref<96x288xf32, #tpu.memory_space<vmem>>, %arg16: memref<96x1xf32, #tpu.memory_space<vmem>>, %arg17: memref<96x288xf32, #tpu.memory_space<vmem>>, %arg18: memref<96x1xf32, #tpu.memory_space<vmem>>, %arg19: memref<96x96xf32, #tpu.memory_space<vmem>>, %arg20: memref<96x1xf32, #tpu.memory_space<vmem>>, %arg21: memref<96x288xf32, #tpu.memory_space<vmem>>, %arg22: memref<96x1xf32, #tpu.memory_space<vmem>>, %arg23: memref<96x288xf32, #tpu.memory_space<vmem>>, %arg24: memref<96x1xf32, #tpu.memory_space<vmem>>, %arg25: memref<96x96xf32, #tpu.memory_space<vmem>>, %arg26: memref<96x1xf32, #tpu.memory_space<vmem>>, %arg27: memref<80x288xf32, #tpu.memory_space<vmem>>, %arg28: memref<80x1xf32, #tpu.memory_space<vmem>>, %arg29: memref<80x240xf32, #tpu.memory_space<vmem>>, %arg30: memref<80x1xf32, #tpu.memory_space<vmem>>, %arg31: memref<80x96xf32, #tpu.memory_space<vmem>>, %arg32: memref<80x1xf32, #tpu.memory_space<vmem>>, %arg33: memref<136x4xf32, #tpu.memory_space<vmem>>, %arg34: memref<1x4xf32, #tpu.memory_space<vmem>>, %arg35: memref<1x80x4xf32, #tpu.memory_space<vmem>>) attributes {dimension_semantics = [#tpu.dimension_semantics<parallel>], iteration_bounds = array<i64: 2>, scalar_prefetch = 0 : i64, scratch_operands = 0 : i64, tpu.core_type = #tpu.core_type<tc>, window_params = [{transform_indices = @transform_0, window_bounds = array<i64: 1, 24, 12>}, {pipeline_mode = #tpu.pipeline_mode<synchronous>, transform_indices = @transform_1, window_bounds = array<i64: 8, 24>}, {pipeline_mode = #tpu.pipeline_mode<synchronous>, transform_indices = @transform_2, window_bounds = array<i64: 96, 24>}, {pipeline_mode = #tpu.pipeline_mode<synchronous>, transform_indices = @transform_3, window_bounds = array<i64: 96, 1>}, {pipeline_mode = #tpu.pipeline_mode<synchronous>, transform_indices = @transform_4, window_bounds = array<i64: 96, 288>}, {pipeline_mode = #tpu.pipeline_mode<synchronous>, transform_indices = @transform_5, window_bounds = array<i64: 96, 1>}, {pipeline_mode = #tpu.pipeline_mode<synchronous>, transform_indices = @transform_6, window_bounds = array<i64: 96, 8>}, {pipeline_mode = #tpu.pipeline_mode<synchronous>, transform_indices = @transform_7, window_bounds = array<i64: 96, 1>}, {pipeline_mode = #tpu.pipeline_mode<synchronous>, transform_indices = @transform_8, window_bounds = array<i64: 96, 288>}, {pipeline_mode = #tpu.pipeline_mode<synchronous>, transform_indices = @transform_9, window_bounds = array<i64: 96, 1>}, {pipeline_mode = #tpu.pipeline_mode<synchronous>, transform_indices = @transform_10, window_bounds = array<i64: 96, 288>}, {pipeline_mode = #tpu.pipeline_mode<synchronous>, transform_indices = @transform_11, window_bounds = array<i64: 96, 1>}, {pipeline_mode = #tpu.pipeline_mode<synchronous>, transform_indices = @transform_12, window_bounds = array<i64: 96, 96>}, {pipeline_mode = #tpu.pipeline_mode<synchronous>, transform_indices = @transform_13, window_bounds = array<i64: 96, 1>}, {pipeline_mode = #tpu.pipeline_mode<synchronous>, transform_indices = @transform_14, window_bounds = array<i64: 96, 288>}, {pipeline_mode = #tpu.pipeline_mode<synchronous>, transform_indices = @transform_15, window_bounds = array<i64: 96, 1>}, {pipeline_mode = #tpu.pipeline_mode<synchronous>, transform_indices = @transform_16, window_bounds = array<i64: 96, 288>}, {pipeline_mode = #tpu.pipeline_mode<synchronous>, transform_indices = @transform_17, window_bounds = array<i64: 96, 1>}, {pipeline_mode = #tpu.pipeline_mode<synchronous>, transform_indices = @transform_18, window_bounds = array<i64: 96, 96>}, {pipeline_mode = #tpu.pipeline_mode<synchronous>, transform_indices = @transform_19, window_bounds = array<i64: 96, 1>}, {pipeline_mode = #tpu.pipeline_mode<synchronous>, transform_indices = @transform_20, window_bounds = array<i64: 96, 288>}, {pipeline_mode = #tpu.pipeline_mode<synchronous>, transform_indices = @transform_21, window_bounds = array<i64: 96, 1>}, {pipeline_mode = #tpu.pipeline_mode<synchronous>, transform_indices = @transform_22, window_bounds = array<i64: 96, 288>}, {pipeline_mode = #tpu.pipeline_mode<synchronous>, transform_indices = @transform_23, window_bounds = array<i64: 96, 1>}, {pipeline_mode = #tpu.pipeline_mode<synchronous>, transform_indices = @transform_24, window_bounds = array<i64: 96, 96>}, {pipeline_mode = #tpu.pipeline_mode<synchronous>, transform_indices = @transform_25, window_bounds = array<i64: 96, 1>}, {pipeline_mode = #tpu.pipeline_mode<synchronous>, transform_indices = @transform_26, window_bounds = array<i64: 80, 288>}, {pipeline_mode = #tpu.pipeline_mode<synchronous>, transform_indices = @transform_27, window_bounds = array<i64: 80, 1>}, {pipeline_mode = #tpu.pipeline_mode<synchronous>, transform_indices = @transform_28, window_bounds = array<i64: 80, 240>}, {pipeline_mode = #tpu.pipeline_mode<synchronous>, transform_indices = @transform_29, window_bounds = array<i64: 80, 1>}, {pipeline_mode = #tpu.pipeline_mode<synchronous>, transform_indices = @transform_30, window_bounds = array<i64: 80, 96>}, {pipeline_mode = #tpu.pipeline_mode<synchronous>, transform_indices = @transform_31, window_bounds = array<i64: 80, 1>}, {pipeline_mode = #tpu.pipeline_mode<synchronous>, transform_indices = @transform_32, window_bounds = array<i64: 136, 4>}, {pipeline_mode = #tpu.pipeline_mode<synchronous>, transform_indices = @transform_33, window_bounds = array<i64: 1, 4>}, {transform_indices = @transform_34, window_bounds = array<i64: 1, 80, 4>}]} {
    %c0 = arith.constant 0 : index
    %c0_0 = arith.constant 0 : index
    %0 = vector.load %arg2[%c0, %c0_0] : memref<8x24xf32, #tpu.memory_space<vmem>>, vector<8x24xf32>
    %c0_1 = arith.constant 0 : index
    %c0_2 = arith.constant 0 : index
    %c0_3 = arith.constant 0 : index
    %1 = vector.load %arg1[%c0_1, %c0_2, %c0_3] : memref<1x24x12xf32, #tpu.memory_space<vmem>>, vector<1x24x12xf32>
    %2 = vector.shape_cast %1 : vector<1x24x12xf32> to vector<24x12xf32>
    %cst = arith.constant dense<0.000000e+00> : vector<8x12xf32>
    %3 = tpu.matmul %0, %2, %cst {dimension_numbers = #tpu.dot_dimension_numbers<[1], [0], [0], [1], [0, 0, 1, 1], [], []>} : vector<8x24xf32>, vector<24x12xf32>, vector<8x12xf32> -> vector<8x12xf32>
    %cst_4 = arith.constant 0.000000e+00 : f32
    %4 = vector.broadcast %cst_4 : f32 to vector<8x12xf32>
    %5 = arith.maximumf %3, %4 : vector<8x12xf32>
    %cst_5 = arith.constant 0.000000e+00 : f32
    %6 = vector.broadcast %cst_5 : f32 to vector<8x2xf32>
    %7 = tpu.concatenate %6, %5, %6 in 1 : vector<8x2xf32>, vector<8x12xf32>, vector<8x2xf32> -> vector<8x16xf32>
    %8 = vector.extract_strided_slice %7 {offsets = [0, 0], sizes = [8, 14], strides = [1, 1]} : vector<8x16xf32> to vector<8x14xf32>
    %9 = vector.extract_strided_slice %7 {offsets = [0, 1], sizes = [8, 14], strides = [1, 1]} : vector<8x16xf32> to vector<8x14xf32>
    %10 = vector.extract_strided_slice %7 {offsets = [0, 2], sizes = [8, 14], strides = [1, 1]} : vector<8x16xf32> to vector<8x14xf32>
    %11 = tpu.concatenate %8, %9, %10 in 0 : vector<8x14xf32>, vector<8x14xf32>, vector<8x14xf32> -> vector<24x14xf32>
    %c0_6 = arith.constant 0 : index
    %c0_7 = arith.constant 0 : index
    %12 = vector.load %arg3[%c0_6, %c0_7] : memref<96x24xf32, #tpu.memory_space<vmem>>, vector<96x24xf32>
    %cst_8 = arith.constant dense<0.000000e+00> : vector<96x14xf32>
    %13 = tpu.matmul %12, %11, %cst_8 {dimension_numbers = #tpu.dot_dimension_numbers<[1], [0], [0], [1], [0, 0, 1, 1], [], []>} : vector<96x24xf32>, vector<24x14xf32>, vector<96x14xf32> -> vector<96x14xf32>
    %c0_9 = arith.constant 0 : index
    %c0_10 = arith.constant 0 : index
    %14 = vector.load %arg4[%c0_9, %c0_10] : memref<96x1xf32, #tpu.memory_space<vmem>>, vector<96x1xf32>
    %15 = vector.broadcast %14 : vector<96x1xf32> to vector<96x14xf32>
    %16 = arith.addf %13, %15 : vector<96x14xf32>
    %17 = math.tanh %16 : vector<96x14xf32>
    %cst_11 = arith.constant 0.000000e+00 : f32
    %18 = vector.broadcast %cst_11 : f32 to vector<96x2xf32>
    %19 = tpu.concatenate %18, %17, %18 in 1 : vector<96x2xf32>, vector<96x14xf32>, vector<96x2xf32> -> vector<96x18xf32>
    %20 = vector.extract_strided_slice %19 {offsets = [0, 0], sizes = [96, 16], strides = [1, 1]} : vector<96x18xf32> to vector<96x16xf32>
    %21 = vector.extract_strided_slice %19 {offsets = [0, 1], sizes = [96, 16], strides = [1, 1]} : vector<96x18xf32> to vector<96x16xf32>
    %22 = vector.extract_strided_slice %19 {offsets = [0, 2], sizes = [96, 16], strides = [1, 1]} : vector<96x18xf32> to vector<96x16xf32>
    %23 = tpu.concatenate %20, %21, %22 in 0 : vector<96x16xf32>, vector<96x16xf32>, vector<96x16xf32> -> vector<288x16xf32>
    %c0_12 = arith.constant 0 : index
    %c0_13 = arith.constant 0 : index
    %24 = vector.load %arg5[%c0_12, %c0_13] : memref<96x288xf32, #tpu.memory_space<vmem>>, vector<96x288xf32>
    %cst_14 = arith.constant dense<0.000000e+00> : vector<96x16xf32>
    %25 = tpu.matmul %24, %23, %cst_14 {dimension_numbers = #tpu.dot_dimension_numbers<[1], [0], [0], [1], [0, 0, 1, 1], [], []>} : vector<96x288xf32>, vector<288x16xf32>, vector<96x16xf32> -> vector<96x16xf32>
    %c0_15 = arith.constant 0 : index
    %c0_16 = arith.constant 0 : index
    %26 = vector.load %arg6[%c0_15, %c0_16] : memref<96x1xf32, #tpu.memory_space<vmem>>, vector<96x1xf32>
    %27 = vector.broadcast %26 : vector<96x1xf32> to vector<96x16xf32>
    %28 = arith.addf %25, %27 : vector<96x16xf32>
    %29 = math.tanh %28 : vector<96x16xf32>
    %c0_17 = arith.constant 0 : index
    %c0_18 = arith.constant 0 : index
    %30 = vector.load %arg7[%c0_17, %c0_18] : memref<96x8xf32, #tpu.memory_space<vmem>>, vector<96x8xf32>
    %cst_19 = arith.constant dense<0.000000e+00> : vector<96x16xf32>
    %31 = tpu.matmul %30, %7, %cst_19 {dimension_numbers = #tpu.dot_dimension_numbers<[1], [0], [0], [1], [0, 0, 1, 1], [], []>} : vector<96x8xf32>, vector<8x16xf32>, vector<96x16xf32> -> vector<96x16xf32>
    %c0_20 = arith.constant 0 : index
    %c0_21 = arith.constant 0 : index
    %32 = vector.load %arg8[%c0_20, %c0_21] : memref<96x1xf32, #tpu.memory_space<vmem>>, vector<96x1xf32>
    %33 = vector.broadcast %32 : vector<96x1xf32> to vector<96x16xf32>
    %34 = arith.addf %31, %33 : vector<96x16xf32>
    %35 = arith.addf %29, %34 : vector<96x16xf32>
    %cst_22 = arith.constant 0.000000e+00 : f32
    %36 = vector.broadcast %cst_22 : f32 to vector<96x16xf32>
    %37 = arith.maximumf %35, %36 : vector<96x16xf32>
    %cst_23 = arith.constant 0.000000e+00 : f32
    %38 = vector.broadcast %cst_23 : f32 to vector<96x4xf32>
    %39 = tpu.concatenate %38, %37, %38 in 1 : vector<96x4xf32>, vector<96x16xf32>, vector<96x4xf32> -> vector<96x24xf32>
    %40 = vector.extract_strided_slice %39 {offsets = [0, 0], sizes = [96, 20], strides = [1, 1]} : vector<96x24xf32> to vector<96x20xf32>
    %41 = vector.extract_strided_slice %39 {offsets = [0, 2], sizes = [96, 20], strides = [1, 1]} : vector<96x24xf32> to vector<96x20xf32>
    %42 = vector.extract_strided_slice %39 {offsets = [0, 4], sizes = [96, 20], strides = [1, 1]} : vector<96x24xf32> to vector<96x20xf32>
    %43 = tpu.concatenate %40, %41, %42 in 0 : vector<96x20xf32>, vector<96x20xf32>, vector<96x20xf32> -> vector<288x20xf32>
    %c0_24 = arith.constant 0 : index
    %c0_25 = arith.constant 0 : index
    %44 = vector.load %arg9[%c0_24, %c0_25] : memref<96x288xf32, #tpu.memory_space<vmem>>, vector<96x288xf32>
    %cst_26 = arith.constant dense<0.000000e+00> : vector<96x20xf32>
    %45 = tpu.matmul %44, %43, %cst_26 {dimension_numbers = #tpu.dot_dimension_numbers<[1], [0], [0], [1], [0, 0, 1, 1], [], []>} : vector<96x288xf32>, vector<288x20xf32>, vector<96x20xf32> -> vector<96x20xf32>
    %c0_27 = arith.constant 0 : index
    %c0_28 = arith.constant 0 : index
    %46 = vector.load %arg10[%c0_27, %c0_28] : memref<96x1xf32, #tpu.memory_space<vmem>>, vector<96x1xf32>
    %47 = vector.broadcast %46 : vector<96x1xf32> to vector<96x20xf32>
    %48 = arith.addf %45, %47 : vector<96x20xf32>
    %49 = math.tanh %48 : vector<96x20xf32>
    %cst_29 = arith.constant 0.000000e+00 : f32
    %50 = vector.broadcast %cst_29 : f32 to vector<96x4xf32>
    %51 = tpu.concatenate %50, %49, %50 in 1 : vector<96x4xf32>, vector<96x20xf32>, vector<96x4xf32> -> vector<96x28xf32>
    %52 = vector.extract_strided_slice %51 {offsets = [0, 0], sizes = [96, 24], strides = [1, 1]} : vector<96x28xf32> to vector<96x24xf32>
    %53 = vector.extract_strided_slice %51 {offsets = [0, 2], sizes = [96, 24], strides = [1, 1]} : vector<96x28xf32> to vector<96x24xf32>
    %54 = vector.extract_strided_slice %51 {offsets = [0, 4], sizes = [96, 24], strides = [1, 1]} : vector<96x28xf32> to vector<96x24xf32>
    %55 = tpu.concatenate %52, %53, %54 in 0 : vector<96x24xf32>, vector<96x24xf32>, vector<96x24xf32> -> vector<288x24xf32>
    %c0_30 = arith.constant 0 : index
    %c0_31 = arith.constant 0 : index
    %56 = vector.load %arg11[%c0_30, %c0_31] : memref<96x288xf32, #tpu.memory_space<vmem>>, vector<96x288xf32>
    %cst_32 = arith.constant dense<0.000000e+00> : vector<96x24xf32>
    %57 = tpu.matmul %56, %55, %cst_32 {dimension_numbers = #tpu.dot_dimension_numbers<[1], [0], [0], [1], [0, 0, 1, 1], [], []>} : vector<96x288xf32>, vector<288x24xf32>, vector<96x24xf32> -> vector<96x24xf32>
    %c0_33 = arith.constant 0 : index
    %c0_34 = arith.constant 0 : index
    %58 = vector.load %arg12[%c0_33, %c0_34] : memref<96x1xf32, #tpu.memory_space<vmem>>, vector<96x1xf32>
    %59 = vector.broadcast %58 : vector<96x1xf32> to vector<96x24xf32>
    %60 = arith.addf %57, %59 : vector<96x24xf32>
    %61 = math.tanh %60 : vector<96x24xf32>
    %c0_35 = arith.constant 0 : index
    %c0_36 = arith.constant 0 : index
    %62 = vector.load %arg13[%c0_35, %c0_36] : memref<96x96xf32, #tpu.memory_space<vmem>>, vector<96x96xf32>
    %cst_37 = arith.constant dense<0.000000e+00> : vector<96x24xf32>
    %63 = tpu.matmul %62, %39, %cst_37 {dimension_numbers = #tpu.dot_dimension_numbers<[1], [0], [0], [1], [0, 0, 1, 1], [], []>} : vector<96x96xf32>, vector<96x24xf32>, vector<96x24xf32> -> vector<96x24xf32>
    %c0_38 = arith.constant 0 : index
    %c0_39 = arith.constant 0 : index
    %64 = vector.load %arg14[%c0_38, %c0_39] : memref<96x1xf32, #tpu.memory_space<vmem>>, vector<96x1xf32>
    %65 = vector.broadcast %64 : vector<96x1xf32> to vector<96x24xf32>
    %66 = arith.addf %63, %65 : vector<96x24xf32>
    %67 = arith.addf %61, %66 : vector<96x24xf32>
    %cst_40 = arith.constant 0.000000e+00 : f32
    %68 = vector.broadcast %cst_40 : f32 to vector<96x24xf32>
    %69 = arith.maximumf %67, %68 : vector<96x24xf32>
    %cst_41 = arith.constant 0.000000e+00 : f32
    %70 = vector.broadcast %cst_41 : f32 to vector<96x8xf32>
    %71 = tpu.concatenate %70, %69, %70 in 1 : vector<96x8xf32>, vector<96x24xf32>, vector<96x8xf32> -> vector<96x40xf32>
    %72 = vector.extract_strided_slice %71 {offsets = [0, 0], sizes = [96, 32], strides = [1, 1]} : vector<96x40xf32> to vector<96x32xf32>
    %73 = vector.extract_strided_slice %71 {offsets = [0, 4], sizes = [96, 32], strides = [1, 1]} : vector<96x40xf32> to vector<96x32xf32>
    %74 = vector.extract_strided_slice %71 {offsets = [0, 8], sizes = [96, 32], strides = [1, 1]} : vector<96x40xf32> to vector<96x32xf32>
    %75 = tpu.concatenate %72, %73, %74 in 0 : vector<96x32xf32>, vector<96x32xf32>, vector<96x32xf32> -> vector<288x32xf32>
    %c0_42 = arith.constant 0 : index
    %c0_43 = arith.constant 0 : index
    %76 = vector.load %arg15[%c0_42, %c0_43] : memref<96x288xf32, #tpu.memory_space<vmem>>, vector<96x288xf32>
    %cst_44 = arith.constant dense<0.000000e+00> : vector<96x32xf32>
    %77 = tpu.matmul %76, %75, %cst_44 {dimension_numbers = #tpu.dot_dimension_numbers<[1], [0], [0], [1], [0, 0, 1, 1], [], []>} : vector<96x288xf32>, vector<288x32xf32>, vector<96x32xf32> -> vector<96x32xf32>
    %c0_45 = arith.constant 0 : index
    %c0_46 = arith.constant 0 : index
    %78 = vector.load %arg16[%c0_45, %c0_46] : memref<96x1xf32, #tpu.memory_space<vmem>>, vector<96x1xf32>
    %79 = vector.broadcast %78 : vector<96x1xf32> to vector<96x32xf32>
    %80 = arith.addf %77, %79 : vector<96x32xf32>
    %81 = math.tanh %80 : vector<96x32xf32>
    %cst_47 = arith.constant 0.000000e+00 : f32
    %82 = vector.broadcast %cst_47 : f32 to vector<96x8xf32>
    %83 = tpu.concatenate %82, %81, %82 in 1 : vector<96x8xf32>, vector<96x32xf32>, vector<96x8xf32> -> vector<96x48xf32>
    %84 = vector.extract_strided_slice %83 {offsets = [0, 0], sizes = [96, 40], strides = [1, 1]} : vector<96x48xf32> to vector<96x40xf32>
    %85 = vector.extract_strided_slice %83 {offsets = [0, 4], sizes = [96, 40], strides = [1, 1]} : vector<96x48xf32> to vector<96x40xf32>
    %86 = vector.extract_strided_slice %83 {offsets = [0, 8], sizes = [96, 40], strides = [1, 1]} : vector<96x48xf32> to vector<96x40xf32>
    %87 = tpu.concatenate %84, %85, %86 in 0 : vector<96x40xf32>, vector<96x40xf32>, vector<96x40xf32> -> vector<288x40xf32>
    %c0_48 = arith.constant 0 : index
    %c0_49 = arith.constant 0 : index
    %88 = vector.load %arg17[%c0_48, %c0_49] : memref<96x288xf32, #tpu.memory_space<vmem>>, vector<96x288xf32>
    %cst_50 = arith.constant dense<0.000000e+00> : vector<96x40xf32>
    %89 = tpu.matmul %88, %87, %cst_50 {dimension_numbers = #tpu.dot_dimension_numbers<[1], [0], [0], [1], [0, 0, 1, 1], [], []>} : vector<96x288xf32>, vector<288x40xf32>, vector<96x40xf32> -> vector<96x40xf32>
    %c0_51 = arith.constant 0 : index
    %c0_52 = arith.constant 0 : index
    %90 = vector.load %arg18[%c0_51, %c0_52] : memref<96x1xf32, #tpu.memory_space<vmem>>, vector<96x1xf32>
    %91 = vector.broadcast %90 : vector<96x1xf32> to vector<96x40xf32>
    %92 = arith.addf %89, %91 : vector<96x40xf32>
    %93 = math.tanh %92 : vector<96x40xf32>
    %c0_53 = arith.constant 0 : index
    %c0_54 = arith.constant 0 : index
    %94 = vector.load %arg19[%c0_53, %c0_54] : memref<96x96xf32, #tpu.memory_space<vmem>>, vector<96x96xf32>
    %cst_55 = arith.constant dense<0.000000e+00> : vector<96x40xf32>
    %95 = tpu.matmul %94, %71, %cst_55 {dimension_numbers = #tpu.dot_dimension_numbers<[1], [0], [0], [1], [0, 0, 1, 1], [], []>} : vector<96x96xf32>, vector<96x40xf32>, vector<96x40xf32> -> vector<96x40xf32>
    %c0_56 = arith.constant 0 : index
    %c0_57 = arith.constant 0 : index
    %96 = vector.load %arg20[%c0_56, %c0_57] : memref<96x1xf32, #tpu.memory_space<vmem>>, vector<96x1xf32>
    %97 = vector.broadcast %96 : vector<96x1xf32> to vector<96x40xf32>
    %98 = arith.addf %95, %97 : vector<96x40xf32>
    %99 = arith.addf %93, %98 : vector<96x40xf32>
    %cst_58 = arith.constant 0.000000e+00 : f32
    %100 = vector.broadcast %cst_58 : f32 to vector<96x40xf32>
    %101 = arith.maximumf %99, %100 : vector<96x40xf32>
    %cst_59 = arith.constant 0.000000e+00 : f32
    %102 = vector.broadcast %cst_59 : f32 to vector<96x16xf32>
    %103 = tpu.concatenate %102, %101, %102 in 1 : vector<96x16xf32>, vector<96x40xf32>, vector<96x16xf32> -> vector<96x72xf32>
    %104 = vector.extract_strided_slice %103 {offsets = [0, 0], sizes = [96, 56], strides = [1, 1]} : vector<96x72xf32> to vector<96x56xf32>
    %105 = vector.extract_strided_slice %103 {offsets = [0, 8], sizes = [96, 56], strides = [1, 1]} : vector<96x72xf32> to vector<96x56xf32>
    %106 = vector.extract_strided_slice %103 {offsets = [0, 16], sizes = [96, 56], strides = [1, 1]} : vector<96x72xf32> to vector<96x56xf32>
    %107 = tpu.concatenate %104, %105, %106 in 0 : vector<96x56xf32>, vector<96x56xf32>, vector<96x56xf32> -> vector<288x56xf32>
    %c0_60 = arith.constant 0 : index
    %c0_61 = arith.constant 0 : index
    %108 = vector.load %arg21[%c0_60, %c0_61] : memref<96x288xf32, #tpu.memory_space<vmem>>, vector<96x288xf32>
    %cst_62 = arith.constant dense<0.000000e+00> : vector<96x56xf32>
    %109 = tpu.matmul %108, %107, %cst_62 {dimension_numbers = #tpu.dot_dimension_numbers<[1], [0], [0], [1], [0, 0, 1, 1], [], []>} : vector<96x288xf32>, vector<288x56xf32>, vector<96x56xf32> -> vector<96x56xf32>
    %c0_63 = arith.constant 0 : index
    %c0_64 = arith.constant 0 : index
    %110 = vector.load %arg22[%c0_63, %c0_64] : memref<96x1xf32, #tpu.memory_space<vmem>>, vector<96x1xf32>
    %111 = vector.broadcast %110 : vector<96x1xf32> to vector<96x56xf32>
    %112 = arith.addf %109, %111 : vector<96x56xf32>
    %113 = math.tanh %112 : vector<96x56xf32>
    %cst_65 = arith.constant 0.000000e+00 : f32
    %114 = vector.broadcast %cst_65 : f32 to vector<96x16xf32>
    %115 = tpu.concatenate %114, %113, %114 in 1 : vector<96x16xf32>, vector<96x56xf32>, vector<96x16xf32> -> vector<96x88xf32>
    %116 = vector.extract_strided_slice %115 {offsets = [0, 0], sizes = [96, 72], strides = [1, 1]} : vector<96x88xf32> to vector<96x72xf32>
    %117 = vector.extract_strided_slice %115 {offsets = [0, 8], sizes = [96, 72], strides = [1, 1]} : vector<96x88xf32> to vector<96x72xf32>
    %118 = vector.extract_strided_slice %115 {offsets = [0, 16], sizes = [96, 72], strides = [1, 1]} : vector<96x88xf32> to vector<96x72xf32>
    %119 = tpu.concatenate %116, %117, %118 in 0 : vector<96x72xf32>, vector<96x72xf32>, vector<96x72xf32> -> vector<288x72xf32>
    %c0_66 = arith.constant 0 : index
    %c0_67 = arith.constant 0 : index
    %120 = vector.load %arg23[%c0_66, %c0_67] : memref<96x288xf32, #tpu.memory_space<vmem>>, vector<96x288xf32>
    %cst_68 = arith.constant dense<0.000000e+00> : vector<96x72xf32>
    %121 = tpu.matmul %120, %119, %cst_68 {dimension_numbers = #tpu.dot_dimension_numbers<[1], [0], [0], [1], [0, 0, 1, 1], [], []>} : vector<96x288xf32>, vector<288x72xf32>, vector<96x72xf32> -> vector<96x72xf32>
    %c0_69 = arith.constant 0 : index
    %c0_70 = arith.constant 0 : index
    %122 = vector.load %arg24[%c0_69, %c0_70] : memref<96x1xf32, #tpu.memory_space<vmem>>, vector<96x1xf32>
    %123 = vector.broadcast %122 : vector<96x1xf32> to vector<96x72xf32>
    %124 = arith.addf %121, %123 : vector<96x72xf32>
    %125 = math.tanh %124 : vector<96x72xf32>
    %c0_71 = arith.constant 0 : index
    %c0_72 = arith.constant 0 : index
    %126 = vector.load %arg25[%c0_71, %c0_72] : memref<96x96xf32, #tpu.memory_space<vmem>>, vector<96x96xf32>
    %cst_73 = arith.constant dense<0.000000e+00> : vector<96x72xf32>
    %127 = tpu.matmul %126, %103, %cst_73 {dimension_numbers = #tpu.dot_dimension_numbers<[1], [0], [0], [1], [0, 0, 1, 1], [], []>} : vector<96x96xf32>, vector<96x72xf32>, vector<96x72xf32> -> vector<96x72xf32>
    %c0_74 = arith.constant 0 : index
    %c0_75 = arith.constant 0 : index
    %128 = vector.load %arg26[%c0_74, %c0_75] : memref<96x1xf32, #tpu.memory_space<vmem>>, vector<96x1xf32>
    %129 = vector.broadcast %128 : vector<96x1xf32> to vector<96x72xf32>
    %130 = arith.addf %127, %129 : vector<96x72xf32>
    %131 = arith.addf %125, %130 : vector<96x72xf32>
    %cst_76 = arith.constant 0.000000e+00 : f32
    %132 = vector.broadcast %cst_76 : f32 to vector<96x72xf32>
    %133 = arith.maximumf %131, %132 : vector<96x72xf32>
    %cst_77 = arith.constant 0.000000e+00 : f32
    %134 = vector.broadcast %cst_77 : f32 to vector<96x32xf32>
    %135 = tpu.concatenate %134, %133, %134 in 1 : vector<96x32xf32>, vector<96x72xf32>, vector<96x32xf32> -> vector<96x136xf32>
    %136 = vector.extract_strided_slice %135 {offsets = [0, 0], sizes = [96, 104], strides = [1, 1]} : vector<96x136xf32> to vector<96x104xf32>
    %137 = vector.extract_strided_slice %135 {offsets = [0, 16], sizes = [96, 104], strides = [1, 1]} : vector<96x136xf32> to vector<96x104xf32>
    %138 = vector.extract_strided_slice %135 {offsets = [0, 32], sizes = [96, 104], strides = [1, 1]} : vector<96x136xf32> to vector<96x104xf32>
    %139 = tpu.concatenate %136, %137, %138 in 0 : vector<96x104xf32>, vector<96x104xf32>, vector<96x104xf32> -> vector<288x104xf32>
    %c0_78 = arith.constant 0 : index
    %c0_79 = arith.constant 0 : index
    %140 = vector.load %arg27[%c0_78, %c0_79] : memref<80x288xf32, #tpu.memory_space<vmem>>, vector<80x288xf32>
    %cst_80 = arith.constant dense<0.000000e+00> : vector<80x104xf32>
    %141 = tpu.matmul %140, %139, %cst_80 {dimension_numbers = #tpu.dot_dimension_numbers<[1], [0], [0], [1], [0, 0, 1, 1], [], []>} : vector<80x288xf32>, vector<288x104xf32>, vector<80x104xf32> -> vector<80x104xf32>
    %c0_81 = arith.constant 0 : index
    %c0_82 = arith.constant 0 : index
    %142 = vector.load %arg28[%c0_81, %c0_82] : memref<80x1xf32, #tpu.memory_space<vmem>>, vector<80x1xf32>
    %143 = vector.broadcast %142 : vector<80x1xf32> to vector<80x104xf32>
    %144 = arith.addf %141, %143 : vector<80x104xf32>
    %145 = math.tanh %144 : vector<80x104xf32>
    %cst_83 = arith.constant 0.000000e+00 : f32
    %146 = vector.broadcast %cst_83 : f32 to vector<80x32xf32>
    %147 = tpu.concatenate %146, %145, %146 in 1 : vector<80x32xf32>, vector<80x104xf32>, vector<80x32xf32> -> vector<80x168xf32>
    %148 = vector.extract_strided_slice %147 {offsets = [0, 0], sizes = [80, 136], strides = [1, 1]} : vector<80x168xf32> to vector<80x136xf32>
    %149 = vector.extract_strided_slice %147 {offsets = [0, 16], sizes = [80, 136], strides = [1, 1]} : vector<80x168xf32> to vector<80x136xf32>
    %150 = vector.extract_strided_slice %147 {offsets = [0, 32], sizes = [80, 136], strides = [1, 1]} : vector<80x168xf32> to vector<80x136xf32>
    %151 = tpu.concatenate %148, %149, %150 in 0 : vector<80x136xf32>, vector<80x136xf32>, vector<80x136xf32> -> vector<240x136xf32>
    %c0_84 = arith.constant 0 : index
    %c0_85 = arith.constant 0 : index
    %152 = vector.load %arg29[%c0_84, %c0_85] : memref<80x240xf32, #tpu.memory_space<vmem>>, vector<80x240xf32>
    %cst_86 = arith.constant dense<0.000000e+00> : vector<80x136xf32>
    %153 = tpu.matmul %152, %151, %cst_86 {dimension_numbers = #tpu.dot_dimension_numbers<[1], [0], [0], [1], [0, 0, 1, 1], [], []>} : vector<80x240xf32>, vector<240x136xf32>, vector<80x136xf32> -> vector<80x136xf32>
    %c0_87 = arith.constant 0 : index
    %c0_88 = arith.constant 0 : index
    %154 = vector.load %arg30[%c0_87, %c0_88] : memref<80x1xf32, #tpu.memory_space<vmem>>, vector<80x1xf32>
    %155 = vector.broadcast %154 : vector<80x1xf32> to vector<80x136xf32>
    %156 = arith.addf %153, %155 : vector<80x136xf32>
    %157 = math.tanh %156 : vector<80x136xf32>
    %c0_89 = arith.constant 0 : index
    %c0_90 = arith.constant 0 : index
    %158 = vector.load %arg31[%c0_89, %c0_90] : memref<80x96xf32, #tpu.memory_space<vmem>>, vector<80x96xf32>
    %cst_91 = arith.constant dense<0.000000e+00> : vector<80x136xf32>
    %159 = tpu.matmul %158, %135, %cst_91 {dimension_numbers = #tpu.dot_dimension_numbers<[1], [0], [0], [1], [0, 0, 1, 1], [], []>} : vector<80x96xf32>, vector<96x136xf32>, vector<80x136xf32> -> vector<80x136xf32>
    %c0_92 = arith.constant 0 : index
    %c0_93 = arith.constant 0 : index
    %160 = vector.load %arg32[%c0_92, %c0_93] : memref<80x1xf32, #tpu.memory_space<vmem>>, vector<80x1xf32>
    %161 = vector.broadcast %160 : vector<80x1xf32> to vector<80x136xf32>
    %162 = arith.addf %159, %161 : vector<80x136xf32>
    %163 = arith.addf %157, %162 : vector<80x136xf32>
    %cst_94 = arith.constant 0.000000e+00 : f32
    %164 = vector.broadcast %cst_94 : f32 to vector<80x136xf32>
    %165 = arith.maximumf %163, %164 : vector<80x136xf32>
    %c0_95 = arith.constant 0 : index
    %c0_96 = arith.constant 0 : index
    %166 = vector.load %arg33[%c0_95, %c0_96] : memref<136x4xf32, #tpu.memory_space<vmem>>, vector<136x4xf32>
    %cst_97 = arith.constant dense<0.000000e+00> : vector<80x4xf32>
    %167 = tpu.matmul %165, %166, %cst_97 {dimension_numbers = #tpu.dot_dimension_numbers<[1], [0], [0], [1], [0, 0, 1, 1], [], []>} : vector<80x136xf32>, vector<136x4xf32>, vector<80x4xf32> -> vector<80x4xf32>
    %c0_98 = arith.constant 0 : index
    %c0_99 = arith.constant 0 : index
    %168 = vector.load %arg34[%c0_98, %c0_99] : memref<1x4xf32, #tpu.memory_space<vmem>>, vector<1x4xf32>
    %169 = vector.broadcast %168 : vector<1x4xf32> to vector<80x4xf32>
    %170 = arith.addf %167, %169 : vector<80x4xf32>
    %c0_100 = arith.constant 0 : index
    %c0_101 = arith.constant 0 : index
    %c0_102 = arith.constant 0 : index
    %171 = vector.load %arg35[%c0_100, %c0_101, %c0_102] : memref<1x80x4xf32, #tpu.memory_space<vmem>>, vector<1x80x4xf32>
    %172 = vector.shape_cast %171 : vector<1x80x4xf32> to vector<80x4xf32>
    %173 = vector.shape_cast %170 : vector<80x4xf32> to vector<1x80x4xf32>
    tpu.vector_store %arg35[%c0_100, %c0_101, %c0_102], %173 {strides = array<i32>} : memref<1x80x4xf32, #tpu.memory_space<vmem>>, vector<1x80x4xf32>,
    return
  }
  func.func @transform_0(%arg0: i32) -> (i32, i32, i32) {
    %c0_i32 = arith.constant 0 : i32
    %c0_i32_0 = arith.constant 0 : i32
    %c0_i32_1 = arith.constant 0 : i32
    return %arg0, %c0_i32, %c0_i32_0 : i32, i32, i32
  }
  func.func @transform_1(%arg0: i32) -> (i32, i32) {
    %c0_i32 = arith.constant 0 : i32
    %c0_i32_0 = arith.constant 0 : i32
    %c0_i32_1 = arith.constant 0 : i32
    return %c0_i32, %c0_i32_0 : i32, i32
  }
  func.func @transform_2(%arg0: i32) -> (i32, i32) {
    %c0_i32 = arith.constant 0 : i32
    %c0_i32_0 = arith.constant 0 : i32
    %c0_i32_1 = arith.constant 0 : i32
    return %c0_i32, %c0_i32_0 : i32, i32
  }
  func.func @transform_3(%arg0: i32) -> (i32, i32) {
    %c0_i32 = arith.constant 0 : i32
    %c0_i32_0 = arith.constant 0 : i32
    %c0_i32_1 = arith.constant 0 : i32
    return %c0_i32, %c0_i32_0 : i32, i32
  }
  func.func @transform_4(%arg0: i32) -> (i32, i32) {
    %c0_i32 = arith.constant 0 : i32
    %c0_i32_0 = arith.constant 0 : i32
    %c0_i32_1 = arith.constant 0 : i32
    return %c0_i32, %c0_i32_0 : i32, i32
  }
  func.func @transform_5(%arg0: i32) -> (i32, i32) {
    %c0_i32 = arith.constant 0 : i32
    %c0_i32_0 = arith.constant 0 : i32
    %c0_i32_1 = arith.constant 0 : i32
    return %c0_i32, %c0_i32_0 : i32, i32
  }
  func.func @transform_6(%arg0: i32) -> (i32, i32) {
    %c0_i32 = arith.constant 0 : i32
    %c0_i32_0 = arith.constant 0 : i32
    %c0_i32_1 = arith.constant 0 : i32
    return %c0_i32, %c0_i32_0 : i32, i32
  }
  func.func @transform_7(%arg0: i32) -> (i32, i32) {
    %c0_i32 = arith.constant 0 : i32
    %c0_i32_0 = arith.constant 0 : i32
    %c0_i32_1 = arith.constant 0 : i32
    return %c0_i32, %c0_i32_0 : i32, i32
  }
  func.func @transform_8(%arg0: i32) -> (i32, i32) {
    %c0_i32 = arith.constant 0 : i32
    %c0_i32_0 = arith.constant 0 : i32
    %c0_i32_1 = arith.constant 0 : i32
    return %c0_i32, %c0_i32_0 : i32, i32
  }
  func.func @transform_9(%arg0: i32) -> (i32, i32) {
    %c0_i32 = arith.constant 0 : i32
    %c0_i32_0 = arith.constant 0 : i32
    %c0_i32_1 = arith.constant 0 : i32
    return %c0_i32, %c0_i32_0 : i32, i32
  }
  func.func @transform_10(%arg0: i32) -> (i32, i32) {
    %c0_i32 = arith.constant 0 : i32
    %c0_i32_0 = arith.constant 0 : i32
    %c0_i32_1 = arith.constant 0 : i32
    return %c0_i32, %c0_i32_0 : i32, i32
  }
  func.func @transform_11(%arg0: i32) -> (i32, i32) {
    %c0_i32 = arith.constant 0 : i32
    %c0_i32_0 = arith.constant 0 : i32
    %c0_i32_1 = arith.constant 0 : i32
    return %c0_i32, %c0_i32_0 : i32, i32
  }
  func.func @transform_12(%arg0: i32) -> (i32, i32) {
    %c0_i32 = arith.constant 0 : i32
    %c0_i32_0 = arith.constant 0 : i32
    %c0_i32_1 = arith.constant 0 : i32
    return %c0_i32, %c0_i32_0 : i32, i32
  }
  func.func @transform_13(%arg0: i32) -> (i32, i32) {
    %c0_i32 = arith.constant 0 : i32
    %c0_i32_0 = arith.constant 0 : i32
    %c0_i32_1 = arith.constant 0 : i32
    return %c0_i32, %c0_i32_0 : i32, i32
  }
  func.func @transform_14(%arg0: i32) -> (i32, i32) {
    %c0_i32 = arith.constant 0 : i32
    %c0_i32_0 = arith.constant 0 : i32
    %c0_i32_1 = arith.constant 0 : i32
    return %c0_i32, %c0_i32_0 : i32, i32
  }
  func.func @transform_15(%arg0: i32) -> (i32, i32) {
    %c0_i32 = arith.constant 0 : i32
    %c0_i32_0 = arith.constant 0 : i32
    %c0_i32_1 = arith.constant 0 : i32
    return %c0_i32, %c0_i32_0 : i32, i32
  }
  func.func @transform_16(%arg0: i32) -> (i32, i32) {
    %c0_i32 = arith.constant 0 : i32
    %c0_i32_0 = arith.constant 0 : i32
    %c0_i32_1 = arith.constant 0 : i32
    return %c0_i32, %c0_i32_0 : i32, i32
  }
  func.func @transform_17(%arg0: i32) -> (i32, i32) {
    %c0_i32 = arith.constant 0 : i32
    %c0_i32_0 = arith.constant 0 : i32
    %c0_i32_1 = arith.constant 0 : i32
    return %c0_i32, %c0_i32_0 : i32, i32
  }
  func.func @transform_18(%arg0: i32) -> (i32, i32) {
    %c0_i32 = arith.constant 0 : i32
    %c0_i32_0 = arith.constant 0 : i32
    %c0_i32_1 = arith.constant 0 : i32
    return %c0_i32, %c0_i32_0 : i32, i32
  }
  func.func @transform_19(%arg0: i32) -> (i32, i32) {
    %c0_i32 = arith.constant 0 : i32
    %c0_i32_0 = arith.constant 0 : i32
    %c0_i32_1 = arith.constant 0 : i32
    return %c0_i32, %c0_i32_0 : i32, i32
  }
  func.func @transform_20(%arg0: i32) -> (i32, i32) {
    %c0_i32 = arith.constant 0 : i32
    %c0_i32_0 = arith.constant 0 : i32
    %c0_i32_1 = arith.constant 0 : i32
    return %c0_i32, %c0_i32_0 : i32, i32
  }
  func.func @transform_21(%arg0: i32) -> (i32, i32) {
    %c0_i32 = arith.constant 0 : i32
    %c0_i32_0 = arith.constant 0 : i32
    %c0_i32_1 = arith.constant 0 : i32
    return %c0_i32, %c0_i32_0 : i32, i32
  }
  func.func @transform_22(%arg0: i32) -> (i32, i32) {
    %c0_i32 = arith.constant 0 : i32
    %c0_i32_0 = arith.constant 0 : i32
    %c0_i32_1 = arith.constant 0 : i32
    return %c0_i32, %c0_i32_0 : i32, i32
  }
  func.func @transform_23(%arg0: i32) -> (i32, i32) {
    %c0_i32 = arith.constant 0 : i32
    %c0_i32_0 = arith.constant 0 : i32
    %c0_i32_1 = arith.constant 0 : i32
    return %c0_i32, %c0_i32_0 : i32, i32
  }
  func.func @transform_24(%arg0: i32) -> (i32, i32) {
    %c0_i32 = arith.constant 0 : i32
    %c0_i32_0 = arith.constant 0 : i32
    %c0_i32_1 = arith.constant 0 : i32
    return %c0_i32, %c0_i32_0 : i32, i32
  }
  func.func @transform_25(%arg0: i32) -> (i32, i32) {
    %c0_i32 = arith.constant 0 : i32
    %c0_i32_0 = arith.constant 0 : i32
    %c0_i32_1 = arith.constant 0 : i32
    return %c0_i32, %c0_i32_0 : i32, i32
  }
  func.func @transform_26(%arg0: i32) -> (i32, i32) {
    %c0_i32 = arith.constant 0 : i32
    %c0_i32_0 = arith.constant 0 : i32
    %c0_i32_1 = arith.constant 0 : i32
    return %c0_i32, %c0_i32_0 : i32, i32
  }
  func.func @transform_27(%arg0: i32) -> (i32, i32) {
    %c0_i32 = arith.constant 0 : i32
    %c0_i32_0 = arith.constant 0 : i32
    %c0_i32_1 = arith.constant 0 : i32
    return %c0_i32, %c0_i32_0 : i32, i32
  }
  func.func @transform_28(%arg0: i32) -> (i32, i32) {
    %c0_i32 = arith.constant 0 : i32
    %c0_i32_0 = arith.constant 0 : i32
    %c0_i32_1 = arith.constant 0 : i32
    return %c0_i32, %c0_i32_0 : i32, i32
  }
  func.func @transform_29(%arg0: i32) -> (i32, i32) {
    %c0_i32 = arith.constant 0 : i32
    %c0_i32_0 = arith.constant 0 : i32
    %c0_i32_1 = arith.constant 0 : i32
    return %c0_i32, %c0_i32_0 : i32, i32
  }
  func.func @transform_30(%arg0: i32) -> (i32, i32) {
    %c0_i32 = arith.constant 0 : i32
    %c0_i32_0 = arith.constant 0 : i32
    %c0_i32_1 = arith.constant 0 : i32
    return %c0_i32, %c0_i32_0 : i32, i32
  }
  func.func @transform_31(%arg0: i32) -> (i32, i32) {
    %c0_i32 = arith.constant 0 : i32
    %c0_i32_0 = arith.constant 0 : i32
    %c0_i32_1 = arith.constant 0 : i32
    return %c0_i32, %c0_i32_0 : i32, i32
  }
  func.func @transform_32(%arg0: i32) -> (i32, i32) {
    %c0_i32 = arith.constant 0 : i32
    %c0_i32_0 = arith.constant 0 : i32
    %c0_i32_1 = arith.constant 0 : i32
    return %c0_i32, %c0_i32_0 : i32, i32
  }
  func.func @transform_33(%arg0: i32) -> (i32, i32) {
    %c0_i32 = arith.constant 0 : i32
    %c0_i32_0 = arith.constant 0 : i32
    %c0_i32_1 = arith.constant 0 : i32
    return %c0_i32, %c0_i32_0 : i32, i32
  }
  func.func @transform_34(%arg0: i32) -> (i32, i32, i32) {
    %c0_i32 = arith.constant 0 : i32
    %c0_i32_0 = arith.constant 0 : i32
    %c0_i32_1 = arith.constant 0 : i32
    return %arg0, %c0_i32, %c0_i32_0 : i32, i32, i32
  }
}

</mosaic_0001>

<bundles_post_ra>
// kernel: temporal_net_forward.1
= control target key start
LH: loop header
LB: loop body
LE: loop exit
PB: predicated region body
PF: predicated region fallthrough
CT: control target
= control target key end

     0   :  { %s11971_s6 = smov 1   ;;  %s11972_s10 = smov 2   ;;  %s14582_s0 = inlined_call_operand.smem [shape: u32[35], index: -1, kind: input, shape index: {}] }
   0x1   :  { %s12042_s5 = sld [smem:[%s14582_s0]]   ;;  %s11973_s14 = smov 3  }
   0x2   :  { %s12047_s9 = sld [smem:[%s14582_s0 + %s11971_s6]]   ;;  %s11974_s18 = smov 4  }
   0x3   :  { %s12052_s13 = sld [smem:[%s14582_s0 + %s11972_s10]]   ;;  %s11975_s22 = smov 5  }
   0x4   :  { %s12057_s17 = sld [smem:[%s14582_s0 + %s11973_s14]]   ;;  %s11976_s26 = smov 6  }
   0x5   :  { %s12062_s21 = sld [smem:[%s14582_s0 + %s11974_s18]]   ;;  %s11977_s30 = smov 7  }
   0x6   :  { %s12067_s25 = sld [smem:[%s14582_s0 + %s11975_s22]]   ;;  %s11978_s4 = smov 8  }
   0x7   :  { %s12072_s29 = sld [smem:[%s14582_s0 + %s11976_s26]]   ;;  %s11979_s10 = smov 9  }
   0x8   :  { %14627 = sst [smem:[#allocation21_spill]] %s12047_s9  ;;  %s11980_s15 = smov 10  }
   0x9   :  { %s12077_s3 = sld [smem:[%s14582_s0 + %s11977_s30]]   ;;  %s11981_s20 = smov 11  }
   0xa   :  { %s12082_s8 = sld [smem:[%s14582_s0 + %s11978_s4]]   ;;  %s11982_s26 = smov 12  }
   0xb   :  { %s12087_s14 = sld [smem:[%s14582_s0 + %s11979_s10]]   ;;  %s11983_s1 = smov 13  }
   0xc   :  { %s12092_s19 = sld [smem:[%s14582_s0 + %s11980_s15]]   ;;  %s11984_s7 = smov 14  }
   0xd   :  { %s12097_s24 = sld [smem:[%s14582_s0 + %s11981_s20]]   ;;  %s11985_s15 = smov 15  }
   0xe   :  { %s12102_s30 = sld [smem:[%s14582_s0 + %s11982_s26]]   ;;  %s11986_s22 = smov 16  }
   0xf   :  { %s12107_s6 = sld [smem:[%s14582_s0 + %s11983_s1]]   ;;  %s11987_s28 = smov 17  }
  0x10   :  { %14628 = sst [smem:[#allocation22_spill]] %s12082_s8 }
  0x11   :  { %14629 = sst [smem:[#allocation23_spill]] %s12087_s14 }
  0x12   :  { %14630 = sst [smem:[#allocation24_spill]] %s12092_s19 }
  0x13   :  { %14631 = sst [smem:[#allocation25_spill]] %s12097_s24 }
  0x14   :  { %s12112_s12 = sld [smem:[%s14582_s0 + %s11984_s7]]   ;;  %s11988_s7 = smov 18  }
  0x15   :  { %14632 = sst [smem:[#allocation26_spill]] %s12107_s6 }
  0x16   :  { %s12117_s20 = sld [smem:[%s14582_s0 + %s11985_s15]]   ;;  %s11989_s15 = smov 19  }
  0x17   :  { %s12122_s27 = sld [smem:[%s14582_s0 + %s11986_s22]]   ;;  %s11990_s22 = smov 20  }
  0x18   :  { %s12127_s4 = sld [smem:[%s14582_s0 + %s11987_s28]]   ;;  %s11991_s28 = smov 21  }
  0x1a   :  { %14633 = sst [smem:[#allocation27_spill]] %s12112_s12 }
  0x1b   :  { %s12132_s12 = sld [smem:[%s14582_s0 + %s11988_s7]]   ;;  %s11992_s7 = smov 22  }
  0x1c   :  { %14634 = sst [smem:[#allocation28_spill]] %s12117_s20 }
  0x1d   :  { %14635 = sst [smem:[#allocation29_spill]] %s12122_s27 }
  0x1e   :  { %14636 = sst [smem:[#allocation30_spill]] %s12127_s4 }
  0x1f   :  { %s12137_s20 = sld [smem:[%s14582_s0 + %s11989_s15]]   ;;  %s11993_s15 = smov 23  }
  0x20   :  { %s12142_s27 = sld [smem:[%s14582_s0 + %s11990_s22]]   ;;  %s11994_s22 = smov 24  }
  0x21   :  { %14637 = sst [smem:[#allocation31_spill]] %s12132_s12 }
  0x22   :  { %s12147_s4 = sld [smem:[%s14582_s0 + %s11991_s28]]   ;;  %s11995_s28 = smov 25  }
  0x23   :  { %s12152_s6 = sld [smem:[%s14582_s0 + %s11992_s7]]   ;;  %s11996_s7 = smov 26  }
  0x24   :  { %s12172_s19 = sld [smem:[%s14582_s0 + %s11996_s7]]   ;;  %s12000_s7 = smov 30  }
  0x25   :  { %14638 = sst [smem:[#allocation32_spill]] %s12137_s20 }
  0x26   :  { %14639 = sst [smem:[#allocation33_spill]] %s12142_s27 }
  0x27   :  { %s12157_s20 = sld [smem:[%s14582_s0 + %s11993_s15]]   ;;  %s11997_s15 = smov 27  }
  0x28   :  { %14640 = sst [smem:[#allocation34_spill]] %s12147_s4 }
  0x29   :  { %s12162_s27 = sld [smem:[%s14582_s0 + %s11994_s22]]   ;;  %s11998_s22 = smov 28  }
  0x2a   :  { %s12167_s4 = sld [smem:[%s14582_s0 + %s11995_s28]]   ;;  %s11999_s28 = smov 29  }
  0x2b   :  { %s12182_s24 = sld [smem:[%s14582_s0 + %s11998_s22]]   ;;  %s12002_s22 = smov 32  }
  0x2c   :  { %s12192_s14 = sld [smem:[%s14582_s0 + %s12000_s7]]   ;;  %s12004_s7 = smov 34  }
  0x2d   :  { %14641 = sst [smem:[#allocation35_spill]] %s12157_s20 }
  0x2e   :  { %s12177_s20 = sld [smem:[%s14582_s0 + %s11997_s15]]   ;;  %s12001_s15 = smov 31  }
  0x2f   :  { %s12212_s8 = sld [smem:[%s14582_s0 + %s12004_s7]]  }
  0x30   :  { %14642 = sst [smem:[#allocation36_spill]] %s12167_s4 }
  0x31   :  { %14644 = sst [smem:[#allocation38_spill]] %s12182_s24 }
  0x32   :  { %s12187_s4 = sld [smem:[%s14582_s0 + %s11999_s28]]   ;;  %s12003_s28 = smov 33  }
  0x33   :  { %s12202_s24 = sld [smem:[%s14582_s0 + %s12002_s22]]  }
  0x34   :  { %14643 = sst [smem:[#allocation37_spill]] %s12177_s20 }
  0x35   :  { %s12197_s20 = sld [smem:[%s14582_s0 + %s12001_s15]]  }
  0x36   :  { %14647 = sst [smem:[#allocation41_spill]] %s12212_s8 }
  0x38   :  { %14645 = sst [smem:[#allocation39_spill]] %s12187_s4 }
  0x39   :  { %14646 = sst [smem:[#allocation40_spill]] %s12202_s24 }
  0x3a   :  { %s12207_s4 = sld [smem:[%s14582_s0 + %s12003_s28]]  }
  0x3b   :  { %74 = vsyncpa [#allocation3], 0 }
  0x3c   :  { %76 = vsyncpa [#allocation3 + $0x1], 0 }
  0x3d   :  { %77 = vsyncpa [#allocation5], 0 }
  0x3e   :  { %78 = vsyncpa [#allocation8], 0 }
  0x3f   :  { %79 = vsyncpa [#allocation11], 0 }
  0x40   :  { %80 = vsyncpa [#allocation14], 0  ;;  %s12214_s15 = smov 0   ;;  %s12216_s16 = smov 0  }
  0x41   :  { %s12218_s18 = smov 0   ;;  %s12220_s22 = smov 0  }
  0x42 LB: > { %s14648_s12 = sld [smem:[#allocation31_spill]]  ;;  %s14649_s9 = sld [smem:[#allocation21_spill]]  ;;  %s11961_s16 = sphi %s12216_s16, %s14719_s16   ;;  %s11957_s15 = sphi %s12214_s15, %s14718_s15   ;;  %s11969_s22 = sphi %s12220_s22, %s14721_s22   ;;  %s11965_s18 = sphi %s12218_s18, %s14720_s18  }
  0x43   : > { %s12005_s0 = smov [#allocation4]   ;;  %s12235_s26 = sadd.s32 4294967295, %s11969_s22  }
  0x44   : > { %s849_s23 = sshll.u32 %s12005_s0, 4  ;;  %p8175_p0 = scmp.ge.s32.totalorder %s11969_s22, 1  ;;  %s850_s23 = int_to_ptr.vmem [resolvable:$true] %s849_s23 }
  0x45   : > { %p14600_p1 = scmp.eq.s32.totalorder %s12235_s26, 0  ;;  %p836_p2 = scmp.lt.s32.totalorder %s11969_s22, 3 }
  0x46   : > { %s12006_s1 = smov [#allocation7]   ;;  %s12007_s10 = smov [#allocation10]  }
  0x47   : > { %p12240_p3 = pnand %p8175_p0, %p836_p2  ;;  %s917_s2 = sshll.u32 %s12006_s1, 4  ;;  %s12252_s2 = int_to_ptr.vmem [resolvable:$true] %s917_s2 }
  0x48   : > { %s955_s11 = sshll.u32 %s12007_s10, 4  ;;  %s11665_s0 = scalar_lea.hbm %s14649_s9, 128  ;;  %s12254_s11 = int_to_ptr.vmem [resolvable:$true] %s955_s11 }
  0x49   : > { %s14650_s28 = scalar_select %p12240_p3, 1, 0 }
  0x4a   : > { %p10426_p4 = pneg %p12240_p3  ;;  %p11666_p6 = scmp.ne.s32.totalorder %s14649_s9, %s11665_s0 }
  0x4b   : > { %p11672_p10 = scmp.lt.u32.totalorder %s11665_s0, %s14649_s9 }
  0x4c   : > { %p12248_p5 = pnand %p10426_p4, %p14600_p1 }
  0x4e   : > { %p12260_p7 = pneg %p12248_p5 }
  0x50   : > { %p11668_p8 = pnand %p12260_p7, %p11666_p6 }
  0x52   : > { %p11669_p9 = pneg %p11668_p8 }
  0x54   : > { %p11674_p11 = pnand %p11672_p10, %p11669_p9 }
  0x56   : > { %11677 = shalt.err (!%p11674_p11)
}
  0x57   : > { %s11678_s1 = scalar_lea.vmem %s850_s23, 128  ;;  %p11686_p2 = scmp.lt.s32.totalorder %s850_s23, %s850_s23 }
  0x58   : > { %p11679_p12 = scmp.ne.s32.totalorder %s850_s23, %s11678_s1  ;;  %p11687_p4 = scmp.lt.s32.totalorder %s11678_s1, %s11678_s1 }
  0x5a   : > { %p11681_p13 = pnand %p11679_p12, %p12260_p7  ;;  %p11688_p1 = por %p11687_p4, %p11686_p2 }
  0x5c   : > { %p11682_p0 = pneg %p11681_p13 }
  0x5e   : > { %p11689_p3 = pnand %p11688_p1, %p11682_p0 }
  0x60   : > { %11692 = shalt.err (!%p11689_p3)
}
  0x61   : > { %10429 = dma.hbm_to_vmem [thread:$0]  (!%p12248_p5), %s14649_s9, 128, %s850_s23, [#allocation5]  }
  0x62   : > { %s11693_s10 = scalar_lea.hbm %s14648_s12, 1536 }
  0x63   : > { %p11694_p6 = scmp.ne.s32.totalorder %s14648_s12, %s11693_s10  ;;  %p11700_p10 = scmp.lt.u32.totalorder %s11693_s10, %s14648_s12 }
  0x65   : > { %p11696_p8 = pnand %p11694_p6, %p12260_p7 }
  0x67   : > { %p11697_p9 = pneg %p11696_p8 }
  0x69   : > { %p11702_p11 = pnand %p11700_p10, %p11697_p9 }
  0x6b   : > { %11705 = shalt.err (!%p11702_p11)
}
  0x6c   : > { %s11706_s0 = scalar_lea.vmem %s12252_s2, 1536  ;;  %p11714_p13 = scmp.lt.s32.totalorder %s12252_s2, %s12252_s2 }
  0x6d   : > { %p11707_p1 = scmp.ne.s32.totalorder %s12252_s2, %s11706_s0  ;;  %p11715_p0 = scmp.lt.s32.totalorder %s11706_s0, %s11706_s0 }
  0x6f   : > { %p11709_p3 = pnand %p11707_p1, %p12260_p7  ;;  %p11716_p2 = por %p11715_p0, %p11714_p13 }
  0x71   : > { %p11710_p12 = pneg %p11709_p3 }
  0x73   : > { %p11717_p4 = pnand %p11716_p2, %p11710_p12 }
  0x75   : > { %11720 = shalt.err (!%p11717_p4)
}
  0x76   : > { %s14605_s23 = smov 128   ;;  %s14606_s1 = smov 8  }
  0x77   : > { %10435 = dma.hbm_to_vmem [thread:$0]  (!%p12248_p5), %s14648_s12, 1536, %s12252_s2, [#allocation8], %s14605_s23, %s14605_s23, %s14606_s1  }
  0x78   : > { %s11721_s10 = scalar_lea.hbm %s12162_s27, 1536 }
  0x79   : > { %p11722_p6 = scmp.ne.s32.totalorder %s12162_s27, %s11721_s10  ;;  %p11728_p10 = scmp.lt.u32.totalorder %s11721_s10, %s12162_s27 }
  0x7b   : > { %p11724_p8 = pnand %p11722_p6, %p12260_p7 }
  0x7d   : > { %p11725_p9 = pneg %p11724_p8 }
  0x7f   : > { %p11730_p11 = pnand %p11728_p10, %p11725_p9 }
  0x81   : > { %11733 = shalt.err (!%p11730_p11)
}
  0x82   : > { %s11734_s0 = scalar_lea.vmem %s12254_s11, 1536  ;;  %p11742_p13 = scmp.lt.s32.totalorder %s12254_s11, %s12254_s11 }
  0x83   : > { %p11735_p1 = scmp.ne.s32.totalorder %s12254_s11, %s11734_s0  ;;  %p11743_p0 = scmp.lt.s32.totalorder %s11734_s0, %s11734_s0 }
  0x85   : > { %p11737_p3 = pnand %p11735_p1, %p12260_p7  ;;  %p11744_p2 = por %p11743_p0, %p11742_p13 }
  0x87   : > { %p11738_p12 = pneg %p11737_p3 }
  0x89   : > { %p11745_p4 = pnand %p11744_p2, %p11738_p12 }
  0x8b   : > { %11748 = shalt.err (!%p11745_p4)
}
  0x8c   : > { %10441 = dma.hbm_to_vmem [thread:$0]  (!%p12248_p5), %s12162_s27, 1536, %s12254_s11, [#allocation11], %s14605_s23, %s14605_s23, %s14606_s1  }
  0x8d   : > { %s12010_s2 = smov [#allocation13]   ;;  %s12011_s9 = smov [#allocation6]  }
  0x8e   : > { %s993_s10 = sshll.u32 %s12010_s2, 4  ;;  %s889_s0 = sshll.u32 %s12011_s9, 4  ;;  %s994_s10 = int_to_ptr.vmem [resolvable:$true] %s993_s10  ;;  %s890_s0 = int_to_ptr.vmem [resolvable:$true] %s889_s0 }
  0x8f   : > { %s11749_s12 = scalar_lea.hbm %s12192_s14, 1280 }
  0x90   : > { %p11750_p6 = scmp.ne.s32.totalorder %s12192_s14, %s11749_s12  ;;  %p11756_p10 = scmp.lt.u32.totalorder %s11749_s12, %s12192_s14 }
  0x92   : > { %p11752_p8 = pnand %p11750_p6, %p12260_p7 }
  0x94   : > { %p11753_p9 = pneg %p11752_p8 }
  0x96   : > { %p11758_p11 = pnand %p11756_p10, %p11753_p9 }
  0x98   : > { %11761 = shalt.err (!%p11758_p11)
}
  0x99   : > { %s11762_s24 = scalar_lea.vmem %s994_s10, 1280  ;;  %p11770_p13 = scmp.lt.s32.totalorder %s994_s10, %s994_s10 }
  0x9a   : > { %p11763_p1 = scmp.ne.s32.totalorder %s994_s10, %s11762_s24  ;;  %p11771_p0 = scmp.lt.s32.totalorder %s11762_s24, %s11762_s24 }
  0x9c   : > { %p11765_p3 = pnand %p11763_p1, %p12260_p7  ;;  %p11772_p2 = por %p11771_p0, %p11770_p13 }
  0x9e   : > { %p11766_p12 = pneg %p11765_p3 }
  0xa0   : > { %p11773_p4 = pnand %p11772_p2, %p11766_p12 }
  0xa2   : > { %11776 = shalt.err (!%p11773_p4)
}
  0xa3   : > { %10447 = dma.hbm_to_vmem [thread:$0]  (!%p12248_p5), %s12192_s14, 1280, %s994_s10, [#allocation14], %s14605_s23, %s14605_s23, %s14606_s1  }
  0xa4   : > { %s11777_s9 = scalar_lea.hbm %s12102_s30, 1536 }
  0xa5   : > { %p11778_p6 = scmp.ne.s32.totalorder %s12102_s30, %s11777_s9  ;;  %p11784_p10 = scmp.lt.u32.totalorder %s11777_s9, %s12102_s30 }
  0xa7   : > { %p11780_p8 = pnand %p11778_p6, %p12260_p7 }
  0xa9   : > { %p11781_p9 = pneg %p11780_p8 }
  0xab   : > { %p11786_p11 = pnand %p11784_p10, %p11781_p9 }
  0xad   : > { %11789 = shalt.err (!%p11786_p11)
}
  0xae   : > { %s11790_s24 = scalar_lea.vmem %s890_s0, 1536  ;;  %p11798_p13 = scmp.lt.s32.totalorder %s890_s0, %s890_s0 }
  0xaf   : > { %p11791_p1 = scmp.ne.s32.totalorder %s890_s0, %s11790_s24  ;;  %p11799_p0 = scmp.lt.s32.totalorder %s11790_s24, %s11790_s24 }
  0xb1   : > { %p11793_p3 = pnand %p11791_p1, %p12260_p7  ;;  %p11800_p2 = por %p11799_p0, %p11798_p13 }
  0xb3   : > { %p11794_p12 = pneg %p11793_p3 }
  0xb5   : > { %p11801_p4 = pnand %p11800_p2, %p11794_p12 }
  0xb7   : > { %11804 = shalt.err (!%p11801_p4)
}
  0xb8   : > { %10432 = dma.hbm_to_vmem [thread:$0]  (!%p12248_p5), %s12102_s30, 1536, %s890_s0, [#allocation5], %s14605_s23, %s14605_s23, %s14606_s1  }
  0xb9   : > { %s12012_s12 = smov [#allocation9]   ;;  %s11805_s2 = scalar_lea.hbm %s12152_s6, 4608 }
  0xba   : > { %s939_s11 = sshll.u32 %s12012_s12, 4  ;;  %p11806_p6 = scmp.ne.s32.totalorder %s12152_s6, %s11805_s2  ;;  %s940_s11 = int_to_ptr.vmem [resolvable:$true] %s939_s11 }
  0xbb   : > { %p11812_p10 = scmp.lt.u32.totalorder %s11805_s2, %s12152_s6 }
  0xbc   : > { %p11808_p8 = pnand %p11806_p6, %p12260_p7 }
  0xbe   : > { %p11809_p9 = pneg %p11808_p8 }
  0xc0   : > { %p11814_p11 = pnand %p11812_p10, %p11809_p9 }
  0xc2   : > { %11817 = shalt.err (!%p11814_p11)
}
  0xc3   : > { %s11818_s10 = scalar_lea.vmem %s940_s11, 4608  ;;  %p11826_p13 = scmp.lt.s32.totalorder %s940_s11, %s940_s11 }
  0xc4   : > { %p11819_p1 = scmp.ne.s32.totalorder %s940_s11, %s11818_s10  ;;  %p11827_p0 = scmp.lt.s32.totalorder %s11818_s10, %s11818_s10 }
  0xc6   : > { %p11821_p3 = pnand %p11819_p1, %p12260_p7  ;;  %p11828_p2 = por %p11827_p0, %p11826_p13 }
  0xc8   : > { %p11822_p12 = pneg %p11821_p3 }
  0xca   : > { %p11829_p4 = pnand %p11828_p2, %p11822_p12 }
  0xcc   : > { %11832 = shalt.err (!%p11829_p4)
}
  0xcd   : > { %s12013_s0 = smov 384   ;;  %s12014_s9 = smov 24  }
  0xce   : > { %10438 = dma.hbm_to_vmem [thread:$0]  (!%p12248_p5), %s12152_s6, 4608, %s940_s11, [#allocation8], %s12013_s0, %s12013_s0, %s12014_s9  }
  0xcf   : > { %s12015_s24 = smov [#allocation12]   ;;  %s12016_s2 = smov [#allocation15]  }
  0xd0   : > { %s971_s12 = sshll.u32 %s12015_s24, 4  ;;  %s1013_s23 = sshll.u32 %s12016_s2, 4  ;;  %s972_s12 = int_to_ptr.vmem [resolvable:$true] %s971_s12  ;;  %s12344_s23 = int_to_ptr.vmem [resolvable:$true] %s1013_s23 }
  0xd1   : > { %s11833_s10 = scalar_lea.hbm %s12172_s19, 3840 }
  0xd2   : > { %p11834_p6 = scmp.ne.s32.totalorder %s12172_s19, %s11833_s10  ;;  %p11840_p10 = scmp.lt.u32.totalorder %s11833_s10, %s12172_s19 }
  0xd4   : > { %p11836_p8 = pnand %p11834_p6, %p12260_p7 }
  0xd6   : > { %p11837_p9 = pneg %p11836_p8 }
  0xd8   : > { %p11842_p11 = pnand %p11840_p10, %p11837_p9 }
  0xda   : > { %11845 = shalt.err (!%p11842_p11)
}
  0xdb   : > { %s11846_s1 = scalar_lea.vmem %s972_s12, 3840  ;;  %p11854_p13 = scmp.lt.s32.totalorder %s972_s12, %s972_s12 }
  0xdc   : > { %p11847_p1 = scmp.ne.s32.totalorder %s972_s12, %s11846_s1  ;;  %p11855_p0 = scmp.lt.s32.totalorder %s11846_s1, %s11846_s1 }
  0xde   : > { %p11849_p3 = pnand %p11847_p1, %p12260_p7  ;;  %p11856_p2 = por %p11855_p0, %p11854_p13 }
  0xe0   : > { %p11850_p12 = pneg %p11849_p3 }
  0xe2   : > { %p11857_p4 = pnand %p11856_p2, %p11850_p12 }
  0xe4   : > { %11860 = shalt.err (!%p11857_p4)
}
  0xe5   : > { %10444 = dma.hbm_to_vmem [thread:$0]  (!%p12248_p5), %s12172_s19, 3840, %s972_s12, [#allocation11], %s12013_s0, %s12013_s0, %s12014_s9  }
  0xe6   : > { %s11861_s11 = scalar_lea.hbm %s12207_s4, 16 }
  0xe7   : > { %p11862_p6 = scmp.ne.s32.totalorder %s12207_s4, %s11861_s11  ;;  %p11868_p10 = scmp.lt.u32.totalorder %s11861_s11, %s12207_s4 }
  0xe9   : > { %p11864_p8 = pnand %p11862_p6, %p12260_p7 }
  0xeb   : > { %p11865_p9 = pneg %p11864_p8 }
  0xed   : > { %p11870_p11 = pnand %p11868_p10, %p11865_p9 }
  0xef   : > { %11873 = shalt.err (!%p11870_p11)
}
  0xf0   : > { %s11874_s1 = scalar_lea.vmem %s12344_s23, 16  ;;  %s11881_s24 = scalar_lea.vmem %s12344_s23, 32 }
  0xf1   : > { %p11875_p1 = scmp.ne.s32.totalorder %s12344_s23, %s11874_s1  ;;  %p11882_p13 = scmp.lt.s32.totalorder %s12344_s23, %s12344_s23 }
  0xf2   : > { %p11883_p0 = scmp.lt.s32.totalorder %s11881_s24, %s11874_s1 }
  0xf3   : > { %p11877_p3 = pnand %p11875_p1, %p12260_p7 }
  0xf4   : > { %p11884_p2 = por %p11883_p0, %p11882_p13 }
  0xf5   : > { %p11878_p12 = pneg %p11877_p3 }
  0xf7   : > { %p11885_p4 = pnand %p11884_p2, %p11878_p12 }
  0xf9   : > { %11888 = shalt.err (!%p11885_p4)
}
  0xfa   : > { %10450 = dma.hbm_to_vmem [thread:$0]  (!%p12248_p5), %s12207_s4, 16, %s12344_s23, [#allocation14]  }
  0xfb   : > { %s12373_s8 = sadd.s32 1, %s11969_s22   ;;  %s93_s7 = sadd.s32 1, %s11965_s18 }
  0xfc   : > { %s90_s0 = ssub.s32 %s11969_s22, %s12373_s8  ;;  %p100_p7 = scmp.ne.s32.totalorder %s11965_s18, %s11961_s16 }
  0xfd   : > { %p91_p6 = scmp.eq.s32.totalorder %s90_s0, 0  ;;  %p101_p8 = scmp.eq.s32.totalorder %s11969_s22, 0 }
  0xfe   : > { %p106_p9 = scmp.ne.s32.totalorder %s11961_s16, %s11957_s15  ;;  %p10463_p10 = scmp.lt.s32.totalorder %s11969_s22, 2 }
  0xff   : > { %s12385_s9 = scalar_select %p91_p6, %s11965_s18, %s93_s7  }
 0x100   : > { %p102_p11 = por %p101_p8, %p100_p7  ;;  %p14653_p1 = scmp.eq.s32.totalorder %s12235_s26, 0 }
 0x101   : > { %s1024_s23 = sand.u32 1, %s11965_s18   ;;  %s10389_s2 = smul.u32 384, %s11969_s22 }
 0x102   : > { %p12389_p3 = por %p14653_p1, %p106_p9  ;;  %s10388_s10 = smul.u32 24, %s1024_s23 }
 0x103   : > { %p12395_p5 = pnand %p10463_p10, %p102_p11  ;;  %s12400_s15 = scalar_lea.hbm %s12042_s5, %s10389_s2 }
 0x104   : > { %s14654_s12 = scalar_select %p12389_p3, 1, 0 }
 0x105   : > { %s1028_s1 = scalar_lea.vmem [#allocation2], %s10388_s10  ;;  %s12404_s7 = scalar_lea.sflag [#allocation3], %s1024_s23 }
 0x106   : > { %s1035_s24 = sshll.u32 %s1028_s1, 4  ;;  %s11889_s22 = scalar_lea.hbm %s12400_s15, 384  ;;  %s12402_s24 = int_to_ptr.vmem [resolvable:$true] %s1035_s24 }
 0x107   : > { %p11890_p12 = scmp.ne.s32.totalorder %s12400_s15, %s11889_s22  ;;  %p11891_p13 = pneg %p12395_p5 }
 0x108   : > { %s11894_s0 = scalar_lea.hbm %s12042_s5, 768  ;;  %p11895_p4 = scmp.lt.u32.totalorder %s12400_s15, %s12042_s5 }
 0x109   : > { %p11892_p0 = pnand %p11891_p13, %p11890_p12  ;;  %p11896_p7 = scmp.lt.u32.totalorder %s11894_s0, %s11889_s22 }
 0x10a   : > { %p11898_p8 = scmp.lt.u32.totalorder %s11889_s22, %s12400_s15 }
 0x10b   : > { %p11893_p2 = pneg %p11892_p0  ;;  %p11897_p6 = por %p11896_p7, %p11895_p4 }
 0x10d   : > { %p11899_p9 = por %p11898_p8, %p11897_p6 }
 0x10f   : > { %p11900_p10 = pnand %p11899_p9, %p11893_p2 }
 0x111   : > { %11903 = shalt.err (!%p11900_p10)
}
 0x112   : > { %s11904_s23 = scalar_lea.vmem %s12402_s24, 384  ;;  %s12017_s2 = smov [#allocation2]  }
 0x113   : > { %p11905_p11 = scmp.ne.s32.totalorder %s12402_s24, %s11904_s23  ;;  %s11909_s10 = sshll.u32 %s12017_s2, 4  ;;  %s11910_s10 = int_to_ptr.vmem [resolvable:$false] %s11909_s10 }
 0x114   : > { %s11911_s1 = scalar_lea.vmem %s11910_s10, 768  ;;  %p11912_p12 = scmp.lt.s32.totalorder %s12402_s24, %s11910_s10 }
 0x115   : > { %p11907_p1 = pnand %p11905_p11, %p11891_p13  ;;  %p11913_p0 = scmp.lt.s32.totalorder %s11911_s1, %s11904_s23 }
 0x117   : > { %p11908_p3 = pneg %p11907_p1  ;;  %p11914_p4 = por %p11913_p0, %p11912_p12 }
 0x119   : > { %p11915_p7 = pnand %p11914_p4, %p11908_p3 }
 0x11b   : > { %11918 = shalt.err (!%p11915_p7)
}
 0x11c   : > { %s14656_s22 = smov 8   ;;  %s14657_s0 = smov 128  }
 0x11d   : > { %10454 = dma.hbm_to_vmem [thread:$0]  (!%p12395_p5), %s12400_s15, 384, %s12402_s24, %s12404_s7, %s14657_s0, %s14657_s0, %s14656_s22  }
 0x11e   : > { %p14658_p13 = scmp.ne.s32.totalorder %s14650_s28, 0 }
 0x11f   : > { %s1049_s2 = sand.u32 (!%p14658_p13), 1, %s11961_s16   ;;  %p14659_p3 = scmp.ne.s32.totalorder (!%p14658_p13), %s14654_s12, 0 }
 0x120   : > { %1047 = sbr.rel (%p14658_p13) target bundleno = 6062 (0x17ae), region = 156  ;;  %s1050_s23 = scalar_lea.sflag (!%p14658_p13), [#allocation3], %s1049_s2 }
 0x121   : > { %s10390_s10 = smul.u32 (!%p14658_p13), 24, %s1049_s2 }
 0x123   : > { %s1053_s1 = scalar_lea.vmem (!%p14658_p13), [#allocation2], %s10390_s10 }
 0x127   : > { %11936 = dma.done.wait (%p14659_p3), %s1050_s23, 384  }
 0x128   : > { %11938 = vsyncadd (%p14659_p3), %s1050_s23, 4294966912  ;;  %p14660_p2 = scmp.eq.s32.totalorder %s12235_s26, 0 }
 0x12a   : > { %11940 = dma.done.wait (%p14660_p2), [#allocation5], 1664   ;;  %p14661_p6 = pmov %p14660_p2 }
 0x12b   : > { %p14662_p5 = pmov %p14660_p2 }
 0x12c   : > { %11942 = vsyncadd (%p14661_p6), [#allocation5], 4294965632 }
 0x12d   : > { %11944 = dma.done.wait (%p14662_p5), [#allocation8], 6144   ;;  %p14663_p8 = pmov %p14660_p2 }
 0x12e   : > { %p14664_p9 = pmov %p14660_p2 }
 0x12f   : > { %11946 = vsyncadd (%p14663_p8), [#allocation8], 4294961152 }
 0x130   : > { %11948 = dma.done.wait (%p14664_p9), [#allocation11], 5376   ;;  %p14665_p10 = pmov %p14660_p2 }
 0x131   : > { %p14666_p11 = pmov %p14660_p2 }
 0x132   : > { %11950 = vsyncadd (%p14665_p10), [#allocation11], 4294961920 }
 0x133   : > { %11952 = dma.done.wait (%p14666_p11), [#allocation14], 1296   ;;  %p14667_p1 = pmov %p14660_p2 }
 0x134   : > { %v12018_v0 = vmov 0.0|0.0   ;;  %vm12019_vm0 = vmmov 0   ;;  %v12020_v1 = vmov 0.0   ;;  %v1176_v2 = vld [vmem:[%s1053_s1] sm:$0xff]  ;;  %v1177_v3 = vld [vmem:[%s1053_s1 + $0x8] sm:$0xff]  ;;  %v1178_v5 = vld [vmem:[%s1053_s1 + $0x10] sm:$0xff] }
 0x135   : > { %11954 = vsyncadd (%p14667_p1), [#allocation14], 4294966000  ;;  %9773 = vmatprep.subr.bf16.mxu1 %v12018_v0  ;;  %9356 = vmatprep.mubr.msk.f32.mxu1 %vm12019_vm0, %v12020_v1  ;;  %v9774_v4 = vpack.c.bf16 %v1177_v3, %v1176_v2  ;;  %v1175_v6 = vld [vmem:[#allocation4] sm:$0xff]  ;;  %vm1179_vm1 = vcmask 195584   ;;  %s12021_s28 = smov 2   ;;  %v1269_v10 = vld [vmem:[%s12052_s13] sm:$0xff] }
 0x136   : > { %9365 = vmatprep.mubr.msk.f32.mxu0 %vm1179_vm1, %v1269_v10  ;;  %vm1258_vm2 = vcmask 15360   ;;  %vm1260_vm3 = vcmask 113664   ;;  %s12022_s12 = smov 126   ;;  %s12023_s11 = smov 127   ;;  %v1285_v14 = vld [vmem:[%s12057_s17 + $0x20] sm:$0xff]  ;;  %v12024_v15 = vmov 0   ;;  %vm13071_vm13 = vmpackc.low %vm1179_vm1, %vm1179_vm1 }
 0x137   : > { %9775 = vmatpush3.bf16.msra.mxu1 %v9774_v4  ;;  %10566 = vset.pattern.permute.xlu1 %v12024_v15  ;;  %v1286_v16 = vld [vmem:[%s12057_s17 + $0x28] sm:$0xff]  ;;  %v1287_v17 = vld [vmem:[%s12057_s17 + $0x30] sm:$0xff]  ;;  %v1289_v18 = vld [vmem:[%s12057_s17 + $0x40] sm:$0xff]  ;;  %vm12025_vm4 = vmmov 1   ;;  %vm1586_vm6 = vcmask 130048   ;;  %vm1791_vm7 = vcmask 261120  }
 0x138   : > { %9354 = vmatprep.subr.mxu1 %v12020_v1  ;;  %10567 = vset.pattern.permute.xlu0 %v12024_v15  ;;  %v1288_v19 = vld [vmem:[%s12057_s17 + $0x38] sm:$0xff]  ;;  %v1291_v20 = vld [vmem:[%s12057_s17 + $0x50] sm:$0xff]  ;;  %v1290_v21 = vld [vmem:[%s12057_s17 + $0x48] sm:$0xff]  ;;  %vm2174_vm9 = vcmask 64512   ;;  %s12026_s15 = smov 4   ;;  %vm2408_vm10 = vcmask 31744  }
 0x139   : > { %v1281_v22 = vld [vmem:[%s12057_s17] sm:$0xff]  ;;  %v1292_v23 = vld [vmem:[%s12057_s17 + $0x58] sm:$0xff]  ;;  %v1283_v24 = vld [vmem:[%s12057_s17 + $0x10] sm:$0xff]  ;;  %vm2421_vm11 = vcmask 162816   ;;  %s14608_s24 = smov 124   ;;  %s14670_s7 = sld [smem:[#allocation22_spill]] }
 0x13a   : > { %v1282_v25 = vld [vmem:[%s12057_s17 + $0x8] sm:$0xff]  ;;  %v1284_v26 = vld [vmem:[%s12057_s17 + $0x18] sm:$0xff]  ;;  %vm9777_vm5 = vmpackc.low %vm12025_vm4, %vm1260_vm3  ;;  %s14671_s22 = sld [smem:[#allocation23_spill]]  ;;  %s14675_s2 = sld [smem:[#allocation25_spill]]  ;;  %vm3570_vm14 = vcmask 785408   ;;  %vm4378_vm0 = vcmask 326656  }
 0x13b   : > { %9355 = vmatpush3.msra.mxu1 %v1178_v5  ;;  %v1270_v30 = vld [vmem:[%s12052_s13 + $0x8] sm:$0xff]  ;;  %v1271_v31 = vld [vmem:[%s12052_s13 + $0x10] sm:$0xff]  ;;  %v1272_v32 = vld [vmem:[%s12052_s13 + $0x18] sm:$0xff]  ;;  %s14676_s10 = sld [smem:[#allocation24_spill]]  ;;  %s14677_s23 = sld [smem:[#allocation26_spill]]  ;;  %vm5773_vm4 = vcmask 588800  }
 0x13c   : > { %9357 = vmatmul.mubr.msk.f32.vlgmr.msra.gmra.mrb[0].mxu1 %vm1179_vm1, %v1175_v6  ;;  %v1273_v33 = vld [vmem:[%s12052_s13 + $0x20] sm:$0xff]  ;;  %v1274_v34 = vld [vmem:[%s12052_s13 + $0x28] sm:$0xff]  ;;  %v1275_v35 = vld [vmem:[%s12052_s13 + $0x30] sm:$0xff]  ;;  %s12028_s1 = smov 8   ;;  %p1170_p12 = scmp.lt.s32.totalorder %s12235_s26, 1 }
 0x13d   : > { %v1276_v36 = vld [vmem:[%s12052_s13 + $0x38] sm:$0xff]  ;;  %v1277_v37 = vld [vmem:[%s12052_s13 + $0x40] sm:$0xff]  ;;  %v1278_v38 = vld [vmem:[%s12052_s13 + $0x48] sm:$0xff] }
 0x13e   : > { %v1279_v39 = vld [vmem:[%s12052_s13 + $0x50] sm:$0xff]  ;;  %v1280_v40 = vld [vmem:[%s12052_s13 + $0x58] sm:$0xff]  ;;  %vm12623_vm8 = vmpackc.low %vm1586_vm6, %vm1586_vm6  ;;  %s14723_s26 = smov (!%p1170_p12, %s12235_s26), 1 }
 0x13f   : > { %vm12864_vm12 = vmpackc.low %vm2421_vm11, %vm2421_vm11 }
 0x140   : > { %s14672_s0 = smov %s14671_s22  ;;  %vm13335_vm15 = vmpackc.low %vm1791_vm7, %vm1791_vm7 }
 0x20f   : > { %v1249_v7 = vpop.f32.mrb[0].mxu1 }
 0x210   : > { %v1253_v8 = vmax.f32 %v1249_v7, 0.0  ;;  %v9358_v9 = vpop.f32.mrb[1].mxu1 }
 0x212   : > { %1255 = vrot.lane.b32.xlu0 %v1253_v8, %s12021_s28 }
 0x284   : > { %v1256_v11 = vpop.permute.xlu0 %1255 }
 0x285   : > { %v12462_v12 = vsel %vm1258_vm2, 0.0, %v1256_v11 }
 0x286   : > { %v1261_v13 = vsel %vm1260_vm3, %v12462_v12, 0.0 }
 0x287   : > { %1266 = vrot.lane.b32.xlu1 %v1261_v13, %s12022_s12  ;;  %1263 = vrot.lane.b32.xlu0 %v1261_v13, %s12023_s11 }
 0x28b   : > { %1315 = vperm.xlu1 %10566, %v1285_v14   ;;  %1320 = vperm.xlu0 %10567, %v1286_v16  }
 0x28f   : > { %1325 = vperm.xlu1 %10566, %v1287_v17   ;;  %1335 = vperm.xlu0 %10567, %v1289_v18  }
 0x293   : > { %1330 = vperm.xlu1 %10566, %v1288_v19   ;;  %1345 = vperm.xlu0 %10567, %v1291_v20  }
 0x297   : > { %1340 = vperm.xlu1 %10566, %v1290_v21   ;;  %1295 = vperm.xlu0 %10567, %v1281_v22  }
 0x29b   : > { %1350 = vperm.xlu1 %10566, %v1292_v23   ;;  %1305 = vperm.xlu0 %10567, %v1283_v24  }
 0x29f   : > { %1300 = vperm.xlu1 %10566, %v1282_v25  }
 0x2a3   : > { %1310 = vperm.xlu1 %10566, %v1284_v26  }
 0x2f9   : > { %v1264_v27 = vpop.permute.xlu0 %1263  ;;  %v1267_v29 = vpop.permute.xlu1 %1266 }
 0x2fa   : > { %v9776_v28 = vpack.c.bf16 %v1264_v27, %v12462_v12 }
 0x2fc   : > { %9778 = vmatprep.subr.msk.bf16.mxu0 %vm9777_vm5, %v9776_v28 }
 0x2fd   : > { %9781 = vmatpush3.bf16.msk.msra.mxu0 %vm9777_vm5, %v9776_v28  ;;  %vm14011_vm5 = vmpackc.low %vm5773_vm4, %vm5773_vm4 }
 0x2fe   : > { %9363 = vmatprep.subr.mxu0 %v1267_v29 }
 0x301   : > { %9364 = vmatpush3.msra.mxu0 %v1267_v29 }
 0x302   : > { %9366 = vmatmul.mubr.msk.f32.vlgmr.msra.gmra.mrb[0].mxu0 %vm1179_vm1, %v1270_v30 }
 0x303   : > { %9368 = vmatprep.mubr.msk.f32.mxu0 %vm1179_vm1, %v1271_v31 }
 0x306   : > { %9369 = vmatmul.mubr.msk.f32.gmra.mrb[2].mxu0 %vm1179_vm1, %v1272_v32 }
 0x307   : > { %9371 = vmatprep.mubr.msk.f32.mxu0 %vm1179_vm1, %v1273_v33 }
 0x30a   : > { %9372 = vmatmul.mubr.msk.f32.gmra.mrb[4].mxu0 %vm1179_vm1, %v1274_v34  ;;  %v1316_v41 = vpop.permute.xlu1 %1315  ;;  %v1321_v44 = vpop.permute.xlu0 %1320 }
 0x30b   : > { %9374 = vmatprep.mubr.msk.f32.mxu0 %vm1179_vm1, %v1275_v35 }
 0x30e   : > { %9375 = vmatmul.mubr.msk.f32.gmra.mrb[6].mxu0 %vm1179_vm1, %v1276_v36  ;;  %v1326_v42 = vpop.permute.xlu1 %1325  ;;  %v1336_v46 = vpop.permute.xlu0 %1335 }
 0x30f   : > { %9377 = vmatprep.mubr.msk.f32.mxu0 %vm1179_vm1, %v1277_v37 }
 0x312   : > { %9378 = vmatmul.mubr.msk.f32.gmra.mrb[8].mxu0 %vm1179_vm1, %v1278_v38  ;;  %v1331_v43 = vpop.permute.xlu1 %1330  ;;  %v1346_v48 = vpop.permute.xlu0 %1345 }
 0x313   : > { %9380 = vmatprep.mubr.msk.f32.mxu0 %vm1179_vm1, %v1279_v39 }
 0x316   : > { %9381 = vmatmul.mubr.msk.f32.gmra.mrb[10].mxu0 %vm1179_vm1, %v1280_v40  ;;  %v1341_v45 = vpop.permute.xlu1 %1340  ;;  %v1296_v50 = vpop.permute.xlu0 %1295 }
 0x31a   : > { %v1351_v47 = vpop.permute.xlu1 %1350  ;;  %v1306_v56 = vpop.permute.xlu0 %1305 }
 0x31e   : > { %v1301_v49 = vpop.permute.xlu1 %1300 }
 0x322   : > { %v1311_v55 = vpop.permute.xlu1 %1310 }
 0x3d5   : > { %v9367_v51 = vpop.f32.mrb[0].mxu0 }
 0x3d6   : > { %v1461_v52 = vadd.f32 %v9367_v51, %v1301_v49  ;;  %v1455_v53 = vpop.f32.mrb[1].mxu0 }
 0x3d7   : > { %v1456_v54 = vadd.f32 %v1455_v53, %v1296_v50 }
 0x3d8   : > { %11413 = vtanh.f32 %v1461_v52 }
 0x3d9   : > { %11415 = vtanh.f32 %v1456_v54  ;;  %v9370_v57 = vpop.f32.mrb[2].mxu0 }
 0x3da   : > { %v1471_v58 = vadd.f32 %v9370_v57, %v1311_v55  ;;  %v1465_v59 = vpop.f32.mrb[3].mxu0 }
 0x3db   : > { %v1466_v60 = vadd.f32 %v1465_v59, %v1306_v56 }
 0x3dc   : > { %11417 = vtanh.f32 %v1471_v58 }
 0x3dd   : > { %11419 = vtanh.f32 %v1466_v60  ;;  %v9373_v61 = vpop.f32.mrb[4].mxu0 }
 0x3de   : > { %v1481_v62 = vadd.f32 %v9373_v61, %v1321_v44  ;;  %v1475_v63 = vpop.f32.mrb[5].mxu0 }
 0x3df   : > { %v1476_v2 = vadd.f32 %v1475_v63, %v1316_v41 }
 0x3e0   : > { %11421 = vtanh.f32 %v1481_v62 }
 0x3e1   : > { %11423 = vtanh.f32 %v1476_v2  ;;  %v9376_v3 = vpop.f32.mrb[6].mxu0 }
 0x3e2   : > { %v11414_v4 = vpop.eup %11413  ;;  %v1491_v5 = vadd.f32 %v9376_v3, %v1331_v43  ;;  %v1485_v6 = vpop.f32.mrb[7].mxu0 }
 0x3e3   : > { %v11416_v7 = vpop.eup %11415  ;;  %v1486_v8 = vadd.f32 %v1485_v6, %v1326_v42 }
 0x3e4   : > { %11425 = vtanh.f32 %v1491_v5  ;;  %v10588_v9 = vpack.i.bf16 %v11414_v4, %v11416_v7 }
 0x3e5   : > { %11427 = vtanh.f32 %v1486_v8  ;;  %v9379_v10 = vpop.f32.mrb[8].mxu0 }
 0x3e6   : > { %v11418_v11 = vpop.eup %11417  ;;  %v1501_v13 = vadd.f32 %v9379_v10, %v1341_v45  ;;  %v1495_v14 = vpop.f32.mrb[9].mxu0 }
 0x3e7   : > { %v11420_v15 = vpop.eup %11419  ;;  %v1496_v16 = vadd.f32 %v1495_v14, %v1336_v46 }
 0x3e8   : > { %11429 = vtanh.f32 %v1501_v13  ;;  %v10593_v17 = vpack.i.bf16 %v11418_v11, %v11420_v15 }
 0x3e9   : > { %11431 = vtanh.f32 %v1496_v16  ;;  %v9382_v18 = vpop.f32.mrb[10].mxu0 }
 0x3ea   : > { %v11422_v19 = vpop.eup %11421  ;;  %v1511_v20 = vadd.f32 %v9382_v18, %v1351_v47  ;;  %v1505_v21 = vpop.f32.mrb[11].mxu0 }
 0x3eb   : > { %v11424_v22 = vpop.eup %11423  ;;  %v1506_v23 = vadd.f32 %v1505_v21, %v1346_v48 }
 0x3ec   : > { %11433 = vtanh.f32 %v1511_v20  ;;  %v10568_v24 = vpack.i.bf16 %v11422_v19, %v11424_v22 }
 0x3ed   : > { %11435 = vtanh.f32 %v1506_v23 }
 0x3ee   : > { %v11426_v25 = vpop.eup %11425  ;;  %10569 = vrot.lane.b32.xlu0 %v10568_v24, %s12021_s28 }
 0x3ef   : > { %v11428_v26 = vpop.eup %11427 }
 0x3f0   : > { %v10573_v27 = vpack.i.bf16 %v11426_v25, %v11428_v26 }
 0x3f2   : > { %v11430_v28 = vpop.eup %11429  ;;  %10574 = vrot.lane.b32.xlu1 %v10573_v27, %s12021_s28  ;;  %v1684_v27 = vld [vmem:[%s12062_s21 + $0x8] sm:$0xff] }
 0x3f3   : > { %v11432_v29 = vpop.eup %11431  ;;  %1892 = vmatprep.mubr.f32.mxu0 %v1684_v27 }
 0x3f4   : > { %v10578_v30 = vpack.i.bf16 %v11430_v28, %v11432_v29  ;;  %v1685_v28 = vld [vmem:[%s12062_s21 + $0x10] sm:$0xff]  ;;  %v1723_v29 = vld [vmem:[%s12067_s25 + $0x20] sm:$0xff] }
 0x3f5   : > { %9391 = vmatprep.mubr.msk.f32.mxu1 %vm1791_vm7, %v1685_v28 }
 0x3f6   : > { %v11434_v31 = vpop.eup %11433  ;;  %10579 = vrot.lane.b32.xlu0 %v10578_v30, %s12021_s28  ;;  %v1724_v30 = vld [vmem:[%s12067_s25 + $0x28] sm:$0xff] }
 0x3f7   : > { %v11436_v32 = vpop.eup %11435 }
 0x3f8   : > { %v10583_v33 = vpack.i.bf16 %v11434_v31, %v11436_v32  ;;  %v1725_v31 = vld [vmem:[%s12067_s25 + $0x30] sm:$0xff]  ;;  %v1726_v32 = vld [vmem:[%s12067_s25 + $0x38] sm:$0xff] }
 0x3fa   : > { %10584 = vrot.lane.b32.xlu1 %v10583_v33, %s12021_s28  ;;  %10589 = vrot.lane.b32.xlu0 %v10588_v9, %s12021_s28  ;;  %v1727_v33 = vld [vmem:[%s12067_s25 + $0x40] sm:$0xff] }
 0x3fe   : > { %10594 = vrot.lane.b32.xlu1 %v10593_v17, %s12021_s28  ;;  %s14610_s28 = smov 120  }
 0x460   : > { %v10570_v34 = vpop.permute.xlu0 %10569 }
 0x461   : > { %v10572_v35 = vunpack.i.h.bf16 %v10570_v34  ;;  %v10571_v36 = vunpack.i.l.bf16 %v10570_v34  ;;  %v1728_v34 = vld [vmem:[%s12067_s25 + $0x48] sm:$0xff] }
 0x463   : > { %v12511_v37 = vsel %vm1258_vm2, 0.0, %v10572_v35  ;;  %v12514_v38 = vsel %vm1258_vm2, 0.0, %v10571_v36  ;;  %v1729_v35 = vld [vmem:[%s12067_s25 + $0x50] sm:$0xff]  ;;  %v1730_v36 = vld [vmem:[%s12067_s25 + $0x58] sm:$0xff] }
 0x464   : > { %v9794_v39 = vpack.c.bf16 %v12511_v37, %v12514_v38  ;;  %v10575_v40 = vpop.permute.xlu1 %10574  ;;  %v1591_v41 = vsel %vm1586_vm6, %v12514_v38, 0.0  ;;  %v1592_v42 = vsel %vm1586_vm6, %v12511_v37, 0.0 }
 0x465   : > { %v10577_v43 = vunpack.i.h.bf16 %v10575_v40  ;;  %v10576_v44 = vunpack.i.l.bf16 %v10575_v40  ;;  %v10598_v45 = vpack.i.bf16 %v1592_v42, %v1591_v41  ;;  %v2106_v40 = vld [vmem:[%s12077_s3 + $0x20] sm:$0xff]  ;;  %v2107_v41 = vld [vmem:[%s12077_s3 + $0x28] sm:$0xff] }
 0x466   : > { %v1719_v42 = vld [vmem:[%s12067_s25] sm:$0xff] }
 0x467   : > { %v12523_v46 = vsel %vm1258_vm2, 0.0, %v10577_v43  ;;  %v12526_v47 = vsel %vm1258_vm2, 0.0, %v10576_v44  ;;  %10599 = vrot.lane.b32.xlu0 %v10598_v45, %s12023_s11  ;;  %v1720_v43 = vld [vmem:[%s12067_s25 + $0x8] sm:$0xff]  ;;  %v2108_v44 = vld [vmem:[%s12077_s3 + $0x30] sm:$0xff] }
 0x468   : > { %v9799_v48 = vpack.c.bf16 %v12523_v46, %v12526_v47  ;;  %v10580_v49 = vpop.permute.xlu0 %10579  ;;  %v1593_v50 = vsel %vm1586_vm6, %v12526_v47, 0.0  ;;  %v1594_v51 = vsel %vm1586_vm6, %v12523_v46, 0.0 }
 0x469   : > { %v10582_v52 = vunpack.i.h.bf16 %v10580_v49  ;;  %v10581_v53 = vunpack.i.l.bf16 %v10580_v49  ;;  %v10603_v54 = vpack.i.bf16 %v1594_v51, %v1593_v50  ;;  %v1721_v49 = vld [vmem:[%s12067_s25 + $0x10] sm:$0xff]  ;;  %v1722_v50 = vld [vmem:[%s12067_s25 + $0x18] sm:$0xff]  ;;  %v2110_v51 = vld [vmem:[%s12077_s3 + $0x40] sm:$0xff] }
 0x46b   : > { %v12536_v55 = vsel %vm1258_vm2, 0.0, %v10582_v52  ;;  %v12539_v56 = vsel %vm1258_vm2, 0.0, %v10581_v53  ;;  %10604 = vrot.lane.b32.xlu1 %v10603_v54, %s12023_s11  ;;  %v2111_v52 = vld [vmem:[%s12077_s3 + $0x48] sm:$0xff]  ;;  %v2112_v53 = vld [vmem:[%s12077_s3 + $0x50] sm:$0xff] }
 0x46c   : > { %v9804_v57 = vpack.c.bf16 %v12536_v55, %v12539_v56  ;;  %v10585_v58 = vpop.permute.xlu1 %10584  ;;  %v10590_v59 = vpop.permute.xlu0 %10589  ;;  %v1595_v60 = vsel %vm1586_vm6, %v12539_v56, 0.0  ;;  %v1596_v61 = vsel %vm1586_vm6, %v12536_v55, 0.0 }
 0x46d   : > { %v10587_v62 = vunpack.i.h.bf16 %v10585_v58  ;;  %v10586_v63 = vunpack.i.l.bf16 %v10585_v58  ;;  %v10592_v2 = vunpack.i.h.bf16 %v10590_v59  ;;  %v10591_v3 = vunpack.i.l.bf16 %v10590_v59  ;;  %v2102_v58 = vld [vmem:[%s12077_s3] sm:$0xff]  ;;  %v2103_v59 = vld [vmem:[%s12077_s3 + $0x8] sm:$0xff] }
 0x46e   : > { %v10608_v4 = vpack.i.bf16 %v1596_v61, %v1595_v60  ;;  %v2104_v60 = vld [vmem:[%s12077_s3 + $0x10] sm:$0xff]  ;;  %v2105_v61 = vld [vmem:[%s12077_s3 + $0x18] sm:$0xff] }
 0x46f   : > { %v12549_v5 = vsel %vm1258_vm2, 0.0, %v10587_v62  ;;  %v12552_v6 = vsel %vm1258_vm2, 0.0, %v10586_v63  ;;  %v12555_v7 = vsel %vm1258_vm2, 0.0, %v10592_v2  ;;  %v12558_v8 = vsel %vm1258_vm2, 0.0, %v10591_v3 }
 0x470   : > { %v9809_v9 = vpack.c.bf16 %v12549_v5, %v12552_v6  ;;  %v9784_v10 = vpack.c.bf16 %v12555_v7, %v12558_v8  ;;  %10609 = vrot.lane.b32.xlu0 %v10608_v4, %s12023_s11  ;;  %v10595_v11 = vpop.permute.xlu1 %10594  ;;  %v1597_v13 = vsel %vm1586_vm6, %v12552_v6, 0.0  ;;  %v1598_v14 = vsel %vm1586_vm6, %v12549_v5, 0.0 }
 0x471   : > { %v10597_v15 = vunpack.i.h.bf16 %v10595_v11  ;;  %v10596_v16 = vunpack.i.l.bf16 %v10595_v11  ;;  %v10613_v17 = vpack.i.bf16 %v1598_v14, %v1597_v13  ;;  %v1587_v18 = vsel %vm1586_vm6, %v12558_v8, 0.0 }
 0x472   : > { %v1588_v19 = vsel %vm1586_vm6, %v12555_v7, 0.0 }
 0x473   : > { %v12574_v20 = vsel %vm1258_vm2, 0.0, %v10597_v15  ;;  %v12577_v21 = vsel %vm1258_vm2, 0.0, %v10596_v16  ;;  %10614 = vrot.lane.b32.xlu1 %v10613_v17, %s12023_s11  ;;  %v10618_v22 = vpack.i.bf16 %v1588_v19, %v1587_v18  ;;  %vm5210_vm2 = vcmask 457728  }
 0x474   : > { %v9789_v23 = vpack.c.bf16 %v12574_v20, %v12577_v21  ;;  %v1589_v24 = vsel %vm1586_vm6, %v12577_v21, 0.0  ;;  %v1590_v25 = vsel %vm1586_vm6, %v12574_v20, 0.0 }
 0x475   : > { %10619 = vrot.lane.b32.xlu0 %v10618_v22, %s12022_s12  ;;  %v10623_v26 = vpack.i.bf16 %v1590_v25, %v1589_v24 }
 0x477   : > { %10624 = vrot.lane.b32.xlu1 %v10623_v26, %s12022_s12 }
 0x479   : > { %10629 = vrot.lane.b32.xlu0 %v10598_v45, %s12022_s12  ;;  %v2109_v45 = vld [vmem:[%s12077_s3 + $0x38] sm:$0xff] }
 0x47b   : > { %10634 = vrot.lane.b32.xlu1 %v10618_v22, %s12023_s11 }
 0x47d   : > { %10639 = vrot.lane.b32.xlu0 %v10603_v54, %s12022_s12  ;;  %v2113_v54 = vld [vmem:[%s12077_s3 + $0x58] sm:$0xff] }
 0x47f   : > { %10644 = vrot.lane.b32.xlu1 %v10623_v26, %s12023_s11  ;;  %s14681_s11 = sld [smem:[#allocation28_spill]] }
 0x481   : > { %10649 = vrot.lane.b32.xlu0 %v10608_v4, %s12022_s12  ;;  %v1712_v4 = vld [vmem:[%s12062_s21 + $0xe8] sm:$0xff] }
 0x483   : > { %10654 = vrot.lane.b32.xlu1 %v10613_v17, %s12022_s12 }
 0x485   : > { %1753 = vperm.xlu0 %10567, %v1723_v29  }
 0x487   : > { %1758 = vperm.xlu1 %10566, %v1724_v30  }
 0x489   : > { %1763 = vperm.xlu0 %10567, %v1725_v31  }
 0x48b   : > { %1768 = vperm.xlu1 %10566, %v1726_v32  }
 0x48d   : > { %1773 = vperm.xlu0 %10567, %v1727_v33  }
 0x48f   : > { %1778 = vperm.xlu1 %10566, %v1728_v34  }
 0x491   : > { %1783 = vperm.xlu0 %10567, %v1729_v35  }
 0x493   : > { %1788 = vperm.xlu1 %10566, %v1730_v36  }
 0x495   : > { %2136 = vperm.xlu0 %10567, %v2106_v40  }
 0x497   : > { %2141 = vperm.xlu1 %10566, %v2107_v41  }
 0x499   : > { %1733 = vperm.xlu0 %10567, %v1719_v42  }
 0x49b   : > { %1738 = vperm.xlu1 %10566, %v1720_v43  }
 0x49d   : > { %2146 = vperm.xlu0 %10567, %v2108_v44  }
 0x49f   : > { %2151 = vperm.xlu1 %10566, %v2109_v45   ;;  %v1688_v45 = vld [vmem:[%s12062_s21 + $0x28] sm:$0xff] }
 0x4a1   : > { %1743 = vperm.xlu0 %10567, %v1721_v49   ;;  %v1687_v49 = vld [vmem:[%s12062_s21 + $0x20] sm:$0xff] }
 0x4a3   : > { %1748 = vperm.xlu1 %10566, %v1722_v50   ;;  %v1691_v50 = vld [vmem:[%s12062_s21 + $0x40] sm:$0xff] }
 0x4a5   : > { %2156 = vperm.xlu0 %10567, %v2110_v51   ;;  %v1686_v51 = vld [vmem:[%s12062_s21 + $0x18] sm:$0xff] }
 0x4a7   : > { %2161 = vperm.xlu1 %10566, %v2111_v52   ;;  %v1694_v52 = vld [vmem:[%s12062_s21 + $0x58] sm:$0xff] }
 0x4a9   : > { %2166 = vperm.xlu0 %10567, %v2112_v53   ;;  %v1690_v53 = vld [vmem:[%s12062_s21 + $0x38] sm:$0xff] }
 0x4ab   : > { %2171 = vperm.xlu1 %10566, %v2113_v54   ;;  %v1697_v54 = vld [vmem:[%s12062_s21 + $0x70] sm:$0xff] }
 0x4ad   : > { %2116 = vperm.xlu0 %10567, %v2102_v58   ;;  %v1689_v58 = vld [vmem:[%s12062_s21 + $0x30] sm:$0xff] }
 0x4af   : > { %2121 = vperm.xlu1 %10566, %v2103_v59   ;;  %v1700_v59 = vld [vmem:[%s12062_s21 + $0x88] sm:$0xff] }
 0x4b1   : > { %2126 = vperm.xlu0 %10567, %v2104_v60   ;;  %v1703_v60 = vld [vmem:[%s12062_s21 + $0xa0] sm:$0xff] }
 0x4b3   : > { %2131 = vperm.xlu1 %10566, %v2105_v61   ;;  %v1692_v61 = vld [vmem:[%s12062_s21 + $0x48] sm:$0xff] }
 0x4d9   : > { %v10600_v62 = vpop.permute.xlu0 %10599 }
 0x4da   : > { %v10602_v63 = vunpack.i.h.bf16 %v10600_v62  ;;  %v10601_v2 = vunpack.i.l.bf16 %v10600_v62  ;;  %v1706_v62 = vld [vmem:[%s12062_s21 + $0xb8] sm:$0xff] }
 0x4dc   : > { %v9782_v3 = vpack.c.bf16 %v10602_v63, %v10601_v2  ;;  %v1696_v63 = vld [vmem:[%s12062_s21 + $0x68] sm:$0xff]  ;;  %v1709_v2 = vld [vmem:[%s12062_s21 + $0xd0] sm:$0xff] }
 0x4dd   : > { %v10605_v11 = vpop.permute.xlu1 %10604 }
 0x4de   : > { %v10607_v13 = vunpack.i.h.bf16 %v10605_v11  ;;  %v10606_v14 = vunpack.i.l.bf16 %v10605_v11  ;;  %9783 = vmatprep.subr.bf16.mxu0 %v9782_v3  ;;  %v1695_v3 = vld [vmem:[%s12062_s21 + $0x60] sm:$0xff] }
 0x4df   : > { %9786 = vmatpush3.bf16.msk.msra.mxu0 %vm12623_vm8, %v9784_v10  ;;  %v1699_v11 = vld [vmem:[%s12062_s21 + $0x80] sm:$0xff] }
 0x4e0   : > { %v9787_v15 = vpack.c.bf16 %v10607_v13, %v10606_v14  ;;  %v1715_v13 = vld [vmem:[%s12062_s21 + $0x100] sm:$0xff]  ;;  %v1698_v14 = vld [vmem:[%s12062_s21 + $0x78] sm:$0xff] }
 0x4e2   : > { %v10610_v16 = vpop.permute.xlu0 %10609  ;;  %9788 = vmatprep.subr.bf16.mxu0 %v9787_v15  ;;  %v1718_v15 = vld [vmem:[%s12062_s21 + $0x118] sm:$0xff] }
 0x4e3   : > { %v10612_v17 = vunpack.i.h.bf16 %v10610_v16  ;;  %v10611_v18 = vunpack.i.l.bf16 %v10610_v16  ;;  %9791 = vmatpush3.bf16.msk.msra.mxu0 %vm12623_vm8, %v9789_v23  ;;  %v1702_v16 = vld [vmem:[%s12062_s21 + $0x98] sm:$0xff] }
 0x4e5   : > { %v10615_v19 = vpop.permute.xlu1 %10614  ;;  %v9792_v22 = vpack.c.bf16 %v10612_v17, %v10611_v18  ;;  %v2090_v17 = vld [vmem:[%s12072_s29] sm:$0xff]  ;;  %v1701_v18 = vld [vmem:[%s12062_s21 + $0x90] sm:$0xff] }
 0x4e6   : > { %v10617_v24 = vunpack.i.h.bf16 %v10615_v19  ;;  %v10616_v25 = vunpack.i.l.bf16 %v10615_v19  ;;  %v2091_v19 = vld [vmem:[%s12072_s29 + $0x8] sm:$0xff] }
 0x4e7   : > { %v10620_v26 = vpop.permute.xlu0 %10619  ;;  %9793 = vmatprep.subr.bf16.mxu0 %v9792_v22  ;;  %v1705_v22 = vld [vmem:[%s12062_s21 + $0xb0] sm:$0xff] }
 0x4e8   : > { %v10622_v7 = vunpack.i.h.bf16 %v10620_v26  ;;  %v10621_v8 = vunpack.i.l.bf16 %v10620_v26  ;;  %9796 = vmatpush3.bf16.msk.msra.mxu0 %vm12623_vm8, %v9794_v39  ;;  %v9797_v10 = vpack.c.bf16 %v10617_v24, %v10616_v25  ;;  %v2092_v24 = vld [vmem:[%s12072_s29 + $0x10] sm:$0xff]  ;;  %v1704_v25 = vld [vmem:[%s12062_s21 + $0xa8] sm:$0xff]  ;;  %v2093_v26 = vld [vmem:[%s12072_s29 + $0x18] sm:$0xff] }
 0x4e9   : > { %v10625_v27 = vpop.permute.xlu1 %10624 }
 0x4ea   : > { %9798 = vmatprep.subr.bf16.mxu0 %v9797_v10  ;;  %v10627_v20 = vunpack.i.h.bf16 %v10625_v27  ;;  %v10626_v21 = vunpack.i.l.bf16 %v10625_v27  ;;  %v9802_v28 = vpack.c.bf16 %v10622_v7, %v10621_v8  ;;  %v1708_v7 = vld [vmem:[%s12062_s21 + $0xc8] sm:$0xff]  ;;  %v2094_v8 = vld [vmem:[%s12072_s29 + $0x20] sm:$0xff] }
 0x4eb   : > { %v10630_v23 = vpop.permute.xlu0 %10629  ;;  %v1707_v10 = vld [vmem:[%s12062_s21 + $0xc0] sm:$0xff]  ;;  %v2095_v27 = vld [vmem:[%s12072_s29 + $0x28] sm:$0xff] }
 0x4ec   : > { %9801 = vmatpush3.bf16.msk.msra.mxu0 %vm12623_vm8, %v9799_v48  ;;  %v10632_v30 = vunpack.i.h.bf16 %v10630_v23  ;;  %v10631_v37 = vunpack.i.l.bf16 %v10630_v23  ;;  %v9807_v31 = vpack.c.bf16 %v10627_v20, %v10626_v21  ;;  %v1711_v20 = vld [vmem:[%s12062_s21 + $0xe0] sm:$0xff]  ;;  %v2096_v21 = vld [vmem:[%s12072_s29 + $0x30] sm:$0xff]  ;;  %v1710_v23 = vld [vmem:[%s12062_s21 + $0xd8] sm:$0xff] }
 0x4ed   : > { %9803 = vmatprep.subr.bf16.mxu0 %v9802_v28  ;;  %v10635_v29 = vpop.permute.xlu1 %10634  ;;  %v2097_v28 = vld [vmem:[%s12072_s29 + $0x38] sm:$0xff] }
 0x4ee   : > { %v10637_v39 = vunpack.i.h.bf16 %v10635_v29  ;;  %v10636_v32 = vunpack.i.l.bf16 %v10635_v29  ;;  %v9812_v48 = vpack.c.bf16 %v10632_v30, %v10631_v37  ;;  %v1714_v29 = vld [vmem:[%s12062_s21 + $0xf8] sm:$0xff]  ;;  %v2098_v30 = vld [vmem:[%s12072_s29 + $0x40] sm:$0xff]  ;;  %v1713_v37 = vld [vmem:[%s12062_s21 + $0xf0] sm:$0xff] }
 0x4ef   : > { %v10640_v38 = vpop.permute.xlu0 %10639 }
 0x4f0   : > { %9806 = vmatpush3.bf16.msk.msra.mxu0 %vm12623_vm8, %v9804_v57  ;;  %v10642_v46 = vunpack.i.h.bf16 %v10640_v38  ;;  %v10641_v47 = vunpack.i.l.bf16 %v10640_v38  ;;  %v9814_v55 = vpack.c.bf16 %v10637_v39, %v10636_v32  ;;  %v2099_v38 = vld [vmem:[%s12072_s29 + $0x48] sm:$0xff]  ;;  %v2100_v39 = vld [vmem:[%s12072_s29 + $0x50] sm:$0xff] }
 0x4f1   : > { %9808 = vmatprep.subr.bf16.mxu0 %v9807_v31  ;;  %v10645_v33 = vpop.permute.xlu1 %10644  ;;  %v1717_v31 = vld [vmem:[%s12062_s21 + $0x110] sm:$0xff]  ;;  %v1716_v32 = vld [vmem:[%s12062_s21 + $0x108] sm:$0xff] }
 0x4f2   : > { %v10647_v56 = vunpack.i.h.bf16 %v10645_v33  ;;  %v10646_v40 = vunpack.i.l.bf16 %v10645_v33  ;;  %v9816_v44 = vpack.c.bf16 %v10642_v46, %v10641_v47  ;;  %v2101_v33 = vld [vmem:[%s12072_s29 + $0x58] sm:$0xff] }
 0x4f3   : > { %v10650_v34 = vpop.permute.xlu0 %10649 }
 0x4f4   : > { %v10652_v35 = vunpack.i.h.bf16 %v10650_v34  ;;  %v10651_v36 = vunpack.i.l.bf16 %v10650_v34  ;;  %9811 = vmatpush3.bf16.msk.msra.mxu0 %vm12623_vm8, %v9809_v9  ;;  %v9818_v6 = vpack.c.bf16 %v10647_v56, %v10646_v40  ;;  %v1683_v9 = vld [vmem:[%s12062_s21] sm:$0xff] }
 0x4f5   : > { %9813 = vmatprep.subr.bf16.mxu0 %v9812_v48  ;;  %v10655_v57 = vpop.permute.xlu1 %10654 }
 0x4f6   : > { %v10657_v41 = vunpack.i.h.bf16 %v10655_v57  ;;  %v10656_v42 = vunpack.i.l.bf16 %v10655_v57  ;;  %v9820_v43 = vpack.c.bf16 %v10652_v35, %v10651_v36 }
 0x4f8   : > { %9821 = vmatprep.subr.bf16.mxu1 %v9820_v43  ;;  %9815 = vmatpush3.bf16.msra.mxu0 %v9814_v55  ;;  %v9824_v5 = vpack.c.bf16 %v10657_v41, %v10656_v42 }
 0x4f9   : > { %9823 = vmatpush3.bf16.msra.mxu1 %v9820_v43  ;;  %9817 = vmatprep.subr.bf16.mxu0 %v9816_v44 }
 0x4fa   : > { %9825 = vmatprep.subr.bf16.mxu1 %v9824_v5 }
 0x4fc   : > { %9819 = vmatpush3.bf16.msra.mxu0 %v9818_v6 }
 0x4fd   : > { %9827 = vmatpush3.bf16.msra.mxu1 %v9824_v5 }
 0x4fe   : > { %9409 = vmatprep.subr.msk.mxu1 %vm1260_vm3, %v12462_v12 }
 0x4ff   : > { %1893 = vmatmul.mubr.f32.vlgmr.msra.gmra.mrb[12].mxu0 %v1683_v9 }
 0x500   : > { %9392 = vmatmul.mubr.msk.f32.vlgmr.msra.gmra.mrb[2].mxu1 %vm1791_vm7, %v1688_v45  ;;  %1897 = vmatprep.mubr.f32.mxu0 %v1687_v49 }
 0x501   : > { %9410 = vmatpush3.msk.msra.mxu1 %vm1260_vm3, %v12462_v12  ;;  %9394 = vmatprep.mubr.msk.f32.mxu1 %vm1791_vm7, %v1691_v50  ;;  %v1693_v12 = vld [vmem:[%s12062_s21 + $0x50] sm:$0xff]  ;;  %vm13806_vm3 = vmpackc.low %vm5210_vm2, %vm5210_vm2 }
 0x503   : > { %1898 = vmatmul.mubr.f32.gmra.mrb[14].mxu0 %v1686_v51 }
 0x504   : > { %9395 = vmatmul.mubr.msk.f32.gmra.mrb[4].mxu1 %vm1791_vm7, %v1694_v52  ;;  %1902 = vmatprep.mubr.f32.mxu0 %v1690_v53  ;;  %v1754_v47 = vpop.permute.xlu0 %1753 }
 0x505   : > { %9397 = vmatprep.mubr.msk.f32.mxu1 %vm1791_vm7, %v1697_v54 }
 0x506   : > { %v12730_v46 = vpop.permute.xlu1 %1758 }
 0x507   : > { %1903 = vmatmul.mubr.f32.gmra.mrb[16].mxu0 %v1689_v58 }
 0x508   : > { %9398 = vmatmul.mubr.msk.f32.gmra.mrb[6].mxu1 %vm1791_vm7, %v1700_v59  ;;  %1907 = vmatprep.mubr.f32.mxu0 %v1693_v12  ;;  %v12734_v48 = vpop.permute.xlu0 %1763 }
 0x509   : > { %9400 = vmatprep.mubr.msk.f32.mxu1 %vm1791_vm7, %v1703_v60 }
 0x50a   : > { %v12732_v34 = vpop.permute.xlu1 %1768 }
 0x50b   : > { %1908 = vmatmul.mubr.f32.gmra.mrb[18].mxu0 %v1692_v61 }
 0x50c   : > { %9401 = vmatmul.mubr.msk.f32.gmra.mrb[8].mxu1 %vm1791_vm7, %v1706_v62  ;;  %1912 = vmatprep.mubr.f32.mxu0 %v1696_v63  ;;  %v12738_v36 = vpop.permute.xlu0 %1773 }
 0x50d   : > { %9403 = vmatprep.mubr.msk.f32.mxu1 %vm1791_vm7, %v1709_v2 }
 0x50e   : > { %v12736_v35 = vpop.permute.xlu1 %1778 }
 0x50f   : > { %1913 = vmatmul.mubr.f32.gmra.mrb[20].mxu0 %v1695_v3 }
 0x510   : > { %9404 = vmatmul.mubr.msk.f32.gmra.mrb[10].mxu1 %vm1791_vm7, %v1712_v4  ;;  %1917 = vmatprep.mubr.f32.mxu0 %v1699_v11  ;;  %v12742_v56 = vpop.permute.xlu0 %1783 }
 0x511   : > { %9406 = vmatprep.mubr.msk.f32.mxu1 %vm1791_vm7, %v1715_v13 }
 0x512   : > { %v12740_v55 = vpop.permute.xlu1 %1788 }
 0x513   : > { %1918 = vmatmul.mubr.f32.gmra.mrb[22].mxu0 %v1698_v14 }
 0x514   : > { %9407 = vmatmul.mubr.msk.f32.gmra.mrb[12].mxu1 %vm1791_vm7, %v1718_v15  ;;  %1922 = vmatprep.mubr.f32.mxu0 %v1702_v16  ;;  %v12746_v40 = vpop.permute.xlu0 %2136 }
 0x515   : > { %9411 = vmatprep.mubr.msk.f32.mxu1 %vm2174_vm9, %v2090_v17 }
 0x516   : > { %v12744_v57 = vpop.permute.xlu1 %2141 }
 0x517   : > { %1923 = vmatmul.mubr.f32.gmra.mrb[24].mxu0 %v1701_v18 }
 0x518   : > { %9412 = vmatmul.mubr.msk.f32.vlgmr.msra.gmra.mrb[14].mxu1 %vm2174_vm9, %v2091_v19  ;;  %1927 = vmatprep.mubr.f32.mxu0 %v1705_v22  ;;  %v1734_v42 = vpop.permute.xlu0 %1733 }
 0x519   : > { %9414 = vmatprep.mubr.msk.f32.mxu1 %vm2174_vm9, %v2092_v24 }
 0x51a   : > { %v1739_v41 = vpop.permute.xlu1 %1738 }
 0x51b   : > { %1928 = vmatmul.mubr.f32.gmra.mrb[26].mxu0 %v1704_v25 }
 0x51c   : > { %9415 = vmatmul.mubr.msk.f32.gmra.mrb[16].mxu1 %vm2174_vm9, %v2093_v26  ;;  %1932 = vmatprep.mubr.f32.mxu0 %v1708_v7  ;;  %v12750_v44 = vpop.permute.xlu0 %2146 }
 0x51d   : > { %9417 = vmatprep.mubr.msk.f32.mxu1 %vm2174_vm9, %v2094_v8 }
 0x51e   : > { %v12748_v43 = vpop.permute.xlu1 %2151 }
 0x51f   : > { %1933 = vmatmul.mubr.f32.gmra.mrb[28].mxu0 %v1707_v10 }
 0x520   : > { %9418 = vmatmul.mubr.msk.f32.gmra.mrb[18].mxu1 %vm2174_vm9, %v2095_v27  ;;  %1937 = vmatprep.mubr.f32.mxu0 %v1711_v20  ;;  %v1744_v58 = vpop.permute.xlu0 %1743 }
 0x521   : > { %9420 = vmatprep.mubr.msk.f32.mxu1 %vm2174_vm9, %v2096_v21 }
 0x522   : > { %v1749_v50 = vpop.permute.xlu1 %1748 }
 0x523   : > { %1938 = vmatmul.mubr.f32.gmra.mrb[30].mxu0 %v1710_v23 }
 0x524   : > { %9421 = vmatmul.mubr.msk.f32.gmra.mrb[20].mxu1 %vm2174_vm9, %v2097_v28  ;;  %1942 = vmatprep.mubr.f32.mxu0 %v1714_v29  ;;  %v12754_v14 = vpop.permute.xlu0 %2156 }
 0x525   : > { %9423 = vmatprep.mubr.msk.f32.mxu1 %vm2174_vm9, %v2098_v30 }
 0x526   : > { %v12752_v3 = vpop.permute.xlu1 %2161 }
 0x527   : > { %1943 = vmatmul.mubr.f32.gmra.mrb[32].mxu0 %v1713_v37 }
 0x528   : > { %9424 = vmatmul.mubr.msk.f32.gmra.mrb[22].mxu1 %vm2174_vm9, %v2099_v38  ;;  %1947 = vmatprep.mubr.f32.mxu0 %v1717_v31  ;;  %v12762_v27 = vpop.permute.xlu0 %2166 }
 0x529   : > { %9426 = vmatprep.mubr.msk.f32.mxu1 %vm2174_vm9, %v2100_v39 }
 0x52a   : > { %v12758_v25 = vpop.permute.xlu1 %2171 }
 0x52b   : > { %1948 = vmatmul.mubr.f32.gmra.mrb[34].mxu0 %v1716_v32 }
 0x52c   : > { %9427 = vmatmul.mubr.msk.f32.gmra.mrb[24].mxu1 %vm2174_vm9, %v2101_v33  ;;  %v2117_v33 = vpop.permute.xlu0 %2116 }
 0x52e   : > { %v2122_v38 = vpop.permute.xlu1 %2121 }
 0x5d2   : > { %v8611_v5 = vpop.f32.mrb[12].mxu0 }
 0x5d3   : > { %v8612_v6 = vpop.f32.mrb[13].mxu0  ;;  %v9393_v9 = vpop.f32.mrb[2].mxu1 }
 0x5d4   : > { %v8613_v45 = vadd.f32 %v8612_v6, %v8611_v5  ;;  %v2019_v49 = vpop.f32.mrb[3].mxu1 }
 0x5d6   : > { %v8614_v51 = vpop.f32.mrb[14].mxu0  ;;  %v1895_v52 = vadd.f32 %v8613_v45, %v1734_v42 }
 0x5d7   : > { %v8615_v53 = vpop.f32.mrb[15].mxu0  ;;  %v9396_v54 = vpop.f32.mrb[4].mxu1 }
 0x5d8   : > { %v8616_v59 = vadd.f32 %v8615_v53, %v8614_v51  ;;  %v2020_v12 = vadd.f32 %v2019_v49, %v1895_v52  ;;  %v2029_v60 = vpop.f32.mrb[5].mxu1  ;;  %v2132_v53 = vpop.permute.xlu1 %2131 }
 0x5da   : > { %v1900_v61 = vadd.f32 %v8616_v59, %v1739_v41  ;;  %v8617_v62 = vpop.f32.mrb[16].mxu0 }
 0x5db   : > { %v8618_v63 = vpop.f32.mrb[17].mxu0  ;;  %v9399_v2 = vpop.f32.mrb[6].mxu1 }
 0x5dc   : > { %v2025_v4 = vadd.f32 %v9393_v9, %v1900_v61  ;;  %v8619_v11 = vadd.f32 %v8618_v63, %v8617_v62  ;;  %v2039_v13 = vpop.f32.mrb[7].mxu1  ;;  %v2127_v62 = vpop.permute.xlu0 %2126 }
 0x5de   : > { %v8620_v15 = vpop.f32.mrb[18].mxu0  ;;  %v1905_v16 = vadd.f32 %v8619_v11, %v1744_v58  ;;  %11437 = vtanh.f32 %v2025_v4 }
 0x5df   : > { %v8621_v17 = vpop.f32.mrb[19].mxu0  ;;  %v12756_v18 = vpop.f32.mrb[8].mxu1  ;;  %11439 = vtanh.f32 %v2020_v12 }
 0x5e0   : > { %v8622_v19 = vadd.f32 %v8621_v17, %v8620_v15  ;;  %v2030_v22 = vadd.f32 %v2029_v60, %v1905_v16  ;;  %v2049_v24 = vpop.f32.mrb[9].mxu1 }
 0x5e2   : > { %v1910_v26 = vadd.f32 %v8622_v19, %v1749_v50  ;;  %v8623_v7 = vpop.f32.mrb[20].mxu0 }
 0x5e3   : > { %v8624_v8 = vpop.f32.mrb[21].mxu0  ;;  %v12760_v10 = vpop.f32.mrb[10].mxu1 }
 0x5e4   : > { %v2035_v20 = vadd.f32 %v9396_v54, %v1910_v26  ;;  %v8625_v21 = vadd.f32 %v8624_v8, %v8623_v7  ;;  %v12764_v23 = vpop.f32.mrb[11].mxu1 }
 0x5e6   : > { %11441 = vtanh.f32 %v2035_v20  ;;  %v1915_v28 = vadd.f32 %v8625_v21, %v1754_v47  ;;  %v8626_v29 = vpop.f32.mrb[22].mxu0 }
 0x5e7   : > { %v8627_v30 = vpop.f32.mrb[23].mxu0  ;;  %v12766_v37 = vpop.f32.mrb[12].mxu1  ;;  %11443 = vtanh.f32 %v2030_v22 }
 0x5e8   : > { %v2040_v31 = vadd.f32 %v2039_v13, %v1915_v28  ;;  %v8628_v39 = vadd.f32 %v8627_v30, %v8626_v29  ;;  %v12768_v32 = vpop.f32.mrb[13].mxu1  ;;  %v11438_v50 = vpop.eup %11437 }
 0x5e9   : > { %v11440_v52 = vpop.eup %11439 }
 0x5ea   : > { %11445 = vtanh.f32 %v2040_v31  ;;  %v1920_v41 = vadd.f32 %v8628_v39, %v12730_v46  ;;  %v8629_v42 = vpop.f32.mrb[24].mxu0 }
 0x5eb   : > { %v9413_v5 = vpop.f32.mrb[14].mxu1  ;;  %v8630_v6 = vpop.f32.mrb[25].mxu0 }
 0x5ec   : > { %v2045_v9 = vadd.f32 %v9399_v2, %v1920_v41  ;;  %v2283_v45 = vadd.f32 %v9413_v5, %v2122_v38  ;;  %v8631_v47 = vadd.f32 %v8630_v6, %v8629_v42  ;;  %v2277_v49 = vpop.f32.mrb[15].mxu1 }
 0x5ed   : > { %v2278_v51 = vadd.f32 %v2277_v49, %v2117_v33 }
 0x5ee   : > { %11447 = vtanh.f32 %v2045_v9  ;;  %v2337_v54 = vadd.f32 %v11438_v50, %v2283_v45  ;;  %v1925_v58 = vadd.f32 %v8631_v47, %v12734_v48  ;;  %v8632_v59 = vpop.f32.mrb[26].mxu0 }
 0x5ef   : > { %v2336_v12 = vadd.f32 %v11440_v52, %v2278_v51  ;;  %v9416_v60 = vpop.f32.mrb[16].mxu1  ;;  %v8633_v61 = vpop.f32.mrb[27].mxu0 }
 0x5f0   : > { %v11442_v46 = vpop.eup %11441  ;;  %v2349_v63 = vmax.f32 %v2337_v54, 0.0  ;;  %v2050_v4 = vadd.f32 %v2049_v24, %v1925_v58  ;;  %v2293_v2 = vadd.f32 %v9416_v60, %v2132_v53  ;;  %v8634_v11 = vadd.f32 %v8633_v61, %v8632_v59  ;;  %v2287_v13 = vpop.f32.mrb[17].mxu1 }
 0x5f1   : > { %v2348_v15 = vmax.f32 %v2336_v12, 0.0  ;;  %v2288_v16 = vadd.f32 %v2287_v13, %v2127_v62  ;;  %v11444_v17 = vpop.eup %11443 }
 0x5f2   : > { %11449 = vtanh.f32 %v2050_v4  ;;  %v2339_v19 = vadd.f32 %v11442_v46, %v2293_v2  ;;  %v1930_v22 = vadd.f32 %v8634_v11, %v12732_v34  ;;  %v8635_v26 = vpop.f32.mrb[28].mxu0 }
 0x5f3   : > { %v2338_v48 = vadd.f32 %v11444_v17, %v2288_v16  ;;  %v9419_v7 = vpop.f32.mrb[18].mxu1  ;;  %v8636_v8 = vpop.f32.mrb[29].mxu0  ;;  %v12773_v20 = vpack.i.bf16 %v2349_v63, %v2348_v15 }
 0x5f4   : > { %v11446_v21 = vpop.eup %11445  ;;  %v2351_v28 = vmax.f32 %v2339_v19, 0.0  ;;  %v2055_v24 = vadd.f32 %v12756_v18, %v1930_v22  ;;  %v8637_v29 = vadd.f32 %v8636_v8, %v8635_v26  ;;  %v2297_v30 = vpop.f32.mrb[19].mxu1  ;;  %v2303_v34 = vadd.f32 %v9419_v7, %v12744_v57 }
 0x5f5   : > { %v2350_v38 = vmax.f32 %v2338_v48, 0.0  ;;  %v2298_v31 = vadd.f32 %v2297_v30, %v12746_v40 }
 0x5f6   : > { %11451 = vtanh.f32 %v2055_v24  ;;  %v1935_v39 = vadd.f32 %v8637_v29, %v12738_v36  ;;  %v8638_v33 = vpop.f32.mrb[30].mxu0 }
 0x5f7   : > { %v2340_v41 = vadd.f32 %v11446_v21, %v2298_v31  ;;  %v9422_v42 = vpop.f32.mrb[20].mxu1  ;;  %v8639_v5 = vpop.f32.mrb[31].mxu0  ;;  %v10683_v6 = vpack.i.bf16 %v2351_v28, %v2350_v38 }
 0x5f8   : > { %v11448_v9 = vpop.eup %11447  ;;  %v2060_v45 = vadd.f32 %v12764_v23, %v1935_v39  ;;  %v8640_v47 = vadd.f32 %v8639_v5, %v8638_v33  ;;  %v2307_v18 = vpop.f32.mrb[21].mxu1 }
 0x5f9   : > { %v2341_v49 = vadd.f32 %v11448_v9, %v2303_v34  ;;  %v2352_v52 = vmax.f32 %v2340_v41, 0.0  ;;  %v2308_v36 = vadd.f32 %v2307_v18, %v12750_v44 }
 0x5fa   : > { %11453 = vtanh.f32 %v2060_v45  ;;  %v1940_v50 = vadd.f32 %v8640_v47, %v12736_v35  ;;  %v8641_v40 = vpop.f32.mrb[32].mxu0  ;;  %v2313_v35 = vadd.f32 %v9422_v42, %v12748_v43 }
 0x5fb   : > { %v2353_v51 = vmax.f32 %v2341_v49, 0.0  ;;  %v9425_v53 = vpop.f32.mrb[22].mxu1  ;;  %v8642_v57 = vpop.f32.mrb[33].mxu0 }
 0x5fc   : > { %v11450_v54 = vpop.eup %11449  ;;  %v2065_v58 = vadd.f32 %v12760_v10, %v1940_v50  ;;  %v8643_v59 = vadd.f32 %v8642_v57, %v8641_v40  ;;  %v2317_v12 = vpop.f32.mrb[23].mxu1  ;;  %v2323_v26 = vadd.f32 %v9425_v53, %v12752_v3 }
 0x5fd   : > { %v2342_v60 = vadd.f32 %v11450_v54, %v2308_v36  ;;  %v10658_v23 = vpack.i.bf16 %v2353_v51, %v2352_v52 }
 0x5fe   : > { %11455 = vtanh.f32 %v2065_v58  ;;  %v1945_v61 = vadd.f32 %v8643_v59, %v12742_v56  ;;  %v8644_v46 = vpop.f32.mrb[34].mxu0  ;;  %v2318_v56 = vadd.f32 %v2317_v12, %v12754_v14 }
 0x5ff   : > { %v9428_v62 = vpop.f32.mrb[24].mxu1  ;;  %v8645_v63 = vpop.f32.mrb[35].mxu0  ;;  %10659 = vrot.lane.b32.xlu0 %v10658_v23, %s12026_s15  ;;  %v2354_v16 = vmax.f32 %v2342_v60, 0.0 }
 0x600   : > { %v11452_v44 = vpop.eup %11451  ;;  %v2070_v4 = vadd.f32 %v12768_v32, %v1945_v61  ;;  %v8646_v2 = vadd.f32 %v8645_v63, %v8644_v46  ;;  %v2327_v10 = vpop.f32.mrb[25].mxu1  ;;  %v2333_v14 = vadd.f32 %v9428_v62, %v12758_v25 }
 0x601   : > { %v2343_v11 = vadd.f32 %v11452_v44, %v2313_v35 }
 0x602   : > { %11457 = vtanh.f32 %v2070_v4  ;;  %v1950_v13 = vadd.f32 %v8646_v2, %v12740_v55  ;;  %v2328_v55 = vadd.f32 %v2327_v10, %v12762_v27 }
 0x603   : > { %v2355_v15 = vmax.f32 %v2343_v11, 0.0 }
 0x604   : > { %v11454_v17 = vpop.eup %11453  ;;  %v2075_v43 = vadd.f32 %v12766_v37, %v1950_v13 }
 0x605   : > { %v2344_v19 = vadd.f32 %v11454_v17, %v2318_v56  ;;  %v10663_v22 = vpack.i.bf16 %v2355_v15, %v2354_v16 }
 0x606   : > { %11459 = vtanh.f32 %v2075_v43 }
 0x607   : > { %10664 = vrot.lane.b32.xlu1 %v10663_v22, %s12026_s15  ;;  %v2356_v8 = vmax.f32 %v2344_v19, 0.0 }
 0x608   : > { %v11456_v32 = vpop.eup %11455 }
 0x609   : > { %v2345_v48 = vadd.f32 %v11456_v32, %v2323_v26 }
 0x60b   : > { %v2357_v7 = vmax.f32 %v2345_v48, 0.0 }
 0x60c   : > { %v11458_v21 = vpop.eup %11457 }
 0x60d   : > { %v2346_v28 = vadd.f32 %v11458_v21, %v2328_v55  ;;  %v10668_v24 = vpack.i.bf16 %v2357_v7, %v2356_v8 }
 0x60f   : > { %10669 = vrot.lane.b32.xlu0 %v10668_v24, %s12026_s15  ;;  %v2358_v30 = vmax.f32 %v2346_v28, 0.0  ;;  %v2519_v28 = vld [vmem:[%s14670_s7 + $0x8] sm:$0xff]  ;;  %v2558_v24 = vld [vmem:[%s14671_s22 + $0x20] sm:$0xff]  ;;  %s14686_s22 = sld [smem:[#allocation29_spill]] }
 0x610   : > { %v11460_v37 = vpop.eup %11459  ;;  %2726 = vmatprep.mubr.f32.mxu0 %v2519_v28 }
 0x611   : > { %v2347_v29 = vadd.f32 %v11460_v37, %v2333_v14  ;;  %v2520_v14 = vld [vmem:[%s14670_s7 + $0x10] sm:$0xff] }
 0x612   : > { %v2560_v37 = vld [vmem:[%s14672_s0 + $0x30] sm:$0xff]  ;;  %9437 = vmatprep.mubr.msk.f32.mxu1 %vm1791_vm7, %v2520_v14 }
 0x613   : > { %10679 = vrot.lane.b32.xlu0 %v12773_v20, %s12026_s15  ;;  %v2359_v3 = vmax.f32 %v2347_v29, 0.0  ;;  %v2559_v29 = vld [vmem:[%s14672_s0 + $0x28] sm:$0xff] }
 0x615   : > { %v10673_v38 = vpack.i.bf16 %v2359_v3, %v2358_v30  ;;  %v2562_v30 = vld [vmem:[%s14672_s0 + $0x40] sm:$0xff]  ;;  %v2561_v3 = vld [vmem:[%s14672_s0 + $0x38] sm:$0xff] }
 0x617   : > { %10674 = vrot.lane.b32.xlu1 %v10673_v38, %s12026_s15  ;;  %v2564_v38 = vld [vmem:[%s14672_s0 + $0x50] sm:$0xff] }
 0x61b   : > { %10684 = vrot.lane.b32.xlu1 %v10683_v6, %s12026_s15 }
 0x671   : > { %v10660_v27 = vpop.permute.xlu0 %10659 }
 0x672   : > { %v10662_v31 = vunpack.i.h.bf16 %v10660_v27  ;;  %v10661_v39 = vunpack.i.l.bf16 %v10660_v27  ;;  %v2563_v27 = vld [vmem:[%s14672_s0 + $0x48] sm:$0xff] }
 0x674   : > { %v2414_v25 = vsel %vm2408_vm10, 0.0, %v10662_v31  ;;  %v2413_v33 = vsel %vm2408_vm10, 0.0, %v10661_v39  ;;  %v2554_v31 = vld [vmem:[%s14672_s0] sm:$0xff]  ;;  %v2565_v39 = vld [vmem:[%s14672_s0 + $0x58] sm:$0xff] }
 0x675   : > { %v12801_v34 = vpack.c.bf16 %v2414_v25, %v2413_v33  ;;  %v2426_v41 = vsel %vm2421_vm11, %v2413_v33, 0.0  ;;  %v2427_v20 = vsel %vm2421_vm11, %v2414_v25, 0.0  ;;  %v2556_v25 = vld [vmem:[%s14672_s0 + $0x10] sm:$0xff]  ;;  %v2555_v33 = vld [vmem:[%s14672_s0 + $0x8] sm:$0xff] }
 0x676   : > { %v10688_v42 = vpack.i.bf16 %v2427_v20, %v2426_v41  ;;  %v2557_v41 = vld [vmem:[%s14672_s0 + $0x18] sm:$0xff]  ;;  %s14689_s0 = smov 120  }
 0x678   : > { %10689 = vrot.lane.b32.xlu0 %v10688_v42, %s12022_s12 }
 0x679   : > { %v10665_v5 = vpop.permute.xlu1 %10664 }
 0x67a   : > { %v10667_v6 = vunpack.i.h.bf16 %v10665_v5  ;;  %v10666_v9 = vunpack.i.l.bf16 %v10665_v5 }
 0x67c   : > { %v2416_v45 = vsel %vm2408_vm10, 0.0, %v10667_v6  ;;  %v2415_v47 = vsel %vm2408_vm10, 0.0, %v10666_v9  ;;  %v3105_v9 = vld [vmem:[%s14676_s10 + $0xc8] sm:$0xff] }
 0x67d   : > { %v12808_v18 = vpack.c.bf16 %v2416_v45, %v2415_v47  ;;  %v2428_v49 = vsel %vm2421_vm11, %v2415_v47, 0.0  ;;  %v2429_v50 = vsel %vm2421_vm11, %v2416_v45, 0.0 }
 0x67e   : > { %v10693_v40 = vpack.i.bf16 %v2429_v50, %v2428_v49 }
 0x680   : > { %10694 = vrot.lane.b32.xlu1 %v10693_v40, %s12022_s12 }
 0x681   : > { %v10670_v51 = vpop.permute.xlu0 %10669 }
 0x682   : > { %v10672_v52 = vunpack.i.h.bf16 %v10670_v51  ;;  %v10671_v36 = vunpack.i.l.bf16 %v10670_v51 }
 0x684   : > { %v2418_v53 = vsel %vm2408_vm10, 0.0, %v10672_v52  ;;  %v2417_v57 = vsel %vm2408_vm10, 0.0, %v10671_v36 }
 0x685   : > { %v12815_v54 = vpack.c.bf16 %v2418_v53, %v2417_v57  ;;  %v10680_v58 = vpop.permute.xlu0 %10679  ;;  %v2430_v59 = vsel %vm2421_vm11, %v2417_v57, 0.0  ;;  %v2431_v12 = vsel %vm2421_vm11, %v2418_v53, 0.0 }
 0x686   : > { %v10682_v60 = vunpack.i.h.bf16 %v10680_v58  ;;  %v10681_v23 = vunpack.i.l.bf16 %v10680_v58  ;;  %v10698_v61 = vpack.i.bf16 %v2431_v12, %v2430_v59 }
 0x688   : > { %v2410_v46 = vsel %vm2408_vm10, 0.0, %v10682_v60  ;;  %v2409_v35 = vsel %vm2408_vm10, 0.0, %v10681_v23  ;;  %10699 = vrot.lane.b32.xlu0 %v10698_v61, %s12022_s12 }
 0x689   : > { %v12822_v62 = vpack.c.bf16 %v2410_v46, %v2409_v35  ;;  %v10675_v63 = vpop.permute.xlu1 %10674  ;;  %v2422_v44 = vsel %vm2421_vm11, %v2409_v35, 0.0  ;;  %v2423_v4 = vsel %vm2421_vm11, %v2410_v46, 0.0 }
 0x68a   : > { %v10677_v2 = vunpack.i.h.bf16 %v10675_v63  ;;  %v10676_v10 = vunpack.i.l.bf16 %v10675_v63  ;;  %v10708_v11 = vpack.i.bf16 %v2423_v4, %v2422_v44 }
 0x68c   : > { %v2420_v13 = vsel %vm2408_vm10, 0.0, %v10677_v2  ;;  %v2419_v15 = vsel %vm2408_vm10, 0.0, %v10676_v10  ;;  %10709 = vrot.lane.b32.xlu0 %v10708_v11, %s14608_s24 }
 0x68d   : > { %v12829_v16 = vpack.c.bf16 %v2420_v13, %v2419_v15  ;;  %v10685_v56 = vpop.permute.xlu1 %10684  ;;  %v2432_v17 = vsel %vm2421_vm11, %v2419_v15, 0.0  ;;  %v2433_v43 = vsel %vm2421_vm11, %v2420_v13, 0.0 }
 0x68e   : > { %v10687_v19 = vunpack.i.h.bf16 %v10685_v56  ;;  %v10686_v22 = vunpack.i.l.bf16 %v10685_v56  ;;  %v10703_v26 = vpack.i.bf16 %v2433_v43, %v2432_v17 }
 0x690   : > { %v2412_v32 = vsel %vm2408_vm10, 0.0, %v10687_v19  ;;  %v2411_v48 = vsel %vm2408_vm10, 0.0, %v10686_v22  ;;  %10704 = vrot.lane.b32.xlu1 %v10703_v26, %s12022_s12  ;;  %10719 = vrot.lane.b32.xlu0 %v10688_v42, %s14608_s24 }
 0x691   : > { %v12837_v7 = vpack.c.bf16 %v2412_v32, %v2411_v48  ;;  %v2424_v8 = vsel %vm2421_vm11, %v2411_v48, 0.0  ;;  %v2425_v55 = vsel %vm2421_vm11, %v2412_v32, 0.0  ;;  %vm8486_vm11 = vmneg %vm1791_vm7 }
 0x692   : > { %v10713_v21 = vpack.i.bf16 %v2425_v55, %v2424_v8 }
 0x694   : > { %10714 = vrot.lane.b32.xlu1 %v10713_v21, %s14608_s24  ;;  %10729 = vrot.lane.b32.xlu0 %v10693_v40, %s14608_s24 }
 0x698   : > { %10724 = vrot.lane.b32.xlu1 %v10708_v11, %s12022_s12  ;;  %10739 = vrot.lane.b32.xlu0 %v10698_v61, %s14608_s24 }
 0x69c   : > { %10734 = vrot.lane.b32.xlu1 %v10713_v21, %s12022_s12  ;;  %2588 = vperm.xlu0 %10567, %v2558_v24  }
 0x6a0   : > { %10744 = vrot.lane.b32.xlu1 %v10703_v26, %s14608_s24  ;;  %2598 = vperm.xlu0 %10567, %v2560_v37  }
 0x6a4   : > { %2593 = vperm.xlu1 %10566, %v2559_v29   ;;  %2608 = vperm.xlu0 %10567, %v2562_v30  }
 0x6a8   : > { %2603 = vperm.xlu1 %10566, %v2561_v3   ;;  %2618 = vperm.xlu0 %10567, %v2564_v38   ;;  %v2518_v38 = vld [vmem:[%s14670_s7] sm:$0xff] }
 0x6ac   : > { %2613 = vperm.xlu1 %10566, %v2563_v27   ;;  %2568 = vperm.xlu0 %10567, %v2554_v31   ;;  %v2523_v27 = vld [vmem:[%s14670_s7 + $0x28] sm:$0xff]  ;;  %v2522_v31 = vld [vmem:[%s14670_s7 + $0x20] sm:$0xff] }
 0x6b0   : > { %2623 = vperm.xlu1 %10566, %v2565_v39   ;;  %2578 = vperm.xlu0 %10567, %v2556_v25   ;;  %v2526_v39 = vld [vmem:[%s14670_s7 + $0x40] sm:$0xff]  ;;  %v2521_v25 = vld [vmem:[%s14670_s7 + $0x18] sm:$0xff] }
 0x6b4   : > { %2573 = vperm.xlu1 %10566, %v2555_v33   ;;  %v2529_v33 = vld [vmem:[%s14670_s7 + $0x58] sm:$0xff] }
 0x6b8   : > { %2583 = vperm.xlu1 %10566, %v2557_v41   ;;  %v2525_v41 = vld [vmem:[%s14670_s7 + $0x38] sm:$0xff] }
 0x6ea   : > { %v10690_v20 = vpop.permute.xlu0 %10689 }
 0x6eb   : > { %v10692_v42 = vunpack.i.h.bf16 %v10690_v20  ;;  %v10691_v5 = vunpack.i.l.bf16 %v10690_v20  ;;  %v2532_v20 = vld [vmem:[%s14670_s7 + $0x70] sm:$0xff] }
 0x6ed   : > { %v9828_v6 = vpack.c.bf16 %v10692_v42, %v10691_v5  ;;  %v2524_v42 = vld [vmem:[%s14670_s7 + $0x30] sm:$0xff]  ;;  %v2535_v5 = vld [vmem:[%s14670_s7 + $0x88] sm:$0xff] }
 0x6ef   : > { %9829 = vmatprep.subr.bf16.mxu0 %v9828_v6  ;;  %v2528_v6 = vld [vmem:[%s14670_s7 + $0x50] sm:$0xff] }
 0x6f0   : > { %9832 = vmatpush3.bf16.msk.msra.mxu0 %vm12864_vm12, %v12822_v62 }
 0x6f2   : > { %v10695_v45 = vpop.permute.xlu1 %10694 }
 0x6f3   : > { %v10697_v47 = vunpack.i.h.bf16 %v10695_v45  ;;  %v10696_v49 = vunpack.i.l.bf16 %v10695_v45  ;;  %v2538_v45 = vld [vmem:[%s14670_s7 + $0xa0] sm:$0xff] }
 0x6f5   : > { %v9833_v50 = vpack.c.bf16 %v10697_v47, %v10696_v49  ;;  %v2527_v47 = vld [vmem:[%s14670_s7 + $0x48] sm:$0xff]  ;;  %v2541_v49 = vld [vmem:[%s14670_s7 + $0xb8] sm:$0xff] }
 0x6f7   : > { %9834 = vmatprep.subr.bf16.mxu0 %v9833_v50  ;;  %v2531_v50 = vld [vmem:[%s14670_s7 + $0x68] sm:$0xff] }
 0x6f8   : > { %9837 = vmatpush3.bf16.msk.msra.mxu0 %vm12864_vm12, %v12837_v7 }
 0x6fa   : > { %v10700_v40 = vpop.permute.xlu0 %10699 }
 0x6fb   : > { %v10702_v51 = vunpack.i.h.bf16 %v10700_v40  ;;  %v10701_v52 = vunpack.i.l.bf16 %v10700_v40  ;;  %v2544_v40 = vld [vmem:[%s14670_s7 + $0xd0] sm:$0xff] }
 0x6fd   : > { %v9838_v36 = vpack.c.bf16 %v10702_v51, %v10701_v52  ;;  %v2530_v51 = vld [vmem:[%s14670_s7 + $0x60] sm:$0xff]  ;;  %v2547_v52 = vld [vmem:[%s14670_s7 + $0xe8] sm:$0xff] }
 0x6fe   : > { %v10710_v53 = vpop.permute.xlu0 %10709 }
 0x6ff   : > { %9839 = vmatprep.subr.bf16.mxu0 %v9838_v36  ;;  %v10712_v59 = vunpack.i.h.bf16 %v10710_v53  ;;  %v10711_v12 = vunpack.i.l.bf16 %v10710_v53  ;;  %v2534_v36 = vld [vmem:[%s14670_s7 + $0x80] sm:$0xff] }
 0x700   : > { %9842 = vmatpush3.bf16.msk.msra.mxu0 %vm12864_vm12, %v12801_v34  ;;  %v2550_v53 = vld [vmem:[%s14670_s7 + $0x100] sm:$0xff] }
 0x701   : > { %v9848_v4 = vpack.c.bf16 %v10712_v59, %v10711_v12  ;;  %v2537_v59 = vld [vmem:[%s14670_s7 + $0x98] sm:$0xff]  ;;  %v2536_v12 = vld [vmem:[%s14670_s7 + $0x90] sm:$0xff] }
 0x702   : > { %v10705_v57 = vpop.permute.xlu1 %10704  ;;  %v10720_v58 = vpop.permute.xlu0 %10719 }
 0x703   : > { %v10707_v60 = vunpack.i.h.bf16 %v10705_v57  ;;  %v10706_v23 = vunpack.i.l.bf16 %v10705_v57  ;;  %v10722_v2 = vunpack.i.h.bf16 %v10720_v58  ;;  %v10721_v13 = vunpack.i.l.bf16 %v10720_v58  ;;  %v2533_v57 = vld [vmem:[%s14670_s7 + $0x78] sm:$0xff] }
 0x704   : > { %v2553_v58 = vld [vmem:[%s14670_s7 + $0x118] sm:$0xff] }
 0x705   : > { %v9843_v61 = vpack.c.bf16 %v10707_v60, %v10706_v23  ;;  %v9858_v8 = vpack.c.bf16 %v10722_v2, %v10721_v13  ;;  %v2540_v60 = vld [vmem:[%s14670_s7 + $0xb0] sm:$0xff]  ;;  %v2539_v23 = vld [vmem:[%s14670_s7 + $0xa8] sm:$0xff] }
 0x706   : > { %v10715_v46 = vpop.permute.xlu1 %10714  ;;  %v10730_v35 = vpop.permute.xlu0 %10729  ;;  %v2552_v2 = vld [vmem:[%s14670_s7 + $0x110] sm:$0xff] }
 0x707   : > { %v10717_v63 = vunpack.i.h.bf16 %v10715_v46  ;;  %v10716_v44 = vunpack.i.l.bf16 %v10715_v46  ;;  %9844 = vmatprep.subr.bf16.mxu0 %v9843_v61  ;;  %v10732_v32 = vunpack.i.h.bf16 %v10730_v35  ;;  %v10731_v48 = vunpack.i.l.bf16 %v10730_v35  ;;  %v2543_v61 = vld [vmem:[%s14670_s7 + $0xc8] sm:$0xff]  ;;  %v2542_v46 = vld [vmem:[%s14670_s7 + $0xc0] sm:$0xff] }
 0x708   : > { %9847 = vmatpush3.bf16.msk.msra.mxu0 %vm12864_vm12, %v12808_v18  ;;  %v2546_v35 = vld [vmem:[%s14670_s7 + $0xe0] sm:$0xff] }
 0x709   : > { %9849 = vmatprep.subr.bf16.mxu0 %v9848_v4  ;;  %v9853_v17 = vpack.c.bf16 %v10717_v63, %v10716_v44  ;;  %v9862_v29 = vpack.c.bf16 %v10732_v32, %v10731_v48  ;;  %v2545_v63 = vld [vmem:[%s14670_s7 + $0xd8] sm:$0xff]  ;;  %v2548_v4 = vld [vmem:[%s14670_s7 + $0xf0] sm:$0xff] }
 0x70a   : > { %v10725_v10 = vpop.permute.xlu1 %10724  ;;  %v10740_v11 = vpop.permute.xlu0 %10739  ;;  %v2549_v44 = vld [vmem:[%s14670_s7 + $0xf8] sm:$0xff] }
 0x70b   : > { %v10742_v15 = vunpack.i.h.bf16 %v10740_v11  ;;  %v10741_v56 = vunpack.i.l.bf16 %v10740_v11  ;;  %v10727_v19 = vunpack.i.h.bf16 %v10725_v10  ;;  %v10726_v22 = vunpack.i.l.bf16 %v10725_v10  ;;  %v2551_v10 = vld [vmem:[%s14670_s7 + $0x108] sm:$0xff] }
 0x70c   : > { %9852 = vmatpush3.bf16.msk.msra.mxu0 %vm12864_vm12, %v12815_v54 }
 0x70d   : > { %9854 = vmatprep.subr.bf16.mxu0 %v9853_v17  ;;  %v9866_v43 = vpack.c.bf16 %v10742_v15, %v10741_v56  ;;  %v9860_v55 = vpack.c.bf16 %v10727_v19, %v10726_v22 }
 0x70e   : > { %v10735_v26 = vpop.permute.xlu1 %10734 }
 0x70f   : > { %9867 = vmatprep.subr.bf16.mxu1 %v9866_v43  ;;  %v10737_v21 = vunpack.i.h.bf16 %v10735_v26  ;;  %v10736_v28 = vunpack.i.l.bf16 %v10735_v26 }
 0x710   : > { %9857 = vmatpush3.bf16.msk.msra.mxu0 %vm12864_vm12, %v12829_v16  ;;  %9869 = vmatpush3.bf16.msra.mxu1 %v9866_v43 }
 0x711   : > { %9859 = vmatprep.subr.bf16.mxu0 %v9858_v8  ;;  %v9864_v3 = vpack.c.bf16 %v10737_v21, %v10736_v28 }
 0x712   : > { %v10745_v24 = vpop.permute.xlu1 %10744 }
 0x713   : > { %v10747_v14 = vunpack.i.h.bf16 %v10745_v24  ;;  %v10746_v37 = vunpack.i.l.bf16 %v10745_v24 }
 0x714   : > { %9861 = vmatpush3.bf16.msra.mxu0 %v9860_v55 }
 0x715   : > { %9863 = vmatprep.subr.bf16.mxu0 %v9862_v29  ;;  %v9870_v30 = vpack.c.bf16 %v10747_v14, %v10746_v37 }
 0x717   : > { %9871 = vmatprep.subr.bf16.mxu1 %v9870_v30 }
 0x718   : > { %9865 = vmatpush3.bf16.msra.mxu0 %v9864_v3  ;;  %9873 = vmatpush3.bf16.msra.mxu1 %v9870_v30 }
 0x71b   : > { %2727 = vmatmul.mubr.f32.vlgmr.msra.gmra.mrb[36].mxu0 %v2518_v38  ;;  %9438 = vmatmul.mubr.msk.f32.vlgmr.msra.gmra.mrb[26].mxu1 %vm1791_vm7, %v2523_v27  ;;  %v2589_v11 = vpop.permute.xlu0 %2588 }
 0x71c   : > { %2731 = vmatprep.mubr.f32.mxu0 %v2522_v31  ;;  %9440 = vmatprep.mubr.msk.f32.mxu1 %vm1791_vm7, %v2526_v39 }
 0x71f   : > { %2732 = vmatmul.mubr.f32.gmra.mrb[38].mxu0 %v2521_v25  ;;  %9441 = vmatmul.mubr.msk.f32.gmra.mrb[28].mxu1 %vm1791_vm7, %v2529_v33  ;;  %v12931_v15 = vpop.permute.xlu0 %2598 }
 0x720   : > { %2736 = vmatprep.mubr.f32.mxu0 %v2525_v41  ;;  %9443 = vmatprep.mubr.msk.f32.mxu1 %vm1791_vm7, %v2532_v20 }
 0x723   : > { %2737 = vmatmul.mubr.f32.gmra.mrb[40].mxu0 %v2524_v42  ;;  %9444 = vmatmul.mubr.msk.f32.gmra.mrb[30].mxu1 %vm1791_vm7, %v2535_v5  ;;  %v2594_v13 = vpop.permute.xlu1 %2593  ;;  %v12935_v17 = vpop.permute.xlu0 %2608 }
 0x724   : > { %2741 = vmatprep.mubr.f32.mxu0 %v2528_v6  ;;  %9446 = vmatprep.mubr.msk.f32.mxu1 %vm1791_vm7, %v2538_v45 }
 0x727   : > { %2742 = vmatmul.mubr.f32.gmra.mrb[42].mxu0 %v2527_v47  ;;  %9447 = vmatmul.mubr.msk.f32.gmra.mrb[32].mxu1 %vm1791_vm7, %v2541_v49  ;;  %v12933_v56 = vpop.permute.xlu1 %2603  ;;  %v12939_v19 = vpop.permute.xlu0 %2618 }
 0x728   : > { %2746 = vmatprep.mubr.f32.mxu0 %v2531_v50  ;;  %9449 = vmatprep.mubr.msk.f32.mxu1 %vm1791_vm7, %v2544_v40 }
 0x72b   : > { %2747 = vmatmul.mubr.f32.gmra.mrb[44].mxu0 %v2530_v51  ;;  %9450 = vmatmul.mubr.msk.f32.gmra.mrb[34].mxu1 %vm1791_vm7, %v2547_v52  ;;  %v12937_v43 = vpop.permute.xlu1 %2613  ;;  %v2569_v21 = vpop.permute.xlu0 %2568 }
 0x72c   : > { %2751 = vmatprep.mubr.f32.mxu0 %v2534_v36  ;;  %9452 = vmatprep.mubr.msk.f32.mxu1 %vm1791_vm7, %v2550_v53 }
 0x72f   : > { %2752 = vmatmul.mubr.f32.gmra.mrb[46].mxu0 %v2533_v57  ;;  %9453 = vmatmul.mubr.msk.f32.gmra.mrb[36].mxu1 %vm1791_vm7, %v2553_v58  ;;  %v12941_v22 = vpop.permute.xlu1 %2623  ;;  %v2579_v42 = vpop.permute.xlu0 %2578 }
 0x730   : > { %2756 = vmatprep.mubr.f32.mxu0 %v2537_v59 }
 0x733   : > { %2757 = vmatmul.mubr.f32.gmra.mrb[48].mxu0 %v2536_v12  ;;  %v2574_v38 = vpop.permute.xlu1 %2573 }
 0x734   : > { %2761 = vmatprep.mubr.f32.mxu0 %v2540_v60 }
 0x737   : > { %2762 = vmatmul.mubr.f32.gmra.mrb[50].mxu0 %v2539_v23  ;;  %v2584_v51 = vpop.permute.xlu1 %2583 }
 0x738   : > { %2766 = vmatprep.mubr.f32.mxu0 %v2543_v61 }
 0x73b   : > { %2767 = vmatmul.mubr.f32.gmra.mrb[52].mxu0 %v2542_v46 }
 0x73c   : > { %2771 = vmatprep.mubr.f32.mxu0 %v2546_v35 }
 0x73f   : > { %2772 = vmatmul.mubr.f32.gmra.mrb[54].mxu0 %v2545_v63 }
 0x740   : > { %2776 = vmatprep.mubr.f32.mxu0 %v2549_v44 }
 0x743   : > { %2777 = vmatmul.mubr.f32.gmra.mrb[56].mxu0 %v2548_v4 }
 0x744   : > { %2781 = vmatprep.mubr.f32.mxu0 %v2552_v2 }
 0x747   : > { %2782 = vmatmul.mubr.f32.gmra.mrb[58].mxu0 %v2551_v10 }
 0x7ee   : > { %v8708_v26 = vpop.f32.mrb[36].mxu0  ;;  %v9439_v32 = vpop.f32.mrb[26].mxu1 }
 0x7ef   : > { %v8709_v48 = vpop.f32.mrb[37].mxu0  ;;  %v2853_v8 = vpop.f32.mrb[27].mxu1 }
 0x7f0   : > { %v8710_v55 = vadd.f32 %v8709_v48, %v8708_v26 }
 0x7f2   : > { %v8711_v28 = vpop.f32.mrb[38].mxu0  ;;  %v2729_v24 = vadd.f32 %v8710_v55, %v2569_v21  ;;  %v9442_v14 = vpop.f32.mrb[28].mxu1 }
 0x7f3   : > { %v8712_v37 = vpop.f32.mrb[39].mxu0  ;;  %v2863_v29 = vpop.f32.mrb[29].mxu1 }
 0x7f4   : > { %v8713_v30 = vadd.f32 %v8712_v37, %v8711_v28  ;;  %v2854_v3 = vadd.f32 %v2853_v8, %v2729_v24 }
 0x7f6   : > { %v2734_v27 = vadd.f32 %v8713_v30, %v2574_v38  ;;  %v8714_v31 = vpop.f32.mrb[40].mxu0  ;;  %v9445_v39 = vpop.f32.mrb[30].mxu1  ;;  %11461 = vtanh.f32 %v2854_v3 }
 0x7f7   : > { %v8715_v25 = vpop.f32.mrb[41].mxu0  ;;  %v2873_v33 = vpop.f32.mrb[31].mxu1 }
 0x7f8   : > { %v2859_v41 = vadd.f32 %v9439_v32, %v2734_v27  ;;  %v8716_v20 = vadd.f32 %v8715_v25, %v8714_v31 }
 0x7fa   : > { %11463 = vtanh.f32 %v2859_v41  ;;  %v8717_v5 = vpop.f32.mrb[42].mxu0  ;;  %v2739_v6 = vadd.f32 %v8716_v20, %v2579_v42  ;;  %v9448_v45 = vpop.f32.mrb[32].mxu1 }
 0x7fb   : > { %v8718_v47 = vpop.f32.mrb[43].mxu0  ;;  %v2883_v49 = vpop.f32.mrb[33].mxu1 }
 0x7fc   : > { %v8719_v50 = vadd.f32 %v8718_v47, %v8717_v5  ;;  %v2864_v40 = vadd.f32 %v2863_v29, %v2739_v6 }
 0x7fe   : > { %v2744_v52 = vadd.f32 %v8719_v50, %v2584_v51  ;;  %v8720_v36 = vpop.f32.mrb[44].mxu0  ;;  %v9451_v53 = vpop.f32.mrb[34].mxu1  ;;  %11465 = vtanh.f32 %v2864_v40 }
 0x7ff   : > { %v8721_v57 = vpop.f32.mrb[45].mxu0  ;;  %v2893_v58 = vpop.f32.mrb[35].mxu1 }
 0x800   : > { %v2869_v59 = vadd.f32 %v9442_v14, %v2744_v52  ;;  %v8722_v12 = vadd.f32 %v8721_v57, %v8720_v36  ;;  %v12943_v46 = vpop.eup %11461 }
 0x802   : > { %11467 = vtanh.f32 %v2869_v59  ;;  %v8723_v60 = vpop.f32.mrb[46].mxu0  ;;  %v2749_v23 = vadd.f32 %v8722_v12, %v2589_v11  ;;  %v9454_v61 = vpop.f32.mrb[36].mxu1 }
 0x803   : > { %v8724_v35 = vpop.f32.mrb[47].mxu0  ;;  %v2903_v63 = vpop.f32.mrb[37].mxu1 }
 0x804   : > { %v11464_v44 = vpop.eup %11463  ;;  %v8725_v4 = vadd.f32 %v8724_v35, %v8723_v60  ;;  %v2874_v2 = vadd.f32 %v2873_v33, %v2749_v23 }
 0x805   : > { %v10768_v10 = vpack.i.bf16 %v11464_v44, %v12943_v46 }
 0x806   : > { %v2754_v26 = vadd.f32 %v8725_v4, %v2594_v13  ;;  %v8726_v32 = vpop.f32.mrb[48].mxu0  ;;  %11469 = vtanh.f32 %v2874_v2 }
 0x807   : > { %v8727_v48 = vpop.f32.mrb[49].mxu0 }
 0x808   : > { %v2879_v8 = vadd.f32 %v9445_v39, %v2754_v26  ;;  %v8728_v55 = vadd.f32 %v8727_v48, %v8726_v32  ;;  %v11466_v28 = vpop.eup %11465 }
 0x80a   : > { %11471 = vtanh.f32 %v2879_v8  ;;  %v8729_v21 = vpop.f32.mrb[50].mxu0  ;;  %v2759_v11 = vadd.f32 %v8728_v55, %v12931_v15 }
 0x80b   : > { %v8730_v24 = vpop.f32.mrb[51].mxu0 }
 0x80c   : > { %v11468_v14 = vpop.eup %11467  ;;  %v8731_v37 = vadd.f32 %v8730_v24, %v8729_v21  ;;  %v2884_v29 = vadd.f32 %v2883_v49, %v2759_v11 }
 0x80d   : > { %v10773_v30 = vpack.i.bf16 %v11468_v14, %v11466_v28 }
 0x80e   : > { %v2764_v3 = vadd.f32 %v8731_v37, %v12933_v56  ;;  %v8732_v38 = vpop.f32.mrb[52].mxu0  ;;  %11473 = vtanh.f32 %v2884_v29 }
 0x80f   : > { %v8733_v27 = vpop.f32.mrb[53].mxu0 }
 0x810   : > { %v2889_v13 = vadd.f32 %v9448_v45, %v2764_v3  ;;  %v8734_v31 = vadd.f32 %v8733_v27, %v8732_v38  ;;  %v11470_v33 = vpop.eup %11469 }
 0x812   : > { %11475 = vtanh.f32 %v2889_v13  ;;  %v8735_v39 = vpop.f32.mrb[54].mxu0  ;;  %v2769_v25 = vadd.f32 %v8734_v31, %v12935_v17 }
 0x813   : > { %v8736_v41 = vpop.f32.mrb[55].mxu0 }
 0x814   : > { %v11472_v15 = vpop.eup %11471  ;;  %v8737_v20 = vadd.f32 %v8736_v41, %v8735_v39  ;;  %v2894_v42 = vadd.f32 %v2893_v58, %v2769_v25 }
 0x815   : > { %v10748_v5 = vpack.i.bf16 %v11472_v15, %v11470_v33 }
 0x816   : > { %v2774_v6 = vadd.f32 %v8737_v20, %v12937_v43  ;;  %v8738_v47 = vpop.f32.mrb[56].mxu0  ;;  %11477 = vtanh.f32 %v2894_v42 }
 0x817   : > { %v8739_v49 = vpop.f32.mrb[57].mxu0  ;;  %10749 = vrot.lane.b32.xlu0 %v10748_v5, %s12026_s15 }
 0x818   : > { %v2899_v56 = vadd.f32 %v9451_v53, %v2774_v6  ;;  %v8740_v45 = vadd.f32 %v8739_v49, %v8738_v47  ;;  %v11474_v17 = vpop.eup %11473 }
 0x81a   : > { %11479 = vtanh.f32 %v2899_v56  ;;  %v8741_v50 = vpop.f32.mrb[58].mxu0  ;;  %v2779_v40 = vadd.f32 %v8740_v45, %v12939_v19 }
 0x81b   : > { %v8742_v51 = vpop.f32.mrb[59].mxu0 }
 0x81c   : > { %v11476_v52 = vpop.eup %11475  ;;  %v8743_v36 = vadd.f32 %v8742_v51, %v8741_v50  ;;  %v2904_v57 = vadd.f32 %v2903_v63, %v2779_v40 }
 0x81d   : > { %v10753_v58 = vpack.i.bf16 %v11476_v52, %v11474_v17 }
 0x81e   : > { %v2784_v59 = vadd.f32 %v8743_v36, %v12941_v22  ;;  %11481 = vtanh.f32 %v2904_v57 }
 0x81f   : > { %10754 = vrot.lane.b32.xlu1 %v10753_v58, %s12026_s15 }
 0x820   : > { %v2909_v43 = vadd.f32 %v9454_v61, %v2784_v59  ;;  %v11478_v53 = vpop.eup %11477 }
 0x822   : > { %11483 = vtanh.f32 %v2909_v43 }
 0x824   : > { %v11480_v12 = vpop.eup %11479 }
 0x825   : > { %v10758_v60 = vpack.i.bf16 %v11480_v12, %v11478_v53 }
 0x827   : > { %10759 = vrot.lane.b32.xlu0 %v10758_v60, %s12026_s15 }
 0x828   : > { %v11482_v23 = vpop.eup %11481 }
 0x82b   : > { %10769 = vrot.lane.b32.xlu0 %v10768_v10, %s12026_s15 }
 0x82c   : > { %v11484_v19 = vpop.eup %11483 }
 0x82d   : > { %v10763_v46 = vpack.i.bf16 %v11484_v19, %v11482_v23 }
 0x82f   : > { %10764 = vrot.lane.b32.xlu1 %v10763_v46, %s12026_s15  ;;  %v3120_v46 = vld [vmem:[%s14675_s2 + $0x20] sm:$0xff] }
 0x833   : > { %10774 = vrot.lane.b32.xlu1 %v10773_v30, %s12026_s15  ;;  %s14684_s15 = sld [smem:[#allocation30_spill]] }
 0x889   : > { %v10750_v22 = vpop.permute.xlu0 %10749 }
 0x88a   : > { %v10752_v35 = vunpack.i.h.bf16 %v10750_v22  ;;  %v10751_v63 = vunpack.i.l.bf16 %v10750_v22  ;;  %v3081_v22 = vld [vmem:[%s14676_s10 + $0x8] sm:$0xff] }
 0x88b   : > { %3288 = vmatprep.mubr.f32.mxu1 %v3081_v22 }
 0x88c   : > { %v12959_v61 = vsel %vm2408_vm10, 0.0, %v10752_v35  ;;  %v12962_v44 = vsel %vm2408_vm10, 0.0, %v10751_v63  ;;  %v3082_v35 = vld [vmem:[%s14676_s10 + $0x10] sm:$0xff] }
 0x88d   : > { %v9886_v4 = vpack.c.bf16 %v12959_v61, %v12962_v44  ;;  %v2988_v2 = vsel %vm1179_vm1, %v12962_v44, 0.0  ;;  %v2989_v10 = vsel %vm1179_vm1, %v12959_v61, 0.0  ;;  %9463 = vmatprep.mubr.msk.f32.mxu0 %vm1791_vm7, %v3082_v35  ;;  %v3122_v63 = vld [vmem:[%s14675_s2 + $0x30] sm:$0xff] }
 0x88e   : > { %v10778_v26 = vpack.i.bf16 %v2989_v10, %v2988_v2  ;;  %v3121_v2 = vld [vmem:[%s14675_s2 + $0x28] sm:$0xff]  ;;  %v3124_v10 = vld [vmem:[%s14675_s2 + $0x40] sm:$0xff] }
 0x890   : > { %10779 = vrot.lane.b32.xlu0 %v10778_v26, %s12022_s12 }
 0x891   : > { %v10755_v32 = vpop.permute.xlu1 %10754 }
 0x892   : > { %v10757_v48 = vunpack.i.h.bf16 %v10755_v32  ;;  %v10756_v8 = vunpack.i.l.bf16 %v10755_v32  ;;  %v3126_v32 = vld [vmem:[%s14675_s2 + $0x50] sm:$0xff] }
 0x894   : > { %v12972_v55 = vsel %vm2408_vm10, 0.0, %v10757_v48  ;;  %v12975_v21 = vsel %vm2408_vm10, 0.0, %v10756_v8  ;;  %v3125_v48 = vld [vmem:[%s14675_s2 + $0x48] sm:$0xff]  ;;  %v3502_v8 = vld [vmem:[%s14677_s23 + $0x20] sm:$0xff] }
 0x895   : > { %v9891_v11 = vpack.c.bf16 %v12972_v55, %v12975_v21  ;;  %v2990_v28 = vsel %vm1179_vm1, %v12975_v21, 0.0  ;;  %v2991_v24 = vsel %vm1179_vm1, %v12972_v55, 0.0 }
 0x896   : > { %v10783_v14 = vpack.i.bf16 %v2991_v24, %v2990_v28  ;;  %v3127_v28 = vld [vmem:[%s14675_s2 + $0x58] sm:$0xff]  ;;  %v3116_v24 = vld [vmem:[%s14675_s2] sm:$0xff] }
 0x898   : > { %10784 = vrot.lane.b32.xlu1 %v10783_v14, %s12022_s12 }
 0x899   : > { %v10760_v37 = vpop.permute.xlu0 %10759 }
 0x89a   : > { %v10762_v29 = vunpack.i.h.bf16 %v10760_v37  ;;  %v10761_v30 = vunpack.i.l.bf16 %v10760_v37  ;;  %v3504_v37 = vld [vmem:[%s14677_s23 + $0x30] sm:$0xff] }
 0x89c   : > { %v12985_v3 = vsel %vm2408_vm10, 0.0, %v10762_v29  ;;  %v12988_v38 = vsel %vm2408_vm10, 0.0, %v10761_v30  ;;  %v3117_v29 = vld [vmem:[%s14675_s2 + $0x8] sm:$0xff]  ;;  %v3118_v30 = vld [vmem:[%s14675_s2 + $0x10] sm:$0xff] }
 0x89d   : > { %v9896_v27 = vpack.c.bf16 %v12985_v3, %v12988_v38  ;;  %v10770_v13 = vpop.permute.xlu0 %10769  ;;  %v2992_v31 = vsel %vm1179_vm1, %v12988_v38, 0.0  ;;  %v2993_v39 = vsel %vm1179_vm1, %v12985_v3, 0.0 }
 0x89e   : > { %v10772_v25 = vunpack.i.h.bf16 %v10770_v13  ;;  %v10771_v33 = vunpack.i.l.bf16 %v10770_v13  ;;  %v10788_v41 = vpack.i.bf16 %v2993_v39, %v2992_v31  ;;  %v3505_v13 = vld [vmem:[%s14677_s23 + $0x38] sm:$0xff]  ;;  %v3506_v31 = vld [vmem:[%s14677_s23 + $0x40] sm:$0xff] }
 0x89f   : > { %v3119_v39 = vld [vmem:[%s14675_s2 + $0x18] sm:$0xff] }
 0x8a0   : > { %v12997_v15 = vsel %vm2408_vm10, 0.0, %v10772_v25  ;;  %v13000_v20 = vsel %vm2408_vm10, 0.0, %v10771_v33  ;;  %10789 = vrot.lane.b32.xlu0 %v10788_v41, %s12022_s12  ;;  %v3508_v25 = vld [vmem:[%s14677_s23 + $0x50] sm:$0xff]  ;;  %v3507_v33 = vld [vmem:[%s14677_s23 + $0x48] sm:$0xff] }
 0x8a1   : > { %v9876_v42 = vpack.c.bf16 %v12997_v15, %v13000_v20  ;;  %v10765_v5 = vpop.permute.xlu1 %10764  ;;  %v2984_v6 = vsel %vm1179_vm1, %v13000_v20, 0.0  ;;  %v2985_v47 = vsel %vm1179_vm1, %v12997_v15, 0.0 }
 0x8a2   : > { %v10767_v49 = vunpack.i.h.bf16 %v10765_v5  ;;  %v10766_v56 = vunpack.i.l.bf16 %v10765_v5  ;;  %v10798_v45 = vpack.i.bf16 %v2985_v47, %v2984_v6  ;;  %v3509_v5 = vld [vmem:[%s14677_s23 + $0x58] sm:$0xff]  ;;  %v3500_v6 = vld [vmem:[%s14677_s23 + $0x10] sm:$0xff]  ;;  %v3499_v47 = vld [vmem:[%s14677_s23 + $0x8] sm:$0xff] }
 0x8a4   : > { %v13010_v50 = vsel %vm2408_vm10, 0.0, %v10767_v49  ;;  %v13013_v40 = vsel %vm2408_vm10, 0.0, %v10766_v56  ;;  %10799 = vrot.lane.b32.xlu0 %v10798_v45, %s14608_s24  ;;  %v3501_v49 = vld [vmem:[%s14677_s23 + $0x18] sm:$0xff] }
 0x8a5   : > { %v9901_v17 = vpack.c.bf16 %v13010_v50, %v13013_v40  ;;  %v10775_v51 = vpop.permute.xlu1 %10774  ;;  %v2994_v52 = vsel %vm1179_vm1, %v13013_v40, 0.0  ;;  %v2995_v36 = vsel %vm1179_vm1, %v13010_v50, 0.0 }
 0x8a6   : > { %v10777_v57 = vunpack.i.h.bf16 %v10775_v51  ;;  %v10776_v58 = vunpack.i.l.bf16 %v10775_v51  ;;  %v10793_v59 = vpack.i.bf16 %v2995_v36, %v2994_v52  ;;  %v3100_v36 = vld [vmem:[%s14676_s10 + $0xa0] sm:$0xff] }
 0x8a8   : > { %v13023_v43 = vsel %vm2408_vm10, 0.0, %v10777_v57  ;;  %v13026_v53 = vsel %vm2408_vm10, 0.0, %v10776_v58  ;;  %10794 = vrot.lane.b32.xlu1 %v10793_v59, %s12022_s12  ;;  %10809 = vrot.lane.b32.xlu0 %v10778_v26, %s14608_s24  ;;  %v3123_v26 = vld [vmem:[%s14675_s2 + $0x38] sm:$0xff]  ;;  %s14690_s2 = sld [smem:[#allocation32_spill]] }
 0x8a9   : > { %v2987_v12 = vsel %vm1179_vm1, %v13023_v43, 0.0  ;;  %v2986_v60 = vsel %vm1179_vm1, %v13026_v53, 0.0  ;;  %v9881_v23 = vpack.c.bf16 %v13023_v43, %v13026_v53  ;;  %vm13542_vm1 = vmpackc.low %vm4378_vm0, %vm4378_vm0 }
 0x8aa   : > { %v10803_v19 = vpack.i.bf16 %v2987_v12, %v2986_v60 }
 0x8ac   : > { %10804 = vrot.lane.b32.xlu1 %v10803_v19, %s14608_s24  ;;  %10819 = vrot.lane.b32.xlu0 %v10783_v14, %s14608_s24  ;;  %v3503_v14 = vld [vmem:[%s14677_s23 + $0x28] sm:$0xff] }
 0x8b0   : > { %10814 = vrot.lane.b32.xlu1 %v10798_v45, %s12022_s12  ;;  %10829 = vrot.lane.b32.xlu0 %v10788_v41, %s14608_s24  ;;  %v3498_v41 = vld [vmem:[%s14677_s23] sm:$0xff] }
 0x8b4   : > { %10824 = vrot.lane.b32.xlu1 %v10803_v19, %s12022_s12  ;;  %3150 = vperm.xlu0 %10567, %v3120_v46   ;;  %s14680_s12 = sld [smem:[#allocation27_spill]] }
 0x8b8   : > { %10834 = vrot.lane.b32.xlu1 %v10793_v59, %s14608_s24  ;;  %3160 = vperm.xlu0 %10567, %v3122_v63  }
 0x8bc   : > { %3155 = vperm.xlu1 %10566, %v3121_v2   ;;  %3170 = vperm.xlu0 %10567, %v3124_v10  }
 0x8c0   : > { %3165 = vperm.xlu1 %10566, %v3123_v26   ;;  %3180 = vperm.xlu0 %10567, %v3126_v32  }
 0x8c4   : > { %3175 = vperm.xlu1 %10566, %v3125_v48   ;;  %3532 = vperm.xlu0 %10567, %v3502_v8  }
 0x8c8   : > { %3185 = vperm.xlu1 %10566, %v3127_v28   ;;  %3130 = vperm.xlu0 %10567, %v3116_v24  }
 0x8cc   : > { %3537 = vperm.xlu1 %10566, %v3503_v14   ;;  %3542 = vperm.xlu0 %10567, %v3504_v37  }
 0x8d0   : > { %3135 = vperm.xlu1 %10566, %v3117_v29   ;;  %3140 = vperm.xlu0 %10567, %v3118_v30  }
 0x8d4   : > { %3547 = vperm.xlu1 %10566, %v3505_v13   ;;  %3552 = vperm.xlu0 %10567, %v3506_v31  }
 0x8d8   : > { %3145 = vperm.xlu1 %10566, %v3119_v39   ;;  %3562 = vperm.xlu0 %10567, %v3508_v25  }
 0x8dc   : > { %3557 = vperm.xlu1 %10566, %v3507_v33   ;;  %3512 = vperm.xlu0 %10567, %v3498_v41   ;;  %v3085_v41 = vld [vmem:[%s14676_s10 + $0x28] sm:$0xff] }
 0x8e0   : > { %3567 = vperm.xlu1 %10566, %v3509_v5   ;;  %3522 = vperm.xlu0 %10567, %v3500_v6   ;;  %v3084_v5 = vld [vmem:[%s14676_s10 + $0x20] sm:$0xff] }
 0x8e1   : > { %v3088_v6 = vld [vmem:[%s14676_s10 + $0x40] sm:$0xff] }
 0x8e4   : > { %3517 = vperm.xlu1 %10566, %v3499_v47   ;;  %v3083_v47 = vld [vmem:[%s14676_s10 + $0x18] sm:$0xff] }
 0x8e8   : > { %3527 = vperm.xlu1 %10566, %v3501_v49   ;;  %v3091_v49 = vld [vmem:[%s14676_s10 + $0x58] sm:$0xff] }
 0x902   : > { %v10780_v56 = vpop.permute.xlu0 %10779 }
 0x903   : > { %v10782_v45 = vunpack.i.h.bf16 %v10780_v56  ;;  %v10781_v51 = vunpack.i.l.bf16 %v10780_v56  ;;  %v3087_v56 = vld [vmem:[%s14676_s10 + $0x38] sm:$0xff] }
 0x905   : > { %v9874_v52 = vpack.c.bf16 %v10782_v45, %v10781_v51  ;;  %v3094_v45 = vld [vmem:[%s14676_s10 + $0x70] sm:$0xff]  ;;  %v3097_v51 = vld [vmem:[%s14676_s10 + $0x88] sm:$0xff] }
 0x907   : > { %9875 = vmatprep.subr.bf16.mxu1 %v9874_v52  ;;  %v3090_v52 = vld [vmem:[%s14676_s10 + $0x50] sm:$0xff] }
 0x908   : > { %9878 = vmatpush3.bf16.msk.msra.mxu1 %vm13071_vm13, %v9876_v42 }
 0x90a   : > { %v10785_v57 = vpop.permute.xlu1 %10784 }
 0x90b   : > { %v10787_v58 = vunpack.i.h.bf16 %v10785_v57  ;;  %v10786_v59 = vunpack.i.l.bf16 %v10785_v57  ;;  %v3103_v57 = vld [vmem:[%s14676_s10 + $0xb8] sm:$0xff] }
 0x90d   : > { %v9879_v12 = vpack.c.bf16 %v10787_v58, %v10786_v59  ;;  %v3093_v58 = vld [vmem:[%s14676_s10 + $0x68] sm:$0xff]  ;;  %v3106_v59 = vld [vmem:[%s14676_s10 + $0xd0] sm:$0xff] }
 0x90f   : > { %9880 = vmatprep.subr.bf16.mxu1 %v9879_v12  ;;  %v3109_v12 = vld [vmem:[%s14676_s10 + $0xe8] sm:$0xff] }
 0x910   : > { %9883 = vmatpush3.bf16.msk.msra.mxu1 %vm13071_vm13, %v9881_v23 }
 0x912   : > { %v10790_v60 = vpop.permute.xlu0 %10789 }
 0x913   : > { %v10792_v19 = vunpack.i.h.bf16 %v10790_v60  ;;  %v10791_v46 = vunpack.i.l.bf16 %v10790_v60  ;;  %v3096_v60 = vld [vmem:[%s14676_s10 + $0x80] sm:$0xff] }
 0x915   : > { %v9884_v22 = vpack.c.bf16 %v10792_v19, %v10791_v46  ;;  %v3112_v19 = vld [vmem:[%s14676_s10 + $0x100] sm:$0xff]  ;;  %v3115_v46 = vld [vmem:[%s14676_s10 + $0x118] sm:$0xff] }
 0x916   : > { %v10800_v35 = vpop.permute.xlu0 %10799 }
 0x917   : > { %9885 = vmatprep.subr.bf16.mxu1 %v9884_v22  ;;  %v10802_v42 = vunpack.i.h.bf16 %v10800_v35  ;;  %v10801_v63 = vunpack.i.l.bf16 %v10800_v35  ;;  %v3099_v22 = vld [vmem:[%s14676_s10 + $0x98] sm:$0xff] }
 0x918   : > { %9888 = vmatpush3.bf16.msk.msra.mxu1 %vm13071_vm13, %v9886_v4  ;;  %v3486_v35 = vld [vmem:[#allocation6] sm:$0xff] }
 0x919   : > { %v9894_v48 = vpack.c.bf16 %v10802_v42, %v10801_v63  ;;  %v3488_v42 = vld [vmem:[#allocation6 + $0x10] sm:$0xff] }
 0x91a   : > { %v10795_v15 = vpop.permute.xlu1 %10794  ;;  %v10810_v20 = vpop.permute.xlu0 %10809  ;;  %v3101_v63 = vld [vmem:[%s14676_s10 + $0xa8] sm:$0xff] }
 0x91b   : > { %v10797_v43 = vunpack.i.h.bf16 %v10795_v15  ;;  %v10796_v53 = vunpack.i.l.bf16 %v10795_v15  ;;  %v10812_v61 = vunpack.i.h.bf16 %v10810_v20  ;;  %v10811_v8 = vunpack.i.l.bf16 %v10810_v20  ;;  %v3487_v15 = vld [vmem:[#allocation6 + $0x8] sm:$0xff]  ;;  %v3102_v20 = vld [vmem:[%s14676_s10 + $0xb0] sm:$0xff] }
 0x91d   : > { %v9889_v2 = vpack.c.bf16 %v10797_v43, %v10796_v53  ;;  %v9904_v13 = vpack.c.bf16 %v10812_v61, %v10811_v8  ;;  %v3489_v43 = vld [vmem:[#allocation6 + $0x18] sm:$0xff]  ;;  %v3104_v53 = vld [vmem:[%s14676_s10 + $0xc0] sm:$0xff]  ;;  %v3494_v61 = vld [vmem:[#allocation6 + $0x40] sm:$0xff] }
 0x91e   : > { %v10805_v23 = vpop.permute.xlu1 %10804  ;;  %v10820_v10 = vpop.permute.xlu0 %10819  ;;  %v3114_v8 = vld [vmem:[%s14676_s10 + $0x110] sm:$0xff] }
 0x91f   : > { %v10807_v26 = vunpack.i.h.bf16 %v10805_v23  ;;  %v10806_v32 = vunpack.i.l.bf16 %v10805_v23  ;;  %9890 = vmatprep.subr.bf16.mxu1 %v9889_v2  ;;  %v10821_v30 = vunpack.i.l.bf16 %v10820_v10  ;;  %v3491_v2 = vld [vmem:[#allocation6 + $0x28] sm:$0xff] }
 0x920   : > { %9893 = vmatpush3.bf16.msk.msra.mxu1 %vm13071_vm13, %v9891_v11  ;;  %v10822_v11 = vunpack.i.h.bf16 %v10820_v10  ;;  %v3108_v23 = vld [vmem:[%s14676_s10 + $0xe0] sm:$0xff]  ;;  %v3492_v10 = vld [vmem:[#allocation6 + $0x30] sm:$0xff] }
 0x921   : > { %9895 = vmatprep.subr.bf16.mxu1 %v9894_v48  ;;  %v9899_v14 = vpack.c.bf16 %v10807_v26, %v10806_v32  ;;  %v3107_v26 = vld [vmem:[%s14676_s10 + $0xd8] sm:$0xff]  ;;  %v3493_v32 = vld [vmem:[#allocation6 + $0x38] sm:$0xff] }
 0x922   : > { %v10815_v44 = vpop.permute.xlu1 %10814  ;;  %v10830_v4 = vpop.permute.xlu0 %10829  ;;  %v9908_v33 = vpack.c.bf16 %v10822_v11, %v10821_v30  ;;  %v3111_v48 = vld [vmem:[%s14676_s10 + $0xf8] sm:$0xff] }
 0x923   : > { %v10832_v28 = vunpack.i.h.bf16 %v10830_v4  ;;  %v10831_v24 = vunpack.i.l.bf16 %v10830_v4  ;;  %v10817_v55 = vunpack.i.h.bf16 %v10815_v44  ;;  %v10816_v21 = vunpack.i.l.bf16 %v10815_v44  ;;  %v3110_v44 = vld [vmem:[%s14676_s10 + $0xf0] sm:$0xff]  ;;  %v3495_v4 = vld [vmem:[#allocation6 + $0x48] sm:$0xff] }
 0x924   : > { %9898 = vmatpush3.bf16.msk.msra.mxu1 %vm13071_vm13, %v9896_v27 }
 0x925   : > { %9900 = vmatprep.subr.bf16.mxu1 %v9899_v14  ;;  %v9912_v37 = vpack.c.bf16 %v10832_v28, %v10831_v24  ;;  %v9906_v3 = vpack.c.bf16 %v10817_v55, %v10816_v21  ;;  %v3496_v28 = vld [vmem:[#allocation6 + $0x50] sm:$0xff]  ;;  %v3497_v14 = vld [vmem:[#allocation6 + $0x58] sm:$0xff] }
 0x926   : > { %v10825_v29 = vpop.permute.xlu1 %10824  ;;  %v3113_v24 = vld [vmem:[%s14676_s10 + $0x108] sm:$0xff] }
 0x927   : > { %9913 = vmatprep.subr.bf16.mxu0 %v9912_v37  ;;  %v10827_v38 = vunpack.i.h.bf16 %v10825_v29  ;;  %v10826_v27 = vunpack.i.l.bf16 %v10825_v29 }
 0x928   : > { %9903 = vmatpush3.bf16.msk.msra.mxu1 %vm13071_vm13, %v9901_v17  ;;  %9915 = vmatpush3.bf16.msra.mxu0 %v9912_v37  ;;  %v3080_v17 = vld [vmem:[%s14676_s10] sm:$0xff]  ;;  %vm14347_vm13 = vmpackc.low %vm8486_vm11, %vm8486_vm11 }
 0x929   : > { %9905 = vmatprep.subr.bf16.mxu1 %v9904_v13  ;;  %v9910_v40 = vpack.c.bf16 %v10827_v38, %v10826_v27 }
 0x92a   : > { %v10835_v31 = vpop.permute.xlu1 %10834 }
 0x92b   : > { %v10837_v39 = vunpack.i.h.bf16 %v10835_v31  ;;  %v10836_v25 = vunpack.i.l.bf16 %v10835_v31 }
 0x92c   : > { %9907 = vmatpush3.bf16.msra.mxu1 %v9906_v3 }
 0x92d   : > { %9909 = vmatprep.subr.bf16.mxu1 %v9908_v33  ;;  %v9916_v50 = vpack.c.bf16 %v10837_v39, %v10836_v25 }
 0x92f   : > { %9917 = vmatprep.subr.bf16.mxu0 %v9916_v50 }
 0x930   : > { %9911 = vmatpush3.bf16.msra.mxu1 %v9910_v40  ;;  %9919 = vmatpush3.bf16.msra.mxu0 %v9916_v50 }
 0x931   : > { %9922 = vmatprep.subr.msk.bf16.mxu0 %vm12864_vm12, %v12822_v62 }
 0x933   : > { %3289 = vmatmul.mubr.f32.vlgmr.msra.gmra.mrb[38].mxu1 %v3080_v17  ;;  %9464 = vmatmul.mubr.msk.f32.vlgmr.msra.gmra.mrb[60].mxu0 %vm1791_vm7, %v3085_v41  ;;  %v3151_v37 = vpop.permute.xlu0 %3150 }
 0x934   : > { %9925 = vmatpush3.bf16.msk.msra.mxu0 %vm12864_vm12, %v12822_v62  ;;  %3293 = vmatprep.mubr.f32.mxu1 %v3084_v5  ;;  %v3086_v62 = vld [vmem:[%s14676_s10 + $0x30] sm:$0xff] }
 0x935   : > { %9928 = vmatprep.subr.msk.bf16.mxu0 %vm12864_vm12, %v12837_v7  ;;  %9466 = vmatprep.mubr.msk.f32.mxu0 %vm1791_vm7, %v3088_v6 }
 0x937   : > { %3294 = vmatmul.mubr.f32.gmra.mrb[40].mxu1 %v3083_v47  ;;  %9467 = vmatmul.mubr.msk.f32.gmra.mrb[62].mxu0 %vm1791_vm7, %v3091_v49  ;;  %v13200_v21 = vpop.permute.xlu0 %3160 }
 0x938   : > { %9931 = vmatpush3.bf16.msk.msra.mxu0 %vm12864_vm12, %v12837_v7  ;;  %3298 = vmatprep.mubr.f32.mxu1 %v3087_v56  ;;  %v3089_v7 = vld [vmem:[%s14676_s10 + $0x48] sm:$0xff] }
 0x939   : > { %9934 = vmatprep.subr.msk.bf16.mxu0 %vm12864_vm12, %v12801_v34  ;;  %9469 = vmatprep.mubr.msk.f32.mxu0 %vm1791_vm7, %v3094_v45 }
 0x93b   : > { %3299 = vmatmul.mubr.f32.gmra.mrb[42].mxu1 %v3086_v62  ;;  %9470 = vmatmul.mubr.msk.f32.gmra.mrb[64].mxu0 %vm1791_vm7, %v3097_v51  ;;  %v13198_v55 = vpop.permute.xlu1 %3155  ;;  %v13204_v11 = vpop.permute.xlu0 %3170 }
 0x93c   : > { %9937 = vmatpush3.bf16.msk.msra.mxu0 %vm12864_vm12, %v12801_v34  ;;  %3303 = vmatprep.mubr.f32.mxu1 %v3090_v52  ;;  %v3092_v34 = vld [vmem:[%s14676_s10 + $0x60] sm:$0xff] }
 0x93d   : > { %9940 = vmatprep.subr.msk.bf16.mxu0 %vm12864_vm12, %v12808_v18  ;;  %9472 = vmatprep.mubr.msk.f32.mxu0 %vm1791_vm7, %v3100_v36 }
 0x93f   : > { %3304 = vmatmul.mubr.f32.gmra.mrb[44].mxu1 %v3089_v7  ;;  %9473 = vmatmul.mubr.msk.f32.gmra.mrb[66].mxu0 %vm1791_vm7, %v3103_v57  ;;  %v13202_v29 = vpop.permute.xlu1 %3165  ;;  %v13208_v13 = vpop.permute.xlu0 %3180 }
 0x940   : > { %9943 = vmatpush3.bf16.msk.msra.mxu0 %vm12864_vm12, %v12808_v18  ;;  %3308 = vmatprep.mubr.f32.mxu1 %v3093_v58  ;;  %v3095_v18 = vld [vmem:[%s14676_s10 + $0x78] sm:$0xff] }
 0x941   : > { %9946 = vmatprep.subr.msk.bf16.mxu0 %vm12864_vm12, %v12815_v54  ;;  %9475 = vmatprep.mubr.msk.f32.mxu0 %vm1791_vm7, %v3106_v59 }
 0x943   : > { %3309 = vmatmul.mubr.f32.gmra.mrb[46].mxu1 %v3092_v34  ;;  %9476 = vmatmul.mubr.msk.f32.gmra.mrb[68].mxu0 %vm1791_vm7, %v3109_v12  ;;  %v13206_v30 = vpop.permute.xlu1 %3175  ;;  %v13212_v38 = vpop.permute.xlu0 %3532 }
 0x944   : > { %9949 = vmatpush3.bf16.msk.msra.mxu0 %vm12864_vm12, %v12815_v54  ;;  %3313 = vmatprep.mubr.f32.mxu1 %v3096_v60  ;;  %v3098_v54 = vld [vmem:[%s14676_s10 + $0x90] sm:$0xff] }
 0x945   : > { %9952 = vmatprep.subr.msk.bf16.mxu0 %vm12864_vm12, %v12829_v16  ;;  %9478 = vmatprep.mubr.msk.f32.mxu0 %vm1791_vm7, %v3112_v19 }
 0x947   : > { %3314 = vmatmul.mubr.f32.gmra.mrb[48].mxu1 %v3095_v18  ;;  %9479 = vmatmul.mubr.msk.f32.gmra.mrb[70].mxu0 %vm1791_vm7, %v3115_v46  ;;  %v13210_v3 = vpop.permute.xlu1 %3185  ;;  %v3131_v31 = vpop.permute.xlu0 %3130 }
 0x948   : > { %9955 = vmatpush3.bf16.msk.msra.mxu0 %vm12864_vm12, %v12829_v16  ;;  %3318 = vmatprep.mubr.f32.mxu1 %v3099_v22  ;;  %v3490_v16 = vld [vmem:[#allocation6 + $0x20] sm:$0xff]  ;;  %vm14341_vm12 = vmpackc.low %vm2174_vm9, %vm2174_vm9 }
 0x949   : > { %9505 = vmatprep.mubr.msk.f32.mxu0 %vm3570_vm14, %v3486_v35 }
 0x94b   : > { %3319 = vmatmul.mubr.f32.gmra.mrb[50].mxu1 %v3098_v54  ;;  %9506 = vmatmul.mubr.msk.f32.vlgmr.msra.gmra.mrb[72].mxu0 %vm3570_vm14, %v3487_v15  ;;  %v13214_v27 = vpop.permute.xlu1 %3537  ;;  %v13216_v25 = vpop.permute.xlu0 %3542 }
 0x94c   : > { %3323 = vmatprep.mubr.f32.mxu1 %v3102_v20  ;;  %9508 = vmatprep.mubr.msk.f32.mxu0 %vm3570_vm14, %v3488_v42 }
 0x94f   : > { %3324 = vmatmul.mubr.f32.gmra.mrb[52].mxu1 %v3101_v63  ;;  %9509 = vmatmul.mubr.msk.f32.gmra.mrb[74].mxu0 %vm3570_vm14, %v3489_v43  ;;  %v3136_v39 = vpop.permute.xlu1 %3135  ;;  %v3141_v50 = vpop.permute.xlu0 %3140 }
 0x950   : > { %3328 = vmatprep.mubr.f32.mxu1 %v3105_v9  ;;  %9511 = vmatprep.mubr.msk.f32.mxu0 %vm3570_vm14, %v3490_v16 }
 0x953   : > { %3329 = vmatmul.mubr.f32.gmra.mrb[54].mxu1 %v3104_v53  ;;  %9512 = vmatmul.mubr.msk.f32.gmra.mrb[76].mxu0 %vm3570_vm14, %v3491_v2  ;;  %v13218_v33 = vpop.permute.xlu1 %3547  ;;  %v13220_v49 = vpop.permute.xlu0 %3552 }
 0x954   : > { %3333 = vmatprep.mubr.f32.mxu1 %v3108_v23  ;;  %9514 = vmatprep.mubr.msk.f32.mxu0 %vm3570_vm14, %v3492_v10 }
 0x957   : > { %3334 = vmatmul.mubr.f32.gmra.mrb[56].mxu1 %v3107_v26  ;;  %9515 = vmatmul.mubr.msk.f32.gmra.mrb[78].mxu0 %vm3570_vm14, %v3493_v32  ;;  %v3146_v40 = vpop.permute.xlu1 %3145  ;;  %v13224_v46 = vpop.permute.xlu0 %3562 }
 0x958   : > { %3338 = vmatprep.mubr.f32.mxu1 %v3111_v48  ;;  %9517 = vmatprep.mubr.msk.f32.mxu0 %vm3570_vm14, %v3494_v61 }
 0x95b   : > { %3339 = vmatmul.mubr.f32.gmra.mrb[58].mxu1 %v3110_v44  ;;  %9518 = vmatmul.mubr.msk.f32.gmra.mrb[80].mxu0 %vm3570_vm14, %v3495_v4  ;;  %v13222_v56 = vpop.permute.xlu1 %3557  ;;  %v3513_v32 = vpop.permute.xlu0 %3512 }
 0x95c   : > { %3343 = vmatprep.mubr.f32.mxu1 %v3114_v8  ;;  %9520 = vmatprep.mubr.msk.f32.mxu0 %vm3570_vm14, %v3496_v28 }
 0x95f   : > { %3344 = vmatmul.mubr.f32.gmra.mrb[60].mxu1 %v3113_v24  ;;  %9521 = vmatmul.mubr.msk.f32.gmra.mrb[82].mxu0 %vm3570_vm14, %v3497_v14  ;;  %v13226_v22 = vpop.permute.xlu1 %3567 }
 0x963   : > { %v3518_v48 = vpop.permute.xlu1 %3517 }
 0xa06   : > { %v8792_v17 = vpop.f32.mrb[38].mxu1  ;;  %v9465_v41 = vpop.f32.mrb[60].mxu0 }
 0xa07   : > { %v8793_v5 = vpop.f32.mrb[39].mxu1  ;;  %v3415_v6 = vpop.f32.mrb[61].mxu0 }
 0xa08   : > { %v8794_v47 = vadd.f32 %v8793_v5, %v8792_v17 }
 0xa0a   : > { %v8795_v45 = vpop.f32.mrb[40].mxu1  ;;  %v3291_v62 = vadd.f32 %v8794_v47, %v3131_v31  ;;  %v9468_v51 = vpop.f32.mrb[62].mxu0 }
 0xa0b   : > { %v8796_v52 = vpop.f32.mrb[41].mxu1  ;;  %v3425_v36 = vpop.f32.mrb[63].mxu0 }
 0xa0c   : > { %v8797_v7 = vadd.f32 %v8796_v52, %v8795_v45  ;;  %v3416_v57 = vadd.f32 %v3415_v6, %v3291_v62  ;;  %v3523_v62 = vpop.permute.xlu0 %3522 }
 0xa0e   : > { %v3296_v58 = vadd.f32 %v8797_v7, %v3136_v39  ;;  %v8798_v59 = vpop.f32.mrb[42].mxu1  ;;  %v9471_v34 = vpop.f32.mrb[64].mxu0 }
 0xa0f   : > { %v8799_v12 = vpop.f32.mrb[43].mxu1  ;;  %v3435_v60 = vpop.f32.mrb[65].mxu0 }
 0xa10   : > { %v3421_v19 = vadd.f32 %v9465_v41, %v3296_v58  ;;  %v8800_v18 = vadd.f32 %v8799_v12, %v8798_v59 }
 0xa12   : > { %v8801_v35 = vpop.f32.mrb[44].mxu1  ;;  %v3301_v54 = vadd.f32 %v8800_v18, %v3141_v50  ;;  %v13228_v15 = vpop.f32.mrb[66].mxu0  ;;  %11485 = vtanh.f32 %v3421_v19 }
 0xa13   : > { %v8802_v20 = vpop.f32.mrb[45].mxu1  ;;  %v3445_v42 = vpop.f32.mrb[67].mxu0  ;;  %11487 = vtanh.f32 %v3416_v57 }
 0xa14   : > { %v8803_v63 = vadd.f32 %v8802_v20, %v8801_v35  ;;  %v3426_v43 = vadd.f32 %v3425_v36, %v3301_v54 }
 0xa16   : > { %v3306_v9 = vadd.f32 %v8803_v63, %v3146_v40  ;;  %v8804_v16 = vpop.f32.mrb[46].mxu1  ;;  %v13230_v53 = vpop.f32.mrb[68].mxu0 }
 0xa17   : > { %v8805_v2 = vpop.f32.mrb[47].mxu1  ;;  %v13232_v23 = vpop.f32.mrb[69].mxu0 }
 0xa18   : > { %v3431_v10 = vadd.f32 %v9468_v51, %v3306_v9  ;;  %v8806_v26 = vadd.f32 %v8805_v2, %v8804_v16  ;;  %v3528_v51 = vpop.permute.xlu1 %3527 }
 0xa1a   : > { %11489 = vtanh.f32 %v3431_v10  ;;  %v3311_v61 = vadd.f32 %v8806_v26, %v3151_v37  ;;  %v8807_v44 = vpop.f32.mrb[48].mxu1  ;;  %v13234_v4 = vpop.f32.mrb[70].mxu0 }
 0xa1b   : > { %11491 = vtanh.f32 %v3426_v43  ;;  %v8808_v8 = vpop.f32.mrb[49].mxu1  ;;  %v13236_v28 = vpop.f32.mrb[71].mxu0 }
 0xa1c   : > { %v3436_v24 = vadd.f32 %v3435_v60, %v3311_v61  ;;  %v8809_v14 = vadd.f32 %v8808_v8, %v8807_v44  ;;  %v11486_v5 = vpop.eup %11485 }
 0xa1d   : > { %v11488_v45 = vpop.eup %11487 }
 0xa1e   : > { %11493 = vtanh.f32 %v3436_v24  ;;  %v3316_v31 = vadd.f32 %v8809_v14, %v13198_v55  ;;  %v8810_v39 = vpop.f32.mrb[50].mxu1  ;;  %v9507_v50 = vpop.f32.mrb[72].mxu0 }
 0xa1f   : > { %v3679_v40 = vadd.f32 %v9507_v50, %v3518_v48  ;;  %v8811_v17 = vpop.f32.mrb[51].mxu1  ;;  %v3673_v41 = vpop.f32.mrb[73].mxu0 }
 0xa20   : > { %v3441_v6 = vadd.f32 %v9471_v34, %v3316_v31  ;;  %v8812_v37 = vadd.f32 %v8811_v17, %v8810_v39  ;;  %v3674_v47 = vadd.f32 %v3673_v41, %v3513_v32 }
 0xa21   : > { %v3733_v52 = vadd.f32 %v11486_v5, %v3679_v40 }
 0xa22   : > { %11495 = vtanh.f32 %v3441_v6  ;;  %v3321_v36 = vadd.f32 %v8812_v37, %v13200_v21  ;;  %v3732_v7 = vadd.f32 %v11488_v45, %v3674_v47  ;;  %v8813_v57 = vpop.f32.mrb[52].mxu1  ;;  %v9510_v58 = vpop.f32.mrb[74].mxu0 }
 0xa23   : > { %v3745_v55 = vmax.f32 %v3733_v52, 0.0  ;;  %v3689_v59 = vadd.f32 %v9510_v58, %v3528_v51  ;;  %v8814_v12 = vpop.f32.mrb[53].mxu1  ;;  %v3683_v60 = vpop.f32.mrb[75].mxu0 }
 0xa24   : > { %v11490_v19 = vpop.eup %11489  ;;  %v3446_v18 = vadd.f32 %v3445_v42, %v3321_v36  ;;  %v3744_v35 = vmax.f32 %v3732_v7, 0.0  ;;  %v8815_v34 = vadd.f32 %v8814_v12, %v8813_v57  ;;  %v3684_v54 = vadd.f32 %v3683_v60, %v3523_v62 }
 0xa25   : > { %v11492_v20 = vpop.eup %11491  ;;  %v3735_v63 = vadd.f32 %v11490_v19, %v3689_v59 }
 0xa26   : > { %11497 = vtanh.f32 %v3446_v18  ;;  %v13240_v43 = vpack.i.bf16 %v3745_v55, %v3744_v35  ;;  %v3326_v9 = vadd.f32 %v8815_v34, %v13202_v29  ;;  %v3734_v21 = vadd.f32 %v11492_v20, %v3684_v54  ;;  %v8816_v16 = vpop.f32.mrb[54].mxu1  ;;  %v9513_v2 = vpop.f32.mrb[76].mxu0 }
 0xa27   : > { %v3747_v10 = vmax.f32 %v3735_v63, 0.0  ;;  %v8817_v26 = vpop.f32.mrb[55].mxu1  ;;  %v3693_v32 = vpop.f32.mrb[77].mxu0  ;;  %v3699_v50 = vadd.f32 %v9513_v2, %v13214_v27 }
 0xa28   : > { %v11494_v48 = vpop.eup %11493  ;;  %v3451_v61 = vadd.f32 %v13228_v15, %v3326_v9  ;;  %v3746_v42 = vmax.f32 %v3734_v21, 0.0  ;;  %v8818_v44 = vadd.f32 %v8817_v26, %v8816_v16  ;;  %v3694_v8 = vadd.f32 %v3693_v32, %v13212_v38 }
 0xa2a   : > { %11499 = vtanh.f32 %v3451_v61  ;;  %v13245_v24 = vpack.i.bf16 %v3747_v10, %v3746_v42  ;;  %v3331_v14 = vadd.f32 %v8818_v44, %v13204_v11  ;;  %v3736_v31 = vadd.f32 %v11494_v48, %v3694_v8  ;;  %v8819_v29 = vpop.f32.mrb[56].mxu1  ;;  %v9516_v39 = vpop.f32.mrb[78].mxu0 }
 0xa2b   : > { %v8820_v40 = vpop.f32.mrb[57].mxu1  ;;  %v3703_v17 = vpop.f32.mrb[79].mxu0 }
 0xa2c   : > { %v11496_v41 = vpop.eup %11495  ;;  %v3456_v5 = vadd.f32 %v13232_v23, %v3331_v14  ;;  %v8821_v15 = vadd.f32 %v8820_v40, %v8819_v29  ;;  %v3748_v62 = vmax.f32 %v3736_v31, 0.0  ;;  %v3704_v11 = vadd.f32 %v3703_v17, %v13216_v25 }
 0xa2d   : > { %v3737_v6 = vadd.f32 %v11496_v41, %v3699_v50 }
 0xa2e   : > { %11501 = vtanh.f32 %v3456_v5  ;;  %v3336_v38 = vadd.f32 %v8821_v15, %v13206_v30  ;;  %v8822_v37 = vpop.f32.mrb[58].mxu1  ;;  %v9519_v47 = vpop.f32.mrb[80].mxu0  ;;  %v3709_v30 = vadd.f32 %v9516_v39, %v13218_v33 }
 0xa2f   : > { %v3749_v45 = vmax.f32 %v3737_v6, 0.0  ;;  %v8823_v51 = vpop.f32.mrb[59].mxu1  ;;  %v3713_v52 = vpop.f32.mrb[81].mxu0  ;;  %v3719_v21 = vadd.f32 %v9519_v47, %v13222_v56 }
 0xa30   : > { %v11498_v36 = vpop.eup %11497  ;;  %v3461_v27 = vadd.f32 %v13230_v53, %v3336_v38  ;;  %v8824_v7 = vadd.f32 %v8823_v51, %v8822_v37 }
 0xa31   : > { %v10838_v57 = vpack.i.bf16 %v3749_v45, %v3748_v62  ;;  %v3738_v58 = vadd.f32 %v11498_v36, %v3704_v11 }
 0xa32   : > { %11503 = vtanh.f32 %v3461_v27  ;;  %v3341_v23 = vadd.f32 %v8824_v7, %v13208_v13  ;;  %v8825_v55 = vpop.f32.mrb[60].mxu1  ;;  %v9522_v59 = vpop.f32.mrb[82].mxu0  ;;  %v3714_v13 = vadd.f32 %v3713_v52, %v13220_v49 }
 0xa33   : > { %v8826_v12 = vpop.f32.mrb[61].mxu1  ;;  %v3723_v60 = vpop.f32.mrb[83].mxu0  ;;  %10839 = vrot.lane.b32.xlu0 %v10838_v57, %s12028_s1  ;;  %v3750_v54 = vmax.f32 %v3738_v58, 0.0  ;;  %v3729_v49 = vadd.f32 %v9522_v59, %v13226_v22 }
 0xa34   : > { %v11500_v25 = vpop.eup %11499  ;;  %v3466_v19 = vadd.f32 %v13236_v28, %v3341_v23  ;;  %v8827_v18 = vadd.f32 %v8826_v12, %v8825_v55 }
 0xa35   : > { %v3739_v53 = vadd.f32 %v11500_v25, %v3709_v30 }
 0xa36   : > { %11505 = vtanh.f32 %v3466_v19  ;;  %v3346_v35 = vadd.f32 %v8827_v18, %v13210_v3  ;;  %v3724_v3 = vadd.f32 %v3723_v60, %v13224_v46 }
 0xa37   : > { %v3751_v34 = vmax.f32 %v3739_v53, 0.0 }
 0xa38   : > { %v11502_v20 = vpop.eup %11501  ;;  %v3471_v33 = vadd.f32 %v13234_v4, %v3346_v35 }
 0xa39   : > { %v10843_v63 = vpack.i.bf16 %v3751_v34, %v3750_v54  ;;  %v3740_v9 = vadd.f32 %v11502_v20, %v3714_v13 }
 0xa3a   : > { %11507 = vtanh.f32 %v3471_v33 }
 0xa3b   : > { %10844 = vrot.lane.b32.xlu1 %v10843_v63, %s12028_s1  ;;  %v3752_v10 = vmax.f32 %v3740_v9, 0.0 }
 0xa3c   : > { %v11504_v28 = vpop.eup %11503 }
 0xa3d   : > { %v3741_v16 = vadd.f32 %v11504_v28, %v3719_v21 }
 0xa3f   : > { %v3753_v2 = vmax.f32 %v3741_v16, 0.0 }
 0xa40   : > { %v11506_v26 = vpop.eup %11505 }
 0xa41   : > { %v10848_v32 = vpack.i.bf16 %v3753_v2, %v3752_v10  ;;  %v3742_v48 = vadd.f32 %v11506_v26, %v3724_v3 }
 0xa43   : > { %10849 = vrot.lane.b32.xlu0 %v10848_v32, %s12028_s1  ;;  %v3754_v42 = vmax.f32 %v3742_v48, 0.0  ;;  %v3913_v32 = vld [vmem:[%s14680_s12 + $0x8] sm:$0xff]  ;;  %v3952_v48 = vld [vmem:[%s14681_s11 + $0x20] sm:$0xff] }
 0xa44   : > { %v11508_v4 = vpop.eup %11507  ;;  %4120 = vmatprep.mubr.f32.mxu1 %v3913_v32 }
 0xa45   : > { %v3743_v61 = vadd.f32 %v11508_v4, %v3729_v49  ;;  %v3914_v49 = vld [vmem:[%s14680_s12 + $0x10] sm:$0xff] }
 0xa46   : > { %v3954_v4 = vld [vmem:[%s14681_s11 + $0x30] sm:$0xff]  ;;  %9531 = vmatprep.mubr.msk.f32.mxu0 %vm1791_vm7, %v3914_v49 }
 0xa47   : > { %v3755_v44 = vmax.f32 %v3743_v61, 0.0  ;;  %10859 = vrot.lane.b32.xlu0 %v13240_v43, %s12028_s1  ;;  %v3953_v61 = vld [vmem:[%s14681_s11 + $0x28] sm:$0xff] }
 0xa49   : > { %v10853_v56 = vpack.i.bf16 %v3755_v44, %v3754_v42  ;;  %v3956_v42 = vld [vmem:[%s14681_s11 + $0x40] sm:$0xff]  ;;  %v3955_v44 = vld [vmem:[%s14681_s11 + $0x38] sm:$0xff] }
 0xa4b   : > { %10854 = vrot.lane.b32.xlu1 %v10853_v56, %s12028_s1  ;;  %v3958_v56 = vld [vmem:[%s14681_s11 + $0x50] sm:$0xff] }
 0xa4f   : > { %10864 = vrot.lane.b32.xlu1 %v13245_v24, %s12028_s1 }
 0xaa5   : > { %v10840_v46 = vpop.permute.xlu0 %10839 }
 0xaa6   : > { %v10842_v8 = vunpack.i.h.bf16 %v10840_v46  ;;  %v10841_v14 = vunpack.i.l.bf16 %v10840_v46  ;;  %v3957_v46 = vld [vmem:[%s14681_s11 + $0x48] sm:$0xff] }
 0xaa8   : > { %v3809_v22 = vsel %vm2174_vm9, 0.0, %v10842_v8  ;;  %v3808_v31 = vsel %vm2174_vm9, 0.0, %v10841_v14  ;;  %v3948_v8 = vld [vmem:[%s14681_s11] sm:$0xff]  ;;  %v3959_v14 = vld [vmem:[%s14681_s11 + $0x58] sm:$0xff] }
 0xaa9   : > { %v3821_v29 = vsel %vm1791_vm7, %v3809_v22, 0.0  ;;  %v3820_v39 = vsel %vm1791_vm7, %v3808_v31, 0.0  ;;  %v13274_v50 = vpack.c.bf16 %v3809_v22, %v3808_v31  ;;  %v3950_v22 = vld [vmem:[%s14681_s11 + $0x10] sm:$0xff]  ;;  %v3949_v31 = vld [vmem:[%s14681_s11 + $0x8] sm:$0xff] }
 0xaaa   : > { %v10868_v43 = vpack.i.bf16 %v3821_v29, %v3820_v39  ;;  %v3951_v29 = vld [vmem:[%s14681_s11 + $0x18] sm:$0xff] }
 0xaac   : > { %10869 = vrot.lane.b32.xlu0 %v10868_v43, %s14608_s24 }
 0xaad   : > { %v10845_v40 = vpop.permute.xlu1 %10844 }
 0xaae   : > { %v10847_v17 = vunpack.i.h.bf16 %v10845_v40  ;;  %v10846_v41 = vunpack.i.l.bf16 %v10845_v40 }
 0xab0   : > { %v3811_v24 = vsel %vm2174_vm9, 0.0, %v10847_v17  ;;  %v3810_v5 = vsel %vm2174_vm9, 0.0, %v10846_v41 }
 0xab1   : > { %v3823_v15 = vsel %vm1791_vm7, %v3811_v24, 0.0  ;;  %v3822_v6 = vsel %vm1791_vm7, %v3810_v5, 0.0  ;;  %v13281_v38 = vpack.c.bf16 %v3811_v24, %v3810_v5 }
 0xab2   : > { %v10873_v37 = vpack.i.bf16 %v3823_v15, %v3822_v6 }
 0xab4   : > { %10874 = vrot.lane.b32.xlu1 %v10873_v37, %s14608_s24 }
 0xab5   : > { %v10850_v47 = vpop.permute.xlu0 %10849 }
 0xab6   : > { %v10852_v45 = vunpack.i.h.bf16 %v10850_v47  ;;  %v10851_v62 = vunpack.i.l.bf16 %v10850_v47 }
 0xab8   : > { %v3813_v11 = vsel %vm2174_vm9, 0.0, %v10852_v45  ;;  %v3812_v51 = vsel %vm2174_vm9, 0.0, %v10851_v62 }
 0xab9   : > { %v3825_v52 = vsel %vm1791_vm7, %v3813_v11, 0.0  ;;  %v3824_v36 = vsel %vm1791_vm7, %v3812_v51, 0.0  ;;  %v13288_v27 = vpack.c.bf16 %v3813_v11, %v3812_v51  ;;  %v10860_v7 = vpop.permute.xlu0 %10859 }
 0xaba   : > { %v10862_v57 = vunpack.i.h.bf16 %v10860_v7  ;;  %v10861_v58 = vunpack.i.l.bf16 %v10860_v7  ;;  %v10878_v23 = vpack.i.bf16 %v3825_v52, %v3824_v36 }
 0xabc   : > { %v3805_v55 = vsel %vm2174_vm9, 0.0, %v10862_v57  ;;  %v3804_v59 = vsel %vm2174_vm9, 0.0, %v10861_v58  ;;  %10879 = vrot.lane.b32.xlu0 %v10878_v23, %s14608_s24 }
 0xabd   : > { %v3817_v30 = vsel %vm1791_vm7, %v3805_v55, 0.0  ;;  %v3816_v12 = vsel %vm1791_vm7, %v3804_v59, 0.0  ;;  %v13295_v60 = vpack.c.bf16 %v3805_v55, %v3804_v59  ;;  %v10855_v25 = vpop.permute.xlu1 %10854 }
 0xabe   : > { %v10857_v19 = vunpack.i.h.bf16 %v10855_v25  ;;  %v10856_v18 = vunpack.i.l.bf16 %v10855_v25  ;;  %v10888_v53 = vpack.i.bf16 %v3817_v30, %v3816_v12 }
 0xac0   : > { %v3815_v35 = vsel %vm2174_vm9, 0.0, %v10857_v19  ;;  %v3814_v34 = vsel %vm2174_vm9, 0.0, %v10856_v18  ;;  %10889 = vrot.lane.b32.xlu0 %v10888_v53, %s14610_s28 }
 0xac1   : > { %v3827_v54 = vsel %vm1791_vm7, %v3815_v35, 0.0  ;;  %v3826_v13 = vsel %vm1791_vm7, %v3814_v34, 0.0  ;;  %v13302_v20 = vpack.c.bf16 %v3815_v35, %v3814_v34  ;;  %v10865_v33 = vpop.permute.xlu1 %10864 }
 0xac2   : > { %v10867_v63 = vunpack.i.h.bf16 %v10865_v33  ;;  %v10866_v9 = vunpack.i.l.bf16 %v10865_v33  ;;  %v10883_v21 = vpack.i.bf16 %v3827_v54, %v3826_v13 }
 0xac4   : > { %v3807_v28 = vsel %vm2174_vm9, 0.0, %v10867_v63  ;;  %v3806_v16 = vsel %vm2174_vm9, 0.0, %v10866_v9  ;;  %10884 = vrot.lane.b32.xlu1 %v10883_v21, %s14608_s24  ;;  %10899 = vrot.lane.b32.xlu0 %v10868_v43, %s14610_s28 }
 0xac5   : > { %v3819_v2 = vsel %vm1791_vm7, %v3807_v28, 0.0  ;;  %v3818_v10 = vsel %vm1791_vm7, %v3806_v16, 0.0  ;;  %v13310_v3 = vpack.c.bf16 %v3807_v28, %v3806_v16 }
 0xac6   : > { %v10893_v26 = vpack.i.bf16 %v3819_v2, %v3818_v10 }
 0xac8   : > { %10894 = vrot.lane.b32.xlu1 %v10893_v26, %s14610_s28  ;;  %10909 = vrot.lane.b32.xlu0 %v10873_v37, %s14610_s28 }
 0xacc   : > { %10904 = vrot.lane.b32.xlu1 %v10888_v53, %s14608_s24  ;;  %10919 = vrot.lane.b32.xlu0 %v10878_v23, %s14610_s28 }
 0xad0   : > { %10914 = vrot.lane.b32.xlu1 %v10893_v26, %s14608_s24  ;;  %3982 = vperm.xlu0 %10567, %v3952_v48  }
 0xad4   : > { %10924 = vrot.lane.b32.xlu1 %v10883_v21, %s14610_s28  ;;  %3992 = vperm.xlu0 %10567, %v3954_v4  }
 0xad8   : > { %3987 = vperm.xlu1 %10566, %v3953_v61   ;;  %4002 = vperm.xlu0 %10567, %v3956_v42  }
 0xadc   : > { %3997 = vperm.xlu1 %10566, %v3955_v44   ;;  %4012 = vperm.xlu0 %10567, %v3958_v56   ;;  %v3912_v56 = vld [vmem:[%s14680_s12] sm:$0xff] }
 0xae0   : > { %4007 = vperm.xlu1 %10566, %v3957_v46   ;;  %3962 = vperm.xlu0 %10567, %v3948_v8   ;;  %v3917_v46 = vld [vmem:[%s14680_s12 + $0x28] sm:$0xff]  ;;  %v3916_v8 = vld [vmem:[%s14680_s12 + $0x20] sm:$0xff] }
 0xae4   : > { %4017 = vperm.xlu1 %10566, %v3959_v14   ;;  %3972 = vperm.xlu0 %10567, %v3950_v22   ;;  %v3920_v14 = vld [vmem:[%s14680_s12 + $0x40] sm:$0xff]  ;;  %v3915_v22 = vld [vmem:[%s14680_s12 + $0x18] sm:$0xff] }
 0xae8   : > { %3967 = vperm.xlu1 %10566, %v3949_v31   ;;  %v3923_v31 = vld [vmem:[%s14680_s12 + $0x58] sm:$0xff] }
 0xaec   : > { %3977 = vperm.xlu1 %10566, %v3951_v29   ;;  %v3919_v29 = vld [vmem:[%s14680_s12 + $0x38] sm:$0xff] }
 0xb1e   : > { %v10870_v39 = vpop.permute.xlu0 %10869 }
 0xb1f   : > { %v10872_v43 = vunpack.i.h.bf16 %v10870_v39  ;;  %v10871_v40 = vunpack.i.l.bf16 %v10870_v39  ;;  %v3926_v39 = vld [vmem:[%s14680_s12 + $0x70] sm:$0xff] }
 0xb21   : > { %v9956_v17 = vpack.c.bf16 %v10872_v43, %v10871_v40  ;;  %v3918_v43 = vld [vmem:[%s14680_s12 + $0x30] sm:$0xff]  ;;  %v3929_v40 = vld [vmem:[%s14680_s12 + $0x88] sm:$0xff] }
 0xb23   : > { %9957 = vmatprep.subr.bf16.mxu1 %v9956_v17  ;;  %v3922_v17 = vld [vmem:[%s14680_s12 + $0x50] sm:$0xff] }
 0xb24   : > { %9960 = vmatpush3.bf16.msk.msra.mxu1 %vm13335_vm15, %v13295_v60 }
 0xb26   : > { %v10875_v24 = vpop.permute.xlu1 %10874 }
 0xb27   : > { %v10877_v5 = vunpack.i.h.bf16 %v10875_v24  ;;  %v10876_v15 = vunpack.i.l.bf16 %v10875_v24  ;;  %v3932_v24 = vld [vmem:[%s14680_s12 + $0xa0] sm:$0xff] }
 0xb29   : > { %v9961_v6 = vpack.c.bf16 %v10877_v5, %v10876_v15  ;;  %v3921_v5 = vld [vmem:[%s14680_s12 + $0x48] sm:$0xff]  ;;  %v3935_v15 = vld [vmem:[%s14680_s12 + $0xb8] sm:$0xff] }
 0xb2b   : > { %9962 = vmatprep.subr.bf16.mxu1 %v9961_v6  ;;  %v3925_v6 = vld [vmem:[%s14680_s12 + $0x68] sm:$0xff] }
 0xb2c   : > { %9965 = vmatpush3.bf16.msk.msra.mxu1 %vm13335_vm15, %v13310_v3 }
 0xb2e   : > { %v10880_v37 = vpop.permute.xlu0 %10879 }
 0xb2f   : > { %v10882_v47 = vunpack.i.h.bf16 %v10880_v37  ;;  %v10881_v45 = vunpack.i.l.bf16 %v10880_v37  ;;  %v3938_v37 = vld [vmem:[%s14680_s12 + $0xd0] sm:$0xff] }
 0xb31   : > { %v9966_v62 = vpack.c.bf16 %v10882_v47, %v10881_v45  ;;  %v3924_v47 = vld [vmem:[%s14680_s12 + $0x60] sm:$0xff]  ;;  %v3941_v45 = vld [vmem:[%s14680_s12 + $0xe8] sm:$0xff] }
 0xb32   : > { %v10890_v11 = vpop.permute.xlu0 %10889 }
 0xb33   : > { %9967 = vmatprep.subr.bf16.mxu1 %v9966_v62  ;;  %v10892_v36 = vunpack.i.h.bf16 %v10890_v11  ;;  %v10891_v7 = vunpack.i.l.bf16 %v10890_v11  ;;  %v3928_v62 = vld [vmem:[%s14680_s12 + $0x80] sm:$0xff] }
 0xb34   : > { %9970 = vmatpush3.bf16.msk.msra.mxu1 %vm13335_vm15, %v13274_v50  ;;  %v3944_v11 = vld [vmem:[%s14680_s12 + $0x100] sm:$0xff] }
 0xb35   : > { %v9976_v25 = vpack.c.bf16 %v10892_v36, %v10891_v7  ;;  %v3931_v36 = vld [vmem:[%s14680_s12 + $0x98] sm:$0xff]  ;;  %v3930_v7 = vld [vmem:[%s14680_s12 + $0x90] sm:$0xff] }
 0xb36   : > { %v10885_v51 = vpop.permute.xlu1 %10884  ;;  %v10900_v52 = vpop.permute.xlu0 %10899 }
 0xb37   : > { %v10887_v57 = vunpack.i.h.bf16 %v10885_v51  ;;  %v10886_v58 = vunpack.i.l.bf16 %v10885_v51  ;;  %v10902_v19 = vunpack.i.h.bf16 %v10900_v52  ;;  %v10901_v35 = vunpack.i.l.bf16 %v10900_v52  ;;  %v3927_v51 = vld [vmem:[%s14680_s12 + $0x78] sm:$0xff] }
 0xb38   : > { %v3947_v52 = vld [vmem:[%s14680_s12 + $0x118] sm:$0xff] }
 0xb39   : > { %v9971_v23 = vpack.c.bf16 %v10887_v57, %v10886_v58  ;;  %v9986_v2 = vpack.c.bf16 %v10902_v19, %v10901_v35  ;;  %v3934_v57 = vld [vmem:[%s14680_s12 + $0xb0] sm:$0xff]  ;;  %v3933_v58 = vld [vmem:[%s14680_s12 + $0xa8] sm:$0xff] }
 0xb3a   : > { %v10895_v55 = vpop.permute.xlu1 %10894  ;;  %v10910_v59 = vpop.permute.xlu0 %10909  ;;  %v3946_v19 = vld [vmem:[%s14680_s12 + $0x110] sm:$0xff] }
 0xb3b   : > { %v10897_v30 = vunpack.i.h.bf16 %v10895_v55  ;;  %v10896_v12 = vunpack.i.l.bf16 %v10895_v55  ;;  %9972 = vmatprep.subr.bf16.mxu1 %v9971_v23  ;;  %v10912_v28 = vunpack.i.h.bf16 %v10910_v59  ;;  %v10911_v16 = vunpack.i.l.bf16 %v10910_v59  ;;  %v3937_v23 = vld [vmem:[%s14680_s12 + $0xc8] sm:$0xff]  ;;  %v3936_v55 = vld [vmem:[%s14680_s12 + $0xc0] sm:$0xff] }
 0xb3c   : > { %9975 = vmatpush3.bf16.msk.msra.mxu1 %vm13335_vm15, %v13281_v38  ;;  %v3940_v59 = vld [vmem:[%s14680_s12 + $0xe0] sm:$0xff] }
 0xb3d   : > { %9977 = vmatprep.subr.bf16.mxu1 %v9976_v25  ;;  %v9981_v13 = vpack.c.bf16 %v10897_v30, %v10896_v12  ;;  %v9990_v61 = vpack.c.bf16 %v10912_v28, %v10911_v16  ;;  %v3939_v30 = vld [vmem:[%s14680_s12 + $0xd8] sm:$0xff]  ;;  %v3942_v25 = vld [vmem:[%s14680_s12 + $0xf0] sm:$0xff] }
 0xb3e   : > { %v10905_v18 = vpop.permute.xlu1 %10904  ;;  %v10920_v53 = vpop.permute.xlu0 %10919  ;;  %v3943_v12 = vld [vmem:[%s14680_s12 + $0xf8] sm:$0xff] }
 0xb3f   : > { %v10922_v34 = vunpack.i.h.bf16 %v10920_v53  ;;  %v10921_v54 = vunpack.i.l.bf16 %v10920_v53  ;;  %v10907_v63 = vunpack.i.h.bf16 %v10905_v18  ;;  %v10906_v9 = vunpack.i.l.bf16 %v10905_v18  ;;  %v3945_v18 = vld [vmem:[%s14680_s12 + $0x108] sm:$0xff] }
 0xb40   : > { %9980 = vmatpush3.bf16.msk.msra.mxu1 %vm13335_vm15, %v13288_v27 }
 0xb41   : > { %9982 = vmatprep.subr.bf16.mxu1 %v9981_v13  ;;  %v9994_v33 = vpack.c.bf16 %v10922_v34, %v10921_v54  ;;  %v9988_v10 = vpack.c.bf16 %v10907_v63, %v10906_v9 }
 0xb42   : > { %v10915_v21 = vpop.permute.xlu1 %10914 }
 0xb43   : > { %9995 = vmatprep.subr.bf16.mxu0 %v9994_v33  ;;  %v10917_v26 = vunpack.i.h.bf16 %v10915_v21  ;;  %v10916_v32 = vunpack.i.l.bf16 %v10915_v21 }
 0xb44   : > { %9985 = vmatpush3.bf16.msk.msra.mxu1 %vm13335_vm15, %v13302_v20  ;;  %9997 = vmatpush3.bf16.msra.mxu0 %v9994_v33 }
 0xb45   : > { %9987 = vmatprep.subr.bf16.mxu1 %v9986_v2  ;;  %v9992_v44 = vpack.c.bf16 %v10917_v26, %v10916_v32 }
 0xb46   : > { %v10925_v48 = vpop.permute.xlu1 %10924 }
 0xb47   : > { %v10927_v49 = vunpack.i.h.bf16 %v10925_v48  ;;  %v10926_v4 = vunpack.i.l.bf16 %v10925_v48 }
 0xb48   : > { %9989 = vmatpush3.bf16.msra.mxu1 %v9988_v10 }
 0xb49   : > { %9991 = vmatprep.subr.bf16.mxu1 %v9990_v61  ;;  %v9998_v42 = vpack.c.bf16 %v10927_v49, %v10926_v4 }
 0xb4b   : > { %9999 = vmatprep.subr.bf16.mxu0 %v9998_v42 }
 0xb4c   : > { %9993 = vmatpush3.bf16.msra.mxu1 %v9992_v44  ;;  %10001 = vmatpush3.bf16.msra.mxu0 %v9998_v42 }
 0xb4f   : > { %4121 = vmatmul.mubr.f32.vlgmr.msra.gmra.mrb[62].mxu1 %v3912_v56  ;;  %9532 = vmatmul.mubr.msk.f32.vlgmr.msra.gmra.mrb[84].mxu0 %vm1791_vm7, %v3917_v46  ;;  %v3983_v53 = vpop.permute.xlu0 %3982 }
 0xb50   : > { %4125 = vmatprep.mubr.f32.mxu1 %v3916_v8  ;;  %9534 = vmatprep.mubr.msk.f32.mxu0 %vm1791_vm7, %v3920_v14 }
 0xb53   : > { %4126 = vmatmul.mubr.f32.gmra.mrb[64].mxu1 %v3915_v22  ;;  %9535 = vmatmul.mubr.msk.f32.gmra.mrb[86].mxu0 %vm1791_vm7, %v3923_v31  ;;  %v13402_v34 = vpop.permute.xlu0 %3992 }
 0xb54   : > { %4130 = vmatprep.mubr.f32.mxu1 %v3919_v29  ;;  %9537 = vmatprep.mubr.msk.f32.mxu0 %vm1791_vm7, %v3926_v39 }
 0xb57   : > { %4131 = vmatmul.mubr.f32.gmra.mrb[66].mxu1 %v3918_v43  ;;  %9538 = vmatmul.mubr.msk.f32.gmra.mrb[88].mxu0 %vm1791_vm7, %v3929_v40  ;;  %v3988_v35 = vpop.permute.xlu1 %3987  ;;  %v13406_v13 = vpop.permute.xlu0 %4002 }
 0xb58   : > { %4135 = vmatprep.mubr.f32.mxu1 %v3922_v17  ;;  %9540 = vmatprep.mubr.msk.f32.mxu0 %vm1791_vm7, %v3932_v24 }
 0xb5b   : > { %4136 = vmatmul.mubr.f32.gmra.mrb[68].mxu1 %v3921_v5  ;;  %9541 = vmatmul.mubr.msk.f32.gmra.mrb[90].mxu0 %vm1791_vm7, %v3935_v15  ;;  %v13404_v54 = vpop.permute.xlu1 %3997  ;;  %v13410_v63 = vpop.permute.xlu0 %4012 }
 0xb5c   : > { %4140 = vmatprep.mubr.f32.mxu1 %v3925_v6  ;;  %9543 = vmatprep.mubr.msk.f32.mxu0 %vm1791_vm7, %v3938_v37 }
 0xb5f   : > { %4141 = vmatmul.mubr.f32.gmra.mrb[70].mxu1 %v3924_v47  ;;  %9544 = vmatmul.mubr.msk.f32.gmra.mrb[92].mxu0 %vm1791_vm7, %v3941_v45  ;;  %v13408_v33 = vpop.permute.xlu1 %4007  ;;  %v3963_v26 = vpop.permute.xlu0 %3962 }
 0xb60   : > { %4145 = vmatprep.mubr.f32.mxu1 %v3928_v62  ;;  %9546 = vmatprep.mubr.msk.f32.mxu0 %vm1791_vm7, %v3944_v11 }
 0xb63   : > { %4146 = vmatmul.mubr.f32.gmra.mrb[72].mxu1 %v3927_v51  ;;  %9547 = vmatmul.mubr.msk.f32.gmra.mrb[94].mxu0 %vm1791_vm7, %v3947_v52  ;;  %v13412_v9 = vpop.permute.xlu1 %4017  ;;  %v3973_v43 = vpop.permute.xlu0 %3972 }
 0xb64   : > { %4150 = vmatprep.mubr.f32.mxu1 %v3931_v36 }
 0xb67   : > { %4151 = vmatmul.mubr.f32.gmra.mrb[74].mxu1 %v3930_v7  ;;  %v3968_v56 = vpop.permute.xlu1 %3967 }
 0xb68   : > { %4155 = vmatprep.mubr.f32.mxu1 %v3934_v57 }
 0xb6b   : > { %4156 = vmatmul.mubr.f32.gmra.mrb[76].mxu1 %v3933_v58  ;;  %v3978_v47 = vpop.permute.xlu1 %3977 }
 0xb6c   : > { %4160 = vmatprep.mubr.f32.mxu1 %v3937_v23 }
 0xb6f   : > { %4161 = vmatmul.mubr.f32.gmra.mrb[78].mxu1 %v3936_v55 }
 0xb70   : > { %4165 = vmatprep.mubr.f32.mxu1 %v3940_v59 }
 0xb73   : > { %4166 = vmatmul.mubr.f32.gmra.mrb[80].mxu1 %v3939_v30 }
 0xb74   : > { %4170 = vmatprep.mubr.f32.mxu1 %v3943_v12 }
 0xb77   : > { %4171 = vmatmul.mubr.f32.gmra.mrb[82].mxu1 %v3942_v25 }
 0xb78   : > { %4175 = vmatprep.mubr.f32.mxu1 %v3946_v19 }
 0xb7b   : > { %4176 = vmatmul.mubr.f32.gmra.mrb[84].mxu1 %v3945_v18 }
 0xc22   : > { %v8900_v21 = vpop.f32.mrb[62].mxu1  ;;  %v9533_v28 = vpop.f32.mrb[84].mxu0 }
 0xc23   : > { %v8901_v16 = vpop.f32.mrb[63].mxu1  ;;  %v4247_v2 = vpop.f32.mrb[85].mxu0 }
 0xc24   : > { %v8902_v10 = vadd.f32 %v8901_v16, %v8900_v21 }
 0xc26   : > { %v8903_v32 = vpop.f32.mrb[64].mxu1  ;;  %v4123_v48 = vadd.f32 %v8902_v10, %v3963_v26  ;;  %v9536_v49 = vpop.f32.mrb[86].mxu0 }
 0xc27   : > { %v8904_v4 = vpop.f32.mrb[65].mxu1  ;;  %v4257_v61 = vpop.f32.mrb[87].mxu0 }
 0xc28   : > { %v8905_v42 = vadd.f32 %v8904_v4, %v8903_v32  ;;  %v4248_v44 = vadd.f32 %v4247_v2, %v4123_v48 }
 0xc2a   : > { %v4128_v46 = vadd.f32 %v8905_v42, %v3968_v56  ;;  %v8906_v8 = vpop.f32.mrb[66].mxu1  ;;  %v9539_v14 = vpop.f32.mrb[88].mxu0  ;;  %11509 = vtanh.f32 %v4248_v44 }
 0xc2b   : > { %v8907_v22 = vpop.f32.mrb[67].mxu1  ;;  %v4267_v31 = vpop.f32.mrb[89].mxu0 }
 0xc2c   : > { %v4253_v29 = vadd.f32 %v9533_v28, %v4128_v46  ;;  %v8908_v39 = vadd.f32 %v8907_v22, %v8906_v8 }
 0xc2e   : > { %11511 = vtanh.f32 %v4253_v29  ;;  %v8909_v40 = vpop.f32.mrb[68].mxu1  ;;  %v4133_v17 = vadd.f32 %v8908_v39, %v3973_v43  ;;  %v9542_v24 = vpop.f32.mrb[90].mxu0 }
 0xc2f   : > { %v8910_v5 = vpop.f32.mrb[69].mxu1  ;;  %v4277_v15 = vpop.f32.mrb[91].mxu0 }
 0xc30   : > { %v8911_v6 = vadd.f32 %v8910_v5, %v8909_v40  ;;  %v4258_v37 = vadd.f32 %v4257_v61, %v4133_v17 }
 0xc32   : > { %v4138_v45 = vadd.f32 %v8911_v6, %v3978_v47  ;;  %v8912_v62 = vpop.f32.mrb[70].mxu1  ;;  %v9545_v11 = vpop.f32.mrb[92].mxu0  ;;  %11513 = vtanh.f32 %v4258_v37 }
 0xc33   : > { %v8913_v51 = vpop.f32.mrb[71].mxu1  ;;  %v4287_v52 = vpop.f32.mrb[93].mxu0 }
 0xc34   : > { %v4263_v36 = vadd.f32 %v9536_v49, %v4138_v45  ;;  %v8914_v7 = vadd.f32 %v8913_v51, %v8912_v62  ;;  %v13414_v55 = vpop.eup %11509 }
 0xc36   : > { %11515 = vtanh.f32 %v4263_v36  ;;  %v8915_v57 = vpop.f32.mrb[72].mxu1  ;;  %v4143_v58 = vadd.f32 %v8914_v7, %v3983_v53  ;;  %v9548_v23 = vpop.f32.mrb[94].mxu0 }
 0xc37   : > { %v8916_v59 = vpop.f32.mrb[73].mxu1  ;;  %v4297_v30 = vpop.f32.mrb[95].mxu0 }
 0xc38   : > { %v11512_v12 = vpop.eup %11511  ;;  %v8917_v25 = vadd.f32 %v8916_v59, %v8915_v57  ;;  %v4268_v19 = vadd.f32 %v4267_v31, %v4143_v58 }
 0xc39   : > { %v10948_v18 = vpack.i.bf16 %v11512_v12, %v13414_v55 }
 0xc3a   : > { %v4148_v21 = vadd.f32 %v8917_v25, %v3988_v35  ;;  %v8918_v28 = vpop.f32.mrb[74].mxu1  ;;  %11517 = vtanh.f32 %v4268_v19 }
 0xc3b   : > { %v8919_v16 = vpop.f32.mrb[75].mxu1 }
 0xc3c   : > { %v4273_v2 = vadd.f32 %v9539_v14, %v4148_v21  ;;  %v8920_v10 = vadd.f32 %v8919_v16, %v8918_v28  ;;  %v11514_v32 = vpop.eup %11513 }
 0xc3e   : > { %11519 = vtanh.f32 %v4273_v2  ;;  %v8921_v26 = vpop.f32.mrb[76].mxu1  ;;  %v4153_v53 = vadd.f32 %v8920_v10, %v13402_v34 }
 0xc3f   : > { %v8922_v48 = vpop.f32.mrb[77].mxu1 }
 0xc40   : > { %v11516_v49 = vpop.eup %11515  ;;  %v8923_v4 = vadd.f32 %v8922_v48, %v8921_v26  ;;  %v4278_v61 = vadd.f32 %v4277_v15, %v4153_v53 }
 0xc41   : > { %v10953_v42 = vpack.i.bf16 %v11516_v49, %v11514_v32 }
 0xc42   : > { %v4158_v44 = vadd.f32 %v8923_v4, %v13404_v54  ;;  %v8924_v56 = vpop.f32.mrb[78].mxu1  ;;  %11521 = vtanh.f32 %v4278_v61 }
 0xc43   : > { %v8925_v46 = vpop.f32.mrb[79].mxu1 }
 0xc44   : > { %v4283_v35 = vadd.f32 %v9542_v24, %v4158_v44  ;;  %v8926_v8 = vadd.f32 %v8925_v46, %v8924_v56  ;;  %v11518_v31 = vpop.eup %11517 }
 0xc46   : > { %11523 = vtanh.f32 %v4283_v35  ;;  %v8927_v14 = vpop.f32.mrb[80].mxu1  ;;  %v4163_v22 = vadd.f32 %v8926_v8, %v13406_v13 }
 0xc47   : > { %v8928_v29 = vpop.f32.mrb[81].mxu1 }
 0xc48   : > { %v11520_v34 = vpop.eup %11519  ;;  %v8929_v39 = vadd.f32 %v8928_v29, %v8927_v14  ;;  %v4288_v43 = vadd.f32 %v4287_v52, %v4163_v22 }
 0xc49   : > { %v10928_v40 = vpack.i.bf16 %v11520_v34, %v11518_v31 }
 0xc4a   : > { %v4168_v17 = vadd.f32 %v8929_v39, %v13408_v33  ;;  %v8930_v5 = vpop.f32.mrb[82].mxu1  ;;  %11525 = vtanh.f32 %v4288_v43 }
 0xc4b   : > { %v8931_v15 = vpop.f32.mrb[83].mxu1  ;;  %10929 = vrot.lane.b32.xlu0 %v10928_v40, %s12028_s1 }
 0xc4c   : > { %v4293_v54 = vadd.f32 %v9545_v11, %v4168_v17  ;;  %v8932_v24 = vadd.f32 %v8931_v15, %v8930_v5  ;;  %v11522_v13 = vpop.eup %11521 }
 0xc4e   : > { %11527 = vtanh.f32 %v4293_v54  ;;  %v8933_v6 = vpop.f32.mrb[84].mxu1  ;;  %v4173_v37 = vadd.f32 %v8932_v24, %v13410_v63 }
 0xc4f   : > { %v8934_v47 = vpop.f32.mrb[85].mxu1 }
 0xc50   : > { %v11524_v45 = vpop.eup %11523  ;;  %v8935_v62 = vadd.f32 %v8934_v47, %v8933_v6  ;;  %v4298_v51 = vadd.f32 %v4297_v30, %v4173_v37 }
 0xc51   : > { %v10933_v52 = vpack.i.bf16 %v11524_v45, %v11522_v13 }
 0xc52   : > { %v4178_v36 = vadd.f32 %v8935_v62, %v13412_v9  ;;  %11529 = vtanh.f32 %v4298_v51 }
 0xc53   : > { %10934 = vrot.lane.b32.xlu1 %v10933_v52, %s12028_s1 }
 0xc54   : > { %v4303_v33 = vadd.f32 %v9548_v23, %v4178_v36  ;;  %v11526_v11 = vpop.eup %11525 }
 0xc56   : > { %11531 = vtanh.f32 %v4303_v33 }
 0xc58   : > { %v11528_v7 = vpop.eup %11527 }
 0xc59   : > { %v10938_v57 = vpack.i.bf16 %v11528_v7, %v11526_v11 }
 0xc5b   : > { %10939 = vrot.lane.b32.xlu0 %v10938_v57, %s12028_s1 }
 0xc5c   : > { %v11530_v58 = vpop.eup %11529 }
 0xc5f   : > { %10949 = vrot.lane.b32.xlu0 %v10948_v18, %s12028_s1 }
 0xc60   : > { %v11532_v63 = vpop.eup %11531 }
 0xc61   : > { %v10943_v55 = vpack.i.bf16 %v11532_v63, %v11530_v58 }
 0xc63   : > { %10944 = vrot.lane.b32.xlu1 %v10943_v55, %s12028_s1  ;;  %v4515_v55 = vld [vmem:[%s14684_s15 + $0x20] sm:$0xff] }
 0xc67   : > { %10954 = vrot.lane.b32.xlu1 %v10953_v42, %s12028_s1  ;;  %s14685_s1 = smov %s14684_s15  ;;  %s12031_s15 = smov 112  }
 0xcbd   : > { %v10930_v9 = vpop.permute.xlu0 %10929 }
 0xcbe   : > { %v10932_v59 = vunpack.i.h.bf16 %v10930_v9  ;;  %v10931_v23 = vunpack.i.l.bf16 %v10930_v9  ;;  %v4476_v9 = vld [vmem:[%s14686_s22 + $0x8] sm:$0xff] }
 0xcbf   : > { %4683 = vmatprep.mubr.f32.mxu1 %v4476_v9 }
 0xcc0   : > { %v13430_v30 = vsel %vm2174_vm9, 0.0, %v10932_v59  ;;  %v13433_v12 = vsel %vm2174_vm9, 0.0, %v10931_v23  ;;  %v4517_v23 = vld [vmem:[%s14685_s1 + $0x30] sm:$0xff] }
 0xcc1   : > { %v4384_v25 = vsel %vm4378_vm0, %v13430_v30, 0.0  ;;  %v4383_v19 = vsel %vm4378_vm0, %v13433_v12, 0.0  ;;  %v10014_v18 = vpack.c.bf16 %v13430_v30, %v13433_v12 }
 0xcc2   : > { %v10958_v21 = vpack.i.bf16 %v4384_v25, %v4383_v19  ;;  %v4516_v25 = vld [vmem:[%s14685_s1 + $0x28] sm:$0xff]  ;;  %v4519_v19 = vld [vmem:[%s14685_s1 + $0x40] sm:$0xff] }
 0xcc4   : > { %10959 = vrot.lane.b32.xlu0 %v10958_v21, %s14608_s24 }
 0xcc5   : > { %v10935_v28 = vpop.permute.xlu1 %10934 }
 0xcc6   : > { %v10937_v16 = vunpack.i.h.bf16 %v10935_v28  ;;  %v10936_v2 = vunpack.i.l.bf16 %v10935_v28  ;;  %v4521_v28 = vld [vmem:[%s14685_s1 + $0x50] sm:$0xff] }
 0xcc8   : > { %v13443_v10 = vsel %vm2174_vm9, 0.0, %v10937_v16  ;;  %v13446_v26 = vsel %vm2174_vm9, 0.0, %v10936_v2  ;;  %v4520_v16 = vld [vmem:[%s14685_s1 + $0x48] sm:$0xff]  ;;  %v4897_v2 = vld [vmem:[%s14690_s2 + $0x20] sm:$0xff] }
 0xcc9   : > { %v4386_v53 = vsel %vm4378_vm0, %v13443_v10, 0.0  ;;  %v4385_v32 = vsel %vm4378_vm0, %v13446_v26, 0.0  ;;  %v10019_v48 = vpack.c.bf16 %v13443_v10, %v13446_v26 }
 0xcca   : > { %v10963_v49 = vpack.i.bf16 %v4386_v53, %v4385_v32  ;;  %v4522_v53 = vld [vmem:[%s14685_s1 + $0x58] sm:$0xff]  ;;  %v4511_v32 = vld [vmem:[%s14685_s1] sm:$0xff] }
 0xccc   : > { %10964 = vrot.lane.b32.xlu1 %v10963_v49, %s14608_s24 }
 0xccd   : > { %v10940_v4 = vpop.permute.xlu0 %10939 }
 0xcce   : > { %v10942_v61 = vunpack.i.h.bf16 %v10940_v4  ;;  %v10941_v42 = vunpack.i.l.bf16 %v10940_v4  ;;  %v4899_v4 = vld [vmem:[%s14690_s2 + $0x30] sm:$0xff] }
 0xcd0   : > { %v13456_v44 = vsel %vm2174_vm9, 0.0, %v10942_v61  ;;  %v13459_v56 = vsel %vm2174_vm9, 0.0, %v10941_v42  ;;  %v4512_v61 = vld [vmem:[%s14685_s1 + $0x8] sm:$0xff]  ;;  %v4513_v42 = vld [vmem:[%s14685_s1 + $0x10] sm:$0xff] }
 0xcd1   : > { %v4388_v46 = vsel %vm4378_vm0, %v13456_v44, 0.0  ;;  %v4387_v35 = vsel %vm4378_vm0, %v13459_v56, 0.0  ;;  %v10024_v8 = vpack.c.bf16 %v13456_v44, %v13459_v56  ;;  %v10950_v14 = vpop.permute.xlu0 %10949 }
 0xcd2   : > { %v10952_v22 = vunpack.i.h.bf16 %v10950_v14  ;;  %v10951_v31 = vunpack.i.l.bf16 %v10950_v14  ;;  %v10968_v29 = vpack.i.bf16 %v4388_v46, %v4387_v35  ;;  %v4900_v46 = vld [vmem:[%s14690_s2 + $0x38] sm:$0xff]  ;;  %v4901_v35 = vld [vmem:[%s14690_s2 + $0x40] sm:$0xff] }
 0xcd3   : > { %v4514_v14 = vld [vmem:[%s14685_s1 + $0x18] sm:$0xff] }
 0xcd4   : > { %v13468_v34 = vsel %vm2174_vm9, 0.0, %v10952_v22  ;;  %v13471_v39 = vsel %vm2174_vm9, 0.0, %v10951_v31  ;;  %10969 = vrot.lane.b32.xlu0 %v10968_v29, %s14608_s24  ;;  %s14687_s24 = smov %s14686_s22  ;;  %v4903_v22 = vld [vmem:[%s14690_s2 + $0x50] sm:$0xff]  ;;  %v4902_v31 = vld [vmem:[%s14690_s2 + $0x48] sm:$0xff]  ;;  %s14693_s22 = sld [smem:[#allocation33_spill]] }
 0xcd5   : > { %v4380_v43 = vsel %vm4378_vm0, %v13468_v34, 0.0  ;;  %v4379_v40 = vsel %vm4378_vm0, %v13471_v39, 0.0  ;;  %v10004_v17 = vpack.c.bf16 %v13468_v34, %v13471_v39  ;;  %v10945_v5 = vpop.permute.xlu1 %10944  ;;  %v4477_v59 = vld [vmem:[%s14687_s24 + $0x10] sm:$0xff]  ;;  %v4500_v41 = vld [vmem:[%s14687_s24 + $0xc8] sm:$0xff] }
 0xcd6   : > { %v10947_v15 = vunpack.i.h.bf16 %v10945_v5  ;;  %v10946_v54 = vunpack.i.l.bf16 %v10945_v5  ;;  %v10978_v24 = vpack.i.bf16 %v4380_v43, %v4379_v40  ;;  %9557 = vmatprep.mubr.msk.f32.mxu0 %vm1791_vm7, %v4477_v59  ;;  %v4904_v43 = vld [vmem:[%s14690_s2 + $0x58] sm:$0xff]  ;;  %v4895_v40 = vld [vmem:[%s14690_s2 + $0x10] sm:$0xff]  ;;  %v4894_v5 = vld [vmem:[%s14690_s2 + $0x8] sm:$0xff] }
 0xcd8   : > { %v13481_v6 = vsel %vm2174_vm9, 0.0, %v10947_v15  ;;  %v13484_v37 = vsel %vm2174_vm9, 0.0, %v10946_v54  ;;  %10979 = vrot.lane.b32.xlu0 %v10978_v24, %s14610_s28  ;;  %s14688_s28 = smov 124   ;;  %v4896_v15 = vld [vmem:[%s14690_s2 + $0x18] sm:$0xff] }
 0xcd9   : > { %v4390_v13 = vsel %vm4378_vm0, %v13481_v6, 0.0  ;;  %v4389_v47 = vsel %vm4378_vm0, %v13484_v37, 0.0  ;;  %v10029_v45 = vpack.c.bf16 %v13481_v6, %v13484_v37  ;;  %v10955_v62 = vpop.permute.xlu1 %10954 }
 0xcda   : > { %v10957_v51 = vunpack.i.h.bf16 %v10955_v62  ;;  %v10956_v52 = vunpack.i.l.bf16 %v10955_v62  ;;  %v10973_v36 = vpack.i.bf16 %v4390_v13, %v4389_v47  ;;  %v4495_v62 = vld [vmem:[%s14687_s24 + $0xa0] sm:$0xff] }
 0xcdc   : > { %v13494_v33 = vsel %vm2174_vm9, 0.0, %v10957_v51  ;;  %v13497_v11 = vsel %vm2174_vm9, 0.0, %v10956_v52  ;;  %10974 = vrot.lane.b32.xlu1 %v10973_v36, %s14688_s28  ;;  %10989 = vrot.lane.b32.xlu0 %v10958_v21, %s14689_s0  ;;  %v4518_v21 = vld [vmem:[%s14685_s1 + $0x38] sm:$0xff]  ;;  %s14695_s1 = sld [smem:[#allocation34_spill]] }
 0xcdd   : > { %v4382_v7 = vsel %vm4378_vm0, %v13494_v33, 0.0  ;;  %v4381_v57 = vsel %vm4378_vm0, %v13497_v11, 0.0  ;;  %v10009_v58 = vpack.c.bf16 %v13494_v33, %v13497_v11 }
 0xcde   : > { %v10983_v63 = vpack.i.bf16 %v4382_v7, %v4381_v57 }
 0xce0   : > { %10984 = vrot.lane.b32.xlu1 %v10983_v63, %s14689_s0  ;;  %10999 = vrot.lane.b32.xlu0 %v10963_v49, %s14689_s0  ;;  %v4898_v49 = vld [vmem:[%s14690_s2 + $0x28] sm:$0xff] }
 0xce4   : > { %10994 = vrot.lane.b32.xlu1 %v10978_v24, %s14688_s28  ;;  %11009 = vrot.lane.b32.xlu0 %v10968_v29, %s14689_s0  ;;  %v4893_v29 = vld [vmem:[%s14690_s2] sm:$0xff]  ;;  %s14701_s2 = sld [smem:[#allocation36_spill]] }
 0xce8   : > { %11004 = vrot.lane.b32.xlu1 %v10983_v63, %s14688_s28  ;;  %4545 = vperm.xlu0 %10567, %v4515_v55   ;;  %s14614_s28 = smov 16  }
 0xcec   : > { %11014 = vrot.lane.b32.xlu1 %v10973_v36, %s14689_s0  ;;  %4555 = vperm.xlu0 %10567, %v4517_v23  }
 0xcf0   : > { %4550 = vperm.xlu1 %10566, %v4516_v25   ;;  %4565 = vperm.xlu0 %10567, %v4519_v19  }
 0xcf4   : > { %4560 = vperm.xlu1 %10566, %v4518_v21   ;;  %4575 = vperm.xlu0 %10567, %v4521_v28  }
 0xcf8   : > { %4570 = vperm.xlu1 %10566, %v4520_v16   ;;  %4927 = vperm.xlu0 %10567, %v4897_v2  }
 0xcfc   : > { %4580 = vperm.xlu1 %10566, %v4522_v53   ;;  %4525 = vperm.xlu0 %10567, %v4511_v32  }
 0xd00   : > { %4932 = vperm.xlu1 %10566, %v4898_v49   ;;  %4937 = vperm.xlu0 %10567, %v4899_v4  }
 0xd04   : > { %4530 = vperm.xlu1 %10566, %v4512_v61   ;;  %4535 = vperm.xlu0 %10567, %v4513_v42  }
 0xd08   : > { %4942 = vperm.xlu1 %10566, %v4900_v46   ;;  %4947 = vperm.xlu0 %10567, %v4901_v35  }
 0xd0c   : > { %4540 = vperm.xlu1 %10566, %v4514_v14   ;;  %4957 = vperm.xlu0 %10567, %v4903_v22  }
 0xd10   : > { %4952 = vperm.xlu1 %10566, %v4902_v31   ;;  %4907 = vperm.xlu0 %10567, %v4893_v29   ;;  %v4480_v29 = vld [vmem:[%s14687_s24 + $0x28] sm:$0xff] }
 0xd14   : > { %4962 = vperm.xlu1 %10566, %v4904_v43   ;;  %4917 = vperm.xlu0 %10567, %v4895_v40   ;;  %v4479_v43 = vld [vmem:[%s14687_s24 + $0x20] sm:$0xff] }
 0xd15   : > { %v4483_v40 = vld [vmem:[%s14687_s24 + $0x40] sm:$0xff] }
 0xd18   : > { %4912 = vperm.xlu1 %10566, %v4894_v5   ;;  %v4478_v5 = vld [vmem:[%s14687_s24 + $0x18] sm:$0xff] }
 0xd1c   : > { %4922 = vperm.xlu1 %10566, %v4896_v15   ;;  %v4486_v15 = vld [vmem:[%s14687_s24 + $0x58] sm:$0xff] }
 0xd36   : > { %v10960_v54 = vpop.permute.xlu0 %10959 }
 0xd37   : > { %v10962_v24 = vunpack.i.h.bf16 %v10960_v54  ;;  %v10961_v13 = vunpack.i.l.bf16 %v10960_v54  ;;  %v4482_v54 = vld [vmem:[%s14687_s24 + $0x38] sm:$0xff] }
 0xd39   : > { %v10002_v47 = vpack.c.bf16 %v10962_v24, %v10961_v13  ;;  %v4489_v24 = vld [vmem:[%s14687_s24 + $0x70] sm:$0xff]  ;;  %v4492_v13 = vld [vmem:[%s14687_s24 + $0x88] sm:$0xff] }
 0xd3b   : > { %10003 = vmatprep.subr.bf16.mxu1 %v10002_v47  ;;  %v4485_v47 = vld [vmem:[%s14687_s24 + $0x50] sm:$0xff] }
 0xd3c   : > { %10006 = vmatpush3.bf16.msk.msra.mxu1 %vm13542_vm1, %v10004_v17 }
 0xd3e   : > { %v10965_v51 = vpop.permute.xlu1 %10964 }
 0xd3f   : > { %v10967_v52 = vunpack.i.h.bf16 %v10965_v51  ;;  %v10966_v36 = vunpack.i.l.bf16 %v10965_v51  ;;  %v4498_v51 = vld [vmem:[%s14687_s24 + $0xb8] sm:$0xff] }
 0xd41   : > { %v10007_v7 = vpack.c.bf16 %v10967_v52, %v10966_v36  ;;  %v4488_v52 = vld [vmem:[%s14687_s24 + $0x68] sm:$0xff]  ;;  %v4501_v36 = vld [vmem:[%s14687_s24 + $0xd0] sm:$0xff] }
 0xd43   : > { %10008 = vmatprep.subr.bf16.mxu1 %v10007_v7  ;;  %v4504_v7 = vld [vmem:[%s14687_s24 + $0xe8] sm:$0xff] }
 0xd44   : > { %10011 = vmatpush3.bf16.msk.msra.mxu1 %vm13542_vm1, %v10009_v58 }
 0xd46   : > { %v10970_v57 = vpop.permute.xlu0 %10969 }
 0xd47   : > { %v10972_v63 = vunpack.i.h.bf16 %v10970_v57  ;;  %v10971_v55 = vunpack.i.l.bf16 %v10970_v57  ;;  %v4491_v57 = vld [vmem:[%s14687_s24 + $0x80] sm:$0xff] }
 0xd49   : > { %v10012_v9 = vpack.c.bf16 %v10972_v63, %v10971_v55  ;;  %v4507_v63 = vld [vmem:[%s14687_s24 + $0x100] sm:$0xff]  ;;  %v4510_v55 = vld [vmem:[%s14687_s24 + $0x118] sm:$0xff] }
 0xd4a   : > { %v10980_v59 = vpop.permute.xlu0 %10979 }
 0xd4b   : > { %10013 = vmatprep.subr.bf16.mxu1 %v10012_v9  ;;  %v10982_v17 = vunpack.i.h.bf16 %v10980_v59  ;;  %v10981_v23 = vunpack.i.l.bf16 %v10980_v59  ;;  %v4494_v9 = vld [vmem:[%s14687_s24 + $0x98] sm:$0xff] }
 0xd4c   : > { %10016 = vmatpush3.bf16.msk.msra.mxu1 %vm13542_vm1, %v10014_v18  ;;  %v4881_v59 = vld [vmem:[#allocation7] sm:$0xff] }
 0xd4d   : > { %v10022_v16 = vpack.c.bf16 %v10982_v17, %v10981_v23  ;;  %v4883_v17 = vld [vmem:[#allocation7 + $0x10] sm:$0xff] }
 0xd4e   : > { %v10975_v34 = vpop.permute.xlu1 %10974  ;;  %v10990_v39 = vpop.permute.xlu0 %10989  ;;  %v4496_v23 = vld [vmem:[%s14687_s24 + $0xa8] sm:$0xff] }
 0xd4f   : > { %v10977_v33 = vunpack.i.h.bf16 %v10975_v34  ;;  %v10976_v11 = vunpack.i.l.bf16 %v10975_v34  ;;  %v10992_v30 = vunpack.i.h.bf16 %v10990_v39  ;;  %v10991_v2 = vunpack.i.l.bf16 %v10990_v39  ;;  %v4882_v34 = vld [vmem:[#allocation7 + $0x8] sm:$0xff]  ;;  %v4497_v39 = vld [vmem:[%s14687_s24 + $0xb0] sm:$0xff] }
 0xd51   : > { %v10017_v25 = vpack.c.bf16 %v10977_v33, %v10976_v11  ;;  %v10032_v46 = vpack.c.bf16 %v10992_v30, %v10991_v2  ;;  %v4884_v33 = vld [vmem:[#allocation7 + $0x18] sm:$0xff]  ;;  %v4499_v11 = vld [vmem:[%s14687_s24 + $0xc0] sm:$0xff]  ;;  %v4889_v30 = vld [vmem:[#allocation7 + $0x40] sm:$0xff] }
 0xd52   : > { %v10985_v58 = vpop.permute.xlu1 %10984  ;;  %v11000_v19 = vpop.permute.xlu0 %10999  ;;  %v4509_v2 = vld [vmem:[%s14687_s24 + $0x110] sm:$0xff] }
 0xd53   : > { %v10987_v21 = vunpack.i.h.bf16 %v10985_v58  ;;  %v10986_v28 = vunpack.i.l.bf16 %v10985_v58  ;;  %10018 = vmatprep.subr.bf16.mxu1 %v10017_v25  ;;  %v11001_v42 = vunpack.i.l.bf16 %v11000_v19  ;;  %v4886_v25 = vld [vmem:[#allocation7 + $0x28] sm:$0xff] }
 0xd54   : > { %10021 = vmatpush3.bf16.msk.msra.mxu1 %vm13542_vm1, %v10019_v48  ;;  %v11002_v48 = vunpack.i.h.bf16 %v11000_v19  ;;  %v4503_v58 = vld [vmem:[%s14687_s24 + $0xe0] sm:$0xff]  ;;  %v4887_v19 = vld [vmem:[#allocation7 + $0x30] sm:$0xff] }
 0xd55   : > { %10023 = vmatprep.subr.bf16.mxu1 %v10022_v16  ;;  %v10027_v49 = vpack.c.bf16 %v10987_v21, %v10986_v28  ;;  %v4502_v21 = vld [vmem:[%s14687_s24 + $0xd8] sm:$0xff]  ;;  %v4888_v28 = vld [vmem:[#allocation7 + $0x38] sm:$0xff] }
 0xd56   : > { %v10995_v12 = vpop.permute.xlu1 %10994  ;;  %v11010_v18 = vpop.permute.xlu0 %11009  ;;  %v10036_v31 = vpack.c.bf16 %v11002_v48, %v11001_v42  ;;  %v4506_v16 = vld [vmem:[%s14687_s24 + $0xf8] sm:$0xff] }
 0xd57   : > { %v11012_v53 = vunpack.i.h.bf16 %v11010_v18  ;;  %v11011_v32 = vunpack.i.l.bf16 %v11010_v18  ;;  %v10997_v10 = vunpack.i.h.bf16 %v10995_v12  ;;  %v10996_v26 = vunpack.i.l.bf16 %v10995_v12  ;;  %v4505_v12 = vld [vmem:[%s14687_s24 + $0xf0] sm:$0xff]  ;;  %v4890_v18 = vld [vmem:[#allocation7 + $0x48] sm:$0xff] }
 0xd58   : > { %10026 = vmatpush3.bf16.msk.msra.mxu1 %vm13542_vm1, %v10024_v8 }
 0xd59   : > { %10028 = vmatprep.subr.bf16.mxu1 %v10027_v49  ;;  %v10040_v4 = vpack.c.bf16 %v11012_v53, %v11011_v32  ;;  %v10034_v44 = vpack.c.bf16 %v10997_v10, %v10996_v26  ;;  %v4891_v53 = vld [vmem:[#allocation7 + $0x50] sm:$0xff]  ;;  %v4892_v49 = vld [vmem:[#allocation7 + $0x58] sm:$0xff] }
 0xd5a   : > { %v11005_v61 = vpop.permute.xlu1 %11004  ;;  %v4508_v32 = vld [vmem:[%s14687_s24 + $0x108] sm:$0xff] }
 0xd5b   : > { %10041 = vmatprep.subr.bf16.mxu0 %v10040_v4  ;;  %v11007_v56 = vunpack.i.h.bf16 %v11005_v61  ;;  %v11006_v8 = vunpack.i.l.bf16 %v11005_v61 }
 0xd5c   : > { %10031 = vmatpush3.bf16.msk.msra.mxu1 %vm13542_vm1, %v10029_v45  ;;  %10043 = vmatpush3.bf16.msra.mxu0 %v10040_v4  ;;  %v4475_v45 = vld [vmem:[%s14687_s24] sm:$0xff] }
 0xd5d   : > { %10033 = vmatprep.subr.bf16.mxu1 %v10032_v46  ;;  %v10038_v37 = vpack.c.bf16 %v11007_v56, %v11006_v8 }
 0xd5e   : > { %v11015_v35 = vpop.permute.xlu1 %11014 }
 0xd5f   : > { %v11017_v14 = vunpack.i.h.bf16 %v11015_v35  ;;  %v11016_v22 = vunpack.i.l.bf16 %v11015_v35 }
 0xd60   : > { %10035 = vmatpush3.bf16.msra.mxu1 %v10034_v44 }
 0xd61   : > { %10037 = vmatprep.subr.bf16.mxu1 %v10036_v31  ;;  %v10044_v6 = vpack.c.bf16 %v11017_v14, %v11016_v22 }
 0xd63   : > { %10045 = vmatprep.subr.bf16.mxu0 %v10044_v6 }
 0xd64   : > { %10039 = vmatpush3.bf16.msra.mxu1 %v10038_v37  ;;  %10047 = vmatpush3.bf16.msra.mxu0 %v10044_v6 }
 0xd65   : > { %10050 = vmatprep.subr.msk.bf16.mxu0 %vm13335_vm15, %v13295_v60 }
 0xd67   : > { %4684 = vmatmul.mubr.f32.vlgmr.msra.gmra.mrb[86].mxu1 %v4475_v45  ;;  %9558 = vmatmul.mubr.msk.f32.vlgmr.msra.gmra.mrb[96].mxu0 %vm1791_vm7, %v4480_v29  ;;  %v4546_v4 = vpop.permute.xlu0 %4545 }
 0xd68   : > { %10053 = vmatpush3.bf16.msk.msra.mxu0 %vm13335_vm15, %v13295_v60  ;;  %4688 = vmatprep.mubr.f32.mxu1 %v4479_v43  ;;  %v4481_v60 = vld [vmem:[%s14687_s24 + $0x30] sm:$0xff] }
 0xd69   : > { %10056 = vmatprep.subr.msk.bf16.mxu0 %vm13335_vm15, %v13310_v3  ;;  %9560 = vmatprep.mubr.msk.f32.mxu0 %vm1791_vm7, %v4483_v40 }
 0xd6b   : > { %4689 = vmatmul.mubr.f32.gmra.mrb[88].mxu1 %v4478_v5  ;;  %9561 = vmatmul.mubr.msk.f32.gmra.mrb[98].mxu0 %vm1791_vm7, %v4486_v15  ;;  %v13671_v26 = vpop.permute.xlu0 %4555 }
 0xd6c   : > { %10059 = vmatpush3.bf16.msk.msra.mxu0 %vm13335_vm15, %v13310_v3  ;;  %4693 = vmatprep.mubr.f32.mxu1 %v4482_v54  ;;  %v4484_v3 = vld [vmem:[%s14687_s24 + $0x48] sm:$0xff] }
 0xd6d   : > { %10062 = vmatprep.subr.msk.bf16.mxu0 %vm13335_vm15, %v13274_v50  ;;  %9563 = vmatprep.mubr.msk.f32.mxu0 %vm1791_vm7, %v4489_v24 }
 0xd6f   : > { %4694 = vmatmul.mubr.f32.gmra.mrb[90].mxu1 %v4481_v60  ;;  %9564 = vmatmul.mubr.msk.f32.gmra.mrb[100].mxu0 %vm1791_vm7, %v4492_v13  ;;  %v13669_v10 = vpop.permute.xlu1 %4550  ;;  %v13675_v48 = vpop.permute.xlu0 %4565 }
 0xd70   : > { %10065 = vmatpush3.bf16.msk.msra.mxu0 %vm13335_vm15, %v13274_v50  ;;  %4698 = vmatprep.mubr.f32.mxu1 %v4485_v47  ;;  %v4487_v50 = vld [vmem:[%s14687_s24 + $0x60] sm:$0xff] }
 0xd71   : > { %10068 = vmatprep.subr.msk.bf16.mxu0 %vm13335_vm15, %v13281_v38  ;;  %9566 = vmatprep.mubr.msk.f32.mxu0 %vm1791_vm7, %v4495_v62 }
 0xd73   : > { %4699 = vmatmul.mubr.f32.gmra.mrb[92].mxu1 %v4484_v3  ;;  %9567 = vmatmul.mubr.msk.f32.gmra.mrb[102].mxu0 %vm1791_vm7, %v4498_v51  ;;  %v13673_v61 = vpop.permute.xlu1 %4560  ;;  %v13679_v46 = vpop.permute.xlu0 %4575 }
 0xd74   : > { %10071 = vmatpush3.bf16.msk.msra.mxu0 %vm13335_vm15, %v13281_v38  ;;  %4703 = vmatprep.mubr.f32.mxu1 %v4488_v52  ;;  %v4490_v38 = vld [vmem:[%s14687_s24 + $0x78] sm:$0xff] }
 0xd75   : > { %10074 = vmatprep.subr.msk.bf16.mxu0 %vm13335_vm15, %v13288_v27  ;;  %9569 = vmatprep.mubr.msk.f32.mxu0 %vm1791_vm7, %v4501_v36 }
 0xd77   : > { %4704 = vmatmul.mubr.f32.gmra.mrb[94].mxu1 %v4487_v50  ;;  %9570 = vmatmul.mubr.msk.f32.gmra.mrb[104].mxu0 %vm1791_vm7, %v4504_v7  ;;  %v13677_v42 = vpop.permute.xlu1 %4570  ;;  %v13683_v56 = vpop.permute.xlu0 %4927 }
 0xd78   : > { %10077 = vmatpush3.bf16.msk.msra.mxu0 %vm13335_vm15, %v13288_v27  ;;  %4708 = vmatprep.mubr.f32.mxu1 %v4491_v57  ;;  %v4493_v27 = vld [vmem:[%s14687_s24 + $0x90] sm:$0xff] }
 0xd79   : > { %10080 = vmatprep.subr.msk.bf16.mxu0 %vm13335_vm15, %v13302_v20  ;;  %9572 = vmatprep.mubr.msk.f32.mxu0 %vm1791_vm7, %v4507_v63 }
 0xd7b   : > { %4709 = vmatmul.mubr.f32.gmra.mrb[96].mxu1 %v4490_v38  ;;  %9573 = vmatmul.mubr.msk.f32.gmra.mrb[106].mxu0 %vm1791_vm7, %v4510_v55  ;;  %v13681_v44 = vpop.permute.xlu1 %4580  ;;  %v4526_v35 = vpop.permute.xlu0 %4525 }
 0xd7c   : > { %10083 = vmatpush3.bf16.msk.msra.mxu0 %vm13335_vm15, %v13302_v20  ;;  %4713 = vmatprep.mubr.f32.mxu1 %v4494_v9  ;;  %v4885_v20 = vld [vmem:[#allocation7 + $0x20] sm:$0xff] }
 0xd7d   : > { %9599 = vmatprep.mubr.msk.f32.mxu0 %vm3570_vm14, %v4881_v59 }
 0xd7f   : > { %4714 = vmatmul.mubr.f32.gmra.mrb[98].mxu1 %v4493_v27  ;;  %9600 = vmatmul.mubr.msk.f32.vlgmr.msra.gmra.mrb[108].mxu0 %vm3570_vm14, %v4882_v34  ;;  %v13685_v8 = vpop.permute.xlu1 %4932  ;;  %v13687_v22 = vpop.permute.xlu0 %4937 }
 0xd80   : > { %4718 = vmatprep.mubr.f32.mxu1 %v4497_v39  ;;  %9602 = vmatprep.mubr.msk.f32.mxu0 %vm3570_vm14, %v4883_v17 }
 0xd83   : > { %4719 = vmatmul.mubr.f32.gmra.mrb[100].mxu1 %v4496_v23  ;;  %9603 = vmatmul.mubr.msk.f32.gmra.mrb[110].mxu0 %vm3570_vm14, %v4884_v33  ;;  %v4531_v14 = vpop.permute.xlu1 %4530  ;;  %v4536_v6 = vpop.permute.xlu0 %4535 }
 0xd84   : > { %4723 = vmatprep.mubr.f32.mxu1 %v4500_v41  ;;  %9605 = vmatprep.mubr.msk.f32.mxu0 %vm3570_vm14, %v4885_v20 }
 0xd87   : > { %4724 = vmatmul.mubr.f32.gmra.mrb[102].mxu1 %v4499_v11  ;;  %9606 = vmatmul.mubr.msk.f32.gmra.mrb[112].mxu0 %vm3570_vm14, %v4886_v25  ;;  %v13689_v31 = vpop.permute.xlu1 %4942  ;;  %v13691_v15 = vpop.permute.xlu0 %4947 }
 0xd88   : > { %4728 = vmatprep.mubr.f32.mxu1 %v4503_v58  ;;  %9608 = vmatprep.mubr.msk.f32.mxu0 %vm3570_vm14, %v4887_v19 }
 0xd8b   : > { %4729 = vmatmul.mubr.f32.gmra.mrb[104].mxu1 %v4502_v21  ;;  %9609 = vmatmul.mubr.msk.f32.gmra.mrb[114].mxu0 %vm3570_vm14, %v4888_v28  ;;  %v4541_v37 = vpop.permute.xlu1 %4540  ;;  %v13695_v55 = vpop.permute.xlu0 %4957 }
 0xd8c   : > { %4733 = vmatprep.mubr.f32.mxu1 %v4506_v16  ;;  %9611 = vmatprep.mubr.msk.f32.mxu0 %vm3570_vm14, %v4889_v30 }
 0xd8f   : > { %4734 = vmatmul.mubr.f32.gmra.mrb[106].mxu1 %v4505_v12  ;;  %9612 = vmatmul.mubr.msk.f32.gmra.mrb[116].mxu0 %vm3570_vm14, %v4890_v18  ;;  %v13693_v54 = vpop.permute.xlu1 %4952  ;;  %v4908_v28 = vpop.permute.xlu0 %4907 }
 0xd90   : > { %4738 = vmatprep.mubr.f32.mxu1 %v4509_v2  ;;  %9614 = vmatprep.mubr.msk.f32.mxu0 %vm3570_vm14, %v4891_v53 }
 0xd93   : > { %4739 = vmatmul.mubr.f32.gmra.mrb[108].mxu1 %v4508_v32  ;;  %9615 = vmatmul.mubr.msk.f32.gmra.mrb[118].mxu0 %vm3570_vm14, %v4892_v49  ;;  %v13697_v9 = vpop.permute.xlu1 %4962 }
 0xd97   : > { %v4913_v16 = vpop.permute.xlu1 %4912 }
 0xe3a   : > { %v8984_v45 = vpop.f32.mrb[86].mxu1  ;;  %v9559_v29 = vpop.f32.mrb[96].mxu0 }
 0xe3b   : > { %v8985_v43 = vpop.f32.mrb[87].mxu1  ;;  %v4810_v40 = vpop.f32.mrb[97].mxu0 }
 0xe3c   : > { %v8986_v5 = vadd.f32 %v8985_v43, %v8984_v45 }
 0xe3e   : > { %v8987_v24 = vpop.f32.mrb[88].mxu1  ;;  %v4686_v60 = vadd.f32 %v8986_v5, %v4526_v35  ;;  %v9562_v13 = vpop.f32.mrb[98].mxu0 }
 0xe3f   : > { %v8988_v47 = vpop.f32.mrb[89].mxu1  ;;  %v4820_v62 = vpop.f32.mrb[99].mxu0 }
 0xe40   : > { %v8989_v3 = vadd.f32 %v8988_v47, %v8987_v24  ;;  %v4811_v51 = vadd.f32 %v4810_v40, %v4686_v60  ;;  %v4918_v60 = vpop.permute.xlu0 %4917 }
 0xe42   : > { %v4691_v52 = vadd.f32 %v8989_v3, %v4531_v14  ;;  %v8990_v36 = vpop.f32.mrb[90].mxu1  ;;  %v9565_v50 = vpop.f32.mrb[100].mxu0 }
 0xe43   : > { %v8991_v7 = vpop.f32.mrb[91].mxu1  ;;  %v4830_v57 = vpop.f32.mrb[101].mxu0 }
 0xe44   : > { %v4816_v63 = vadd.f32 %v9559_v29, %v4691_v52  ;;  %v8992_v38 = vadd.f32 %v8991_v7, %v8990_v36 }
 0xe46   : > { %v8993_v59 = vpop.f32.mrb[92].mxu1  ;;  %v4696_v27 = vadd.f32 %v8992_v38, %v4536_v6  ;;  %v13699_v34 = vpop.f32.mrb[102].mxu0  ;;  %11533 = vtanh.f32 %v4816_v63 }
 0xe47   : > { %v8994_v39 = vpop.f32.mrb[93].mxu1  ;;  %v4840_v17 = vpop.f32.mrb[103].mxu0  ;;  %11535 = vtanh.f32 %v4811_v51 }
 0xe48   : > { %v8995_v23 = vadd.f32 %v8994_v39, %v8993_v59  ;;  %v4821_v33 = vadd.f32 %v4820_v62, %v4696_v27 }
 0xe4a   : > { %v4701_v41 = vadd.f32 %v8995_v23, %v4541_v37  ;;  %v8996_v20 = vpop.f32.mrb[94].mxu1  ;;  %v13701_v11 = vpop.f32.mrb[104].mxu0 }
 0xe4b   : > { %v8997_v25 = vpop.f32.mrb[95].mxu1  ;;  %v13703_v58 = vpop.f32.mrb[105].mxu0 }
 0xe4c   : > { %v4826_v19 = vadd.f32 %v9562_v13, %v4701_v41  ;;  %v8998_v21 = vadd.f32 %v8997_v25, %v8996_v20  ;;  %v4923_v13 = vpop.permute.xlu1 %4922 }
 0xe4e   : > { %11537 = vtanh.f32 %v4826_v19  ;;  %v4706_v30 = vadd.f32 %v8998_v21, %v4546_v4  ;;  %v8999_v12 = vpop.f32.mrb[96].mxu1  ;;  %v13705_v18 = vpop.f32.mrb[106].mxu0 }
 0xe4f   : > { %11539 = vtanh.f32 %v4821_v33  ;;  %v9000_v2 = vpop.f32.mrb[97].mxu1  ;;  %v13707_v53 = vpop.f32.mrb[107].mxu0 }
 0xe50   : > { %v4831_v32 = vadd.f32 %v4830_v57, %v4706_v30  ;;  %v9001_v49 = vadd.f32 %v9000_v2, %v8999_v12  ;;  %v11534_v43 = vpop.eup %11533 }
 0xe51   : > { %v11536_v24 = vpop.eup %11535 }
 0xe52   : > { %11541 = vtanh.f32 %v4831_v32  ;;  %v4711_v35 = vadd.f32 %v9001_v49, %v13669_v10  ;;  %v9002_v14 = vpop.f32.mrb[98].mxu1  ;;  %v9601_v6 = vpop.f32.mrb[108].mxu0 }
 0xe53   : > { %v5073_v37 = vadd.f32 %v9601_v6, %v4913_v16  ;;  %v9003_v45 = vpop.f32.mrb[99].mxu1  ;;  %v5067_v29 = vpop.f32.mrb[109].mxu0 }
 0xe54   : > { %v4836_v40 = vadd.f32 %v9565_v50, %v4711_v35  ;;  %v9004_v4 = vadd.f32 %v9003_v45, %v9002_v14  ;;  %v5068_v5 = vadd.f32 %v5067_v29, %v4908_v28 }
 0xe55   : > { %v5127_v47 = vadd.f32 %v11534_v43, %v5073_v37 }
 0xe56   : > { %11543 = vtanh.f32 %v4836_v40  ;;  %v4716_v62 = vadd.f32 %v9004_v4, %v13671_v26  ;;  %v5126_v3 = vadd.f32 %v11536_v24, %v5068_v5  ;;  %v9005_v51 = vpop.f32.mrb[100].mxu1  ;;  %v9604_v52 = vpop.f32.mrb[110].mxu0 }
 0xe57   : > { %v5139_v10 = vmax.f32 %v5127_v47, 0.0  ;;  %v5083_v36 = vadd.f32 %v9604_v52, %v4923_v13  ;;  %v9006_v7 = vpop.f32.mrb[101].mxu1  ;;  %v5077_v57 = vpop.f32.mrb[111].mxu0 }
 0xe58   : > { %v11538_v63 = vpop.eup %11537  ;;  %v4841_v38 = vadd.f32 %v4840_v17, %v4716_v62  ;;  %v5138_v59 = vmax.f32 %v5126_v3, 0.0  ;;  %v9007_v50 = vadd.f32 %v9006_v7, %v9005_v51  ;;  %v5078_v27 = vadd.f32 %v5077_v57, %v4918_v60 }
 0xe59   : > { %v11540_v39 = vpop.eup %11539  ;;  %v5129_v23 = vadd.f32 %v11538_v63, %v5083_v36 }
 0xe5a   : > { %11545 = vtanh.f32 %v4841_v38  ;;  %v13711_v33 = vpack.i.bf16 %v5139_v10, %v5138_v59  ;;  %v4721_v41 = vadd.f32 %v9007_v50, %v13673_v61  ;;  %v5128_v26 = vadd.f32 %v11540_v39, %v5078_v27  ;;  %v9008_v20 = vpop.f32.mrb[102].mxu1  ;;  %v9607_v25 = vpop.f32.mrb[112].mxu0 }
 0xe5b   : > { %v5141_v19 = vmax.f32 %v5129_v23, 0.0  ;;  %v9009_v21 = vpop.f32.mrb[103].mxu1  ;;  %v5087_v28 = vpop.f32.mrb[113].mxu0  ;;  %v5093_v6 = vadd.f32 %v9607_v25, %v13685_v8 }
 0xe5c   : > { %v11542_v16 = vpop.eup %11541  ;;  %v4846_v30 = vadd.f32 %v13699_v34, %v4721_v41  ;;  %v5140_v17 = vmax.f32 %v5128_v26, 0.0  ;;  %v9010_v12 = vadd.f32 %v9009_v21, %v9008_v20  ;;  %v5088_v2 = vadd.f32 %v5087_v28, %v13683_v56 }
 0xe5e   : > { %11547 = vtanh.f32 %v4846_v30  ;;  %v13716_v32 = vpack.i.bf16 %v5141_v19, %v5140_v17  ;;  %v4726_v49 = vadd.f32 %v9010_v12, %v13675_v48  ;;  %v5130_v35 = vadd.f32 %v11542_v16, %v5088_v2  ;;  %v9011_v61 = vpop.f32.mrb[104].mxu1  ;;  %v9610_v14 = vpop.f32.mrb[114].mxu0 }
 0xe5f   : > { %v9012_v37 = vpop.f32.mrb[105].mxu1  ;;  %v5097_v45 = vpop.f32.mrb[115].mxu0 }
 0xe60   : > { %v11544_v29 = vpop.eup %11543  ;;  %v4851_v43 = vadd.f32 %v13703_v58, %v4726_v49  ;;  %v9013_v34 = vadd.f32 %v9012_v37, %v9011_v61  ;;  %v5142_v60 = vmax.f32 %v5130_v35, 0.0  ;;  %v5098_v48 = vadd.f32 %v5097_v45, %v13687_v22 }
 0xe61   : > { %v5131_v40 = vadd.f32 %v11544_v29, %v5093_v6 }
 0xe62   : > { %11549 = vtanh.f32 %v4851_v43  ;;  %v4731_v56 = vadd.f32 %v9013_v34, %v13677_v42  ;;  %v9014_v4 = vpop.f32.mrb[106].mxu1  ;;  %v9613_v5 = vpop.f32.mrb[116].mxu0  ;;  %v5103_v42 = vadd.f32 %v9610_v14, %v13689_v31 }
 0xe63   : > { %v5143_v24 = vmax.f32 %v5131_v40, 0.0  ;;  %v9015_v13 = vpop.f32.mrb[107].mxu1  ;;  %v5107_v47 = vpop.f32.mrb[117].mxu0  ;;  %v5113_v26 = vadd.f32 %v9613_v5, %v13693_v54 }
 0xe64   : > { %v11546_v62 = vpop.eup %11545  ;;  %v4856_v8 = vadd.f32 %v13701_v11, %v4731_v56  ;;  %v9016_v3 = vadd.f32 %v9015_v13, %v9014_v4 }
 0xe65   : > { %v11018_v51 = vpack.i.bf16 %v5143_v24, %v5142_v60  ;;  %v5132_v52 = vadd.f32 %v11546_v62, %v5098_v48 }
 0xe66   : > { %11551 = vtanh.f32 %v4856_v8  ;;  %v4736_v58 = vadd.f32 %v9016_v3, %v13679_v46  ;;  %v9017_v10 = vpop.f32.mrb[108].mxu1  ;;  %v9616_v36 = vpop.f32.mrb[118].mxu0  ;;  %v5108_v46 = vadd.f32 %v5107_v47, %v13691_v15 }
 0xe67   : > { %v9018_v7 = vpop.f32.mrb[109].mxu1  ;;  %v5117_v57 = vpop.f32.mrb[119].mxu0  ;;  %11019 = vrot.lane.b32.xlu0 %v11018_v51, %s14614_s28  ;;  %v5144_v27 = vmax.f32 %v5132_v52, 0.0  ;;  %v5123_v15 = vadd.f32 %v9616_v36, %v13697_v9 }
 0xe68   : > { %v11548_v22 = vpop.eup %11547  ;;  %v4861_v63 = vadd.f32 %v13707_v53, %v4736_v58  ;;  %v9019_v38 = vadd.f32 %v9018_v7, %v9017_v10 }
 0xe69   : > { %v5133_v11 = vadd.f32 %v11548_v22, %v5103_v42 }
 0xe6a   : > { %11553 = vtanh.f32 %v4861_v63  ;;  %v4741_v59 = vadd.f32 %v9019_v38, %v13681_v44  ;;  %v5118_v44 = vadd.f32 %v5117_v57, %v13695_v55 }
 0xe6b   : > { %v5145_v50 = vmax.f32 %v5133_v11, 0.0 }
 0xe6c   : > { %v11550_v39 = vpop.eup %11549  ;;  %v4866_v31 = vadd.f32 %v13705_v18, %v4741_v59 }
 0xe6d   : > { %v11023_v23 = vpack.i.bf16 %v5145_v50, %v5144_v27  ;;  %v5134_v41 = vadd.f32 %v11550_v39, %v5108_v46 }
 0xe6e   : > { %11555 = vtanh.f32 %v4866_v31 }
 0xe6f   : > { %11024 = vrot.lane.b32.xlu1 %v11023_v23, %s14614_s28  ;;  %v5146_v19 = vmax.f32 %v5134_v41, 0.0 }
 0xe70   : > { %v11552_v53 = vpop.eup %11551 }
 0xe71   : > { %v5135_v20 = vadd.f32 %v11552_v53, %v5113_v26 }
 0xe73   : > { %v5147_v25 = vmax.f32 %v5135_v20, 0.0 }
 0xe74   : > { %v11554_v21 = vpop.eup %11553 }
 0xe75   : > { %v11028_v28 = vpack.i.bf16 %v5147_v25, %v5146_v19  ;;  %v5136_v16 = vadd.f32 %v11554_v21, %v5118_v44 }
 0xe77   : > { %11029 = vrot.lane.b32.xlu0 %v11028_v28, %s14614_s28  ;;  %v5148_v17 = vmax.f32 %v5136_v16, 0.0  ;;  %v5308_v28 = vld [vmem:[%s14693_s22 + $0x8] sm:$0xff]  ;;  %v5347_v16 = vld [vmem:[%s14695_s1 + $0x20] sm:$0xff] }
 0xe78   : > { %v11556_v18 = vpop.eup %11555  ;;  %5515 = vmatprep.mubr.f32.mxu1 %v5308_v28 }
 0xe79   : > { %v5137_v30 = vadd.f32 %v11556_v18, %v5123_v15  ;;  %v5349_v18 = vld [vmem:[%s14695_s1 + $0x30] sm:$0xff] }
 0xe7b   : > { %v5149_v12 = vmax.f32 %v5137_v30, 0.0  ;;  %11039 = vrot.lane.b32.xlu0 %v13711_v33, %s14614_s28  ;;  %v5348_v30 = vld [vmem:[%s14695_s1 + $0x28] sm:$0xff] }
 0xe7d   : > { %v11033_v54 = vpack.i.bf16 %v5149_v12, %v5148_v17  ;;  %v5351_v17 = vld [vmem:[%s14695_s1 + $0x40] sm:$0xff]  ;;  %v5350_v12 = vld [vmem:[%s14695_s1 + $0x38] sm:$0xff] }
 0xe7f   : > { %11034 = vrot.lane.b32.xlu1 %v11033_v54, %s14614_s28  ;;  %v5353_v54 = vld [vmem:[%s14695_s1 + $0x50] sm:$0xff] }
 0xe83   : > { %11044 = vrot.lane.b32.xlu1 %v13716_v32, %s14614_s28  ;;  %s14694_s28 = smov %s14693_s22  ;;  %s14698_s22 = smov 16  }
 0xe84   : > { %v5309_v15 = vld [vmem:[%s14694_s28 + $0x10] sm:$0xff] }
 0xe85   : > { %9625 = vmatprep.mubr.msk.f32.mxu0 %vm1791_vm7, %v5309_v15 }
 0xed9   : > { %v11020_v55 = vpop.permute.xlu0 %11019 }
 0xeda   : > { %v11022_v2 = vunpack.i.h.bf16 %v11020_v55  ;;  %v11021_v49 = vunpack.i.l.bf16 %v11020_v55  ;;  %v5352_v55 = vld [vmem:[%s14695_s1 + $0x48] sm:$0xff] }
 0xedc   : > { %v5203_v9 = vsel %vm1586_vm6, 0.0, %v11022_v2  ;;  %v5202_v35 = vsel %vm1586_vm6, 0.0, %v11021_v49  ;;  %v5343_v2 = vld [vmem:[%s14695_s1] sm:$0xff]  ;;  %v5354_v49 = vld [vmem:[%s14695_s1 + $0x58] sm:$0xff] }
 0xedd   : > { %v5216_v61 = vsel %vm5210_vm2, %v5203_v9, 0.0  ;;  %v5215_v14 = vsel %vm5210_vm2, %v5202_v35, 0.0  ;;  %v13745_v6 = vpack.c.bf16 %v5203_v9, %v5202_v35  ;;  %v5345_v9 = vld [vmem:[%s14695_s1 + $0x10] sm:$0xff]  ;;  %v5344_v35 = vld [vmem:[%s14695_s1 + $0x8] sm:$0xff] }
 0xede   : > { %v11048_v33 = vpack.i.bf16 %v5216_v61, %v5215_v14  ;;  %v5346_v61 = vld [vmem:[%s14695_s1 + $0x18] sm:$0xff] }
 0xee0   : > { %11049 = vrot.lane.b32.xlu0 %v11048_v33, %s14689_s0 }
 0xee1   : > { %v11025_v37 = vpop.permute.xlu1 %11024 }
 0xee2   : > { %v11027_v45 = vunpack.i.h.bf16 %v11025_v37  ;;  %v11026_v32 = vunpack.i.l.bf16 %v11025_v37 }
 0xee4   : > { %v5205_v29 = vsel %vm1586_vm6, 0.0, %v11027_v45  ;;  %v5204_v43 = vsel %vm1586_vm6, 0.0, %v11026_v32  ;;  %v6281_v32 = vld [vmem:[#allocation10 + $0x28] sm:$0xff] }
 0xee5   : > { %v5218_v34 = vsel %vm5210_vm2, %v5205_v29, 0.0  ;;  %v5217_v40 = vsel %vm5210_vm2, %v5204_v43, 0.0  ;;  %v13752_v56 = vpack.c.bf16 %v5205_v29, %v5204_v43 }
 0xee6   : > { %v11053_v4 = vpack.i.bf16 %v5218_v34, %v5217_v40 }
 0xee8   : > { %11054 = vrot.lane.b32.xlu1 %v11053_v4, %s14689_s0 }
 0xee9   : > { %v11030_v5 = vpop.permute.xlu0 %11029 }
 0xeea   : > { %v11032_v24 = vunpack.i.h.bf16 %v11030_v5  ;;  %v11031_v60 = vunpack.i.l.bf16 %v11030_v5 }
 0xeec   : > { %v5207_v48 = vsel %vm1586_vm6, 0.0, %v11032_v24  ;;  %v5206_v13 = vsel %vm1586_vm6, 0.0, %v11031_v60 }
 0xeed   : > { %v5220_v47 = vsel %vm5210_vm2, %v5207_v48, 0.0  ;;  %v5219_v62 = vsel %vm5210_vm2, %v5206_v13, 0.0  ;;  %v13759_v8 = vpack.c.bf16 %v5207_v48, %v5206_v13  ;;  %v11040_v3 = vpop.permute.xlu0 %11039 }
 0xeee   : > { %v11042_v51 = vunpack.i.h.bf16 %v11040_v3  ;;  %v11041_v52 = vunpack.i.l.bf16 %v11040_v3  ;;  %v11058_v58 = vpack.i.bf16 %v5220_v47, %v5219_v62 }
 0xef0   : > { %v5199_v10 = vsel %vm1586_vm6, 0.0, %v11042_v51  ;;  %v5198_v36 = vsel %vm1586_vm6, 0.0, %v11041_v52  ;;  %11059 = vrot.lane.b32.xlu0 %v11058_v58, %s14689_s0 }
 0xef1   : > { %v5212_v42 = vsel %vm5210_vm2, %v5199_v10, 0.0  ;;  %v5211_v7 = vsel %vm5210_vm2, %v5198_v36, 0.0  ;;  %v13766_v57 = vpack.c.bf16 %v5199_v10, %v5198_v36  ;;  %v11035_v22 = vpop.permute.xlu1 %11034 }
 0xef2   : > { %v11037_v63 = vunpack.i.h.bf16 %v11035_v22  ;;  %v11036_v38 = vunpack.i.l.bf16 %v11035_v22  ;;  %v11068_v11 = vpack.i.bf16 %v5212_v42, %v5211_v7 }
 0xef4   : > { %v5209_v59 = vsel %vm1586_vm6, 0.0, %v11037_v63  ;;  %v5208_v50 = vsel %vm1586_vm6, 0.0, %v11036_v38  ;;  %11069 = vrot.lane.b32.xlu0 %v11068_v11, %s12031_s15 }
 0xef5   : > { %v5222_v27 = vsel %vm5210_vm2, %v5209_v59, 0.0  ;;  %v5221_v46 = vsel %vm5210_vm2, %v5208_v50, 0.0  ;;  %v13773_v39 = vpack.c.bf16 %v5209_v59, %v5208_v50  ;;  %v11045_v31 = vpop.permute.xlu1 %11044 }
 0xef6   : > { %v11047_v23 = vunpack.i.h.bf16 %v11045_v31  ;;  %v11046_v41 = vunpack.i.l.bf16 %v11045_v31  ;;  %v11063_v26 = vpack.i.bf16 %v5222_v27, %v5221_v46 }
 0xef8   : > { %v5201_v53 = vsel %vm1586_vm6, 0.0, %v11047_v23  ;;  %v5200_v20 = vsel %vm1586_vm6, 0.0, %v11046_v41  ;;  %11064 = vrot.lane.b32.xlu1 %v11063_v26, %s14689_s0  ;;  %11079 = vrot.lane.b32.xlu0 %v11048_v33, %s12031_s15 }
 0xef9   : > { %v5214_v25 = vsel %vm5210_vm2, %v5201_v53, 0.0  ;;  %v5213_v19 = vsel %vm5210_vm2, %v5200_v20, 0.0  ;;  %v13781_v44 = vpack.c.bf16 %v5201_v53, %v5200_v20 }
 0xefa   : > { %v11073_v21 = vpack.i.bf16 %v5214_v25, %v5213_v19 }
 0xefc   : > { %11074 = vrot.lane.b32.xlu1 %v11073_v21, %s12031_s15  ;;  %11089 = vrot.lane.b32.xlu0 %v11053_v4, %s12031_s15 }
 0xf00   : > { %11084 = vrot.lane.b32.xlu1 %v11068_v11, %s14689_s0  ;;  %11099 = vrot.lane.b32.xlu0 %v11058_v58, %s12031_s15 }
 0xf04   : > { %11094 = vrot.lane.b32.xlu1 %v11073_v21, %s14689_s0  ;;  %5377 = vperm.xlu0 %10567, %v5347_v16  }
 0xf08   : > { %11104 = vrot.lane.b32.xlu1 %v11063_v26, %s12031_s15  ;;  %5387 = vperm.xlu0 %10567, %v5349_v18  }
 0xf0c   : > { %5382 = vperm.xlu1 %10566, %v5348_v30   ;;  %5397 = vperm.xlu0 %10567, %v5351_v17  }
 0xf10   : > { %5392 = vperm.xlu1 %10566, %v5350_v12   ;;  %5407 = vperm.xlu0 %10567, %v5353_v54   ;;  %v5307_v54 = vld [vmem:[%s14694_s28] sm:$0xff] }
 0xf14   : > { %5402 = vperm.xlu1 %10566, %v5352_v55   ;;  %5357 = vperm.xlu0 %10567, %v5343_v2   ;;  %v5312_v55 = vld [vmem:[%s14694_s28 + $0x28] sm:$0xff]  ;;  %v5311_v2 = vld [vmem:[%s14694_s28 + $0x20] sm:$0xff] }
 0xf18   : > { %5412 = vperm.xlu1 %10566, %v5354_v49   ;;  %5367 = vperm.xlu0 %10567, %v5345_v9   ;;  %v5315_v49 = vld [vmem:[%s14694_s28 + $0x40] sm:$0xff]  ;;  %v5310_v9 = vld [vmem:[%s14694_s28 + $0x18] sm:$0xff] }
 0xf1c   : > { %5362 = vperm.xlu1 %10566, %v5344_v35   ;;  %v5318_v35 = vld [vmem:[%s14694_s28 + $0x58] sm:$0xff] }
 0xf20   : > { %5372 = vperm.xlu1 %10566, %v5346_v61   ;;  %v5314_v61 = vld [vmem:[%s14694_s28 + $0x38] sm:$0xff] }
 0xf52   : > { %v11050_v14 = vpop.permute.xlu0 %11049 }
 0xf53   : > { %v11052_v33 = vunpack.i.h.bf16 %v11050_v14  ;;  %v11051_v37 = vunpack.i.l.bf16 %v11050_v14  ;;  %v5321_v14 = vld [vmem:[%s14694_s28 + $0x70] sm:$0xff] }
 0xf55   : > { %v10084_v45 = vpack.c.bf16 %v11052_v33, %v11051_v37  ;;  %v5313_v33 = vld [vmem:[%s14694_s28 + $0x30] sm:$0xff]  ;;  %v5324_v37 = vld [vmem:[%s14694_s28 + $0x88] sm:$0xff] }
 0xf57   : > { %10085 = vmatprep.subr.bf16.mxu1 %v10084_v45  ;;  %v5317_v45 = vld [vmem:[%s14694_s28 + $0x50] sm:$0xff] }
 0xf58   : > { %10088 = vmatpush3.bf16.msk.msra.mxu1 %vm13806_vm3, %v13766_v57 }
 0xf5a   : > { %v11055_v29 = vpop.permute.xlu1 %11054 }
 0xf5b   : > { %v11057_v43 = vunpack.i.h.bf16 %v11055_v29  ;;  %v11056_v34 = vunpack.i.l.bf16 %v11055_v29  ;;  %v5327_v29 = vld [vmem:[%s14694_s28 + $0xa0] sm:$0xff] }
 0xf5d   : > { %v10089_v40 = vpack.c.bf16 %v11057_v43, %v11056_v34  ;;  %v5316_v43 = vld [vmem:[%s14694_s28 + $0x48] sm:$0xff]  ;;  %v5330_v34 = vld [vmem:[%s14694_s28 + $0xb8] sm:$0xff] }
 0xf5f   : > { %10090 = vmatprep.subr.bf16.mxu1 %v10089_v40  ;;  %v5320_v40 = vld [vmem:[%s14694_s28 + $0x68] sm:$0xff] }
 0xf60   : > { %10093 = vmatpush3.bf16.msk.msra.mxu1 %vm13806_vm3, %v13781_v44 }
 0xf62   : > { %v11060_v4 = vpop.permute.xlu0 %11059 }
 0xf63   : > { %v11062_v5 = vunpack.i.h.bf16 %v11060_v4  ;;  %v11061_v24 = vunpack.i.l.bf16 %v11060_v4  ;;  %v5333_v4 = vld [vmem:[%s14694_s28 + $0xd0] sm:$0xff] }
 0xf65   : > { %v10094_v60 = vpack.c.bf16 %v11062_v5, %v11061_v24  ;;  %v5319_v5 = vld [vmem:[%s14694_s28 + $0x60] sm:$0xff]  ;;  %v5336_v24 = vld [vmem:[%s14694_s28 + $0xe8] sm:$0xff] }
 0xf66   : > { %v11070_v48 = vpop.permute.xlu0 %11069 }
 0xf67   : > { %10095 = vmatprep.subr.bf16.mxu1 %v10094_v60  ;;  %v11072_v62 = vunpack.i.h.bf16 %v11070_v48  ;;  %v11071_v3 = vunpack.i.l.bf16 %v11070_v48  ;;  %v5323_v60 = vld [vmem:[%s14694_s28 + $0x80] sm:$0xff] }
 0xf68   : > { %10098 = vmatpush3.bf16.msk.msra.mxu1 %vm13806_vm3, %v13745_v6  ;;  %v5339_v48 = vld [vmem:[%s14694_s28 + $0x100] sm:$0xff] }
 0xf69   : > { %v10104_v22 = vpack.c.bf16 %v11072_v62, %v11071_v3  ;;  %v5326_v62 = vld [vmem:[%s14694_s28 + $0x98] sm:$0xff]  ;;  %v5325_v3 = vld [vmem:[%s14694_s28 + $0x90] sm:$0xff] }
 0xf6a   : > { %v11065_v13 = vpop.permute.xlu1 %11064  ;;  %v11080_v47 = vpop.permute.xlu0 %11079 }
 0xf6b   : > { %v11067_v51 = vunpack.i.h.bf16 %v11065_v13  ;;  %v11066_v52 = vunpack.i.l.bf16 %v11065_v13  ;;  %v11082_v63 = vunpack.i.h.bf16 %v11080_v47  ;;  %v11081_v59 = vunpack.i.l.bf16 %v11080_v47  ;;  %v5322_v13 = vld [vmem:[%s14694_s28 + $0x78] sm:$0xff] }
 0xf6c   : > { %v5342_v47 = vld [vmem:[%s14694_s28 + $0x118] sm:$0xff] }
 0xf6d   : > { %v10099_v58 = vpack.c.bf16 %v11067_v51, %v11066_v52  ;;  %v10114_v25 = vpack.c.bf16 %v11082_v63, %v11081_v59  ;;  %v5329_v51 = vld [vmem:[%s14694_s28 + $0xb0] sm:$0xff]  ;;  %v5328_v52 = vld [vmem:[%s14694_s28 + $0xa8] sm:$0xff] }
 0xf6e   : > { %v11075_v10 = vpop.permute.xlu1 %11074  ;;  %v11090_v36 = vpop.permute.xlu0 %11089  ;;  %v5341_v63 = vld [vmem:[%s14694_s28 + $0x110] sm:$0xff] }
 0xf6f   : > { %v11077_v42 = vunpack.i.h.bf16 %v11075_v10  ;;  %v11076_v7 = vunpack.i.l.bf16 %v11075_v10  ;;  %10100 = vmatprep.subr.bf16.mxu1 %v10099_v58  ;;  %v11092_v53 = vunpack.i.h.bf16 %v11090_v36  ;;  %v11091_v20 = vunpack.i.l.bf16 %v11090_v36  ;;  %v5332_v58 = vld [vmem:[%s14694_s28 + $0xc8] sm:$0xff]  ;;  %v5331_v10 = vld [vmem:[%s14694_s28 + $0xc0] sm:$0xff] }
 0xf70   : > { %10103 = vmatpush3.bf16.msk.msra.mxu1 %vm13806_vm3, %v13752_v56  ;;  %v5335_v36 = vld [vmem:[%s14694_s28 + $0xe0] sm:$0xff] }
 0xf71   : > { %10105 = vmatprep.subr.bf16.mxu1 %v10104_v22  ;;  %v10109_v46 = vpack.c.bf16 %v11077_v42, %v11076_v7  ;;  %v10118_v30 = vpack.c.bf16 %v11092_v53, %v11091_v20  ;;  %v5334_v42 = vld [vmem:[%s14694_s28 + $0xd8] sm:$0xff]  ;;  %v5337_v22 = vld [vmem:[%s14694_s28 + $0xf0] sm:$0xff] }
 0xf72   : > { %v11085_v38 = vpop.permute.xlu1 %11084  ;;  %v11100_v11 = vpop.permute.xlu0 %11099  ;;  %v5338_v7 = vld [vmem:[%s14694_s28 + $0xf8] sm:$0xff] }
 0xf73   : > { %v11102_v50 = vunpack.i.h.bf16 %v11100_v11  ;;  %v11101_v27 = vunpack.i.l.bf16 %v11100_v11  ;;  %v11087_v23 = vunpack.i.h.bf16 %v11085_v38  ;;  %v11086_v41 = vunpack.i.l.bf16 %v11085_v38  ;;  %v5340_v38 = vld [vmem:[%s14694_s28 + $0x108] sm:$0xff] }
 0xf74   : > { %10108 = vmatpush3.bf16.msk.msra.mxu1 %vm13806_vm3, %v13759_v8 }
 0xf75   : > { %10110 = vmatprep.subr.bf16.mxu1 %v10109_v46  ;;  %v10122_v31 = vpack.c.bf16 %v11102_v50, %v11101_v27  ;;  %v10116_v19 = vpack.c.bf16 %v11087_v23, %v11086_v41 }
 0xf76   : > { %v11095_v26 = vpop.permute.xlu1 %11094 }
 0xf77   : > { %10123 = vmatprep.subr.bf16.mxu0 %v10122_v31  ;;  %v11097_v21 = vunpack.i.h.bf16 %v11095_v26  ;;  %v11096_v28 = vunpack.i.l.bf16 %v11095_v26 }
 0xf78   : > { %10113 = vmatpush3.bf16.msk.msra.mxu1 %vm13806_vm3, %v13773_v39  ;;  %10125 = vmatpush3.bf16.msra.mxu0 %v10122_v31 }
 0xf79   : > { %10115 = vmatprep.subr.bf16.mxu1 %v10114_v25  ;;  %v10120_v12 = vpack.c.bf16 %v11097_v21, %v11096_v28 }
 0xf7a   : > { %v11105_v16 = vpop.permute.xlu1 %11104 }
 0xf7b   : > { %v11107_v15 = vunpack.i.h.bf16 %v11105_v16  ;;  %v11106_v18 = vunpack.i.l.bf16 %v11105_v16 }
 0xf7c   : > { %10117 = vmatpush3.bf16.msra.mxu1 %v10116_v19 }
 0xf7d   : > { %10119 = vmatprep.subr.bf16.mxu1 %v10118_v30  ;;  %v10126_v17 = vpack.c.bf16 %v11107_v15, %v11106_v18 }
 0xf7f   : > { %10127 = vmatprep.subr.bf16.mxu0 %v10126_v17 }
 0xf80   : > { %10121 = vmatpush3.bf16.msra.mxu1 %v10120_v12  ;;  %10129 = vmatpush3.bf16.msra.mxu0 %v10126_v17 }
 0xf83   : > { %5516 = vmatmul.mubr.f32.vlgmr.msra.gmra.mrb[110].mxu1 %v5307_v54  ;;  %9626 = vmatmul.mubr.msk.f32.vlgmr.msra.gmra.mrb[120].mxu0 %vm1791_vm7, %v5312_v55  ;;  %v5378_v11 = vpop.permute.xlu0 %5377 }
 0xf84   : > { %5520 = vmatprep.mubr.f32.mxu1 %v5311_v2  ;;  %9628 = vmatprep.mubr.msk.f32.mxu0 %vm1791_vm7, %v5315_v49 }
 0xf87   : > { %5521 = vmatmul.mubr.f32.gmra.mrb[112].mxu1 %v5310_v9  ;;  %9629 = vmatmul.mubr.msk.f32.gmra.mrb[122].mxu0 %vm1791_vm7, %v5318_v35  ;;  %v13873_v50 = vpop.permute.xlu0 %5387 }
 0xf88   : > { %5525 = vmatprep.mubr.f32.mxu1 %v5314_v61  ;;  %9631 = vmatprep.mubr.msk.f32.mxu0 %vm1791_vm7, %v5321_v14 }
 0xf8b   : > { %5526 = vmatmul.mubr.f32.gmra.mrb[114].mxu1 %v5313_v33  ;;  %9632 = vmatmul.mubr.msk.f32.gmra.mrb[124].mxu0 %vm1791_vm7, %v5324_v37  ;;  %v5383_v59 = vpop.permute.xlu1 %5382  ;;  %v13877_v46 = vpop.permute.xlu0 %5397 }
 0xf8c   : > { %5530 = vmatprep.mubr.f32.mxu1 %v5317_v45  ;;  %9634 = vmatprep.mubr.msk.f32.mxu0 %vm1791_vm7, %v5327_v29 }
 0xf8f   : > { %5531 = vmatmul.mubr.f32.gmra.mrb[116].mxu1 %v5316_v43  ;;  %9635 = vmatmul.mubr.msk.f32.gmra.mrb[126].mxu0 %vm1791_vm7, %v5330_v34  ;;  %v13875_v27 = vpop.permute.xlu1 %5392  ;;  %v13881_v23 = vpop.permute.xlu0 %5407 }
 0xf90   : > { %5535 = vmatprep.mubr.f32.mxu1 %v5320_v40  ;;  %9637 = vmatprep.mubr.msk.f32.mxu0 %vm1791_vm7, %v5333_v4 }
 0xf93   : > { %5536 = vmatmul.mubr.f32.gmra.mrb[118].mxu1 %v5319_v5  ;;  %9638 = vmatmul.mubr.msk.f32.gmra.mrb[128].mxu0 %vm1791_vm7, %v5336_v24  ;;  %v13879_v31 = vpop.permute.xlu1 %5402  ;;  %v5358_v21 = vpop.permute.xlu0 %5357 }
 0xf94   : > { %5540 = vmatprep.mubr.f32.mxu1 %v5323_v60  ;;  %9640 = vmatprep.mubr.msk.f32.mxu0 %vm1791_vm7, %v5339_v48 }
 0xf97   : > { %5541 = vmatmul.mubr.f32.gmra.mrb[120].mxu1 %v5322_v13  ;;  %9641 = vmatmul.mubr.msk.f32.gmra.mrb[130].mxu0 %vm1791_vm7, %v5342_v47  ;;  %v13883_v41 = vpop.permute.xlu1 %5412  ;;  %v5368_v33 = vpop.permute.xlu0 %5367 }
 0xf98   : > { %5545 = vmatprep.mubr.f32.mxu1 %v5326_v62 }
 0xf9b   : > { %5546 = vmatmul.mubr.f32.gmra.mrb[122].mxu1 %v5325_v3  ;;  %v5363_v54 = vpop.permute.xlu1 %5362 }
 0xf9c   : > { %5550 = vmatprep.mubr.f32.mxu1 %v5329_v51 }
 0xf9f   : > { %5551 = vmatmul.mubr.f32.gmra.mrb[124].mxu1 %v5328_v52  ;;  %v5373_v5 = vpop.permute.xlu1 %5372 }
 0xfa0   : > { %5555 = vmatprep.mubr.f32.mxu1 %v5332_v58 }
 0xfa3   : > { %5556 = vmatmul.mubr.f32.gmra.mrb[126].mxu1 %v5331_v10 }
 0xfa4   : > { %5560 = vmatprep.mubr.f32.mxu1 %v5335_v36 }
 0xfa7   : > { %5561 = vmatmul.mubr.f32.gmra.mrb[128].mxu1 %v5334_v42 }
 0xfa8   : > { %5565 = vmatprep.mubr.f32.mxu1 %v5338_v7 }
 0xfab   : > { %5566 = vmatmul.mubr.f32.gmra.mrb[130].mxu1 %v5337_v22 }
 0xfac   : > { %5570 = vmatprep.mubr.f32.mxu1 %v5341_v63 }
 0xfaf   : > { %5571 = vmatmul.mubr.f32.gmra.mrb[132].mxu1 %v5340_v38 }
0x1056   : > { %v9092_v26 = vpop.f32.mrb[110].mxu1  ;;  %v9627_v53 = vpop.f32.mrb[120].mxu0 }
0x1057   : > { %v9093_v20 = vpop.f32.mrb[111].mxu1  ;;  %v5642_v25 = vpop.f32.mrb[121].mxu0 }
0x1058   : > { %v9094_v19 = vadd.f32 %v9093_v20, %v9092_v26 }
0x105a   : > { %v9095_v28 = vpop.f32.mrb[112].mxu1  ;;  %v5518_v16 = vadd.f32 %v9094_v19, %v5358_v21  ;;  %v9630_v15 = vpop.f32.mrb[122].mxu0 }
0x105b   : > { %v9096_v18 = vpop.f32.mrb[113].mxu1  ;;  %v5652_v30 = vpop.f32.mrb[123].mxu0 }
0x105c   : > { %v9097_v17 = vadd.f32 %v9096_v18, %v9095_v28  ;;  %v5643_v12 = vadd.f32 %v5642_v25, %v5518_v16 }
0x105e   : > { %v5523_v55 = vadd.f32 %v9097_v17, %v5363_v54  ;;  %v9098_v2 = vpop.f32.mrb[114].mxu1  ;;  %v9633_v49 = vpop.f32.mrb[124].mxu0  ;;  %11557 = vtanh.f32 %v5643_v12 }
0x105f   : > { %v9099_v9 = vpop.f32.mrb[115].mxu1  ;;  %v5662_v35 = vpop.f32.mrb[125].mxu0 }
0x1060   : > { %v5648_v61 = vadd.f32 %v9627_v53, %v5523_v55  ;;  %v9100_v14 = vadd.f32 %v9099_v9, %v9098_v2 }
0x1062   : > { %11559 = vtanh.f32 %v5648_v61  ;;  %v9101_v37 = vpop.f32.mrb[116].mxu1  ;;  %v5528_v45 = vadd.f32 %v9100_v14, %v5368_v33  ;;  %v9636_v29 = vpop.f32.mrb[126].mxu0 }
0x1063   : > { %v9102_v43 = vpop.f32.mrb[117].mxu1  ;;  %v5672_v34 = vpop.f32.mrb[127].mxu0 }
0x1064   : > { %v9103_v40 = vadd.f32 %v9102_v43, %v9101_v37  ;;  %v5653_v4 = vadd.f32 %v5652_v30, %v5528_v45 }
0x1066   : > { %v5533_v24 = vadd.f32 %v9103_v40, %v5373_v5  ;;  %v9104_v60 = vpop.f32.mrb[118].mxu1  ;;  %v9639_v48 = vpop.f32.mrb[128].mxu0  ;;  %11561 = vtanh.f32 %v5653_v4 }
0x1067   : > { %v9105_v13 = vpop.f32.mrb[119].mxu1  ;;  %v5682_v47 = vpop.f32.mrb[129].mxu0 }
0x1068   : > { %v5658_v62 = vadd.f32 %v9630_v15, %v5533_v24  ;;  %v9106_v3 = vadd.f32 %v9105_v13, %v9104_v60  ;;  %v13885_v10 = vpop.eup %11557 }
0x106a   : > { %11563 = vtanh.f32 %v5658_v62  ;;  %v9107_v51 = vpop.f32.mrb[120].mxu1  ;;  %v5538_v52 = vadd.f32 %v9106_v3, %v5378_v11  ;;  %v9642_v58 = vpop.f32.mrb[130].mxu0 }
0x106b   : > { %v9108_v36 = vpop.f32.mrb[121].mxu1  ;;  %v5692_v42 = vpop.f32.mrb[131].mxu0 }
0x106c   : > { %v11560_v7 = vpop.eup %11559  ;;  %v9109_v22 = vadd.f32 %v9108_v36, %v9107_v51  ;;  %v5663_v63 = vadd.f32 %v5662_v35, %v5538_v52 }
0x106d   : > { %v11128_v38 = vpack.i.bf16 %v11560_v7, %v13885_v10 }
0x106e   : > { %v5543_v26 = vadd.f32 %v9109_v22, %v5383_v59  ;;  %v9110_v53 = vpop.f32.mrb[122].mxu1  ;;  %11565 = vtanh.f32 %v5663_v63 }
0x106f   : > { %v9111_v20 = vpop.f32.mrb[123].mxu1 }
0x1070   : > { %v5668_v25 = vadd.f32 %v9633_v49, %v5543_v26  ;;  %v9112_v19 = vadd.f32 %v9111_v20, %v9110_v53  ;;  %v11562_v28 = vpop.eup %11561 }
0x1072   : > { %11567 = vtanh.f32 %v5668_v25  ;;  %v9113_v21 = vpop.f32.mrb[124].mxu1  ;;  %v5548_v11 = vadd.f32 %v9112_v19, %v13873_v50 }
0x1073   : > { %v9114_v16 = vpop.f32.mrb[125].mxu1 }
0x1074   : > { %v11564_v15 = vpop.eup %11563  ;;  %v9115_v18 = vadd.f32 %v9114_v16, %v9113_v21  ;;  %v5673_v30 = vadd.f32 %v5672_v34, %v5548_v11 }
0x1075   : > { %v11133_v17 = vpack.i.bf16 %v11564_v15, %v11562_v28 }
0x1076   : > { %v5553_v12 = vadd.f32 %v9115_v18, %v13875_v27  ;;  %v9116_v54 = vpop.f32.mrb[126].mxu1  ;;  %11569 = vtanh.f32 %v5673_v30 }
0x1077   : > { %v9117_v55 = vpop.f32.mrb[127].mxu1 }
0x1078   : > { %v5678_v59 = vadd.f32 %v9636_v29, %v5553_v12  ;;  %v9118_v2 = vadd.f32 %v9117_v55, %v9116_v54  ;;  %v11566_v35 = vpop.eup %11565 }
0x107a   : > { %11571 = vtanh.f32 %v5678_v59  ;;  %v9119_v49 = vpop.f32.mrb[128].mxu1  ;;  %v5558_v9 = vadd.f32 %v9118_v2, %v13877_v46 }
0x107b   : > { %v9120_v61 = vpop.f32.mrb[129].mxu1 }
0x107c   : > { %v11568_v50 = vpop.eup %11567  ;;  %v9121_v14 = vadd.f32 %v9120_v61, %v9119_v49  ;;  %v5683_v33 = vadd.f32 %v5682_v47, %v5558_v9 }
0x107d   : > { %v11108_v37 = vpack.i.bf16 %v11568_v50, %v11566_v35 }
0x107e   : > { %v5563_v45 = vadd.f32 %v9121_v14, %v13879_v31  ;;  %v9122_v43 = vpop.f32.mrb[130].mxu1  ;;  %11573 = vtanh.f32 %v5683_v33 }
0x107f   : > { %v9123_v34 = vpop.f32.mrb[131].mxu1  ;;  %11109 = vrot.lane.b32.xlu0 %v11108_v37, %s14698_s22 }
0x1080   : > { %v5688_v27 = vadd.f32 %v9639_v48, %v5563_v45  ;;  %v9124_v29 = vadd.f32 %v9123_v34, %v9122_v43  ;;  %v11570_v46 = vpop.eup %11569 }
0x1082   : > { %11575 = vtanh.f32 %v5688_v27  ;;  %v9125_v40 = vpop.f32.mrb[132].mxu1  ;;  %v5568_v4 = vadd.f32 %v9124_v29, %v13881_v23 }
0x1083   : > { %v9126_v5 = vpop.f32.mrb[133].mxu1 }
0x1084   : > { %v11572_v24 = vpop.eup %11571  ;;  %v9127_v60 = vadd.f32 %v9126_v5, %v9125_v40  ;;  %v5693_v13 = vadd.f32 %v5692_v42, %v5568_v4 }
0x1085   : > { %v11113_v47 = vpack.i.bf16 %v11572_v24, %v11570_v46 }
0x1086   : > { %v5573_v62 = vadd.f32 %v9127_v60, %v13883_v41  ;;  %11577 = vtanh.f32 %v5693_v13 }
0x1087   : > { %11114 = vrot.lane.b32.xlu1 %v11113_v47, %s14698_s22 }
0x1088   : > { %v5698_v31 = vadd.f32 %v9642_v58, %v5573_v62  ;;  %v11574_v48 = vpop.eup %11573 }
0x108a   : > { %11579 = vtanh.f32 %v5698_v31 }
0x108c   : > { %v11576_v3 = vpop.eup %11575 }
0x108d   : > { %v11118_v51 = vpack.i.bf16 %v11576_v3, %v11574_v48 }
0x108f   : > { %11119 = vrot.lane.b32.xlu0 %v11118_v51, %s14698_s22 }
0x1090   : > { %v11578_v52 = vpop.eup %11577 }
0x1093   : > { %11129 = vrot.lane.b32.xlu0 %v11128_v38, %s14698_s22 }
0x1094   : > { %v11580_v23 = vpop.eup %11579 }
0x1095   : > { %v11123_v10 = vpack.i.bf16 %v11580_v23, %v11578_v52 }
0x1097   : > { %11124 = vrot.lane.b32.xlu1 %v11123_v10, %s14698_s22 }
0x109b   : > { %11134 = vrot.lane.b32.xlu1 %v11133_v17, %s14698_s22  ;;  %s14699_s22 = sld [smem:[#allocation35_spill]] }
0x10a1   : > { %s14700_s1 = smov %s14699_s22  ;;  %v5910_v10 = vld [vmem:[%s14699_s22 + $0x20] sm:$0xff]  ;;  %s14621_s22 = smov 96  }
0x10f1   : > { %v11110_v41 = vpop.permute.xlu0 %11109 }
0x10f2   : > { %v11112_v36 = vunpack.i.h.bf16 %v11110_v41  ;;  %v11111_v58 = vunpack.i.l.bf16 %v11110_v41  ;;  %v5871_v41 = vld [vmem:[#allocation9 + $0x8] sm:$0xff] }
0x10f3   : > { %6078 = vmatprep.mubr.f32.mxu0 %v5871_v41 }
0x10f4   : > { %v13901_v42 = vsel %vm1586_vm6, 0.0, %v11112_v36  ;;  %v13904_v7 = vsel %vm1586_vm6, 0.0, %v11111_v58  ;;  %v5872_v36 = vld [vmem:[#allocation9 + $0x10] sm:$0xff]  ;;  %v5912_v58 = vld [vmem:[%s14700_s1 + $0x30] sm:$0xff] }
0x10f5   : > { %v5779_v22 = vsel %vm5773_vm4, %v13901_v42, 0.0  ;;  %v5778_v63 = vsel %vm5773_vm4, %v13904_v7, 0.0  ;;  %v10142_v38 = vpack.c.bf16 %v13901_v42, %v13904_v7  ;;  %9651 = vmatprep.mubr.msk.f32.mxu1 %vm1791_vm7, %v5872_v36 }
0x10f6   : > { %v11138_v26 = vpack.i.bf16 %v5779_v22, %v5778_v63  ;;  %v5911_v22 = vld [vmem:[%s14700_s1 + $0x28] sm:$0xff]  ;;  %v5914_v63 = vld [vmem:[%s14700_s1 + $0x40] sm:$0xff] }
0x10f8   : > { %11139 = vrot.lane.b32.xlu0 %v11138_v26, %s14689_s0 }
0x10f9   : > { %v11115_v53 = vpop.permute.xlu1 %11114 }
0x10fa   : > { %v11117_v20 = vunpack.i.h.bf16 %v11115_v53  ;;  %v11116_v25 = vunpack.i.l.bf16 %v11115_v53  ;;  %v5916_v53 = vld [vmem:[%s14700_s1 + $0x50] sm:$0xff] }
0x10fc   : > { %v13914_v19 = vsel %vm1586_vm6, 0.0, %v11117_v20  ;;  %v13917_v21 = vsel %vm1586_vm6, 0.0, %v11116_v25  ;;  %v5915_v20 = vld [vmem:[%s14700_s1 + $0x48] sm:$0xff]  ;;  %v6292_v25 = vld [vmem:[%s14701_s2 + $0x20] sm:$0xff] }
0x10fd   : > { %v5781_v11 = vsel %vm5773_vm4, %v13914_v19, 0.0  ;;  %v5780_v28 = vsel %vm5773_vm4, %v13917_v21, 0.0  ;;  %v10147_v16 = vpack.c.bf16 %v13914_v19, %v13917_v21 }
0x10fe   : > { %v11143_v15 = vpack.i.bf16 %v5781_v11, %v5780_v28  ;;  %v5917_v11 = vld [vmem:[%s14700_s1 + $0x58] sm:$0xff]  ;;  %v5906_v28 = vld [vmem:[%s14700_s1] sm:$0xff] }
0x1100   : > { %11144 = vrot.lane.b32.xlu1 %v11143_v15, %s14689_s0 }
0x1101   : > { %v11120_v18 = vpop.permute.xlu0 %11119 }
0x1102   : > { %v11122_v30 = vunpack.i.h.bf16 %v11120_v18  ;;  %v11121_v17 = vunpack.i.l.bf16 %v11120_v18  ;;  %v6294_v18 = vld [vmem:[%s14701_s2 + $0x30] sm:$0xff] }
0x1104   : > { %v13927_v12 = vsel %vm1586_vm6, 0.0, %v11122_v30  ;;  %v13930_v54 = vsel %vm1586_vm6, 0.0, %v11121_v17  ;;  %v5907_v30 = vld [vmem:[%s14700_s1 + $0x8] sm:$0xff]  ;;  %v5908_v17 = vld [vmem:[%s14700_s1 + $0x10] sm:$0xff] }
0x1105   : > { %v5783_v55 = vsel %vm5773_vm4, %v13927_v12, 0.0  ;;  %v5782_v59 = vsel %vm5773_vm4, %v13930_v54, 0.0  ;;  %v10152_v2 = vpack.c.bf16 %v13927_v12, %v13930_v54  ;;  %v11130_v49 = vpop.permute.xlu0 %11129 }
0x1106   : > { %v11132_v9 = vunpack.i.h.bf16 %v11130_v49  ;;  %v11131_v35 = vunpack.i.l.bf16 %v11130_v49  ;;  %v11148_v61 = vpack.i.bf16 %v5783_v55, %v5782_v59  ;;  %v6295_v55 = vld [vmem:[%s14701_s2 + $0x38] sm:$0xff]  ;;  %v6296_v59 = vld [vmem:[%s14701_s2 + $0x40] sm:$0xff] }
0x1107   : > { %v5909_v49 = vld [vmem:[%s14700_s1 + $0x18] sm:$0xff] }
0x1108   : > { %v13939_v50 = vsel %vm1586_vm6, 0.0, %v11132_v9  ;;  %v13942_v14 = vsel %vm1586_vm6, 0.0, %v11131_v35  ;;  %11149 = vrot.lane.b32.xlu0 %v11148_v61, %s14689_s0  ;;  %v6298_v9 = vld [vmem:[%s14701_s2 + $0x50] sm:$0xff]  ;;  %v6297_v35 = vld [vmem:[%s14701_s2 + $0x48] sm:$0xff] }
0x1109   : > { %v5775_v33 = vsel %vm5773_vm4, %v13939_v50, 0.0  ;;  %v5774_v37 = vsel %vm5773_vm4, %v13942_v14, 0.0  ;;  %v10132_v45 = vpack.c.bf16 %v13939_v50, %v13942_v14  ;;  %v11125_v43 = vpop.permute.xlu1 %11124 }
0x110a   : > { %v11127_v34 = vunpack.i.h.bf16 %v11125_v43  ;;  %v11126_v27 = vunpack.i.l.bf16 %v11125_v43  ;;  %v11158_v29 = vpack.i.bf16 %v5775_v33, %v5774_v37  ;;  %v6299_v33 = vld [vmem:[%s14701_s2 + $0x58] sm:$0xff]  ;;  %v6290_v37 = vld [vmem:[%s14701_s2 + $0x10] sm:$0xff]  ;;  %v6289_v43 = vld [vmem:[%s14701_s2 + $0x8] sm:$0xff] }
0x110c   : > { %v13952_v40 = vsel %vm1586_vm6, 0.0, %v11127_v34  ;;  %v13955_v4 = vsel %vm1586_vm6, 0.0, %v11126_v27  ;;  %11159 = vrot.lane.b32.xlu0 %v11158_v29, %s12031_s15  ;;  %v6291_v34 = vld [vmem:[%s14701_s2 + $0x18] sm:$0xff] }
0x110d   : > { %v5785_v46 = vsel %vm5773_vm4, %v13952_v40, 0.0  ;;  %v5784_v5 = vsel %vm5773_vm4, %v13955_v4, 0.0  ;;  %v10157_v24 = vpack.c.bf16 %v13952_v40, %v13955_v4  ;;  %v11135_v60 = vpop.permute.xlu1 %11134  ;;  %v5870_v40 = vld [vmem:[#allocation9] sm:$0xff]  ;;  %v5875_v4 = vld [vmem:[#allocation9 + $0x28] sm:$0xff] }
0x110e   : > { %v11137_v13 = vunpack.i.h.bf16 %v11135_v60  ;;  %v11136_v47 = vunpack.i.l.bf16 %v11135_v60  ;;  %v11153_v62 = vpack.i.bf16 %v5785_v46, %v5784_v5  ;;  %v5890_v60 = vld [vmem:[#allocation9 + $0xa0] sm:$0xff] }
0x1110   : > { %v13965_v31 = vsel %vm1586_vm6, 0.0, %v11137_v13  ;;  %v13968_v48 = vsel %vm1586_vm6, 0.0, %v11136_v47  ;;  %11154 = vrot.lane.b32.xlu1 %v11153_v62, %s14689_s0  ;;  %11169 = vrot.lane.b32.xlu0 %v11138_v26, %s12031_s15  ;;  %v5913_v26 = vld [vmem:[%s14700_s1 + $0x38] sm:$0xff]  ;;  %vm6605_vm6 = vcmask 850944   ;;  %s14714_s1 = sld [smem:[#allocation39_spill]] }
0x1111   : > { %v5777_v3 = vsel %vm5773_vm4, %v13965_v31, 0.0  ;;  %v5776_v51 = vsel %vm5773_vm4, %v13968_v48, 0.0  ;;  %v10137_v52 = vpack.c.bf16 %v13965_v31, %v13968_v48  ;;  %vm14239_vm8 = vmpackc.low %vm6605_vm6, %vm6605_vm6 }
0x1112   : > { %v11163_v23 = vpack.i.bf16 %v5777_v3, %v5776_v51 }
0x1114   : > { %11164 = vrot.lane.b32.xlu1 %v11163_v23, %s12031_s15  ;;  %11179 = vrot.lane.b32.xlu0 %v11143_v15, %s12031_s15  ;;  %v6293_v15 = vld [vmem:[%s14701_s2 + $0x28] sm:$0xff] }
0x1118   : > { %11174 = vrot.lane.b32.xlu1 %v11158_v29, %s14689_s0  ;;  %11189 = vrot.lane.b32.xlu0 %v11148_v61, %s12031_s15  ;;  %v6288_v61 = vld [vmem:[%s14701_s2] sm:$0xff]  ;;  %s14715_s2 = smov 96  }
0x111c   : > { %11184 = vrot.lane.b32.xlu1 %v11163_v23, %s14689_s0  ;;  %5940 = vperm.xlu0 %10567, %v5910_v10   ;;  %s14619_s0 = smov 32  }
0x1120   : > { %11194 = vrot.lane.b32.xlu1 %v11153_v62, %s12031_s15  ;;  %5950 = vperm.xlu0 %10567, %v5912_v58  }
0x1124   : > { %5945 = vperm.xlu1 %10566, %v5911_v22   ;;  %5960 = vperm.xlu0 %10567, %v5914_v63  }
0x1128   : > { %5955 = vperm.xlu1 %10566, %v5913_v26   ;;  %5970 = vperm.xlu0 %10567, %v5916_v53  }
0x112c   : > { %5965 = vperm.xlu1 %10566, %v5915_v20   ;;  %6322 = vperm.xlu0 %10567, %v6292_v25  }
0x1130   : > { %5975 = vperm.xlu1 %10566, %v5917_v11   ;;  %5920 = vperm.xlu0 %10567, %v5906_v28  }
0x1134   : > { %6327 = vperm.xlu1 %10566, %v6293_v15   ;;  %6332 = vperm.xlu0 %10567, %v6294_v18  }
0x1138   : > { %5925 = vperm.xlu1 %10566, %v5907_v30   ;;  %5930 = vperm.xlu0 %10567, %v5908_v17  }
0x113c   : > { %6337 = vperm.xlu1 %10566, %v6295_v55   ;;  %6342 = vperm.xlu0 %10567, %v6296_v59  }
0x1140   : > { %5935 = vperm.xlu1 %10566, %v5909_v49   ;;  %6352 = vperm.xlu0 %10567, %v6298_v9  }
0x1144   : > { %6347 = vperm.xlu1 %10566, %v6297_v35   ;;  %6302 = vperm.xlu0 %10567, %v6288_v61  }
0x1148   : > { %6357 = vperm.xlu1 %10566, %v6299_v33   ;;  %6312 = vperm.xlu0 %10567, %v6290_v37   ;;  %v5878_v37 = vld [vmem:[#allocation9 + $0x40] sm:$0xff] }
0x114c   : > { %6307 = vperm.xlu1 %10566, %v6289_v43   ;;  %v5873_v43 = vld [vmem:[#allocation9 + $0x18] sm:$0xff] }
0x1150   : > { %6317 = vperm.xlu1 %10566, %v6291_v34   ;;  %v5881_v34 = vld [vmem:[#allocation9 + $0x58] sm:$0xff] }
0x116a   : > { %v11140_v27 = vpop.permute.xlu0 %11139 }
0x116b   : > { %v11142_v29 = vunpack.i.h.bf16 %v11140_v27  ;;  %v11141_v46 = vunpack.i.l.bf16 %v11140_v27  ;;  %v5877_v27 = vld [vmem:[#allocation9 + $0x38] sm:$0xff] }
0x116d   : > { %v10130_v5 = vpack.c.bf16 %v11142_v29, %v11141_v46  ;;  %v5884_v29 = vld [vmem:[#allocation9 + $0x70] sm:$0xff]  ;;  %v5887_v46 = vld [vmem:[#allocation9 + $0x88] sm:$0xff] }
0x116f   : > { %10131 = vmatprep.subr.bf16.mxu0 %v10130_v5  ;;  %v5880_v5 = vld [vmem:[#allocation9 + $0x50] sm:$0xff] }
0x1170   : > { %10134 = vmatpush3.bf16.msk.msra.mxu0 %vm14011_vm5, %v10132_v45 }
0x1172   : > { %v11145_v13 = vpop.permute.xlu1 %11144 }
0x1173   : > { %v11147_v47 = vunpack.i.h.bf16 %v11145_v13  ;;  %v11146_v62 = vunpack.i.l.bf16 %v11145_v13  ;;  %v5893_v13 = vld [vmem:[#allocation9 + $0xb8] sm:$0xff] }
0x1175   : > { %v10135_v3 = vpack.c.bf16 %v11147_v47, %v11146_v62  ;;  %v5883_v47 = vld [vmem:[#allocation9 + $0x68] sm:$0xff]  ;;  %v5896_v62 = vld [vmem:[#allocation9 + $0xd0] sm:$0xff] }
0x1177   : > { %10136 = vmatprep.subr.bf16.mxu0 %v10135_v3  ;;  %v5899_v3 = vld [vmem:[#allocation9 + $0xe8] sm:$0xff] }
0x1178   : > { %10139 = vmatpush3.bf16.msk.msra.mxu0 %vm14011_vm5, %v10137_v52 }
0x117a   : > { %v11150_v51 = vpop.permute.xlu0 %11149 }
0x117b   : > { %v11152_v23 = vunpack.i.h.bf16 %v11150_v51  ;;  %v11151_v10 = vunpack.i.l.bf16 %v11150_v51  ;;  %v5886_v51 = vld [vmem:[#allocation9 + $0x80] sm:$0xff] }
0x117d   : > { %v10140_v41 = vpack.c.bf16 %v11152_v23, %v11151_v10  ;;  %v5902_v23 = vld [vmem:[#allocation9 + $0x100] sm:$0xff]  ;;  %v5905_v10 = vld [vmem:[#allocation9 + $0x118] sm:$0xff] }
0x117e   : > { %v11160_v36 = vpop.permute.xlu0 %11159 }
0x117f   : > { %10141 = vmatprep.subr.bf16.mxu0 %v10140_v41  ;;  %v11162_v45 = vunpack.i.h.bf16 %v11160_v36  ;;  %v11161_v58 = vunpack.i.l.bf16 %v11160_v36  ;;  %v5889_v41 = vld [vmem:[#allocation9 + $0x98] sm:$0xff]  ;;  %v6276_v36 = vld [vmem:[#allocation10] sm:$0xff] }
0x1180   : > { %10144 = vmatpush3.bf16.msk.msra.mxu0 %vm14011_vm5, %v10142_v38 }
0x1181   : > { %v10150_v20 = vpack.c.bf16 %v11162_v45, %v11161_v58  ;;  %v6278_v45 = vld [vmem:[#allocation10 + $0x10] sm:$0xff]  ;;  %v5891_v58 = vld [vmem:[#allocation9 + $0xa8] sm:$0xff] }
0x1182   : > { %v11155_v50 = vpop.permute.xlu1 %11154  ;;  %v11170_v14 = vpop.permute.xlu0 %11169 }
0x1183   : > { %v11157_v31 = vunpack.i.h.bf16 %v11155_v50  ;;  %v11156_v48 = vunpack.i.l.bf16 %v11155_v50  ;;  %v11172_v42 = vunpack.i.h.bf16 %v11170_v14  ;;  %v11171_v25 = vunpack.i.l.bf16 %v11170_v14  ;;  %v6277_v50 = vld [vmem:[#allocation10 + $0x8] sm:$0xff]  ;;  %v5892_v14 = vld [vmem:[#allocation9 + $0xb0] sm:$0xff] }
0x1185   : > { %v10145_v22 = vpack.c.bf16 %v11157_v31, %v11156_v48  ;;  %v10160_v55 = vpack.c.bf16 %v11172_v42, %v11171_v25  ;;  %v6279_v31 = vld [vmem:[#allocation10 + $0x18] sm:$0xff]  ;;  %v5895_v48 = vld [vmem:[#allocation9 + $0xc8] sm:$0xff]  ;;  %v6284_v42 = vld [vmem:[#allocation10 + $0x40] sm:$0xff] }
0x1186   : > { %v11165_v52 = vpop.permute.xlu1 %11164  ;;  %v11180_v63 = vpop.permute.xlu0 %11179  ;;  %v5904_v25 = vld [vmem:[#allocation9 + $0x110] sm:$0xff] }
0x1187   : > { %v11167_v26 = vunpack.i.h.bf16 %v11165_v52  ;;  %v11166_v53 = vunpack.i.l.bf16 %v11165_v52  ;;  %10146 = vmatprep.subr.bf16.mxu0 %v10145_v22  ;;  %v11181_v17 = vunpack.i.l.bf16 %v11180_v63  ;;  %v6280_v22 = vld [vmem:[#allocation10 + $0x20] sm:$0xff] }
0x1188   : > { %10149 = vmatpush3.bf16.msk.msra.mxu0 %vm14011_vm5, %v10147_v16  ;;  %v11182_v16 = vunpack.i.h.bf16 %v11180_v63  ;;  %v5898_v52 = vld [vmem:[#allocation9 + $0xe0] sm:$0xff]  ;;  %v6282_v63 = vld [vmem:[#allocation10 + $0x30] sm:$0xff] }
0x1189   : > { %10151 = vmatprep.subr.bf16.mxu0 %v10150_v20  ;;  %v10155_v15 = vpack.c.bf16 %v11167_v26, %v11166_v53  ;;  %v5897_v26 = vld [vmem:[#allocation9 + $0xd8] sm:$0xff] }
0x118a   : > { %v11175_v7 = vpop.permute.xlu1 %11174  ;;  %v11190_v38 = vpop.permute.xlu0 %11189  ;;  %v10164_v35 = vpack.c.bf16 %v11182_v16, %v11181_v17  ;;  %v6283_v53 = vld [vmem:[#allocation10 + $0x38] sm:$0xff] }
0x118b   : > { %v11192_v11 = vunpack.i.h.bf16 %v11190_v38  ;;  %v11191_v28 = vunpack.i.l.bf16 %v11190_v38  ;;  %v11177_v19 = vunpack.i.h.bf16 %v11175_v7  ;;  %v11176_v21 = vunpack.i.l.bf16 %v11175_v7  ;;  %v5901_v20 = vld [vmem:[#allocation9 + $0xf8] sm:$0xff]  ;;  %v5900_v7 = vld [vmem:[#allocation9 + $0xf0] sm:$0xff]  ;;  %v6285_v38 = vld [vmem:[#allocation10 + $0x48] sm:$0xff] }
0x118c   : > { %10154 = vmatpush3.bf16.msk.msra.mxu0 %vm14011_vm5, %v10152_v2 }
0x118d   : > { %10156 = vmatprep.subr.bf16.mxu0 %v10155_v15  ;;  %v10168_v18 = vpack.c.bf16 %v11192_v11, %v11191_v28  ;;  %v10162_v12 = vpack.c.bf16 %v11177_v19, %v11176_v21  ;;  %v6286_v11 = vld [vmem:[#allocation10 + $0x50] sm:$0xff]  ;;  %v5903_v28 = vld [vmem:[#allocation9 + $0x108] sm:$0xff]  ;;  %v6287_v15 = vld [vmem:[#allocation10 + $0x58] sm:$0xff] }
0x118e   : > { %v11185_v30 = vpop.permute.xlu1 %11184 }
0x118f   : > { %10169 = vmatprep.subr.bf16.mxu1 %v10168_v18  ;;  %v11187_v54 = vunpack.i.h.bf16 %v11185_v30  ;;  %v11186_v2 = vunpack.i.l.bf16 %v11185_v30 }
0x1190   : > { %10159 = vmatpush3.bf16.msk.msra.mxu0 %vm14011_vm5, %v10157_v24  ;;  %10171 = vmatpush3.bf16.msra.mxu1 %v10168_v18  ;;  %v5874_v24 = vld [vmem:[#allocation9 + $0x20] sm:$0xff] }
0x1191   : > { %10161 = vmatprep.subr.bf16.mxu0 %v10160_v55  ;;  %v10166_v33 = vpack.c.bf16 %v11187_v54, %v11186_v2 }
0x1192   : > { %v11195_v59 = vpop.permute.xlu1 %11194 }
0x1193   : > { %v11197_v49 = vunpack.i.h.bf16 %v11195_v59  ;;  %v11196_v9 = vunpack.i.l.bf16 %v11195_v59 }
0x1194   : > { %10163 = vmatpush3.bf16.msra.mxu0 %v10162_v12 }
0x1195   : > { %10165 = vmatprep.subr.bf16.mxu0 %v10164_v35  ;;  %v10172_v61 = vpack.c.bf16 %v11197_v49, %v11196_v9 }
0x1197   : > { %10173 = vmatprep.subr.bf16.mxu1 %v10172_v61 }
0x1198   : > { %10167 = vmatpush3.bf16.msra.mxu0 %v10166_v33  ;;  %10175 = vmatpush3.bf16.msra.mxu1 %v10172_v61 }
0x1199   : > { %10178 = vmatprep.subr.msk.bf16.mxu1 %vm13806_vm3, %v13766_v57 }
0x119b   : > { %6079 = vmatmul.mubr.f32.vlgmr.msra.gmra.mrb[132].mxu0 %v5870_v40  ;;  %9652 = vmatmul.mubr.msk.f32.vlgmr.msra.gmra.mrb[134].mxu1 %vm1791_vm7, %v5875_v4  ;;  %v5941_v18 = vpop.permute.xlu0 %5940 }
0x119c   : > { %10181 = vmatpush3.bf16.msk.msra.mxu1 %vm13806_vm3, %v13766_v57  ;;  %6083 = vmatprep.mubr.f32.mxu0 %v5874_v24  ;;  %v5876_v57 = vld [vmem:[#allocation9 + $0x30] sm:$0xff] }
0x119d   : > { %10184 = vmatprep.subr.msk.bf16.mxu1 %vm13806_vm3, %v13781_v44  ;;  %9654 = vmatprep.mubr.msk.f32.mxu1 %vm1791_vm7, %v5878_v37 }
0x119f   : > { %6084 = vmatmul.mubr.f32.gmra.mrb[134].mxu0 %v5873_v43  ;;  %9655 = vmatmul.mubr.msk.f32.gmra.mrb[136].mxu1 %vm1791_vm7, %v5881_v34  ;;  %v14106_v21 = vpop.permute.xlu0 %5950 }
0x11a0   : > { %10187 = vmatpush3.bf16.msk.msra.mxu1 %vm13806_vm3, %v13781_v44  ;;  %6088 = vmatprep.mubr.f32.mxu0 %v5877_v27  ;;  %v5879_v44 = vld [vmem:[#allocation9 + $0x48] sm:$0xff] }
0x11a1   : > { %10190 = vmatprep.subr.msk.bf16.mxu1 %vm13806_vm3, %v13745_v6  ;;  %9657 = vmatprep.mubr.msk.f32.mxu1 %vm1791_vm7, %v5884_v29 }
0x11a3   : > { %6089 = vmatmul.mubr.f32.gmra.mrb[136].mxu0 %v5876_v57  ;;  %9658 = vmatmul.mubr.msk.f32.gmra.mrb[138].mxu1 %vm1791_vm7, %v5887_v46  ;;  %v14104_v19 = vpop.permute.xlu1 %5945  ;;  %v14110_v16 = vpop.permute.xlu0 %5960 }
0x11a4   : > { %10193 = vmatpush3.bf16.msk.msra.mxu1 %vm13806_vm3, %v13745_v6  ;;  %6093 = vmatprep.mubr.f32.mxu0 %v5880_v5  ;;  %v5882_v6 = vld [vmem:[#allocation9 + $0x60] sm:$0xff] }
0x11a5   : > { %10196 = vmatprep.subr.msk.bf16.mxu1 %vm13806_vm3, %v13752_v56  ;;  %9660 = vmatprep.mubr.msk.f32.mxu1 %vm1791_vm7, %v5890_v60 }
0x11a7   : > { %6094 = vmatmul.mubr.f32.gmra.mrb[138].mxu0 %v5879_v44  ;;  %9661 = vmatmul.mubr.msk.f32.gmra.mrb[140].mxu1 %vm1791_vm7, %v5893_v13  ;;  %v14108_v30 = vpop.permute.xlu1 %5955  ;;  %v14114_v55 = vpop.permute.xlu0 %5970 }
0x11a8   : > { %10199 = vmatpush3.bf16.msk.msra.mxu1 %vm13806_vm3, %v13752_v56  ;;  %6098 = vmatprep.mubr.f32.mxu0 %v5883_v47  ;;  %v5885_v56 = vld [vmem:[#allocation9 + $0x78] sm:$0xff] }
0x11a9   : > { %10202 = vmatprep.subr.msk.bf16.mxu1 %vm13806_vm3, %v13759_v8  ;;  %9663 = vmatprep.mubr.msk.f32.mxu1 %vm1791_vm7, %v5896_v62 }
0x11ab   : > { %6099 = vmatmul.mubr.f32.gmra.mrb[140].mxu0 %v5882_v6  ;;  %9664 = vmatmul.mubr.msk.f32.gmra.mrb[142].mxu1 %vm1791_vm7, %v5899_v3  ;;  %v14112_v17 = vpop.permute.xlu1 %5965  ;;  %v14118_v54 = vpop.permute.xlu0 %6322 }
0x11ac   : > { %10205 = vmatpush3.bf16.msk.msra.mxu1 %vm13806_vm3, %v13759_v8  ;;  %6103 = vmatprep.mubr.f32.mxu0 %v5886_v51  ;;  %v5888_v8 = vld [vmem:[#allocation9 + $0x90] sm:$0xff] }
0x11ad   : > { %10208 = vmatprep.subr.msk.bf16.mxu1 %vm13806_vm3, %v13773_v39  ;;  %9666 = vmatprep.mubr.msk.f32.mxu1 %vm1791_vm7, %v5902_v23 }
0x11af   : > { %6104 = vmatmul.mubr.f32.gmra.mrb[142].mxu0 %v5885_v56  ;;  %9667 = vmatmul.mubr.msk.f32.gmra.mrb[144].mxu1 %vm1791_vm7, %v5905_v10  ;;  %v14116_v12 = vpop.permute.xlu1 %5975  ;;  %v5921_v59 = vpop.permute.xlu0 %5920 }
0x11b0   : > { %10211 = vmatpush3.bf16.msk.msra.mxu1 %vm13806_vm3, %v13773_v39  ;;  %6108 = vmatprep.mubr.f32.mxu0 %v5889_v41  ;;  %v5894_v39 = vld [vmem:[#allocation9 + $0xc0] sm:$0xff] }
0x11b1   : > { %9693 = vmatprep.mubr.msk.f32.mxu1 %vm3570_vm14, %v6276_v36 }
0x11b3   : > { %6109 = vmatmul.mubr.f32.gmra.mrb[144].mxu0 %v5888_v8  ;;  %9694 = vmatmul.mubr.msk.f32.vlgmr.msra.gmra.mrb[146].mxu1 %vm3570_vm14, %v6277_v50  ;;  %v14120_v2 = vpop.permute.xlu1 %6327  ;;  %v14122_v9 = vpop.permute.xlu0 %6332 }
0x11b4   : > { %6113 = vmatprep.mubr.f32.mxu0 %v5892_v14  ;;  %9696 = vmatprep.mubr.msk.f32.mxu1 %vm3570_vm14, %v6278_v45 }
0x11b7   : > { %6114 = vmatmul.mubr.f32.gmra.mrb[146].mxu0 %v5891_v58  ;;  %9697 = vmatmul.mubr.msk.f32.gmra.mrb[148].mxu1 %vm3570_vm14, %v6279_v31  ;;  %v5926_v49 = vpop.permute.xlu1 %5925  ;;  %v5931_v61 = vpop.permute.xlu0 %5930 }
0x11b8   : > { %6118 = vmatprep.mubr.f32.mxu0 %v5895_v48  ;;  %9699 = vmatprep.mubr.msk.f32.mxu1 %vm3570_vm14, %v6280_v22 }
0x11bb   : > { %6119 = vmatmul.mubr.f32.gmra.mrb[148].mxu0 %v5894_v39  ;;  %9700 = vmatmul.mubr.msk.f32.gmra.mrb[150].mxu1 %vm3570_vm14, %v6281_v32  ;;  %v14124_v35 = vpop.permute.xlu1 %6337  ;;  %v14126_v34 = vpop.permute.xlu0 %6342 }
0x11bc   : > { %6123 = vmatprep.mubr.f32.mxu0 %v5898_v52  ;;  %9702 = vmatprep.mubr.msk.f32.mxu1 %vm3570_vm14, %v6282_v63 }
0x11bf   : > { %6124 = vmatmul.mubr.f32.gmra.mrb[150].mxu0 %v5897_v26  ;;  %9703 = vmatmul.mubr.msk.f32.gmra.mrb[152].mxu1 %vm3570_vm14, %v6283_v53  ;;  %v5936_v33 = vpop.permute.xlu1 %5935  ;;  %v14130_v10 = vpop.permute.xlu0 %6352 }
0x11c0   : > { %6128 = vmatprep.mubr.f32.mxu0 %v5901_v20  ;;  %9705 = vmatprep.mubr.msk.f32.mxu1 %vm3570_vm14, %v6284_v42 }
0x11c3   : > { %6129 = vmatmul.mubr.f32.gmra.mrb[152].mxu0 %v5900_v7  ;;  %9706 = vmatmul.mubr.msk.f32.gmra.mrb[154].mxu1 %vm3570_vm14, %v6285_v38  ;;  %v14128_v27 = vpop.permute.xlu1 %6347  ;;  %v6303_v53 = vpop.permute.xlu0 %6302 }
0x11c4   : > { %6133 = vmatprep.mubr.f32.mxu0 %v5904_v25  ;;  %9708 = vmatprep.mubr.msk.f32.mxu1 %vm3570_vm14, %v6286_v11 }
0x11c7   : > { %6134 = vmatmul.mubr.f32.gmra.mrb[154].mxu0 %v5903_v28  ;;  %9709 = vmatmul.mubr.msk.f32.gmra.mrb[156].mxu1 %vm3570_vm14, %v6287_v15  ;;  %v14132_v41 = vpop.permute.xlu1 %6357 }
0x11cb   : > { %v6308_v20 = vpop.permute.xlu1 %6307 }
0x126e   : > { %v9176_v40 = vpop.f32.mrb[132].mxu0  ;;  %v9653_v4 = vpop.f32.mrb[134].mxu1 }
0x126f   : > { %v9177_v24 = vpop.f32.mrb[133].mxu0  ;;  %v6205_v37 = vpop.f32.mrb[135].mxu1 }
0x1270   : > { %v9178_v43 = vadd.f32 %v9177_v24, %v9176_v40 }
0x1272   : > { %v9179_v29 = vpop.f32.mrb[134].mxu0  ;;  %v6081_v57 = vadd.f32 %v9178_v43, %v5921_v59  ;;  %v9656_v46 = vpop.f32.mrb[136].mxu1 }
0x1273   : > { %v9180_v5 = vpop.f32.mrb[135].mxu0  ;;  %v6215_v60 = vpop.f32.mrb[137].mxu1 }
0x1274   : > { %v9181_v44 = vadd.f32 %v9180_v5, %v9179_v29  ;;  %v6206_v13 = vadd.f32 %v6205_v37, %v6081_v57  ;;  %v6313_v57 = vpop.permute.xlu0 %6312 }
0x1276   : > { %v6086_v47 = vadd.f32 %v9181_v44, %v5926_v49  ;;  %v9182_v62 = vpop.f32.mrb[136].mxu0  ;;  %v9659_v6 = vpop.f32.mrb[138].mxu1 }
0x1277   : > { %v9183_v3 = vpop.f32.mrb[137].mxu0  ;;  %v6225_v51 = vpop.f32.mrb[139].mxu1 }
0x1278   : > { %v6211_v23 = vadd.f32 %v9653_v4, %v6086_v47  ;;  %v9184_v56 = vadd.f32 %v9183_v3, %v9182_v62 }
0x127a   : > { %v9185_v36 = vpop.f32.mrb[138].mxu0  ;;  %v6091_v8 = vadd.f32 %v9184_v56, %v5931_v61  ;;  %v14134_v50 = vpop.f32.mrb[140].mxu1  ;;  %11581 = vtanh.f32 %v6211_v23 }
0x127b   : > { %v9186_v14 = vpop.f32.mrb[139].mxu0  ;;  %v6235_v45 = vpop.f32.mrb[141].mxu1  ;;  %11583 = vtanh.f32 %v6206_v13 }
0x127c   : > { %v9187_v58 = vadd.f32 %v9186_v14, %v9185_v36  ;;  %v6216_v31 = vadd.f32 %v6215_v60, %v6091_v8 }
0x127e   : > { %v6096_v48 = vadd.f32 %v9187_v58, %v5936_v33  ;;  %v9188_v22 = vpop.f32.mrb[140].mxu0  ;;  %v14136_v39 = vpop.f32.mrb[142].mxu1 }
0x127f   : > { %v9189_v32 = vpop.f32.mrb[141].mxu0  ;;  %v14138_v52 = vpop.f32.mrb[143].mxu1 }
0x1280   : > { %v6221_v63 = vadd.f32 %v9656_v46, %v6096_v48  ;;  %v9190_v26 = vadd.f32 %v9189_v32, %v9188_v22  ;;  %v6318_v46 = vpop.permute.xlu1 %6317 }
0x1282   : > { %11585 = vtanh.f32 %v6221_v63  ;;  %v6101_v42 = vadd.f32 %v9190_v26, %v5941_v18  ;;  %v9191_v7 = vpop.f32.mrb[142].mxu0  ;;  %v14140_v38 = vpop.f32.mrb[144].mxu1 }
0x1283   : > { %11587 = vtanh.f32 %v6216_v31  ;;  %v9192_v25 = vpop.f32.mrb[143].mxu0  ;;  %v14142_v11 = vpop.f32.mrb[145].mxu1 }
0x1284   : > { %v6226_v28 = vadd.f32 %v6225_v51, %v6101_v42  ;;  %v9193_v15 = vadd.f32 %v9192_v25, %v9191_v7  ;;  %v11582_v24 = vpop.eup %11581 }
0x1285   : > { %v11584_v29 = vpop.eup %11583 }
0x1286   : > { %11589 = vtanh.f32 %v6226_v28  ;;  %v6106_v59 = vadd.f32 %v9193_v15, %v14104_v19  ;;  %v9194_v49 = vpop.f32.mrb[144].mxu0  ;;  %v9695_v61 = vpop.f32.mrb[146].mxu1 }
0x1287   : > { %v6468_v33 = vadd.f32 %v9695_v61, %v6308_v20  ;;  %v9195_v40 = vpop.f32.mrb[145].mxu0  ;;  %v6462_v4 = vpop.f32.mrb[147].mxu1 }
0x1288   : > { %v6231_v37 = vadd.f32 %v9659_v6, %v6106_v59  ;;  %v9196_v18 = vadd.f32 %v9195_v40, %v9194_v49  ;;  %v6463_v43 = vadd.f32 %v6462_v4, %v6303_v53 }
0x1289   : > { %v6522_v5 = vadd.f32 %v11582_v24, %v6468_v33 }
0x128a   : > { %11591 = vtanh.f32 %v6231_v37  ;;  %v6111_v60 = vadd.f32 %v9196_v18, %v14106_v21  ;;  %v6521_v44 = vadd.f32 %v11584_v29, %v6463_v43  ;;  %v9197_v13 = vpop.f32.mrb[146].mxu0  ;;  %v9698_v47 = vpop.f32.mrb[148].mxu1 }
0x128b   : > { %v6534_v19 = vmax.f32 %v6522_v5, 0.0  ;;  %v6478_v62 = vadd.f32 %v9698_v47, %v6318_v46  ;;  %v9198_v3 = vpop.f32.mrb[147].mxu0  ;;  %v6472_v51 = vpop.f32.mrb[149].mxu1 }
0x128c   : > { %v11586_v23 = vpop.eup %11585  ;;  %v6236_v56 = vadd.f32 %v6235_v45, %v6111_v60  ;;  %v6533_v36 = vmax.f32 %v6521_v44, 0.0  ;;  %v9199_v6 = vadd.f32 %v9198_v3, %v9197_v13  ;;  %v6473_v8 = vadd.f32 %v6472_v51, %v6313_v57 }
0x128d   : > { %v11588_v14 = vpop.eup %11587  ;;  %v6524_v58 = vadd.f32 %v11586_v23, %v6478_v62 }
0x128e   : > { %11593 = vtanh.f32 %v6236_v56  ;;  %v14146_v31 = vpack.i.bf16 %v6534_v19, %v6533_v36  ;;  %v6116_v48 = vadd.f32 %v9199_v6, %v14108_v30  ;;  %v6523_v21 = vadd.f32 %v11588_v14, %v6473_v8  ;;  %v9200_v22 = vpop.f32.mrb[148].mxu0  ;;  %v9701_v32 = vpop.f32.mrb[150].mxu1 }
0x128f   : > { %v6536_v63 = vmax.f32 %v6524_v58, 0.0  ;;  %v9201_v26 = vpop.f32.mrb[149].mxu0  ;;  %v6482_v53 = vpop.f32.mrb[151].mxu1  ;;  %v6488_v61 = vadd.f32 %v9701_v32, %v14120_v2 }
0x1290   : > { %v11590_v20 = vpop.eup %11589  ;;  %v6241_v42 = vadd.f32 %v14134_v50, %v6116_v48  ;;  %v6535_v45 = vmax.f32 %v6523_v21, 0.0  ;;  %v9202_v7 = vadd.f32 %v9201_v26, %v9200_v22  ;;  %v6483_v25 = vadd.f32 %v6482_v53, %v14118_v54 }
0x1292   : > { %11595 = vtanh.f32 %v6241_v42  ;;  %v14151_v28 = vpack.i.bf16 %v6536_v63, %v6535_v45  ;;  %v6121_v15 = vadd.f32 %v9202_v7, %v14110_v16  ;;  %v6525_v59 = vadd.f32 %v11590_v20, %v6483_v25  ;;  %v9203_v30 = vpop.f32.mrb[150].mxu0  ;;  %v9704_v49 = vpop.f32.mrb[152].mxu1 }
0x1293   : > { %v9204_v33 = vpop.f32.mrb[151].mxu0  ;;  %v6492_v40 = vpop.f32.mrb[153].mxu1 }
0x1294   : > { %v11592_v4 = vpop.eup %11591  ;;  %v6246_v24 = vadd.f32 %v14138_v52, %v6121_v15  ;;  %v9205_v50 = vadd.f32 %v9204_v33, %v9203_v30  ;;  %v6537_v57 = vmax.f32 %v6525_v59, 0.0  ;;  %v6493_v16 = vadd.f32 %v6492_v40, %v14122_v9 }
0x1295   : > { %v6526_v37 = vadd.f32 %v11592_v4, %v6488_v61 }
0x1296   : > { %11597 = vtanh.f32 %v6246_v24  ;;  %v6126_v54 = vadd.f32 %v9205_v50, %v14112_v17  ;;  %v9206_v18 = vpop.f32.mrb[152].mxu0  ;;  %v9707_v43 = vpop.f32.mrb[154].mxu1  ;;  %v6498_v17 = vadd.f32 %v9704_v49, %v14124_v35 }
0x1297   : > { %v6538_v29 = vmax.f32 %v6526_v37, 0.0  ;;  %v9207_v46 = vpop.f32.mrb[153].mxu0  ;;  %v6502_v5 = vpop.f32.mrb[155].mxu1  ;;  %v6508_v21 = vadd.f32 %v9707_v43, %v14128_v27 }
0x1298   : > { %v11594_v60 = vpop.eup %11593  ;;  %v6251_v2 = vadd.f32 %v14136_v39, %v6126_v54  ;;  %v9208_v44 = vadd.f32 %v9207_v46, %v9206_v18 }
0x1299   : > { %v11198_v13 = vpack.i.bf16 %v6538_v29, %v6537_v57  ;;  %v6527_v47 = vadd.f32 %v11594_v60, %v6493_v16 }
0x129a   : > { %11599 = vtanh.f32 %v6251_v2  ;;  %v6131_v52 = vadd.f32 %v9208_v44, %v14114_v55  ;;  %v9209_v19 = vpop.f32.mrb[154].mxu0  ;;  %v9710_v62 = vpop.f32.mrb[156].mxu1  ;;  %v6503_v55 = vadd.f32 %v6502_v5, %v14126_v34 }
0x129b   : > { %v9210_v3 = vpop.f32.mrb[155].mxu0  ;;  %v6512_v51 = vpop.f32.mrb[157].mxu1  ;;  %11199 = vrot.lane.b32.xlu0 %v11198_v13, %s14619_s0  ;;  %v6539_v8 = vmax.f32 %v6527_v47, 0.0  ;;  %v6518_v34 = vadd.f32 %v9710_v62, %v14132_v41 }
0x129c   : > { %v11596_v9 = vpop.eup %11595  ;;  %v6256_v23 = vadd.f32 %v14142_v11, %v6131_v52  ;;  %v9211_v56 = vadd.f32 %v9210_v3, %v9209_v19 }
0x129d   : > { %v6528_v39 = vadd.f32 %v11596_v9, %v6498_v17 }
0x129e   : > { %11601 = vtanh.f32 %v6256_v23  ;;  %v6136_v36 = vadd.f32 %v9211_v56, %v14116_v12  ;;  %v6513_v12 = vadd.f32 %v6512_v51, %v14130_v10 }
0x129f   : > { %v6540_v6 = vmax.f32 %v6528_v39, 0.0 }
0x12a0   : > { %v11598_v14 = vpop.eup %11597  ;;  %v6261_v35 = vadd.f32 %v14140_v38, %v6136_v36 }
0x12a1   : > { %v11203_v58 = vpack.i.bf16 %v6540_v6, %v6539_v8  ;;  %v6529_v48 = vadd.f32 %v11598_v14, %v6503_v55 }
0x12a2   : > { %11603 = vtanh.f32 %v6261_v35 }
0x12a3   : > { %11204 = vrot.lane.b32.xlu1 %v11203_v58, %s14619_s0  ;;  %v6541_v63 = vmax.f32 %v6529_v48, 0.0 }
0x12a4   : > { %v11600_v11 = vpop.eup %11599 }
0x12a5   : > { %v6530_v22 = vadd.f32 %v11600_v11, %v6508_v21 }
0x12a7   : > { %v6542_v32 = vmax.f32 %v6530_v22, 0.0 }
0x12a8   : > { %v11602_v26 = vpop.eup %11601 }
0x12a9   : > { %v11208_v53 = vpack.i.bf16 %v6542_v32, %v6541_v63  ;;  %v6531_v20 = vadd.f32 %v11602_v26, %v6513_v12 }
0x12ab   : > { %11209 = vrot.lane.b32.xlu0 %v11208_v53, %s14619_s0  ;;  %v6543_v45 = vmax.f32 %v6531_v20, 0.0 }
0x12ac   : > { %v11604_v38 = vpop.eup %11603 }
0x12ad   : > { %v6532_v42 = vadd.f32 %v11604_v38, %v6518_v34 }
0x12af   : > { %v6544_v7 = vmax.f32 %v6532_v42, 0.0  ;;  %11219 = vrot.lane.b32.xlu0 %v14146_v31, %s14619_s0  ;;  %v6718_v42 = vld [vmem:[#allocation12 + $0x8] sm:$0xff] }
0x12b0   : > { %6901 = vmatprep.mubr.f32.mxu0 %v6718_v42 }
0x12b1   : > { %v11213_v27 = vpack.i.bf16 %v6544_v7, %v6543_v45  ;;  %v6719_v45 = vld [vmem:[#allocation12 + $0x10] sm:$0xff] }
0x12b2   : > { %9719 = vmatprep.mubr.msk.f32.mxu1 %vm1791_vm7, %v6719_v45 }
0x12b3   : > { %11214 = vrot.lane.b32.xlu1 %v11213_v27, %s14619_s0 }
0x12b7   : > { %11224 = vrot.lane.b32.xlu1 %v14151_v28, %s14619_s0  ;;  %s14704_s0 = sld [smem:[#allocation37_spill]] }
0x12bd   : > { %v6747_v7 = vld [vmem:[%s14704_s0] sm:$0xff]  ;;  %v6748_v27 = vld [vmem:[%s14704_s0 + $0x8] sm:$0xff] }
0x130d   : > { %v11200_v10 = vpop.permute.xlu0 %11199 }
0x130e   : > { %v11202_v25 = vunpack.i.h.bf16 %v11200_v10  ;;  %v11201_v15 = vunpack.i.l.bf16 %v11200_v10  ;;  %v6749_v10 = vld [vmem:[%s14704_s0 + $0x10] sm:$0xff] }
0x1310   : > { %v6598_v41 = vsel %vm1791_vm7, 0.0, %v11202_v25  ;;  %v6597_v59 = vsel %vm1791_vm7, 0.0, %v11201_v15  ;;  %v6750_v25 = vld [vmem:[%s14704_s0 + $0x18] sm:$0xff]  ;;  %v6751_v15 = vld [vmem:[%s14704_s0 + $0x20] sm:$0xff] }
0x1311   : > { %v6611_v30 = vsel %vm6605_vm6, %v6598_v41, 0.0  ;;  %v6610_v49 = vsel %vm6605_vm6, %v6597_v59, 0.0  ;;  %v14180_v61 = vpack.c.bf16 %v6598_v41, %v6597_v59  ;;  %v6752_v41 = vld [vmem:[%s14704_s0 + $0x28] sm:$0xff]  ;;  %v6753_v59 = vld [vmem:[%s14704_s0 + $0x30] sm:$0xff] }
0x1312   : > { %v11228_v31 = vpack.i.bf16 %v6611_v30, %v6610_v49 }
0x1314   : > { %11229 = vrot.lane.b32.xlu0 %v11228_v31, %s12031_s15  ;;  %v6756_v31 = vld [vmem:[%s14704_s0 + $0x48] sm:$0xff] }
0x1315   : > { %v11205_v33 = vpop.permute.xlu1 %11204 }
0x1316   : > { %v11207_v40 = vunpack.i.h.bf16 %v11205_v33  ;;  %v11206_v28 = vunpack.i.l.bf16 %v11205_v33 }
0x1318   : > { %v6600_v4 = vsel %vm1791_vm7, 0.0, %v11207_v40  ;;  %v6599_v24 = vsel %vm1791_vm7, 0.0, %v11206_v28 }
0x1319   : > { %v6613_v50 = vsel %vm6605_vm6, %v6600_v4, 0.0  ;;  %v6612_v37 = vsel %vm6605_vm6, %v6599_v24, 0.0  ;;  %v14187_v54 = vpack.c.bf16 %v6600_v4, %v6599_v24  ;;  %v7557_v24 = vld [vmem:[#allocation13 + $0x20] sm:$0xff] }
0x131a   : > { %v11233_v18 = vpack.i.bf16 %v6613_v50, %v6612_v37  ;;  %v11263_v20 = vpack.i.bf16 %v6612_v37, %v6611_v30  ;;  %v6754_v30 = vld [vmem:[%s14704_s0 + $0x38] sm:$0xff] }
0x131c   : > { %11234 = vrot.lane.b32.xlu1 %v11233_v18, %s12031_s15 }
0x131d   : > { %v11210_v43 = vpop.permute.xlu0 %11209 }
0x131e   : > { %v11212_v29 = vunpack.i.h.bf16 %v11210_v43  ;;  %v11211_v57 = vunpack.i.l.bf16 %v11210_v43 }
0x1320   : > { %v6602_v16 = vsel %vm1791_vm7, 0.0, %v11212_v29  ;;  %v6601_v46 = vsel %vm1791_vm7, 0.0, %v11211_v57 }
0x1321   : > { %v6615_v5 = vsel %vm6605_vm6, %v6602_v16, 0.0  ;;  %v6614_v60 = vsel %vm6605_vm6, %v6601_v46, 0.0  ;;  %v14194_v2 = vpack.c.bf16 %v6602_v16, %v6601_v46  ;;  %v11220_v44 = vpop.permute.xlu0 %11219 }
0x1322   : > { %v11238_v13 = vpack.i.bf16 %v6615_v5, %v6614_v60  ;;  %v11222_v47 = vunpack.i.h.bf16 %v11220_v44  ;;  %v11221_v52 = vunpack.i.l.bf16 %v11220_v44 }
0x1324   : > { %v6594_v19 = vsel %vm1791_vm7, 0.0, %v11222_v47  ;;  %v6593_v62 = vsel %vm1791_vm7, 0.0, %v11221_v52  ;;  %11239 = vrot.lane.b32.xlu0 %v11238_v13, %s12031_s15 }
0x1325   : > { %v6606_v17 = vsel %vm6605_vm6, %v6593_v62, 0.0  ;;  %v14200_v3 = vpack.c.bf16 %v6594_v19, %v6593_v62  ;;  %v11215_v51 = vpop.permute.xlu1 %11214  ;;  %v6607_v22 = vsel %vm6605_vm6, %v6594_v19, 0.0 }
0x1326   : > { %v11243_v9 = vpack.i.bf16 %v12020_v1, %v6606_v17  ;;  %v11217_v23 = vunpack.i.h.bf16 %v11215_v51  ;;  %v11216_v56 = vunpack.i.l.bf16 %v11215_v51  ;;  %v11268_v34 = vpack.i.bf16 %v6607_v22, %v6606_v17 }
0x1328   : > { %v6604_v39 = vsel %vm1791_vm7, 0.0, %v11217_v23  ;;  %v6603_v36 = vsel %vm1791_vm7, 0.0, %v11216_v56  ;;  %11244 = vrot.lane.b32.xlu0 %v11243_v9, %s14621_s22 }
0x1329   : > { %v6617_v6 = vsel %vm6605_vm6, %v6604_v39, 0.0  ;;  %v6616_v8 = vsel %vm6605_vm6, %v6603_v36, 0.0  ;;  %v14208_v55 = vpack.c.bf16 %v6604_v39, %v6603_v36  ;;  %v11225_v14 = vpop.permute.xlu1 %11224 }
0x132a   : > { %v11248_v35 = vpack.i.bf16 %v6617_v6, %v6616_v8  ;;  %v11227_v58 = vunpack.i.h.bf16 %v11225_v14  ;;  %v11226_v48 = vunpack.i.l.bf16 %v11225_v14 }
0x132c   : > { %v6596_v21 = vsel %vm1791_vm7, 0.0, %v11227_v58  ;;  %v6595_v11 = vsel %vm1791_vm7, 0.0, %v11226_v48  ;;  %11249 = vrot.lane.b32.xlu1 %v11248_v35, %s12031_s15 }
0x132d   : > { %v6609_v32 = vsel %vm6605_vm6, %v6596_v21, 0.0  ;;  %v6608_v63 = vsel %vm6605_vm6, %v6595_v11, 0.0  ;;  %v14216_v12 = vpack.c.bf16 %v6596_v21, %v6595_v11 }
0x132e   : > { %v11258_v26 = vpack.i.bf16 %v6610_v49, %v6609_v32  ;;  %v11253_v53 = vpack.i.bf16 %v6608_v63, %v6607_v22  ;;  %v11273_v38 = vpack.i.bf16 %v6609_v32, %v6608_v63  ;;  %v6755_v49 = vld [vmem:[%s14704_s0 + $0x40] sm:$0xff] }
0x1330   : > { %11254 = vrot.lane.b32.xlu1 %v11253_v53, %s14621_s22  ;;  %11259 = vrot.lane.b32.xlu0 %v11258_v26, %s14621_s22 }
0x1334   : > { %11264 = vrot.lane.b32.xlu1 %v11263_v20, %s14621_s22  ;;  %11269 = vrot.lane.b32.xlu0 %v11268_v34, %s12031_s15 }
0x1338   : > { %6683 = vrot.lane.b32.xlu1 %v6613_v50, %s14621_s22  ;;  %11274 = vrot.lane.b32.xlu0 %v11273_v38, %s12031_s15 }
0x133c   : > { %11279 = vrot.lane.b32.xlu1 %v11238_v13, %s14621_s22  ;;  %11284 = vrot.lane.b32.xlu0 %v11248_v35, %s14621_s22  ;;  %s14707_s22 = smov 32  }
0x1340   : > { %6759 = vperm.xlu1 %10566, %v6747_v7   ;;  %6764 = vperm.xlu0 %10567, %v6748_v27  }
0x1344   : > { %6769 = vperm.xlu1 %10566, %v6749_v10   ;;  %6774 = vperm.xlu0 %10567, %v6750_v25  }
0x1348   : > { %6779 = vperm.xlu1 %10566, %v6751_v15   ;;  %6784 = vperm.xlu0 %10567, %v6752_v41  }
0x134c   : > { %6789 = vperm.xlu1 %10566, %v6753_v59   ;;  %6794 = vperm.xlu0 %10567, %v6754_v30  }
0x1350   : > { %6799 = vperm.xlu1 %10566, %v6755_v49   ;;  %6804 = vperm.xlu0 %10567, %v6756_v31  }
0x1386   : > { %v11230_v33 = vpop.permute.xlu0 %11229 }
0x1387   : > { %v11232_v40 = vunpack.i.h.bf16 %v11230_v33  ;;  %v11231_v28 = vunpack.i.l.bf16 %v11230_v33 }
0x1389   : > { %v10212_v4 = vpack.c.bf16 %v11232_v40, %v11231_v28 }
0x138b   : > { %10213 = vmatprep.subr.bf16.mxu0 %v10212_v4 }
0x138c   : > { %10216 = vmatpush3.bf16.msk.msra.mxu0 %vm14239_vm8, %v14200_v3 }
0x138e   : > { %v11235_v50 = vpop.permute.xlu1 %11234 }
0x138f   : > { %v11237_v37 = vunpack.i.h.bf16 %v11235_v50  ;;  %v11236_v18 = vunpack.i.l.bf16 %v11235_v50 }
0x1391   : > { %v10217_v43 = vpack.c.bf16 %v11237_v37, %v11236_v18  ;;  %v6717_v18 = vld [vmem:[#allocation12] sm:$0xff] }
0x1393   : > { %10218 = vmatprep.subr.bf16.mxu0 %v10217_v43  ;;  %v6721_v43 = vld [vmem:[#allocation12 + $0x20] sm:$0xff] }
0x1394   : > { %10221 = vmatpush3.bf16.msk.msra.mxu0 %vm14239_vm8, %v14216_v12 }
0x1396   : > { %v11240_v29 = vpop.permute.xlu0 %11239 }
0x1397   : > { %v11242_v57 = vunpack.i.h.bf16 %v11240_v29  ;;  %v11241_v16 = vunpack.i.l.bf16 %v11240_v29  ;;  %v6720_v29 = vld [vmem:[#allocation12 + $0x18] sm:$0xff] }
0x1399   : > { %v10222_v46 = vpack.c.bf16 %v11242_v57, %v11241_v16  ;;  %v6722_v57 = vld [vmem:[#allocation12 + $0x28] sm:$0xff]  ;;  %v6724_v16 = vld [vmem:[#allocation12 + $0x38] sm:$0xff] }
0x139a   : > { %v11245_v5 = vpop.permute.xlu0 %11244 }
0x139b   : > { %10223 = vmatprep.subr.bf16.mxu0 %v10222_v46  ;;  %v11247_v47 = vunpack.i.h.bf16 %v11245_v5  ;;  %v11246_v52 = vunpack.i.l.bf16 %v11245_v5  ;;  %v6725_v46 = vld [vmem:[#allocation12 + $0x40] sm:$0xff]  ;;  %v6723_v5 = vld [vmem:[#allocation12 + $0x30] sm:$0xff] }
0x139c   : > { %10226 = vmatpush3.bf16.msk.msra.mxu0 %vm14239_vm8, %v14180_v61 }
0x139d   : > { %v6693_v56 = vsel %vm3570_vm14, %v11246_v52, %v11247_v47  ;;  %v6730_v52 = vld [vmem:[#allocation12 + $0x68] sm:$0xff] }
0x139e   : > { %v11250_v60 = vpop.permute.xlu1 %11249 }
0x139f   : > { %v11252_v44 = vunpack.i.h.bf16 %v11250_v60  ;;  %v11251_v13 = vunpack.i.l.bf16 %v11250_v60  ;;  %v6728_v60 = vld [vmem:[#allocation12 + $0x58] sm:$0xff] }
0x13a1   : > { %v10227_v19 = vpack.c.bf16 %v11252_v44, %v11251_v13  ;;  %v6727_v44 = vld [vmem:[#allocation12 + $0x50] sm:$0xff] }
0x13a2   : > { %v11255_v62 = vpop.permute.xlu1 %11254  ;;  %v11260_v17 = vpop.permute.xlu0 %11259  ;;  %v6731_v13 = vld [vmem:[#allocation12 + $0x70] sm:$0xff] }
0x13a3   : > { %v11257_v51 = vunpack.i.h.bf16 %v11255_v62  ;;  %v11256_v9 = vunpack.i.l.bf16 %v11255_v62  ;;  %v11261_v23 = vunpack.i.l.bf16 %v11260_v17  ;;  %10228 = vmatprep.subr.bf16.mxu0 %v10227_v19  ;;  %v11262_v58 = vunpack.i.h.bf16 %v11260_v17  ;;  %v6737_v19 = vld [vmem:[#allocation12 + $0xa0] sm:$0xff]  ;;  %v6740_v62 = vld [vmem:[#allocation12 + $0xb8] sm:$0xff] }
0x13a4   : > { %10231 = vmatpush3.bf16.msk.msra.mxu0 %vm14239_vm8, %v14187_v54  ;;  %v6733_v17 = vld [vmem:[#allocation12 + $0x80] sm:$0xff] }
0x13a5   : > { %v6694_v39 = vsel %vm3570_vm14, %v11256_v9, %v11247_v47  ;;  %v6695_v36 = vsel %vm3570_vm14, %v11257_v51, %v11247_v47  ;;  %v6696_v6 = vsel %vm3570_vm14, %v11261_v23, %v11247_v47  ;;  %v6697_v20 = vsel %vm3570_vm14, %v11262_v58, %v11247_v47  ;;  %v6743_v51 = vld [vmem:[#allocation12 + $0xd0] sm:$0xff]  ;;  %v6746_v9 = vld [vmem:[#allocation12 + $0xe8] sm:$0xff]  ;;  %v6736_v23 = vld [vmem:[#allocation12 + $0x98] sm:$0xff] }
0x13a6   : > { %v11265_v8 = vpop.permute.xlu1 %11264  ;;  %v11270_v14 = vpop.permute.xlu0 %11269  ;;  %v10232_v35 = vpack.c.bf16 %v6694_v39, %v6693_v56  ;;  %v10237_v21 = vpack.c.bf16 %v6696_v6, %v6695_v36  ;;  %v6735_v56 = vld [vmem:[#allocation12 + $0x90] sm:$0xff]  ;;  %v6738_v39 = vld [vmem:[#allocation12 + $0xa8] sm:$0xff]  ;;  %v6745_v6 = vld [vmem:[#allocation12 + $0xe0] sm:$0xff] }
0x13a7   : > { %v11266_v48 = vunpack.i.l.bf16 %v11265_v8  ;;  %v11267_v22 = vunpack.i.h.bf16 %v11265_v8  ;;  %v11272_v32 = vunpack.i.h.bf16 %v11270_v14  ;;  %v11271_v63 = vunpack.i.l.bf16 %v11270_v14  ;;  %v6742_v36 = vld [vmem:[#allocation12 + $0xc8] sm:$0xff]  ;;  %v6744_v8 = vld [vmem:[#allocation12 + $0xd8] sm:$0xff]  ;;  %v7553_v14 = vld [vmem:[#allocation13] sm:$0xff] }
0x13a8   : > { %10233 = vmatprep.subr.bf16.mxu0 %v10232_v35  ;;  %v7554_v35 = vld [vmem:[#allocation13 + $0x8] sm:$0xff]  ;;  %v7555_v58 = vld [vmem:[#allocation13 + $0x10] sm:$0xff] }
0x13a9   : > { %10236 = vmatpush3.bf16.msk.msra.mxu0 %vm14239_vm8, %v14194_v2  ;;  %v6698_v11 = vsel %vm3570_vm14, %v11266_v48, %v11247_v47  ;;  %v10244_v42 = vpack.c.bf16 %v11272_v32, %v11271_v63  ;;  %v6699_v45 = vsel %vm3570_vm14, %v11267_v22, %v11247_v47 }
0x13aa   : > { %v6684_v26 = vpop.permute.xlu1 %6683  ;;  %v11275_v53 = vpop.permute.xlu0 %11274  ;;  %10238 = vmatprep.subr.bf16.mxu0 %v10237_v21  ;;  %v10242_v34 = vpack.c.bf16 %v6698_v11, %v6697_v20 }
0x13ab   : > { %v6700_v38 = vsel %vm3570_vm14, %v6684_v26, %v11247_v47  ;;  %v11277_v7 = vunpack.i.h.bf16 %v11275_v53  ;;  %v11276_v27 = vunpack.i.l.bf16 %v11275_v53 }
0x13ac   : > { %v10246_v49 = vpack.c.bf16 %v6700_v38, %v6699_v45 }
0x13ad   : > { %10241 = vmatpush3.bf16.msk.msra.mxu0 %vm14239_vm8, %v14208_v55  ;;  %v10248_v50 = vpack.c.bf16 %v11277_v7, %v11276_v27 }
0x13ae   : > { %v11280_v10 = vpop.permute.xlu1 %11279  ;;  %v11285_v25 = vpop.permute.xlu0 %11284  ;;  %10243 = vmatprep.subr.bf16.mxu0 %v10242_v34 }
0x13af   : > { %v11282_v15 = vunpack.i.h.bf16 %v11280_v10  ;;  %v11281_v41 = vunpack.i.l.bf16 %v11280_v10  ;;  %v11287_v59 = vunpack.i.h.bf16 %v11285_v25  ;;  %v11286_v30 = vunpack.i.l.bf16 %v11285_v25 }
0x13b1   : > { %10245 = vmatpush3.bf16.msra.mxu0 %v10244_v42  ;;  %v6701_v31 = vsel %vm3570_vm14, %v11281_v41, %v11247_v47  ;;  %v6702_v33 = vsel %vm3570_vm14, %v11282_v15, %v11247_v47  ;;  %v6703_v40 = vsel %vm3570_vm14, %v11286_v30, %v11247_v47  ;;  %v6704_v28 = vsel %vm3570_vm14, %v11287_v59, %v11247_v47  ;;  %v6734_v47 = vld [vmem:[#allocation12 + $0x88] sm:$0xff] }
0x13b2   : > { %10247 = vmatprep.subr.bf16.mxu0 %v10246_v49  ;;  %v10250_v4 = vpack.c.bf16 %v6702_v33, %v6701_v31  ;;  %v10254_v37 = vpack.c.bf16 %v6704_v28, %v6703_v40  ;;  %v7558_v33 = vld [vmem:[#allocation13 + $0x28] sm:$0xff] }
0x13b4   : > { %10251 = vmatprep.subr.bf16.mxu1 %v10250_v4 }
0x13b5   : > { %10249 = vmatpush3.bf16.msra.mxu0 %v10248_v50  ;;  %10253 = vmatpush3.bf16.msra.mxu1 %v10250_v4 }
0x13b6   : > { %10255 = vmatprep.subr.bf16.mxu1 %v10254_v37 }
0x13b8   : > { %6902 = vmatmul.mubr.f32.vlgmr.msra.gmra.mrb[156].mxu0 %v6717_v18 }
0x13b9   : > { %10257 = vmatpush3.bf16.msra.mxu1 %v10254_v37  ;;  %6906 = vmatprep.mubr.f32.mxu0 %v6721_v43 }
0x13ba   : > { %10330 = vmatprep.subr.msk.bf16.mxu1 %vm14239_vm8, %v14200_v3 }
0x13bc   : > { %6907 = vmatmul.mubr.f32.gmra.mrb[158].mxu0 %v6720_v29  ;;  %9720 = vmatmul.mubr.msk.f32.vlgmr.msra.gmra.mrb[158].mxu1 %vm1791_vm7, %v6722_v57 }
0x13bd   : > { %10333 = vmatpush3.bf16.msk.msra.mxu1 %vm14239_vm8, %v14200_v3  ;;  %6911 = vmatprep.mubr.f32.mxu0 %v6724_v16  ;;  %v6726_v3 = vld [vmem:[#allocation12 + $0x48] sm:$0xff] }
0x13be   : > { %10336 = vmatprep.subr.msk.bf16.mxu1 %vm14239_vm8, %v14216_v12  ;;  %9722 = vmatprep.mubr.msk.f32.mxu1 %vm1791_vm7, %v6725_v46 }
0x13bf   : > { %v6760_v22 = vpop.permute.xlu1 %6759  ;;  %v6765_v42 = vpop.permute.xlu0 %6764 }
0x13c0   : > { %6912 = vmatmul.mubr.f32.gmra.mrb[160].mxu0 %v6723_v5  ;;  %9723 = vmatmul.mubr.msk.f32.gmra.mrb[160].mxu1 %vm1791_vm7, %v6728_v60  ;;  %v7559_v60 = vld [vmem:[#allocation13 + $0x30] sm:$0xff] }
0x13c1   : > { %10339 = vmatpush3.bf16.msk.msra.mxu1 %vm14239_vm8, %v14216_v12  ;;  %6916 = vmatprep.mubr.f32.mxu0 %v6727_v44  ;;  %v6729_v12 = vld [vmem:[#allocation12 + $0x60] sm:$0xff] }
0x13c2   : > { %10342 = vmatprep.subr.msk.bf16.mxu1 %vm14239_vm8, %v14180_v61  ;;  %9725 = vmatprep.mubr.msk.f32.mxu1 %vm1791_vm7, %v6731_v13 }
0x13c3   : > { %v6770_v59 = vpop.permute.xlu1 %6769  ;;  %v6775_v37 = vpop.permute.xlu0 %6774 }
0x13c4   : > { %6917 = vmatmul.mubr.f32.gmra.mrb[162].mxu0 %v6726_v3  ;;  %9726 = vmatmul.mubr.msk.f32.gmra.mrb[162].mxu1 %vm1791_vm7, %v6734_v47 }
0x13c5   : > { %10345 = vmatpush3.bf16.msk.msra.mxu1 %vm14239_vm8, %v14180_v61  ;;  %6921 = vmatprep.mubr.f32.mxu0 %v6730_v52  ;;  %v6732_v61 = vld [vmem:[#allocation12 + $0x78] sm:$0xff]  ;;  %v7560_v52 = vld [vmem:[#allocation13 + $0x38] sm:$0xff] }
0x13c6   : > { %10348 = vmatprep.subr.msk.bf16.mxu1 %vm14239_vm8, %v14187_v54  ;;  %9728 = vmatprep.mubr.msk.f32.mxu1 %vm1791_vm7, %v6737_v19 }
0x13c7   : > { %v6780_v44 = vpop.permute.xlu1 %6779 }
0x13c8   : > { %6922 = vmatmul.mubr.f32.gmra.mrb[164].mxu0 %v6729_v12  ;;  %9729 = vmatmul.mubr.msk.f32.gmra.mrb[164].mxu1 %vm1791_vm7, %v6740_v62 }
0x13c9   : > { %10351 = vmatpush3.bf16.msk.msra.mxu1 %vm14239_vm8, %v14187_v54  ;;  %6926 = vmatprep.mubr.f32.mxu0 %v6733_v17  ;;  %v6739_v54 = vld [vmem:[#allocation12 + $0xb0] sm:$0xff] }
0x13ca   : > { %10354 = vmatprep.subr.msk.bf16.mxu1 %vm14239_vm8, %v14194_v2  ;;  %9731 = vmatprep.mubr.msk.f32.mxu1 %vm1791_vm7, %v6743_v51 }
0x13cc   : > { %6927 = vmatmul.mubr.f32.gmra.mrb[166].mxu0 %v6732_v61  ;;  %9732 = vmatmul.mubr.msk.f32.gmra.mrb[166].mxu1 %vm1791_vm7, %v6746_v9  ;;  %v6785_v9 = vpop.permute.xlu0 %6784 }
0x13cd   : > { %10357 = vmatpush3.bf16.msk.msra.mxu1 %vm14239_vm8, %v14194_v2  ;;  %6931 = vmatprep.mubr.f32.mxu0 %v6736_v23  ;;  %v6741_v2 = vld [vmem:[#allocation12 + $0xc0] sm:$0xff] }
0x13ce   : > { %10360 = vmatprep.subr.msk.bf16.mxu1 %vm14239_vm8, %v14208_v55  ;;  %9758 = vmatprep.mubr.msk.f32.mxu1 %vm3570_vm14, %v7553_v14  ;;  %v6790_v14 = vpop.permute.xlu1 %6789 }
0x13d0   : > { %6932 = vmatmul.mubr.f32.gmra.mrb[168].mxu0 %v6735_v56  ;;  %v7561_v56 = vld [vmem:[#allocation13 + $0x40] sm:$0xff] }
0x13d1   : > { %10363 = vmatpush3.bf16.msk.msra.mxu1 %vm14239_vm8, %v14208_v55  ;;  %6936 = vmatprep.mubr.f32.mxu0 %v6739_v54  ;;  %v7556_v55 = vld [vmem:[#allocation13 + $0x18] sm:$0xff] }
0x13d2   : > { %10364 = vmatprep.subr.bf16.mxu1 %v12018_v0 }
0x13d4   : > { %6937 = vmatmul.mubr.f32.gmra.mrb[170].mxu0 %v6738_v39  ;;  %9759 = vmatmul.mubr.msk.f32.vlgmr.msra.gmra.mrb[168].mxu1 %vm3570_vm14, %v7554_v35 }
0x13d5   : > { %6941 = vmatprep.mubr.f32.mxu0 %v6742_v36  ;;  %9761 = vmatprep.mubr.msk.f32.mxu1 %vm3570_vm14, %v7555_v58  ;;  %v7562_v36 = vld [vmem:[#allocation13 + $0x48] sm:$0xff] }
0x13d8   : > { %6942 = vmatmul.mubr.f32.gmra.mrb[172].mxu0 %v6741_v2  ;;  %9762 = vmatmul.mubr.msk.f32.gmra.mrb[170].mxu1 %vm3570_vm14, %v7556_v55 }
0x13d9   : > { %6946 = vmatprep.mubr.f32.mxu0 %v6745_v6  ;;  %9764 = vmatprep.mubr.msk.f32.mxu1 %vm3570_vm14, %v7557_v24 }
0x13dc   : > { %6947 = vmatmul.mubr.f32.gmra.mrb[174].mxu0 %v6744_v8  ;;  %9765 = vmatmul.mubr.msk.f32.gmra.mrb[172].mxu1 %vm3570_vm14, %v7558_v33 }
0x13dd   : > { %9767 = vmatprep.mubr.msk.f32.mxu1 %vm3570_vm14, %v7559_v60 }
0x13e0   : > { %9768 = vmatmul.mubr.msk.f32.gmra.mrb[174].mxu1 %vm3570_vm14, %v7560_v52 }
0x13e1   : > { %9770 = vmatprep.mubr.msk.f32.mxu1 %vm3570_vm14, %v7561_v56 }
0x13e4   : > { %9771 = vmatmul.mubr.msk.f32.gmra.mrb[176].mxu1 %vm3570_vm14, %v7562_v36 }
0x148b   : > { %v9284_v48 = vpop.f32.mrb[156].mxu0 }
0x148c   : > { %v9285_v21 = vpop.f32.mrb[157].mxu0 }
0x148d   : > { %v9286_v11 = vadd.f32 %v9285_v21, %v9284_v48 }
0x148f   : > { %v9287_v32 = vpop.f32.mrb[158].mxu0  ;;  %v9721_v63 = vpop.f32.mrb[158].mxu1  ;;  %v6904_v26 = vadd.f32 %v9286_v11, %v6760_v22 }
0x1490   : > { %v9288_v53 = vpop.f32.mrb[159].mxu0  ;;  %v7018_v20 = vpop.f32.mrb[159].mxu1 }
0x1491   : > { %v9289_v34 = vadd.f32 %v9288_v53, %v9287_v32  ;;  %v7019_v38 = vadd.f32 %v7018_v20, %v6904_v26  ;;  %v6795_v22 = vpop.permute.xlu0 %6794 }
0x1493   : > { %v6909_v45 = vadd.f32 %v9289_v34, %v6765_v42  ;;  %v9290_v7 = vpop.f32.mrb[160].mxu0  ;;  %v9724_v27 = vpop.f32.mrb[160].mxu1  ;;  %11605 = vtanh.f32 %v7019_v38 }
0x1494   : > { %v9291_v10 = vpop.f32.mrb[161].mxu0  ;;  %v7028_v25 = vpop.f32.mrb[161].mxu1 }
0x1495   : > { %v7024_v15 = vadd.f32 %v9721_v63, %v6909_v45  ;;  %v9292_v41 = vadd.f32 %v9291_v10, %v9290_v7  ;;  %v6800_v38 = vpop.permute.xlu1 %6799 }
0x1497   : > { %11607 = vtanh.f32 %v7024_v15  ;;  %v9293_v30 = vpop.f32.mrb[162].mxu0  ;;  %v6914_v49 = vadd.f32 %v9292_v41, %v6770_v59  ;;  %v9727_v31 = vpop.f32.mrb[162].mxu1 }
0x1498   : > { %v9294_v40 = vpop.f32.mrb[163].mxu0  ;;  %v7038_v28 = vpop.f32.mrb[163].mxu1 }
0x1499   : > { %v9295_v4 = vadd.f32 %v9294_v40, %v9293_v30  ;;  %v7029_v50 = vadd.f32 %v7028_v25, %v6914_v49  ;;  %v6805_v41 = vpop.permute.xlu0 %6804 }
0x149b   : > { %v6919_v18 = vadd.f32 %v9295_v4, %v6775_v37  ;;  %v9296_v43 = vpop.f32.mrb[164].mxu0  ;;  %v9730_v29 = vpop.f32.mrb[164].mxu1  ;;  %11609 = vtanh.f32 %v7029_v50 }
0x149c   : > { %v9297_v57 = vpop.f32.mrb[165].mxu0  ;;  %v7048_v16 = vpop.f32.mrb[165].mxu1 }
0x149d   : > { %v7034_v46 = vadd.f32 %v9724_v27, %v6919_v18  ;;  %v9298_v5 = vadd.f32 %v9297_v57, %v9296_v43  ;;  %v11606_v19 = vpop.eup %11605 }
0x149f   : > { %11611 = vtanh.f32 %v7034_v46  ;;  %v9299_v13 = vpop.f32.mrb[166].mxu0  ;;  %v6924_v3 = vadd.f32 %v9298_v5, %v6780_v44  ;;  %v9733_v47 = vpop.f32.mrb[166].mxu1  ;;  %v7326_v5 = vld [vmem:[%s14714_s1 + $0x40] sm:$0xff] }
0x14a0   : > { %v9300_v12 = vpop.f32.mrb[167].mxu0  ;;  %v7058_v62 = vpop.f32.mrb[167].mxu1 }
0x14a1   : > { %v11608_v17 = vpop.eup %11607  ;;  %v9301_v51 = vadd.f32 %v9300_v12, %v9299_v13  ;;  %v7039_v61 = vadd.f32 %v7038_v28, %v6924_v3 }
0x14a2   : > { %v11288_v23 = vpack.i.bf16 %v11608_v17, %v11606_v19 }
0x14a3   : > { %v6929_v54 = vadd.f32 %v9301_v51, %v6785_v9  ;;  %v9302_v39 = vpop.f32.mrb[168].mxu0  ;;  %11613 = vtanh.f32 %v7039_v61 }
0x14a4   : > { %v9303_v2 = vpop.f32.mrb[169].mxu0  ;;  %11289 = vrot.lane.b32.xlu1 %v11288_v23, %s14707_s22 }
0x14a5   : > { %v7044_v6 = vadd.f32 %v9727_v31, %v6929_v54  ;;  %v9304_v8 = vadd.f32 %v9303_v2, %v9302_v39  ;;  %v11610_v55 = vpop.eup %11609 }
0x14a7   : > { %11615 = vtanh.f32 %v7044_v6  ;;  %v9305_v35 = vpop.f32.mrb[170].mxu0  ;;  %v6934_v58 = vadd.f32 %v9304_v8, %v6790_v14 }
0x14a8   : > { %v9306_v24 = vpop.f32.mrb[171].mxu0 }
0x14a9   : > { %v11612_v48 = vpop.eup %11611  ;;  %v9307_v21 = vadd.f32 %v9306_v24, %v9305_v35  ;;  %v7049_v11 = vadd.f32 %v7048_v16, %v6934_v58 }
0x14aa   : > { %v11293_v32 = vpack.i.bf16 %v11612_v48, %v11610_v55 }
0x14ab   : > { %v6939_v63 = vadd.f32 %v9307_v21, %v6795_v22  ;;  %v9308_v26 = vpop.f32.mrb[172].mxu0  ;;  %11617 = vtanh.f32 %v7049_v11 }
0x14ac   : > { %v9309_v53 = vpop.f32.mrb[173].mxu0  ;;  %11294 = vrot.lane.b32.xlu0 %v11293_v32, %s14707_s22 }
0x14ad   : > { %v7054_v20 = vadd.f32 %v9730_v29, %v6939_v63  ;;  %v9310_v34 = vadd.f32 %v9309_v53, %v9308_v26  ;;  %v11614_v7 = vpop.eup %11613 }
0x14af   : > { %11619 = vtanh.f32 %v7054_v20  ;;  %v9311_v42 = vpop.f32.mrb[174].mxu0  ;;  %v6944_v45 = vadd.f32 %v9310_v34, %v6800_v38 }
0x14b0   : > { %v9312_v27 = vpop.f32.mrb[175].mxu0 }
0x14b1   : > { %v11616_v10 = vpop.eup %11615  ;;  %v9313_v25 = vadd.f32 %v9312_v27, %v9311_v42  ;;  %v7059_v15 = vadd.f32 %v7058_v62, %v6944_v45 }
0x14b2   : > { %v11298_v59 = vpack.i.bf16 %v11616_v10, %v11614_v7 }
0x14b3   : > { %v6949_v30 = vadd.f32 %v9313_v25, %v6805_v41  ;;  %11621 = vtanh.f32 %v7059_v15 }
0x14b4   : > { %11299 = vrot.lane.b32.xlu1 %v11298_v59, %s14707_s22  ;;  %v7319_v59 = vld [vmem:[%s14714_s1 + $0x8] sm:$0xff] }
0x14b5   : > { %v7064_v49 = vadd.f32 %v9733_v47, %v6949_v30  ;;  %v11618_v31 = vpop.eup %11617  ;;  %v7318_v30 = vld [vmem:[%s14714_s1] sm:$0xff] }
0x14b7   : > { %11623 = vtanh.f32 %v7064_v49  ;;  %v7321_v49 = vld [vmem:[%s14714_s1 + $0x18] sm:$0xff] }
0x14b9   : > { %v11620_v33 = vpop.eup %11619 }
0x14ba   : > { %v11303_v40 = vpack.i.bf16 %v11620_v33, %v11618_v31  ;;  %v7320_v31 = vld [vmem:[%s14714_s1 + $0x10] sm:$0xff]  ;;  %v7322_v33 = vld [vmem:[%s14714_s1 + $0x20] sm:$0xff] }
0x14bc   : > { %11304 = vrot.lane.b32.xlu0 %v11303_v40, %s14707_s22  ;;  %v14416_v40 = vpop.f32.mrb[168].mxu1 }
0x14bd   : > { %v11622_v28 = vpop.eup %11621 }
0x14c1   : > { %v11624_v4 = vpop.eup %11623 }
0x14c2   : > { %v11308_v50 = vpack.i.bf16 %v11624_v4, %v11622_v28  ;;  %v7563_v28 = vld [vmem:[%s12197_s20] sm:$0xff]  ;;  %v14419_v4 = vpop.f32.mrb[169].mxu1 }
0x14c4   : > { %11309 = vrot.lane.b32.xlu1 %v11308_v50, %s14707_s22  ;;  %s14712_s22 = sld [smem:[#allocation38_spill]]  ;;  %v7323_v50 = vld [vmem:[%s14714_s1 + $0x28] sm:$0xff] }
0x14ca   : > { %s14713_s0 = smov %s14712_s22  ;;  %v7299_v41 = vld [vmem:[%s14712_s22 + $0x8] sm:$0xff]  ;;  %s10391_s22 = smul.u32 80, %s14723_s26 }
0x1516   : > { %v11290_v37 = vpop.permute.xlu1 %11289 }
0x1517   : > { %v11292_v18 = vunpack.i.h.bf16 %v11290_v37  ;;  %v11291_v43 = vunpack.i.l.bf16 %v11290_v37  ;;  %v7564_v37 = vld [vmem:[%s12197_s20 + $0x8] sm:$0xff] }
0x1519   : > { %v7118_v29 = vsel %vm1791_vm7, 0.0, %v11292_v18  ;;  %v7128_v57 = vsel %vm2174_vm9, %v11292_v18, 0.0  ;;  %v7117_v16 = vsel %vm1791_vm7, 0.0, %v11291_v43  ;;  %v7127_v46 = vsel %vm2174_vm9, %v11291_v43, 0.0 }
0x151a   : > { %v14345_v60 = vpack.i.bf16 %v7128_v57, %v7118_v29  ;;  %v10258_v44 = vpack.c.bf16 %v11292_v18, %v11291_v43  ;;  %v11313_v3 = vpack.i.bf16 %v7127_v46, %v7117_v16  ;;  %v7324_v18 = vld [vmem:[%s14714_s1 + $0x30] sm:$0xff]  ;;  %v14424_v43 = vpop.f32.mrb[170].mxu1  ;;  %v7325_v16 = vld [vmem:[%s14714_s1 + $0x38] sm:$0xff] }
0x151b   : > { %v7565_v29 = vld [vmem:[%s12197_s20 + $0x10] sm:$0xff]  ;;  %v14427_v57 = vpop.f32.mrb[171].mxu1  ;;  %v7566_v46 = vld [vmem:[%s12197_s20 + $0x18] sm:$0xff] }
0x151c   : > { %10260 = vmatprep.subr.msk.bf16.mxu0 %vm14341_vm12, %v10258_v44  ;;  %11319 = vrot.lane.b32.xlu1 %v14345_v60, %s12031_s15 }
0x151d   : > { %10263 = vmatpush1.bf16.msk.msra.mxu0 %vm14347_vm13, %v10258_v44  ;;  %11314 = vrot.lane.b32.xlu0 %v11313_v3, %s12031_s15  ;;  %v14433_v44 = vpop.f32.mrb[172].mxu1 }
0x151e   : > { %v11295_v47 = vpop.permute.xlu0 %11294  ;;  %v14435_v13 = vpop.f32.mrb[173].mxu1 }
0x151f   : > { %v11297_v52 = vunpack.i.h.bf16 %v11295_v47  ;;  %v11296_v19 = vunpack.i.l.bf16 %v11295_v47  ;;  %v7568_v47 = vld [vmem:[%s12197_s20 + $0x28] sm:$0xff] }
0x1521   : > { %v7120_v12 = vsel %vm1791_vm7, 0.0, %v11297_v52  ;;  %v7130_v62 = vsel %vm2174_vm9, %v11297_v52, 0.0  ;;  %v7119_v17 = vsel %vm1791_vm7, 0.0, %v11296_v19  ;;  %v7129_v51 = vsel %vm2174_vm9, %v11296_v19, 0.0 }
0x1522   : > { %v11328_v61 = vpack.i.bf16 %v7130_v62, %v7120_v12  ;;  %v10264_v9 = vpack.c.bf16 %v11297_v52, %v11296_v19  ;;  %v11323_v23 = vpack.i.bf16 %v7129_v51, %v7119_v17  ;;  %v7570_v52 = vld [vmem:[%s12197_s20 + $0x38] sm:$0xff]  ;;  %v7569_v19 = vld [vmem:[%s12197_s20 + $0x30] sm:$0xff]  ;;  %v14441_v12 = vpop.f32.mrb[174].mxu1  ;;  %v7572_v17 = vld [vmem:[%s12197_s20 + $0x48] sm:$0xff] }
0x1523   : > { %v14443_v62 = vpop.f32.mrb[175].mxu1  ;;  %v7571_v51 = vld [vmem:[%s12197_s20 + $0x40] sm:$0xff] }
0x1524   : > { %10266 = vmatprep.subr.msk.bf16.mxu0 %vm14341_vm12, %v10264_v9  ;;  %11329 = vrot.lane.b32.xlu1 %v11328_v61, %s12031_s15 }
0x1525   : > { %10269 = vmatpush1.bf16.msk.msra.mxu0 %vm14347_vm13, %v10264_v9  ;;  %11324 = vrot.lane.b32.xlu0 %v11323_v23, %s12031_s15 }
0x1526   : > { %v11300_v56 = vpop.permute.xlu1 %11299 }
0x1527   : > { %v11302_v54 = vunpack.i.h.bf16 %v11300_v56  ;;  %v11301_v39 = vunpack.i.l.bf16 %v11300_v56 }
0x1529   : > { %v7122_v36 = vsel %vm1791_vm7, 0.0, %v11302_v54  ;;  %v7132_v2 = vsel %vm2174_vm9, %v11302_v54, 0.0  ;;  %v7121_v6 = vsel %vm1791_vm7, 0.0, %v11301_v39  ;;  %v7131_v8 = vsel %vm2174_vm9, %v11301_v39, 0.0 }
0x152a   : > { %v11338_v14 = vpack.i.bf16 %v7132_v2, %v7122_v36  ;;  %v10270_v35 = vpack.c.bf16 %v11302_v54, %v11301_v39  ;;  %v11333_v58 = vpack.i.bf16 %v7131_v8, %v7121_v6 }
0x152c   : > { %10272 = vmatprep.subr.msk.bf16.mxu0 %vm14341_vm12, %v10270_v35  ;;  %11339 = vrot.lane.b32.xlu1 %v11338_v14, %s12031_s15 }
0x152d   : > { %10275 = vmatpush1.bf16.msk.msra.mxu0 %vm14347_vm13, %v10270_v35  ;;  %11334 = vrot.lane.b32.xlu0 %v11333_v58, %s12031_s15 }
0x152e   : > { %v11305_v55 = vpop.permute.xlu0 %11304 }
0x152f   : > { %v11307_v24 = vunpack.i.h.bf16 %v11305_v55  ;;  %v11306_v48 = vunpack.i.l.bf16 %v11305_v55 }
0x1531   : > { %v7124_v21 = vsel %vm1791_vm7, 0.0, %v11307_v24  ;;  %v7134_v11 = vsel %vm2174_vm9, %v11307_v24, 0.0  ;;  %v7123_v22 = vsel %vm1791_vm7, 0.0, %v11306_v48  ;;  %v7133_v32 = vsel %vm2174_vm9, %v11306_v48, 0.0 }
0x1532   : > { %v11348_v63 = vpack.i.bf16 %v7134_v11, %v7124_v21  ;;  %v10276_v26 = vpack.c.bf16 %v11307_v24, %v11306_v48  ;;  %v11343_v53 = vpack.i.bf16 %v7133_v32, %v7123_v22 }
0x1534   : > { %10278 = vmatprep.subr.msk.bf16.mxu0 %vm14341_vm12, %v10276_v26  ;;  %11349 = vrot.lane.b32.xlu1 %v11348_v63, %s12031_s15 }
0x1535   : > { %10281 = vmatpush1.bf16.msk.msra.mxu0 %vm14347_vm13, %v10276_v26  ;;  %11344 = vrot.lane.b32.xlu0 %v11343_v53, %s12031_s15 }
0x1536   : > { %v11310_v20 = vpop.permute.xlu1 %11309 }
0x1537   : > { %v11312_v34 = vunpack.i.h.bf16 %v11310_v20  ;;  %v11311_v38 = vunpack.i.l.bf16 %v11310_v20 }
0x1539   : > { %v7126_v42 = vsel %vm1791_vm7, 0.0, %v11312_v34  ;;  %v7136_v45 = vsel %vm2174_vm9, %v11312_v34, 0.0  ;;  %v7125_v7 = vsel %vm1791_vm7, 0.0, %v11311_v38  ;;  %v7135_v27 = vsel %vm2174_vm9, %v11311_v38, 0.0 }
0x153a   : > { %v11363_v10 = vpack.i.bf16 %v7136_v45, %v7126_v42  ;;  %v10282_v25 = vpack.c.bf16 %v11312_v34, %v11311_v38  ;;  %v11353_v15 = vpack.i.bf16 %v7135_v27, %v7125_v7  ;;  %vm7197_vm7 = vcmask 916480  }
0x153b   : > { %8515 = vmatprep.mubr.msk.f32.mxu0 %vm7197_vm7, %v7299_v41 }
0x153c   : > { %10284 = vmatprep.subr.msk.bf16.mxu0 %vm14341_vm12, %v10282_v25  ;;  %11364 = vrot.lane.b32.xlu1 %v11363_v10, %s12031_s15 }
0x153d   : > { %10287 = vmatpush1.bf16.msk.msra.mxu0 %vm14347_vm13, %v10282_v25  ;;  %11354 = vrot.lane.b32.xlu0 %v11353_v15, %s12031_s15  ;;  %s14717_s15 = sld [smem:[#allocation41_spill]] }
0x1540   : > { %11369 = vrot.lane.b32.xlu1 %v14345_v60, %s14715_s2  ;;  %v7567_v60 = vld [vmem:[%s12197_s20 + $0x20] sm:$0xff] }
0x1541   : > { %11359 = vrot.lane.b32.xlu0 %v11313_v3, %s14715_s2  ;;  %v7327_v3 = vld [vmem:[%s14714_s1 + $0x48] sm:$0xff] }
0x1544   : > { %11379 = vrot.lane.b32.xlu1 %v11328_v61, %s14715_s2  ;;  %v14447_v61 = vpop.f32.mrb[176].mxu1 }
0x1545   : > { %11374 = vrot.lane.b32.xlu0 %v11323_v23, %s14715_s2  ;;  %v14449_v9 = vpop.f32.mrb[177].mxu1 }
0x1548   : > { %11389 = vrot.lane.b32.xlu1 %v11338_v14, %s14715_s2 }
0x1549   : > { %11384 = vrot.lane.b32.xlu0 %v11333_v58, %s14715_s2 }
0x154c   : > { %11399 = vrot.lane.b32.xlu1 %v11348_v63, %s14715_s2 }
0x154d   : > { %11394 = vrot.lane.b32.xlu0 %v11343_v53, %s14715_s2 }
0x1550   : > { %11409 = vrot.lane.b32.xlu1 %v11363_v10, %s14715_s2 }
0x1551   : > { %11404 = vrot.lane.b32.xlu0 %v11353_v15, %s14715_s2  ;;  %s14716_s2 = sld [smem:[#allocation40_spill]] }
0x1554   : > { %7335 = vperm.xlu1 %10566, %v7319_v59  }
0x1555   : > { %7330 = vperm.xlu0 %10567, %v7318_v30  }
0x1557   : > { %v7818_v23 = vld [vmem:[%s14716_s2] sm:$0xff]  ;;  %v7819_v56 = vld [vmem:[%s14716_s2 + $0x8] sm:$0xff]  ;;  %v7820_v54 = vld [vmem:[%s14716_s2 + $0x10] sm:$0xff] }
0x1558   : > { %7345 = vperm.xlu1 %10566, %v7321_v49   ;;  %v10365_v39 = vpack.c.bf16 %v7819_v56, %v7818_v23  ;;  %v7821_v36 = vld [vmem:[%s14716_s2 + $0x18] sm:$0xff]  ;;  %v7822_v6 = vld [vmem:[%s14716_s2 + $0x20] sm:$0xff]  ;;  %v7823_v8 = vld [vmem:[%s14716_s2 + $0x28] sm:$0xff] }
0x1559   : > { %7340 = vperm.xlu0 %10567, %v7320_v31   ;;  %v10368_v2 = vpack.c.bf16 %v7821_v36, %v7820_v54  ;;  %v10371_v14 = vpack.c.bf16 %v7823_v8, %v7822_v6  ;;  %v7824_v35 = vld [vmem:[%s14716_s2 + $0x30] sm:$0xff]  ;;  %v7825_v58 = vld [vmem:[%s14716_s2 + $0x38] sm:$0xff] }
0x155a   : > { %10366 = vmatpush1.bf16.msra.mxu1 %v10365_v39  ;;  %v10374_v55 = vpack.c.bf16 %v7825_v58, %v7824_v35 }
0x155b   : > { %10367 = vmatprep.subr.bf16.mxu1 %v12018_v0 }
0x155c   : > { %7350 = vperm.xlu1 %10566, %v7322_v33  }
0x155d   : > { %7575 = vperm.xlu0 %10567, %v7563_v28  }
0x155e   : > { %10369 = vmatpush1.bf16.msra.mxu1 %v10368_v2 }
0x155f   : > { %10370 = vmatprep.subr.bf16.mxu1 %v12018_v0 }
0x1560   : > { %7355 = vperm.xlu1 %10566, %v7323_v50  }
0x1561   : > { %7580 = vperm.xlu0 %10567, %v7564_v37  }
0x1562   : > { %10372 = vmatpush1.bf16.msra.mxu1 %v10371_v14 }
0x1563   : > { %10373 = vmatprep.subr.bf16.mxu1 %v12018_v0 }
0x1564   : > { %7360 = vperm.xlu1 %10566, %v7324_v18  }
0x1565   : > { %7585 = vperm.xlu0 %10567, %v7565_v29  }
0x1566   : > { %10375 = vmatpush1.bf16.msra.mxu1 %v10374_v55 }
0x1567   : > { %10376 = vmatprep.subr.bf16.mxu1 %v12018_v0 }
0x1568   : > { %7365 = vperm.xlu1 %10566, %v7325_v16  }
0x1569   : > { %7590 = vperm.xlu0 %10567, %v7566_v46  }
0x156c   : > { %7370 = vperm.xlu1 %10566, %v7326_v5  }
0x156d   : > { %7595 = vperm.xlu0 %10567, %v7567_v60  }
0x1570   : > { %7375 = vperm.xlu1 %10566, %v7327_v3  }
0x1571   : > { %7600 = vperm.xlu0 %10567, %v7568_v47  }
0x1574   : > { %7610 = vperm.xlu1 %10566, %v7570_v52  }
0x1575   : > { %7605 = vperm.xlu0 %10567, %v7569_v19  }
0x1578   : > { %7620 = vperm.xlu1 %10566, %v7572_v17  }
0x1579   : > { %7615 = vperm.xlu0 %10567, %v7571_v51  }
0x158e   : > { %v11320_v24 = vpop.permute.xlu1 %11319 }
0x158f   : > { %v11322_v48 = vunpack.i.h.bf16 %v11320_v24  ;;  %v11321_v21 = vunpack.i.l.bf16 %v11320_v24  ;;  %v11315_v11 = vpop.permute.xlu0 %11314 }
0x1590   : > { %v11317_v22 = vunpack.i.h.bf16 %v11315_v11  ;;  %v11316_v32 = vunpack.i.l.bf16 %v11315_v11 }
0x1591   : > { %v7199_v63 = vsel %vm7197_vm7, %v11321_v21, %v11322_v48 }
0x1592   : > { %v10288_v26 = vpack.c.bf16 %v11322_v48, %v11317_v22  ;;  %v7198_v53 = vsel %vm7197_vm7, %v11316_v32, %v11317_v22 }
0x1593   : > { %v10290_v20 = vpack.c.bf16 %v7199_v63, %v7198_v53 }
0x1594   : > { %10289 = vmatprep.subr.bf16.mxu0 %v10288_v26 }
0x1595   : > { %10291 = vmatpush1.bf16.msra.mxu0 %v10290_v20 }
0x1596   : > { %v11330_v34 = vpop.permute.xlu1 %11329 }
0x1597   : > { %v11332_v38 = vunpack.i.h.bf16 %v11330_v34  ;;  %v11331_v42 = vunpack.i.l.bf16 %v11330_v34  ;;  %v11325_v45 = vpop.permute.xlu0 %11324 }
0x1598   : > { %v11327_v7 = vunpack.i.h.bf16 %v11325_v45  ;;  %v11326_v27 = vunpack.i.l.bf16 %v11325_v45 }
0x1599   : > { %v7201_v10 = vsel %vm7197_vm7, %v11331_v42, %v11332_v38 }
0x159a   : > { %v10292_v25 = vpack.c.bf16 %v11332_v38, %v11327_v7  ;;  %v7200_v15 = vsel %vm7197_vm7, %v11326_v27, %v11327_v7 }
0x159b   : > { %v10294_v41 = vpack.c.bf16 %v7201_v10, %v7200_v15 }
0x159c   : > { %10293 = vmatprep.subr.bf16.mxu0 %v10292_v25 }
0x159d   : > { %10295 = vmatpush1.bf16.msra.mxu0 %v10294_v41 }
0x159e   : > { %v11340_v59 = vpop.permute.xlu1 %11339 }
0x159f   : > { %v11342_v30 = vunpack.i.h.bf16 %v11340_v59  ;;  %v11341_v49 = vunpack.i.l.bf16 %v11340_v59  ;;  %v11335_v31 = vpop.permute.xlu0 %11334 }
0x15a0   : > { %v11337_v33 = vunpack.i.h.bf16 %v11335_v31  ;;  %v11336_v28 = vunpack.i.l.bf16 %v11335_v31 }
0x15a1   : > { %v7203_v50 = vsel %vm7197_vm7, %v11341_v49, %v11342_v30 }
0x15a2   : > { %v10296_v37 = vpack.c.bf16 %v11342_v30, %v11337_v33  ;;  %v7202_v18 = vsel %vm7197_vm7, %v11336_v28, %v11337_v33 }
0x15a3   : > { %v10298_v29 = vpack.c.bf16 %v7203_v50, %v7202_v18 }
0x15a4   : > { %10297 = vmatprep.subr.bf16.mxu0 %v10296_v37 }
0x15a5   : > { %10299 = vmatpush1.bf16.msra.mxu0 %v10298_v29 }
0x15a6   : > { %v11350_v16 = vpop.permute.xlu1 %11349 }
0x15a7   : > { %v11352_v46 = vunpack.i.h.bf16 %v11350_v16  ;;  %v11351_v5 = vunpack.i.l.bf16 %v11350_v16  ;;  %v11345_v60 = vpop.permute.xlu0 %11344 }
0x15a8   : > { %v11347_v3 = vunpack.i.h.bf16 %v11345_v60  ;;  %v11346_v47 = vunpack.i.l.bf16 %v11345_v60 }
0x15a9   : > { %v7205_v52 = vsel %vm7197_vm7, %v11351_v5, %v11352_v46 }
0x15aa   : > { %v10300_v19 = vpack.c.bf16 %v11352_v46, %v11347_v3  ;;  %v7204_v17 = vsel %vm7197_vm7, %v11346_v47, %v11347_v3 }
0x15ab   : > { %v10302_v51 = vpack.c.bf16 %v7205_v52, %v7204_v17 }
0x15ac   : > { %10301 = vmatprep.subr.bf16.mxu0 %v10300_v19 }
0x15ad   : > { %10303 = vmatpush1.bf16.msra.mxu0 %v10302_v51 }
0x15ae   : > { %v11365_v23 = vpop.permute.xlu1 %11364 }
0x15af   : > { %v11367_v56 = vunpack.i.h.bf16 %v11365_v23  ;;  %v11366_v54 = vunpack.i.l.bf16 %v11365_v23  ;;  %v11355_v39 = vpop.permute.xlu0 %11354 }
0x15b0   : > { %v11357_v36 = vunpack.i.h.bf16 %v11355_v39  ;;  %v11356_v2 = vunpack.i.l.bf16 %v11355_v39 }
0x15b1   : > { %v7207_v6 = vsel %vm7197_vm7, %v11366_v54, %v11367_v56 }
0x15b2   : > { %v10304_v8 = vpack.c.bf16 %v11367_v56, %v11357_v36  ;;  %v7206_v14 = vsel %vm7197_vm7, %v11356_v2, %v11357_v36  ;;  %v11370_v35 = vpop.permute.xlu1 %11369 }
0x15b3   : > { %v10306_v58 = vpack.c.bf16 %v7207_v6, %v7206_v14  ;;  %v11372_v55 = vunpack.i.h.bf16 %v11370_v35  ;;  %v11371_v24 = vunpack.i.l.bf16 %v11370_v35  ;;  %v11360_v48 = vpop.permute.xlu0 %11359  ;;  %v7298_v14 = vld [vmem:[%s14713_s0] sm:$0xff]  ;;  %v7301_v35 = vld [vmem:[%s14713_s0 + $0x18] sm:$0xff] }
0x15b4   : > { %v11362_v21 = vunpack.i.h.bf16 %v11360_v48  ;;  %v11361_v11 = vunpack.i.l.bf16 %v11360_v48  ;;  %10305 = vmatprep.subr.bf16.mxu0 %v10304_v8  ;;  %v7305_v48 = vld [vmem:[%s14713_s0 + $0x38] sm:$0xff] }
0x15b5   : > { %v7269_v22 = vsel %vm3570_vm14, %v11371_v24, %v11372_v55  ;;  %10307 = vmatpush1.bf16.msra.mxu0 %v10306_v58  ;;  %v7300_v58 = vld [vmem:[%s14713_s0 + $0x10] sm:$0xff]  ;;  %v7302_v24 = vld [vmem:[%s14713_s0 + $0x20] sm:$0xff] }
0x15b6   : > { %v10308_v32 = vpack.c.bf16 %v11372_v55, %v11362_v21  ;;  %v7268_v63 = vsel %vm3570_vm14, %v11361_v11, %v11362_v21  ;;  %v11380_v26 = vpop.permute.xlu1 %11379  ;;  %v7303_v55 = vld [vmem:[%s14713_s0 + $0x28] sm:$0xff]  ;;  %v7304_v21 = vld [vmem:[%s14713_s0 + $0x30] sm:$0xff] }
0x15b7   : > { %v10310_v53 = vpack.c.bf16 %v7269_v22, %v7268_v63  ;;  %v11382_v20 = vunpack.i.h.bf16 %v11380_v26  ;;  %v11381_v34 = vunpack.i.l.bf16 %v11380_v26  ;;  %v11375_v38 = vpop.permute.xlu0 %11374  ;;  %v7307_v11 = vld [vmem:[%s14713_s0 + $0x48] sm:$0xff]  ;;  %v7306_v22 = vld [vmem:[%s14713_s0 + $0x40] sm:$0xff]  ;;  %v7308_v63 = vld [vmem:[%s14713_s0 + $0x50] sm:$0xff] }
0x15b8   : > { %v11377_v42 = vunpack.i.h.bf16 %v11375_v38  ;;  %v11376_v45 = vunpack.i.l.bf16 %v11375_v38  ;;  %10309 = vmatprep.subr.bf16.mxu0 %v10308_v32  ;;  %v7309_v32 = vld [vmem:[%s14713_s0 + $0x58] sm:$0xff]  ;;  %v7311_v26 = vld [vmem:[%s14713_s0 + $0x68] sm:$0xff] }
0x15b9   : > { %v7271_v7 = vsel %vm3570_vm14, %v11381_v34, %v11382_v20  ;;  %10311 = vmatpush1.bf16.msra.mxu0 %v10310_v53  ;;  %v7310_v53 = vld [vmem:[%s14713_s0 + $0x60] sm:$0xff]  ;;  %v7312_v34 = vld [vmem:[%s14713_s0 + $0x70] sm:$0xff]  ;;  %v7315_v38 = vld [vmem:[%s14713_s0 + $0x88] sm:$0xff] }
0x15ba   : > { %v10312_v27 = vpack.c.bf16 %v11382_v20, %v11377_v42  ;;  %v7270_v10 = vsel %vm3570_vm14, %v11376_v45, %v11377_v42  ;;  %v11390_v25 = vpop.permute.xlu1 %11389  ;;  %v7313_v20 = vld [vmem:[%s14713_s0 + $0x78] sm:$0xff]  ;;  %v7314_v42 = vld [vmem:[%s14713_s0 + $0x80] sm:$0xff] }
0x15bb   : > { %v10314_v15 = vpack.c.bf16 %v7271_v7, %v7270_v10  ;;  %v11392_v41 = vunpack.i.h.bf16 %v11390_v25  ;;  %v11391_v59 = vunpack.i.l.bf16 %v11390_v25  ;;  %v11385_v30 = vpop.permute.xlu0 %11384  ;;  %v7317_v45 = vld [vmem:[%s14713_s0 + $0x98] sm:$0xff]  ;;  %v7316_v7 = vld [vmem:[%s14713_s0 + $0x90] sm:$0xff]  ;;  %v7827_v10 = vld [vmem:[%s14716_s2 + $0x48] sm:$0xff]  ;;  %s14547_s0 = scalar_lea.vmem %s14717_s15, %s10391_s22 }
0x15bc   : > { %v11387_v49 = vunpack.i.h.bf16 %v11385_v30  ;;  %v11386_v31 = vunpack.i.l.bf16 %v11385_v30  ;;  %10313 = vmatprep.subr.bf16.mxu0 %v10312_v27  ;;  %v7826_v27 = vld [vmem:[%s14716_s2 + $0x40] sm:$0xff] }
0x15bd   : > { %v7273_v33 = vsel %vm3570_vm14, %v11391_v59, %v11392_v41  ;;  %10315 = vmatpush1.bf16.msra.mxu0 %v10314_v15  ;;  %v10377_v25 = vpack.c.bf16 %v7827_v10, %v7826_v27  ;;  %v7828_v15 = vld [vmem:[%s14716_s2 + $0x50] sm:$0xff]  ;;  %v7830_v30 = vld [vmem:[%s14716_s2 + $0x60] sm:$0xff] }
0x15be   : > { %v10316_v28 = vpack.c.bf16 %v11392_v41, %v11387_v49  ;;  %v7272_v50 = vsel %vm3570_vm14, %v11386_v31, %v11387_v49  ;;  %v11400_v37 = vpop.permute.xlu1 %11399  ;;  %v7829_v41 = vld [vmem:[%s14716_s2 + $0x58] sm:$0xff]  ;;  %v7831_v49 = vld [vmem:[%s14716_s2 + $0x68] sm:$0xff] }
0x15bf   : > { %v10318_v18 = vpack.c.bf16 %v7273_v33, %v7272_v50  ;;  %v11402_v29 = vunpack.i.h.bf16 %v11400_v37  ;;  %v11401_v16 = vunpack.i.l.bf16 %v11400_v37  ;;  %v11395_v46 = vpop.permute.xlu0 %11394  ;;  %10378 = vmatpush1.bf16.msra.mxu1 %v10377_v25  ;;  %v10380_v59 = vpack.c.bf16 %v7829_v41, %v7828_v15  ;;  %v7832_v33 = vld [vmem:[%s14716_s2 + $0x70] sm:$0xff]  ;;  %v7834_v37 = vld [vmem:[%s14716_s2 + $0x80] sm:$0xff] }
0x15c0   : > { %v11397_v5 = vunpack.i.h.bf16 %v11395_v46  ;;  %v11396_v60 = vunpack.i.l.bf16 %v11395_v46  ;;  %10317 = vmatprep.subr.bf16.mxu0 %v10316_v28  ;;  %10379 = vmatprep.subr.bf16.mxu1 %v12018_v0  ;;  %v10383_v31 = vpack.c.bf16 %v7831_v49, %v7830_v30  ;;  %v7833_v28 = vld [vmem:[%s14716_s2 + $0x78] sm:$0xff] }
0x15c1   : > { %v7275_v3 = vsel %vm3570_vm14, %v11401_v16, %v11402_v29  ;;  %10319 = vmatpush1.bf16.msra.mxu0 %v10318_v18  ;;  %v10386_v50 = vpack.c.bf16 %v7833_v28, %v7832_v33 }
0x15c2   : > { %v10320_v47 = vpack.c.bf16 %v11402_v29, %v11397_v5  ;;  %v7274_v52 = vsel %vm3570_vm14, %v11396_v60, %v11397_v5  ;;  %v11410_v19 = vpop.permute.xlu1 %11409 }
0x15c3   : > { %v10322_v17 = vpack.c.bf16 %v7275_v3, %v7274_v52  ;;  %v11412_v51 = vunpack.i.h.bf16 %v11410_v19  ;;  %v11411_v23 = vunpack.i.l.bf16 %v11410_v19  ;;  %v11405_v56 = vpop.permute.xlu0 %11404  ;;  %10381 = vmatpush1.bf16.msra.mxu1 %v10380_v59 }
0x15c4   : > { %v11407_v54 = vunpack.i.h.bf16 %v11405_v56  ;;  %v11406_v39 = vunpack.i.l.bf16 %v11405_v56  ;;  %10321 = vmatprep.subr.bf16.mxu0 %v10320_v47  ;;  %10382 = vmatprep.subr.bf16.mxu1 %v12018_v0 }
0x15c5   : > { %v7277_v36 = vsel %vm3570_vm14, %v11411_v23, %v11412_v51  ;;  %10323 = vmatpush1.bf16.msra.mxu0 %v10322_v17 }
0x15c6   : > { %v10324_v2 = vpack.c.bf16 %v11412_v51, %v11407_v54  ;;  %v7276_v6 = vsel %vm3570_vm14, %v11406_v39, %v11407_v54 }
0x15c7   : > { %v10326_v8 = vpack.c.bf16 %v7277_v36, %v7276_v6  ;;  %10384 = vmatpush1.bf16.msra.mxu1 %v10383_v31 }
0x15c8   : > { %10325 = vmatprep.subr.bf16.mxu0 %v10324_v2  ;;  %10385 = vmatprep.subr.bf16.mxu1 %v12018_v0 }
0x15c9   : > { %10327 = vmatpush1.bf16.msra.mxu0 %v10326_v8 }
0x15cb   : > { %10387 = vmatpush1.bf16.msra.mxu1 %v10386_v50 }
0x15cc   : > { %7473 = vmatmul.mubr.f32.vlgmr.msra.gmra.mrb[176].mxu0 %v7298_v14  ;;  %7904 = vmatprep.subr.mxu1 %v12020_v1 }
0x15cd   : > { %8516 = vmatprep.mubr.msk.f32.mxu0 %vm7197_vm7, %v7301_v35 }
0x15cf   : > { %7905 = vmatpush1.msra.mxu1 %v7834_v37 }
0x15d0   : > { %7479 = vmatmul.mubr.f32.gmra.mrb[178].mxu0 %v7300_v58 }
0x15d1   : > { %8517 = vmatprep.mubr.msk.f32.mxu0 %vm7197_vm7, %v7303_v55 }
0x15d3   : > { %v7336_v29 = vpop.permute.xlu1 %7335 }
0x15d4   : > { %7485 = vmatmul.mubr.f32.gmra.mrb[180].mxu0 %v7302_v24  ;;  %v7331_v18 = vpop.permute.xlu0 %7330 }
0x15d5   : > { %8518 = vmatprep.mubr.msk.f32.mxu0 %vm7197_vm7, %v7305_v48 }
0x15d7   : > { %v7346_v46 = vpop.permute.xlu1 %7345 }
0x15d8   : > { %7491 = vmatmul.mubr.f32.gmra.mrb[182].mxu0 %v7304_v21  ;;  %v7341_v16 = vpop.permute.xlu0 %7340 }
0x15d9   : > { %8519 = vmatprep.mubr.msk.f32.mxu0 %vm7197_vm7, %v7307_v11 }
0x15db   : > { %v7351_v3 = vpop.permute.xlu1 %7350 }
0x15dc   : > { %7497 = vmatmul.mubr.f32.gmra.mrb[184].mxu0 %v7306_v22  ;;  %v7576_v5 = vpop.permute.xlu0 %7575 }
0x15dd   : > { %8520 = vmatprep.mubr.msk.f32.mxu0 %vm7197_vm7, %v7309_v32  ;;  %v7720_v8 = vadd.f32 %v14419_v4, %v7576_v5 }
0x15df   : > { %v7356_v1 = vpop.permute.xlu1 %7355 }
0x15e0   : > { %7503 = vmatmul.mubr.f32.gmra.mrb[186].mxu0 %v7308_v63  ;;  %v7581_v17 = vpop.permute.xlu0 %7580 }
0x15e1   : > { %8521 = vmatprep.mubr.msk.f32.mxu0 %vm7197_vm7, %v7311_v26  ;;  %v7726_v63 = vadd.f32 %v14416_v40, %v7581_v17 }
0x15e3   : > { %v7361_v58 = vpop.permute.xlu1 %7360 }
0x15e4   : > { %7509 = vmatmul.mubr.f32.gmra.mrb[188].mxu0 %v7310_v53  ;;  %v7586_v39 = vpop.permute.xlu0 %7585 }
0x15e5   : > { %8522 = vmatprep.mubr.msk.f32.mxu0 %vm7197_vm7, %v7313_v20  ;;  %v7732_v25 = vadd.f32 %v14427_v57, %v7586_v39 }
0x15e7   : > { %v7366_v27 = vpop.permute.xlu1 %7365 }
0x15e8   : > { %7515 = vmatmul.mubr.f32.gmra.mrb[190].mxu0 %v7312_v34  ;;  %v7591_v22 = vpop.permute.xlu0 %7590 }
0x15e9   : > { %8523 = vmatprep.mubr.msk.f32.mxu0 %vm7197_vm7, %v7315_v38 }
0x15ec   : > { %7521 = vmatmul.mubr.f32.gmra.mrb[192].mxu0 %v7314_v42  ;;  %v7596_v41 = vpop.permute.xlu0 %7595 }
0x15ed   : > { %8524 = vmatprep.mubr.msk.f32.mxu0 %vm7197_vm7, %v7317_v45 }
0x15f0   : > { %7527 = vmatmul.mubr.f32.gmra.mrb[194].mxu0 %v7316_v7 }
0x169f   : > { %v7474_v60 = vpop.f32.mrb[176].mxu0 }
0x16a0   : > { %v7475_v47 = vadd.f32 %v7474_v60, %v7331_v18  ;;  %v7476_v52 = vpop.f32.mrb[177].mxu0 }
0x16a1   : > { %v7477_v19 = vadd.f32 %v7476_v52, %v7331_v18  ;;  %v7738_v18 = vadd.f32 %v14424_v43, %v7591_v22 }
0x16a2   : > { %11625 = vtanh.f32 %v7475_v47 }
0x16a3   : > { %11627 = vtanh.f32 %v7477_v19  ;;  %v7480_v0 = vpop.f32.mrb[178].mxu0 }
0x16a4   : > { %v7481_v51 = vadd.f32 %v7480_v0, %v7336_v29  ;;  %v7482_v23 = vpop.f32.mrb[179].mxu0 }
0x16a5   : > { %v7483_v56 = vadd.f32 %v7482_v23, %v7336_v29 }
0x16a6   : > { %11629 = vtanh.f32 %v7481_v51  ;;  %v7744_v51 = vadd.f32 %v14435_v13, %v7596_v41 }
0x16a7   : > { %11631 = vtanh.f32 %v7483_v56  ;;  %v7486_v54 = vpop.f32.mrb[180].mxu0 }
0x16a8   : > { %v7487_v36 = vadd.f32 %v7486_v54, %v7341_v16  ;;  %v7488_v2 = vpop.f32.mrb[181].mxu0 }
0x16a9   : > { %v7489_v6 = vadd.f32 %v7488_v2, %v7341_v16  ;;  %v7371_v16 = vpop.permute.xlu1 %7370 }
0x16aa   : > { %11633 = vtanh.f32 %v7487_v36 }
0x16ab   : > { %11635 = vtanh.f32 %v7489_v6  ;;  %v7492_v14 = vpop.f32.mrb[182].mxu0 }
0x16ac   : > { %v11626_v35 = vpop.eup %11625  ;;  %v7493_v55 = vadd.f32 %v7492_v14, %v7346_v46  ;;  %v7494_v24 = vpop.f32.mrb[183].mxu0 }
0x16ad   : > { %v11628_v48 = vpop.eup %11627  ;;  %v7778_v21 = vadd.f32 %v11626_v35, %v7720_v8  ;;  %v7495_v11 = vadd.f32 %v7494_v24, %v7346_v46  ;;  %v7376_v8 = vpop.permute.xlu1 %7375 }
0x16ae   : > { %11637 = vtanh.f32 %v7493_v55  ;;  %v7779_v32 = vadd.f32 %v11628_v48, %v7576_v5 }
0x16af   : > { %11639 = vtanh.f32 %v7495_v11  ;;  %v7498_v26 = vpop.f32.mrb[184].mxu0  ;;  %v7798_v45 = vmax.f32 %v7778_v21, 0.0 }
0x16b0   : > { %v11630_v53 = vpop.eup %11629  ;;  %v7499_v20 = vadd.f32 %v7498_v26, %v7351_v3  ;;  %v7500_v34 = vpop.f32.mrb[185].mxu0  ;;  %v7799_v4 = vmax.f32 %v7779_v32, 0.0 }
0x16b1   : > { %v11632_v38 = vpop.eup %11631  ;;  %v7501_v42 = vadd.f32 %v7500_v34, %v7351_v3  ;;  %v7780_v7 = vadd.f32 %v11630_v53, %v7726_v63  ;;  %v7611_v34 = vpop.permute.xlu1 %7610 }
0x16b2   : > { %11641 = vtanh.f32 %v7499_v20  ;;  %8548 = vmatprep.mubr.msk.f32.mxu1 %vm2174_vm9, %v7799_v4  ;;  %v7781_v10 = vadd.f32 %v11632_v38, %v7581_v17  ;;  %v7601_v17 = vpop.permute.xlu0 %7600 }
0x16b3   : > { %11643 = vtanh.f32 %v7501_v42  ;;  %v7504_v15 = vpop.f32.mrb[186].mxu0  ;;  %7937 = vmatmul.mubr.f32.vlgmr.msra.gmra.mrb[178].mxu1 %v7798_v45  ;;  %v7800_v28 = vmax.f32 %v7780_v7, 0.0  ;;  %v7750_v35 = vadd.f32 %v14433_v44, %v7601_v17 }
0x16b4   : > { %v11634_v40 = vpop.eup %11633  ;;  %v7505_v59 = vadd.f32 %v7504_v15, %v7356_v1  ;;  %v7506_v30 = vpop.f32.mrb[187].mxu0  ;;  %v7801_v49 = vmax.f32 %v7781_v10, 0.0  ;;  %v7762_v15 = vadd.f32 %v14441_v12, %v7611_v34 }
0x16b5   : > { %v11636_v31 = vpop.eup %11635  ;;  %v7507_v33 = vadd.f32 %v7506_v30, %v7356_v1  ;;  %v7782_v50 = vadd.f32 %v11634_v40, %v7732_v25 }
0x16b6   : > { %11645 = vtanh.f32 %v7505_v59  ;;  %8549 = vmatprep.mubr.msk.f32.mxu1 %vm2174_vm9, %v7801_v49  ;;  %v7783_v37 = vadd.f32 %v11636_v31, %v7586_v39  ;;  %v7606_v55 = vpop.permute.xlu0 %7605 }
0x16b7   : > { %11647 = vtanh.f32 %v7507_v33  ;;  %v7510_v57 = vpop.f32.mrb[188].mxu0  ;;  %7942 = vmatmul.mubr.f32.gmra.mrb[180].mxu1 %v7800_v28  ;;  %v7802_v52 = vmax.f32 %v7782_v50, 0.0  ;;  %v7756_v53 = vadd.f32 %v14443_v62, %v7606_v55  ;;  %v7621_v50 = vpop.permute.xlu1 %7620 }
0x16b8   : > { %v11638_v29 = vpop.eup %11637  ;;  %v7511_v46 = vadd.f32 %v7510_v57, %v7361_v58  ;;  %v7512_v5 = vpop.f32.mrb[189].mxu0  ;;  %v7803_v60 = vmax.f32 %v7783_v37, 0.0 }
0x16b9   : > { %v11640_v3 = vpop.eup %11639  ;;  %v7513_v47 = vadd.f32 %v7512_v5, %v7361_v58  ;;  %v7784_v19 = vadd.f32 %v11638_v29, %v7738_v18 }
0x16ba   : > { %11649 = vtanh.f32 %v7511_v46  ;;  %8550 = vmatprep.mubr.msk.f32.mxu1 %vm2174_vm9, %v7803_v60  ;;  %v7785_v0 = vadd.f32 %v11640_v3, %v7591_v22  ;;  %v7616_v40 = vpop.permute.xlu0 %7615 }
0x16bb   : > { %11651 = vtanh.f32 %v7513_v47  ;;  %v7516_v43 = vpop.f32.mrb[190].mxu0  ;;  %7947 = vmatmul.mubr.f32.gmra.mrb[182].mxu1 %v7802_v52  ;;  %v7804_v2 = vmax.f32 %v7784_v19, 0.0  ;;  %v7768_v33 = vadd.f32 %v14449_v9, %v7616_v40 }
0x16bc   : > { %v11642_v23 = vpop.eup %11641  ;;  %v7517_v56 = vadd.f32 %v7516_v43, %v7366_v27  ;;  %v7518_v1 = vpop.f32.mrb[191].mxu0  ;;  %v7805_v54 = vmax.f32 %v7785_v0, 0.0 }
0x16bd   : > { %v11644_v39 = vpop.eup %11643  ;;  %v7519_v36 = vadd.f32 %v7518_v1, %v7366_v27  ;;  %v7786_v6 = vadd.f32 %v11642_v23, %v7744_v51 }
0x16be   : > { %11653 = vtanh.f32 %v7517_v56  ;;  %8551 = vmatprep.mubr.msk.f32.mxu1 %vm2174_vm9, %v7805_v54  ;;  %v7787_v14 = vadd.f32 %v11644_v39, %v7596_v41 }
0x16bf   : > { %11655 = vtanh.f32 %v7519_v36  ;;  %v7522_v13 = vpop.f32.mrb[192].mxu0  ;;  %7952 = vmatmul.mubr.f32.gmra.mrb[184].mxu1 %v7804_v2  ;;  %v7806_v32 = vmax.f32 %v7786_v6, 0.0 }
0x16c0   : > { %v11646_v58 = vpop.eup %11645  ;;  %v7523_v24 = vadd.f32 %v7522_v13, %v7371_v16  ;;  %v7524_v48 = vpop.f32.mrb[193].mxu0  ;;  %v7807_v21 = vmax.f32 %v7787_v14, 0.0 }
0x16c1   : > { %v11648_v11 = vpop.eup %11647  ;;  %v7525_v22 = vadd.f32 %v7524_v48, %v7371_v16  ;;  %v7788_v63 = vadd.f32 %v11646_v58, %v7750_v35  ;;  %v7774_v16 = vadd.f32 %v14447_v61, %v7621_v50  ;;  %v8547_v61 = vld [vmem:[#allocation15] ss:$0 sm:$0xff] }
0x16c2   : > { %11657 = vtanh.f32 %v7523_v24  ;;  %8552 = vmatprep.mubr.msk.f32.mxu1 %vm2174_vm9, %v7807_v21  ;;  %v7789_v26 = vadd.f32 %v11648_v11, %v7601_v17 }
0x16c3   : > { %11659 = vtanh.f32 %v7525_v22  ;;  %v7528_v44 = vpop.f32.mrb[194].mxu0  ;;  %7957 = vmatmul.mubr.f32.gmra.mrb[186].mxu1 %v7806_v32  ;;  %v7808_v27 = vmax.f32 %v7788_v63, 0.0 }
0x16c4   : > { %v11650_v20 = vpop.eup %11649  ;;  %v7529_v4 = vadd.f32 %v7528_v44, %v7376_v8  ;;  %v7530_v38 = vpop.f32.mrb[195].mxu0  ;;  %v7809_v42 = vmax.f32 %v7789_v26, 0.0 }
0x16c5   : > { %v11652_v45 = vpop.eup %11651  ;;  %v7531_v7 = vadd.f32 %v7530_v38, %v7376_v8  ;;  %v7790_v10 = vadd.f32 %v11650_v20, %v7756_v53 }
0x16c6   : > { %11661 = vtanh.f32 %v7529_v4  ;;  %8553 = vmatprep.mubr.msk.f32.mxu1 %vm2174_vm9, %v7809_v42  ;;  %v7791_v25 = vadd.f32 %v11652_v45, %v7606_v55 }
0x16c7   : > { %11663 = vtanh.f32 %v7531_v7  ;;  %7962 = vmatmul.mubr.f32.gmra.mrb[188].mxu1 %v7808_v27  ;;  %v7810_v30 = vmax.f32 %v7790_v10, 0.0 }
0x16c8   : > { %v11654_v62 = vpop.eup %11653  ;;  %v7811_v41 = vmax.f32 %v7791_v25, 0.0 }
0x16c9   : > { %v11656_v59 = vpop.eup %11655  ;;  %v7792_v49 = vadd.f32 %v11654_v62, %v7762_v15 }
0x16ca   : > { %8554 = vmatprep.mubr.msk.f32.mxu1 %vm2174_vm9, %v7811_v41  ;;  %v7793_v31 = vadd.f32 %v11656_v59, %v7611_v34 }
0x16cb   : > { %7967 = vmatmul.mubr.f32.gmra.mrb[190].mxu1 %v7810_v30  ;;  %v7812_v57 = vmax.f32 %v7792_v49, 0.0 }
0x16cc   : > { %v11658_v28 = vpop.eup %11657  ;;  %v7813_v37 = vmax.f32 %v7793_v31, 0.0 }
0x16cd   : > { %v11660_v18 = vpop.eup %11659  ;;  %v7794_v12 = vadd.f32 %v11658_v28, %v7768_v33 }
0x16ce   : > { %8555 = vmatprep.mubr.msk.f32.mxu1 %vm2174_vm9, %v7813_v37  ;;  %v7795_v29 = vadd.f32 %v11660_v18, %v7616_v40 }
0x16cf   : > { %7972 = vmatmul.mubr.f32.gmra.mrb[192].mxu1 %v7812_v57  ;;  %v7814_v9 = vmax.f32 %v7794_v12, 0.0 }
0x16d0   : > { %v11662_v46 = vpop.eup %11661  ;;  %v7815_v5 = vmax.f32 %v7795_v29, 0.0 }
0x16d1   : > { %v11664_v60 = vpop.eup %11663  ;;  %v7796_v3 = vadd.f32 %v11662_v46, %v7774_v16 }
0x16d2   : > { %8556 = vmatprep.mubr.msk.f32.mxu1 %vm2174_vm9, %v7815_v5  ;;  %v7797_v47 = vadd.f32 %v11664_v60, %v7621_v50 }
0x16d3   : > { %7977 = vmatmul.mubr.f32.gmra.mrb[194].mxu1 %v7814_v9  ;;  %v7816_v19 = vmax.f32 %v7796_v3, 0.0 }
0x16d4   : > { %v7817_v52 = vmax.f32 %v7797_v47, 0.0 }
0x16d6   : > { %8557 = vmatprep.mubr.msk.f32.mxu1 %vm2174_vm9, %v7817_v52 }
0x16d7   : > { %7982 = vmatmul.mubr.f32.gmra.mrb[196].mxu1 %v7816_v19 }
0x1786   : > { %v7938_v17 = vpop.f32.mrb[178].mxu1 }
0x1787   : > { %v7939_v0 = vadd.f32 %v8547_v61, %v7938_v17  ;;  %v7940_v51 = vpop.f32.mrb[179].mxu1 }
0x1789   : > { %7987 = vst.msk [vmem:[%s14547_s0] sm:$0xff] %vm2408_vm10, %v7939_v0 }
0x178a   : > { %v7943_v43 = vpop.f32.mrb[180].mxu1 }
0x178b   : > { %v7944_v23 = vadd.f32 %v8547_v61, %v7943_v43  ;;  %v7945_v56 = vpop.f32.mrb[181].mxu1 }
0x178d   : > { %7988 = vst.msk [vmem:[%s14547_s0 + $0x8] sm:$0xff] %vm2408_vm10, %v7944_v23 }
0x178e   : > { %v7948_v1 = vpop.f32.mrb[182].mxu1 }
0x178f   : > { %v7949_v54 = vadd.f32 %v8547_v61, %v7948_v1  ;;  %v7950_v39 = vpop.f32.mrb[183].mxu1 }
0x1791   : > { %7989 = vst.msk [vmem:[%s14547_s0 + $0x10] sm:$0xff] %vm2408_vm10, %v7949_v54 }
0x1792   : > { %v7953_v36 = vpop.f32.mrb[184].mxu1 }
0x1793   : > { %v7954_v2 = vadd.f32 %v8547_v61, %v7953_v36  ;;  %v7955_v6 = vpop.f32.mrb[185].mxu1 }
0x1795   : > { %7990 = vst.msk [vmem:[%s14547_s0 + $0x18] sm:$0xff] %vm2408_vm10, %v7954_v2 }
0x1796   : > { %v7958_v8 = vpop.f32.mrb[186].mxu1 }
0x1797   : > { %v7959_v14 = vadd.f32 %v8547_v61, %v7958_v8  ;;  %v7960_v35 = vpop.f32.mrb[187].mxu1 }
0x1799   : > { %7991 = vst.msk [vmem:[%s14547_s0 + $0x20] sm:$0xff] %vm2408_vm10, %v7959_v14 }
0x179a   : > { %v7963_v13 = vpop.f32.mrb[188].mxu1 }
0x179b   : > { %v7964_v58 = vadd.f32 %v8547_v61, %v7963_v13  ;;  %v7965_v55 = vpop.f32.mrb[189].mxu1 }
0x179d   : > { %7992 = vst.msk [vmem:[%s14547_s0 + $0x28] sm:$0xff] %vm2408_vm10, %v7964_v58 }
0x179e   : > { %v7968_v24 = vpop.f32.mrb[190].mxu1 }
0x179f   : > { %v7969_v48 = vadd.f32 %v8547_v61, %v7968_v24  ;;  %v7970_v21 = vpop.f32.mrb[191].mxu1 }
0x17a1   : > { %7993 = vst.msk [vmem:[%s14547_s0 + $0x30] sm:$0xff] %vm2408_vm10, %v7969_v48 }
0x17a2   : > { %v7973_v11 = vpop.f32.mrb[192].mxu1 }
0x17a3   : > { %v7974_v22 = vadd.f32 %v8547_v61, %v7973_v11  ;;  %v7975_v32 = vpop.f32.mrb[193].mxu1 }
0x17a5   : > { %7994 = vst.msk [vmem:[%s14547_s0 + $0x38] sm:$0xff] %vm2408_vm10, %v7974_v22 }
0x17a6   : > { %v7978_v63 = vpop.f32.mrb[194].mxu1 }
0x17a7   : > { %v7979_v26 = vadd.f32 %v8547_v61, %v7978_v63  ;;  %v7980_v53 = vpop.f32.mrb[195].mxu1 }
0x17a9   : > { %7995 = vst.msk [vmem:[%s14547_s0 + $0x40] sm:$0xff] %vm2408_vm10, %v7979_v26 }
0x17aa   : > { %v7983_v44 = vpop.f32.mrb[196].mxu1 }
0x17ab   : > { %v7984_v20 = vadd.f32 %v8547_v61, %v7983_v44  ;;  %v7985_v34 = vpop.f32.mrb[197].mxu1 }
0x17ad   : > { %7996 = vst.msk [vmem:[%s14547_s0 + $0x48] sm:$0xff] %vm2408_vm10, %v7984_v20 }
0x17ae PF: > { %p83_p0 = scmp.ge.s32.totalorder %s12373_s8, 4   ;;  %s14718_s15 = smov %s11961_s16 }
0x17af   : > { %s14719_s16 = smov %s11965_s18  ;;  %s14720_s18 = smov %s12385_s9 }
0x17b0   : > { %s14721_s22 = smov %s12373_s8  ;;  %85 = sbr.rel (!%p83_p0) target bundleno = 66 (0x42), region = 262 }
0x17b7   :  { %8018 = vsyncpa [#allocation3], 1 }
0x17b8   :  { %8020 = vsyncpa [#allocation3 + $0x1], 1 }
0x17b9   :  { %8021 = vsyncpa [#allocation5], 1 }
0x17ba   :  { %8022 = vsyncpa [#allocation8], 1 }
0x17bb   :  { %8023 = vsyncpa [#allocation11], 1 }
0x17bc   :  { %8024 = vsyncpa [#allocation14], 1 }

</bundles_post_ra>
